<compile_context>
chip_gen: v6e
topology: v6e:2x2x1
jax: 0.10.0
libtpu: 0.0.40
codegen_flags: <defaults>
</compile_context>

<pallas_src>
import math
from functools import partial

import jax
import jax.numpy as jnp
from jax.experimental import pallas as pl
from jax.experimental.pallas import tpu as pltpu


# ---------------------------------------------------------------------------
# math helpers (pure jnp -> usable inside the kernel and in the reference)
# ---------------------------------------------------------------------------
def _layer_norm(x, gamma, beta, eps=1e-5):
    # x: (N, D); gamma/beta: (1, D); biased variance like torch.nn.LayerNorm
    mean = jnp.mean(x, axis=-1, keepdims=True)
    var = jnp.mean(jnp.square(x - mean), axis=-1, keepdims=True)
    return (x - mean) * jax.lax.rsqrt(var + eps) * gamma + beta


def _gelu(x, approx=False):
    if approx:
        # tanh approximation routes most of the work to the EUP (useful on v5e)
        return jax.nn.gelu(x, approximate=True)
    # exact erf-based gelu (matches the module's `gelu`)
    return x * 0.5 * (1.0 + jax.lax.erf(x / math.sqrt(2.0)))


# ---------------------------------------------------------------------------
# Pallas kernel: full decoder layer for `batch_block` batch elements per step
# ---------------------------------------------------------------------------
def _decoder_layer_kernel(
        x_ref, mem_ref, tmask_ref, skpad_ref, ckpad_ref,
        sa_qw, sa_qb, sa_kw, sa_kb, sa_vw, sa_vb, sa_ow, sa_ob,
        ca_qw, ca_qb, ca_kw, ca_kb, ca_vw, ca_vb, ca_ow, ca_ob,
        n1_g, n1_b, n2_g, n2_b, n3_g, n3_b,
        f1_w, f1_b, f2_w, f2_b,
        out_ref, *, n_heads, scale, ffn_chunk, qk_trans_a, approx_gelu):
    bblk, lq, d_model = x_ref.shape
    lm = mem_ref.shape[1]
    hd = d_model // n_heads
    g = bblk * n_heads                      # head-batch for the attention matmuls

    x = x_ref[...].reshape(bblk * lq, d_model)      # (B*Lq, D) f32
    mem = mem_ref[...].reshape(bblk * lm, d_model)  # (B*Lm, D) f32

    def proj(h, w_ref, b_ref):
        # bf16 operands on the MXU, f32 accumulation, f32 bias add.
        return jnp.dot(h.astype(jnp.bfloat16), w_ref[...],
                       preferred_element_type=jnp.float32) + b_ref[...]

    def split_heads_t(p, length):
        # (bblk*L, D) -> (bblk*H, hd, L).  Leading-dim reshapes plus exactly one
        # batched minor-dim (XLU) transpose; the lane dim is never split.
        p = jnp.swapaxes(p.reshape(bblk, length, d_model), 1, 2)  # (bblk, D, L)
        return p.reshape(g, hd, length)

    def attention(q_in, kv_in, l_k, kpad, shared_bias_ref,
                  qw, qb, kw, kb, vw, vb, ow, ob):
        q = proj(q_in, qw, qb) * scale      # 1/sqrt(hd) applied in f32
        k = proj(kv_in, kw, kb)
        v = proj(kv_in, vw, vb)
        qt = split_heads_t(q, lq)           # (g, hd, Lq)
        kt = split_heads_t(k, l_k)          # (g, hd, Lk)
        vt = split_heads_t(v, l_k)          # (g, hd, Lk)

        if qk_trans_a:
            # lhs-transposed batched matmul: contract head_dim (dim 1 of both)
            s = jnp.einsum('ghq,ghk->gqk',
                           qt.astype(jnp.bfloat16), kt.astype(jnp.bfloat16),
                           preferred_element_type=jnp.float32)    # (g, Lq, Lk)
        else:
            # conservative path: standard NN batched matmul (one extra transpose)
            qh = jnp.swapaxes(qt, 1, 2)                           # (g, Lq, hd)
            s = jnp.einsum('gqh,ghk->gqk',
                           qh.astype(jnp.bfloat16), kt.astype(jnp.bfloat16),
                           preferred_element_type=jnp.float32)

        # additive masks: key padding broadcast over heads/queries, plus the
        # shared (Lq, Lq) target mask.  Leading-dim reshapes only (free).
        s = s.reshape(bblk, n_heads, lq, l_k) + kpad[:, None]
        if shared_bias_ref is not None:
            s = s + shared_bias_ref[...]
        s = s.reshape(g, lq, l_k)

        # softmax in f32 (-inf masking follows torch semantics: a fully masked
        # row produces NaN, exactly like nn.functional.softmax)
        s = s - jnp.max(s, axis=-1, keepdims=True)
        p = jnp.exp(s)
        p = p * pl.reciprocal(jnp.sum(p, axis=-1, keepdims=True), approx=True)

        # rhs-transposed batched matmul -> (g, hd, Lq): the head merge then
        # needs a single minor-dim transpose instead of two.
        # TODO(synk): for BART-large on v7x, tile this over Lk with an online
        # softmax so the (g, Lq, Lk) score block is bounded.
        o = jnp.einsum('gdk,gqk->gdq',
                       vt.astype(jnp.bfloat16), p.astype(jnp.bfloat16),
                       preferred_element_type=jnp.float32)        # (g, hd, Lq)
        o = o.reshape(bblk, d_model, lq)                  # leading-dim reshape
        o = jnp.swapaxes(o, 1, 2).reshape(bblk * lq, d_model)
        return proj(o, ow, ob)

    def ffn(h_in):
        # fc1 / GELU / fc2 chunked over the (padded) hidden dim so the f32 fc1
        # intermediate never exceeds (bblk*Lq, ffn_chunk); fc2 partials are
        # accumulated into a (bblk*Lq, D) f32 accumulator.
        hb = h_in.astype(jnp.bfloat16)
        f_total = f1_w.shape[1]
        acc = jnp.zeros((bblk * lq, d_model), jnp.float32)
        for c0 in range(0, f_total, ffn_chunk):
            cw = min(ffn_chunk, f_total - c0)
            hc = jnp.dot(hb, f1_w[:, c0:c0 + cw],
                         preferred_element_type=jnp.float32) + f1_b[:, c0:c0 + cw]
            hc = _gelu(hc, approx_gelu)
            acc = acc + jnp.dot(hc.astype(jnp.bfloat16), f2_w[c0:c0 + cw, :],
                                preferred_element_type=jnp.float32)
        return acc + f2_b[...]

    skpad = skpad_ref[...]     # (bblk, 1, Lq) additive key-padding (self-attn)
    ckpad = ckpad_ref[...]     # (bblk, 1, Lm) additive key-padding (cross-attn)

    # ---- self attention + residual + norm1 ----
    sa = attention(x, x, lq, skpad, tmask_ref,
                   sa_qw, sa_qb, sa_kw, sa_kb, sa_vw, sa_vb, sa_ow, sa_ob)
    x = _layer_norm(x + sa, n1_g[...], n1_b[...])

    # ---- cross attention + residual + norm2 ----
    ca = attention(x, mem, lm, ckpad, None,
                   ca_qw, ca_qb, ca_kw, ca_kb, ca_vw, ca_vb, ca_ow, ca_ob)
    x = _layer_norm(x + ca, n2_g[...], n2_b[...])

    # ---- feed-forward + residual + norm3 ----
    x = _layer_norm(x + ffn(x), n3_g[...], n3_b[...])

    out_ref[...] = x.reshape(bblk, lq, d_model).astype(out_ref.dtype)


# ---------------------------------------------------------------------------
# wrapper helpers
# ---------------------------------------------------------------------------
def _vmem_capacity_bytes():
    try:
        cap = getattr(pltpu.get_tpu_info(), "vmem_capacity_bytes", None)
        if cap:
            return int(cap)
    except Exception:
        pass
    return 64 << 20          # conservative fallback (v7x per-TC capacity)


def _pick_batch_block(B, Lq, Lm, D, H, ffn_chunk, act_budget):
    """Largest divisor of B (<=8) whose per-step working set (scores, q/k/v
    copies, FFN chunk, pipelined I/O) fits the activation budget, keeping
    >=2 grid steps so megacore / pipelining still has work to split."""
    Lmax = max(Lq, Lm)
    best = 1
    for cand in range(1, min(B, 8) + 1):
        if B % cand:
            continue
        scores = cand * H * Lq * Lmax * 4                  # f32 attention scores
        qkv = 9 * cand * Lmax * D * 4                      # q/k/v f32 + bf16/transposed copies
        ffn = cand * Lq * (2 * ffn_chunk + D) * 4          # fc1 chunk + fc2 accumulator
        io = 4 * cand * ((Lq + Lm) * D + Lq + Lm) * 4      # double-buffered activations
        if scores + qkv + ffn + io > act_budget:
            continue
        if B >= 2 and B // cand < 2:
            continue
        best = cand
    return best


# ---------------------------------------------------------------------------
# wrapper
# ---------------------------------------------------------------------------
def bart_decoder_layer(x, memory, params, tgt_mask=None,
                       memory_key_padding_mask=None,
                       tgt_key_padding_mask=None, *,
                       n_heads, batch_block=None, ffn_chunk=None,
                       approx_gelu=False):
    Lq, B, D = x.shape
    Lm = memory.shape[0]
    assert D % n_heads == 0
    head_dim = D // n_heads
    scale = 1.0 / math.sqrt(head_dim)

    p = params
    F = p['fc1_w'].shape[0]
    # Pad the ffn hidden dim to a lane-dense multiple of 128.  Exactly
    # semantics-preserving: padded fc1 columns/bias are 0 -> gelu(0)=0 -> padded
    # fc2 rows contribute nothing.
    F_pad = max(128, ((F + 127) // 128) * 128)
    if ffn_chunk is None:
        ffn_chunk = F_pad if F_pad <= 1024 else 512
    # TODO(synk): d_model is not padded (it would change LayerNorm statistics);
    # production d_model (e.g. 1024) should already be a multiple of 128.

    xb = jnp.transpose(x, (1, 0, 2)).astype(jnp.float32)       # (B, Lq, D)
    mb = jnp.transpose(memory, (1, 0, 2)).astype(jnp.float32)  # (B, Lm, D)

    # Masks: a single shared (Lq, Lq) additive target mask (grid-invariant) and
    # per-batch (B, 1, L) additive key-padding rows.  No (B, Lq, Lq) tensor is
    # ever built or DMA'd.
    tm = (jnp.zeros((Lq, Lq), jnp.float32) if tgt_mask is None
          else jnp.asarray(tgt_mask, jnp.float32))
    tk = (jnp.zeros((B, Lq), bool) if tgt_key_padding_mask is None
          else jnp.asarray(tgt_key_padding_mask, bool))
    mk = (jnp.zeros((B, Lm), bool) if memory_key_padding_mask is None
          else jnp.asarray(memory_key_padding_mask, bool))
    skpad = jnp.where(tk, -jnp.inf, 0.0).reshape(B, 1, Lq).astype(jnp.float32)
    ckpad = jnp.where(mk, -jnp.inf, 0.0).reshape(B, 1, Lm).astype(jnp.float32)

    def mw(w):   # matmul weight: torch (out,in) -> (in,out), bf16 for the MXU
        return jnp.asarray(w, jnp.float32).T.astype(jnp.bfloat16)

    def b2(v):   # 1D param -> (1, N) f32
        return jnp.asarray(v, jnp.float32).reshape(1, -1)

    f1w = jnp.zeros((D, F_pad), jnp.float32).at[:, :F].set(
        jnp.asarray(p['fc1_w'], jnp.float32).T).astype(jnp.bfloat16)
    f1b = jnp.zeros((1, F_pad), jnp.float32).at[:, :F].set(
        jnp.asarray(p['fc1_b'], jnp.float32))
    f2w = jnp.zeros((F_pad, D), jnp.float32).at[:F, :].set(
        jnp.asarray(p['fc2_w'], jnp.float32).T).astype(jnp.bfloat16)
    f2b = b2(p['fc2_b'])

    weights = [
        mw(p['sa_q_w']), b2(p['sa_q_b']), mw(p['sa_k_w']), b2(p['sa_k_b']),
        mw(p['sa_v_w']), b2(p['sa_v_b']), mw(p['sa_o_w']), b2(p['sa_o_b']),
        mw(p['ca_q_w']), b2(p['ca_q_b']), mw(p['ca_k_w']), b2(p['ca_k_b']),
        mw(p['ca_v_w']), b2(p['ca_v_b']), mw(p['ca_o_w']), b2(p['ca_o_b']),
        b2(p['n1_g']), b2(p['n1_b']), b2(p['n2_g']), b2(p['n2_b']),
        b2(p['n3_g']), b2(p['n3_b']),
        f1w, f1b, f2w, f2b,
    ]
    w_bytes = sum(int(w.size) * w.dtype.itemsize for w in weights) + tm.size * 4

    # Per-generation VMEM budget with headroom (never the full physical VMEM:
    # ~51 MiB on v7x, ~102 MiB on v5e/v6e).
    vmem_cap = int(0.8 * _vmem_capacity_bytes())
    act_budget = max(vmem_cap - w_bytes - (8 << 20), 4 << 20)
    bblk = (_pick_batch_block(B, Lq, Lm, D, n_heads, ffn_chunk, act_budget)
            if batch_block is None else batch_block)
    assert B % bblk == 0

    Lmax = max(Lq, Lm)
    act_est = (bblk * n_heads * Lq * Lmax * 4 + 9 * bblk * Lmax * D * 4
               + bblk * Lq * (2 * ffn_chunk + D) * 4
               + 4 * bblk * ((Lq + Lm) * D + Lq + Lm) * 4)
    vmem_limit = int(min(max(w_bytes + act_est + (8 << 20), 32 << 20), vmem_cap))

    # advisory cost estimate so XLA schedules surrounding HLO around the kernel
    flops = 2 * B * (6 * Lq * D * D + 2 * Lm * D * D
                     + 2 * Lq * Lq * D + 2 * Lq * Lm * D + 2 * Lq * D * F_pad)
    transc = B * (n_heads * Lq * (Lq + Lm) + Lq * F_pad + 3 * Lq)
    bytes_acc = (xb.size + mb.size + skpad.size + ckpad.size + B * Lq * D) * 4 \
        + w_bytes
    cost = pl.CostEstimate(flops=int(flops), transcendentals=int(transc),
                           bytes_accessed=int(bytes_acc))

    def _const_spec(shape, buffered):
        idx = lambda b: (0,) * len(shape)          # grid-invariant block
        if buffered:
            # single VMEM buffer: Pallas skips re-DMA when the block index is
            # unchanged, so Buffered(1) halves weight residency at no cost.
            return pl.BlockSpec(shape, idx, pipeline_mode=pl.Buffered(1))
        return pl.BlockSpec(shape, idx)

    def run(buffered, qk_trans_a):
        in_specs = [
            pl.BlockSpec((bblk, Lq, D), lambda b: (b, 0, 0)),     # x
            pl.BlockSpec((bblk, Lm, D), lambda b: (b, 0, 0)),     # memory
            _const_spec((Lq, Lq), buffered),                      # shared tgt mask
            pl.BlockSpec((bblk, 1, Lq), lambda b: (b, 0, 0)),     # self key-pad
            pl.BlockSpec((bblk, 1, Lm), lambda b: (b, 0, 0)),     # cross key-pad
        ] + [_const_spec(w.shape, buffered) for w in weights]
        return pl.pallas_call(
            partial(_decoder_layer_kernel, n_heads=n_heads, scale=scale,
                    ffn_chunk=ffn_chunk, qk_trans_a=qk_trans_a,
                    approx_gelu=approx_gelu),
            out_shape=jax.ShapeDtypeStruct((B, Lq, D), jnp.float32),
            grid=(B // bblk,),
            in_specs=in_specs,
            out_specs=pl.BlockSpec((bblk, Lq, D), lambda b: (b, 0, 0)),
            compiler_params=pltpu.CompilerParams(
                dimension_semantics=("parallel",),   # batch steps independent
                vmem_limit_bytes=vmem_limit),
            cost_estimate=cost,
        )(xb, mb, tm, skpad, ckpad, *weights)

    # Degradation ladder: fully optimized first; fall back if this jax/Mosaic
    # build rejects Buffered(1) weight specs or the lhs-transposed QK matmul.
    try:
        out = run(buffered=True, qk_trans_a=True)
    except Exception:
        try:
            out = run(buffered=True, qk_trans_a=False)
        except Exception:
            out = run(buffered=False, qk_trans_a=False)

    return jnp.transpose(out, (1, 0, 2))            # back to (Lq, B, D)


# ---------------------------------------------------------------------------
# deterministic parameter init (nn.Linear-style uniform; LayerNorm = 1/0)
# ---------------------------------------------------------------------------
def _linear_init(key, out_f, in_f):
    kw, kb = jax.random.split(key)
    bound = 1.0 / math.sqrt(in_f)
    w = jax.random.uniform(kw, (out_f, in_f), jnp.float32, -bound, bound)
    b = jax.random.uniform(kb, (out_f,), jnp.float32, -bound, bound)
    return w, b


def init_params(key, d_model, ffn_dim):
    names = ['sa_q', 'sa_k', 'sa_v', 'sa_o', 'ca_q', 'ca_k', 'ca_v', 'ca_o']
    keys = jax.random.split(key, len(names) + 2)
    p = {}
    for name, k in zip(names, keys[:len(names)]):
        w, b = _linear_init(k, d_model, d_model)
        p[name + '_w'], p[name + '_b'] = w, b
    p['fc1_w'], p['fc1_b'] = _linear_init(keys[-2], ffn_dim, d_model)
    p['fc2_w'], p['fc2_b'] = _linear_init(keys[-1], d_model, ffn_dim)
    for n in ['n1', 'n2', 'n3']:
        p[n + '_g'] = jnp.ones((d_model,), jnp.float32)
        p[n + '_b'] = jnp.zeros((d_model,), jnp.float32)
    return p


# ---------------------------------------------------------------------------
# pure-JAX f32 reference (mirrors the PyTorch module exactly)
# ---------------------------------------------------------------------------
def ref_forward(x, memory, params, tgt_mask, tkpm, mkpm, n_heads):
    Lq, B, D = x.shape
    hd = D // n_heads
    p = params

    def mha(q_in, k_in, v_in, pre, attn_bias, kpm):
        wq, bq, wk, bk, wv, bv, wo, bo = pre
        Q = q_in @ wq.T + bq
        K = k_in @ wk.T + bk
        V = v_in @ wv.T + bv
        outs = []
        for h in range(n_heads):
            sl = slice(h * hd, (h + 1) * hd)
            s = (Q[:, sl] @ K[:, sl].T) / math.sqrt(hd)
            if kpm is not None:
                s = jnp.where(kpm[None, :], -jnp.inf, s)
            if attn_bias is not None:
                s = s + attn_bias
            pr = jax.nn.softmax(s, axis=-1)
            outs.append(pr @ V[:, sl])
        return jnp.concatenate(outs, -1) @ wo.T + bo

    sa_pre = (p['sa_q_w'], p['sa_q_b'], p['sa_k_w'], p['sa_k_b'],
              p['sa_v_w'], p['sa_v_b'], p['sa_o_w'], p['sa_o_b'])
    ca_pre = (p['ca_q_w'], p['ca_q_b'], p['ca_k_w'], p['ca_k_b'],
              p['ca_v_w'], p['ca_v_b'], p['ca_o_w'], p['ca_o_b'])

    outs = []
    for b in range(B):
        xs = x[:, b, :]
        ms = memory[:, b, :]
        sa = mha(xs, xs, xs, sa_pre, tgt_mask, tkpm[b])
        xs = _layer_norm(xs + sa, p['n1_g'][None], p['n1_b'][None])
        ca = mha(xs, ms, ms, ca_pre, None, mkpm[b])
        xs = _layer_norm(xs + ca, p['n2_g'][None], p['n2_b'][None])
        h = _gelu(xs @ p['fc1_w'].T + p['fc1_b'][None])
        ff = h @ p['fc2_w'].T + p['fc2_b'][None]
        xs = _layer_norm(xs + ff, p['n3_g'][None], p['n3_b'][None])
        outs.append(xs)
    return jnp.stack(outs, axis=1)


if __name__ == "__main__":
    Lq, Lm, B, D, H, F = 8, 16, 2, 32, 4, 64

    key = jax.random.PRNGKey(0)
    kx, km, kp = jax.random.split(key, 3)
    x = jax.random.normal(kx, (Lq, B, D), jnp.float32)
    memory = jax.random.normal(km, (Lm, B, D), jnp.float32)
    params = init_params(kp, D, F)

    # causal target mask (0 on/below diagonal, -inf above), bool padding masks
    causal = jnp.where(jnp.arange(Lq)[None, :] > jnp.arange(Lq)[:, None],
                       -jnp.inf, 0.0).astype(jnp.float32)
    tkpm = jnp.zeros((B, Lq), bool).at[1, Lq - 1].set(True)
    mkpm = jnp.zeros((B, Lm), bool).at[1, Lm - 2:].set(True)

    ref = ref_forward(x, memory, params, causal, tkpm, mkpm, H)

    # exercise both grid paths: 2 steps of 1 batch and 1 step of 2 batches
    for bblk in (1, 2):
        out = bart_decoder_layer(x, memory, params,
                                 tgt_mask=causal,
                                 memory_key_padding_mask=mkpm,
                                 tgt_key_padding_mask=tkpm,
                                 n_heads=H, batch_block=bblk)
        out = jax.block_until_ready(out)
        assert out.shape == (Lq, B, D)
        assert not bool(jnp.any(jnp.isnan(out)))
        # bf16 MXU operands (f32 accumulation) + approx softmax reciprocal vs a
        # pure-f32 reference: expect a few 1e-2 max-abs on O(1) outputs.
        err = float(jnp.max(jnp.abs(out - ref)))
        rel = float(jnp.sqrt(jnp.sum((out - ref) ** 2) / jnp.sum(ref ** 2)))
        assert rel < 3e-2, f"batch_block={bblk}: relative err {rel}"
        assert jnp.allclose(out, ref, atol=1e-1, rtol=5e-2), \
            f"batch_block={bblk}: max abs err {err}"
    print("KERNEL_OK")
</pallas_src>

<mosaic_0001>
module attributes {stable_mosaic.version = 11 : i64} {
  func.func @_decoder_layer_kernel(%arg0: i32, %arg1: memref<1x8x32xf32, #tpu.memory_space<vmem>>, %arg2: memref<1x16x32xf32, #tpu.memory_space<vmem>>, %arg3: memref<8x8xf32, #tpu.memory_space<vmem>>, %arg4: memref<1x1x8xf32, #tpu.memory_space<vmem>>, %arg5: memref<1x1x16xf32, #tpu.memory_space<vmem>>, %arg6: memref<32x32xbf16, #tpu.memory_space<vmem>>, %arg7: memref<1x32xf32, #tpu.memory_space<vmem>>, %arg8: memref<32x32xbf16, #tpu.memory_space<vmem>>, %arg9: memref<1x32xf32, #tpu.memory_space<vmem>>, %arg10: memref<32x32xbf16, #tpu.memory_space<vmem>>, %arg11: memref<1x32xf32, #tpu.memory_space<vmem>>, %arg12: memref<32x32xbf16, #tpu.memory_space<vmem>>, %arg13: memref<1x32xf32, #tpu.memory_space<vmem>>, %arg14: memref<32x32xbf16, #tpu.memory_space<vmem>>, %arg15: memref<1x32xf32, #tpu.memory_space<vmem>>, %arg16: memref<32x32xbf16, #tpu.memory_space<vmem>>, %arg17: memref<1x32xf32, #tpu.memory_space<vmem>>, %arg18: memref<32x32xbf16, #tpu.memory_space<vmem>>, %arg19: memref<1x32xf32, #tpu.memory_space<vmem>>, %arg20: memref<32x32xbf16, #tpu.memory_space<vmem>>, %arg21: memref<1x32xf32, #tpu.memory_space<vmem>>, %arg22: memref<1x32xf32, #tpu.memory_space<vmem>>, %arg23: memref<1x32xf32, #tpu.memory_space<vmem>>, %arg24: memref<1x32xf32, #tpu.memory_space<vmem>>, %arg25: memref<1x32xf32, #tpu.memory_space<vmem>>, %arg26: memref<1x32xf32, #tpu.memory_space<vmem>>, %arg27: memref<1x32xf32, #tpu.memory_space<vmem>>, %arg28: memref<32x128xbf16, #tpu.memory_space<vmem>>, %arg29: memref<1x128xf32, #tpu.memory_space<vmem>>, %arg30: memref<128x32xbf16, #tpu.memory_space<vmem>>, %arg31: memref<1x32xf32, #tpu.memory_space<vmem>>, %arg32: memref<1x8x32xf32, #tpu.memory_space<vmem>>) attributes {dimension_semantics = [#tpu.dimension_semantics<parallel>], iteration_bounds = array<i64: 2>, scalar_prefetch = 0 : i64, scratch_operands = 0 : i64, tpu.core_type = #tpu.core_type<tc>, window_params = [{transform_indices = @transform_0, window_bounds = array<i64: 1, 8, 32>}, {transform_indices = @transform_1, window_bounds = array<i64: 1, 16, 32>}, {pipeline_mode = #tpu.pipeline_mode<synchronous>, transform_indices = @transform_2, window_bounds = array<i64: 8, 8>}, {transform_indices = @transform_3, window_bounds = array<i64: 1, 1, 8>}, {transform_indices = @transform_4, window_bounds = array<i64: 1, 1, 16>}, {pipeline_mode = #tpu.pipeline_mode<synchronous>, transform_indices = @transform_5, window_bounds = array<i64: 32, 32>}, {pipeline_mode = #tpu.pipeline_mode<synchronous>, transform_indices = @transform_6, window_bounds = array<i64: 1, 32>}, {pipeline_mode = #tpu.pipeline_mode<synchronous>, transform_indices = @transform_7, window_bounds = array<i64: 32, 32>}, {pipeline_mode = #tpu.pipeline_mode<synchronous>, transform_indices = @transform_8, window_bounds = array<i64: 1, 32>}, {pipeline_mode = #tpu.pipeline_mode<synchronous>, transform_indices = @transform_9, window_bounds = array<i64: 32, 32>}, {pipeline_mode = #tpu.pipeline_mode<synchronous>, transform_indices = @transform_10, window_bounds = array<i64: 1, 32>}, {pipeline_mode = #tpu.pipeline_mode<synchronous>, transform_indices = @transform_11, window_bounds = array<i64: 32, 32>}, {pipeline_mode = #tpu.pipeline_mode<synchronous>, transform_indices = @transform_12, window_bounds = array<i64: 1, 32>}, {pipeline_mode = #tpu.pipeline_mode<synchronous>, transform_indices = @transform_13, window_bounds = array<i64: 32, 32>}, {pipeline_mode = #tpu.pipeline_mode<synchronous>, transform_indices = @transform_14, window_bounds = array<i64: 1, 32>}, {pipeline_mode = #tpu.pipeline_mode<synchronous>, transform_indices = @transform_15, window_bounds = array<i64: 32, 32>}, {pipeline_mode = #tpu.pipeline_mode<synchronous>, transform_indices = @transform_16, window_bounds = array<i64: 1, 32>}, {pipeline_mode = #tpu.pipeline_mode<synchronous>, transform_indices = @transform_17, window_bounds = array<i64: 32, 32>}, {pipeline_mode = #tpu.pipeline_mode<synchronous>, transform_indices = @transform_18, window_bounds = array<i64: 1, 32>}, {pipeline_mode = #tpu.pipeline_mode<synchronous>, transform_indices = @transform_19, window_bounds = array<i64: 32, 32>}, {pipeline_mode = #tpu.pipeline_mode<synchronous>, transform_indices = @transform_20, window_bounds = array<i64: 1, 32>}, {pipeline_mode = #tpu.pipeline_mode<synchronous>, transform_indices = @transform_21, window_bounds = array<i64: 1, 32>}, {pipeline_mode = #tpu.pipeline_mode<synchronous>, transform_indices = @transform_22, window_bounds = array<i64: 1, 32>}, {pipeline_mode = #tpu.pipeline_mode<synchronous>, transform_indices = @transform_23, window_bounds = array<i64: 1, 32>}, {pipeline_mode = #tpu.pipeline_mode<synchronous>, transform_indices = @transform_24, window_bounds = array<i64: 1, 32>}, {pipeline_mode = #tpu.pipeline_mode<synchronous>, transform_indices = @transform_25, window_bounds = array<i64: 1, 32>}, {pipeline_mode = #tpu.pipeline_mode<synchronous>, transform_indices = @transform_26, window_bounds = array<i64: 1, 32>}, {pipeline_mode = #tpu.pipeline_mode<synchronous>, transform_indices = @transform_27, window_bounds = array<i64: 32, 128>}, {pipeline_mode = #tpu.pipeline_mode<synchronous>, transform_indices = @transform_28, window_bounds = array<i64: 1, 128>}, {pipeline_mode = #tpu.pipeline_mode<synchronous>, transform_indices = @transform_29, window_bounds = array<i64: 128, 32>}, {pipeline_mode = #tpu.pipeline_mode<synchronous>, transform_indices = @transform_30, window_bounds = array<i64: 1, 32>}, {transform_indices = @transform_31, window_bounds = array<i64: 1, 8, 32>}]} {
    %c0 = arith.constant 0 : index
    %c0_0 = arith.constant 0 : index
    %c0_1 = arith.constant 0 : index
    %0 = vector.load %arg1[%c0, %c0_0, %c0_1] : memref<1x8x32xf32, #tpu.memory_space<vmem>>, vector<1x8x32xf32>
    %1 = vector.shape_cast %0 : vector<1x8x32xf32> to vector<8x32xf32>
    %c0_2 = arith.constant 0 : index
    %c0_3 = arith.constant 0 : index
    %c0_4 = arith.constant 0 : index
    %2 = vector.load %arg2[%c0_2, %c0_3, %c0_4] : memref<1x16x32xf32, #tpu.memory_space<vmem>>, vector<1x16x32xf32>
    %3 = vector.shape_cast %2 : vector<1x16x32xf32> to vector<16x32xf32>
    %c0_5 = arith.constant 0 : index
    %c0_6 = arith.constant 0 : index
    %c0_7 = arith.constant 0 : index
    %4 = vector.load %arg4[%c0_5, %c0_6, %c0_7] : memref<1x1x8xf32, #tpu.memory_space<vmem>>, vector<1x1x8xf32>
    %c0_8 = arith.constant 0 : index
    %c0_9 = arith.constant 0 : index
    %c0_10 = arith.constant 0 : index
    %5 = vector.load %arg5[%c0_8, %c0_9, %c0_10] : memref<1x1x16xf32, #tpu.memory_space<vmem>>, vector<1x1x16xf32>
    %6 = arith.truncf %1 : vector<8x32xf32> to vector<8x32xbf16>
    %c0_11 = arith.constant 0 : index
    %c0_12 = arith.constant 0 : index
    %7 = vector.load %arg6[%c0_11, %c0_12] : memref<32x32xbf16, #tpu.memory_space<vmem>>, vector<32x32xbf16>
    %cst = arith.constant dense<0.000000e+00> : vector<8x32xf32>
    %8 = tpu.matmul %6, %7, %cst {dimension_numbers = #tpu.dot_dimension_numbers<[1], [0], [0], [1], [0, 0, 1, 1], [], []>} : vector<8x32xbf16>, vector<32x32xbf16>, vector<8x32xf32> -> vector<8x32xf32>
    %c0_13 = arith.constant 0 : index
    %c0_14 = arith.constant 0 : index
    %9 = vector.load %arg7[%c0_13, %c0_14] : memref<1x32xf32, #tpu.memory_space<vmem>>, vector<1x32xf32>
    %10 = vector.broadcast %9 : vector<1x32xf32> to vector<8x32xf32>
    %11 = arith.addf %8, %10 : vector<8x32xf32>
    %cst_15 = arith.constant 0.353553385 : f32
    %12 = vector.broadcast %cst_15 : f32 to vector<8x32xf32>
    %13 = arith.mulf %11, %12 : vector<8x32xf32>
    %14 = arith.truncf %1 : vector<8x32xf32> to vector<8x32xbf16>
    %c0_16 = arith.constant 0 : index
    %c0_17 = arith.constant 0 : index
    %15 = vector.load %arg8[%c0_16, %c0_17] : memref<32x32xbf16, #tpu.memory_space<vmem>>, vector<32x32xbf16>
    %cst_18 = arith.constant dense<0.000000e+00> : vector<8x32xf32>
    %16 = tpu.matmul %14, %15, %cst_18 {dimension_numbers = #tpu.dot_dimension_numbers<[1], [0], [0], [1], [0, 0, 1, 1], [], []>} : vector<8x32xbf16>, vector<32x32xbf16>, vector<8x32xf32> -> vector<8x32xf32>
    %c0_19 = arith.constant 0 : index
    %c0_20 = arith.constant 0 : index
    %17 = vector.load %arg9[%c0_19, %c0_20] : memref<1x32xf32, #tpu.memory_space<vmem>>, vector<1x32xf32>
    %18 = vector.broadcast %17 : vector<1x32xf32> to vector<8x32xf32>
    %19 = arith.addf %16, %18 : vector<8x32xf32>
    %20 = arith.truncf %1 : vector<8x32xf32> to vector<8x32xbf16>
    %c0_21 = arith.constant 0 : index
    %c0_22 = arith.constant 0 : index
    %21 = vector.load %arg10[%c0_21, %c0_22] : memref<32x32xbf16, #tpu.memory_space<vmem>>, vector<32x32xbf16>
    %cst_23 = arith.constant dense<0.000000e+00> : vector<8x32xf32>
    %22 = tpu.matmul %20, %21, %cst_23 {dimension_numbers = #tpu.dot_dimension_numbers<[1], [0], [0], [1], [0, 0, 1, 1], [], []>} : vector<8x32xbf16>, vector<32x32xbf16>, vector<8x32xf32> -> vector<8x32xf32>
    %c0_24 = arith.constant 0 : index
    %c0_25 = arith.constant 0 : index
    %23 = vector.load %arg11[%c0_24, %c0_25] : memref<1x32xf32, #tpu.memory_space<vmem>>, vector<1x32xf32>
    %24 = vector.broadcast %23 : vector<1x32xf32> to vector<8x32xf32>
    %25 = arith.addf %22, %24 : vector<8x32xf32>
    %26 = vector.shape_cast %13 : vector<8x32xf32> to vector<1x8x32xf32>
    %27 = tpu.transpose %26, [0, 2, 1] : vector<1x8x32xf32> -> vector<1x32x8xf32>
    %28 = vector.shape_cast %27 : vector<1x32x8xf32> to vector<4x8x8xf32>
    %29 = vector.shape_cast %19 : vector<8x32xf32> to vector<1x8x32xf32>
    %30 = tpu.transpose %29, [0, 2, 1] : vector<1x8x32xf32> -> vector<1x32x8xf32>
    %31 = vector.shape_cast %30 : vector<1x32x8xf32> to vector<4x8x8xf32>
    %32 = vector.shape_cast %25 : vector<8x32xf32> to vector<1x8x32xf32>
    %33 = tpu.transpose %32, [0, 2, 1] : vector<1x8x32xf32> -> vector<1x32x8xf32>
    %34 = vector.shape_cast %33 : vector<1x32x8xf32> to vector<4x8x8xf32>
    %35 = arith.truncf %28 : vector<4x8x8xf32> to vector<4x8x8xbf16>
    %36 = arith.truncf %31 : vector<4x8x8xf32> to vector<4x8x8xbf16>
    "tpu.trace_start"() <{level = 10 : i32, message = "ghq,ghk->gqk"}> : () -> ()
    %cst_26 = arith.constant dense<0.000000e+00> : vector<4x8x8xf32>
    %37 = tpu.matmul %35, %36, %cst_26 {dimension_numbers = #tpu.dot_dimension_numbers<[1], [1], [2], [2], [0, 0, 0, 2, 1, 2], [0], [0]>} : vector<4x8x8xbf16>, vector<4x8x8xbf16>, vector<4x8x8xf32> -> vector<4x8x8xf32>
    "tpu.trace_stop"() : () -> ()
    %38 = vector.shape_cast %37 : vector<4x8x8xf32> to vector<1x4x8x8xf32>
    %39 = vector.shape_cast %4 : vector<1x1x8xf32> to vector<1x1x1x8xf32>
    %40 = vector.broadcast %39 : vector<1x1x1x8xf32> to vector<1x4x8x8xf32>
    %41 = arith.addf %38, %40 : vector<1x4x8x8xf32>
    %c0_27 = arith.constant 0 : index
    %c0_28 = arith.constant 0 : index
    %42 = vector.load %arg3[%c0_27, %c0_28] : memref<8x8xf32, #tpu.memory_space<vmem>>, vector<8x8xf32>
    %43 = vector.shape_cast %42 : vector<8x8xf32> to vector<1x1x8x8xf32>
    %44 = vector.broadcast %43 : vector<1x1x8x8xf32> to vector<1x4x8x8xf32>
    %45 = arith.addf %41, %44 : vector<1x4x8x8xf32>
    %46 = vector.shape_cast %45 : vector<1x4x8x8xf32> to vector<4x8x8xf32>
    %cst_29 = arith.constant dense<0xFF800000> : vector<4x8xf32>
    %47 = vector.multi_reduction <maximumf>, %46, %cst_29 [2] : vector<4x8x8xf32> to vector<4x8xf32>
    %48 = vector.shape_cast %47 : vector<4x8xf32> to vector<4x8x1xf32>
    %49 = vector.broadcast %48 : vector<4x8x1xf32> to vector<4x8x8xf32>
    %50 = arith.subf %46, %49 : vector<4x8x8xf32>
    %51 = math.exp %50 : vector<4x8x8xf32>
    %cst_30 = arith.constant dense<0.000000e+00> : vector<4x8xf32>
    %52 = vector.multi_reduction <add>, %51, %cst_30 [2] : vector<4x8x8xf32> to vector<4x8xf32>
    %53 = vector.shape_cast %52 : vector<4x8xf32> to vector<4x8x1xf32>
    %54 = tpu.reciprocal %53 {approx = true} : vector<4x8x1xf32> -> vector<4x8x1xf32>
    %55 = vector.broadcast %54 : vector<4x8x1xf32> to vector<4x8x8xf32>
    %56 = arith.mulf %51, %55 : vector<4x8x8xf32>
    %57 = arith.truncf %34 : vector<4x8x8xf32> to vector<4x8x8xbf16>
    %58 = arith.truncf %56 : vector<4x8x8xf32> to vector<4x8x8xbf16>
    "tpu.trace_start"() <{level = 10 : i32, message = "gdk,gqk->gdq"}> : () -> ()
    %cst_31 = arith.constant dense<0.000000e+00> : vector<4x8x8xf32>
    %59 = tpu.matmul %57, %58, %cst_31 {dimension_numbers = #tpu.dot_dimension_numbers<[2], [2], [1], [1], [0, 0, 0, 1, 1, 1], [0], [0]>} : vector<4x8x8xbf16>, vector<4x8x8xbf16>, vector<4x8x8xf32> -> vector<4x8x8xf32>
    "tpu.trace_stop"() : () -> ()
    %60 = vector.shape_cast %59 : vector<4x8x8xf32> to vector<1x32x8xf32>
    %61 = tpu.transpose %60, [0, 2, 1] : vector<1x32x8xf32> -> vector<1x8x32xf32>
    %62 = vector.shape_cast %61 : vector<1x8x32xf32> to vector<8x32xf32>
    %63 = arith.truncf %62 : vector<8x32xf32> to vector<8x32xbf16>
    %c0_32 = arith.constant 0 : index
    %c0_33 = arith.constant 0 : index
    %64 = vector.load %arg12[%c0_32, %c0_33] : memref<32x32xbf16, #tpu.memory_space<vmem>>, vector<32x32xbf16>
    %cst_34 = arith.constant dense<0.000000e+00> : vector<8x32xf32>
    %65 = tpu.matmul %63, %64, %cst_34 {dimension_numbers = #tpu.dot_dimension_numbers<[1], [0], [0], [1], [0, 0, 1, 1], [], []>} : vector<8x32xbf16>, vector<32x32xbf16>, vector<8x32xf32> -> vector<8x32xf32>
    %c0_35 = arith.constant 0 : index
    %c0_36 = arith.constant 0 : index
    %66 = vector.load %arg13[%c0_35, %c0_36] : memref<1x32xf32, #tpu.memory_space<vmem>>, vector<1x32xf32>
    %67 = vector.broadcast %66 : vector<1x32xf32> to vector<8x32xf32>
    %68 = arith.addf %65, %67 : vector<8x32xf32>
    %69 = arith.addf %1, %68 : vector<8x32xf32>
    %c0_37 = arith.constant 0 : index
    %c0_38 = arith.constant 0 : index
    %70 = vector.load %arg22[%c0_37, %c0_38] : memref<1x32xf32, #tpu.memory_space<vmem>>, vector<1x32xf32>
    %c0_39 = arith.constant 0 : index
    %c0_40 = arith.constant 0 : index
    %71 = vector.load %arg23[%c0_39, %c0_40] : memref<1x32xf32, #tpu.memory_space<vmem>>, vector<1x32xf32>
    %cst_41 = arith.constant dense<0.000000e+00> : vector<8xf32>
    %72 = vector.multi_reduction <add>, %69, %cst_41 [1] : vector<8x32xf32> to vector<8xf32>
    %73 = vector.shape_cast %72 : vector<8xf32> to vector<8x1xf32>
    %cst_42 = arith.constant 3.200000e+01 : f32
    %74 = vector.broadcast %cst_42 : f32 to vector<8x1xf32>
    %75 = arith.divf %73, %74 : vector<8x1xf32>
    %76 = vector.broadcast %75 : vector<8x1xf32> to vector<8x32xf32>
    %77 = arith.subf %69, %76 : vector<8x32xf32>
    %78 = arith.mulf %77, %77 : vector<8x32xf32>
    %cst_43 = arith.constant dense<0.000000e+00> : vector<8xf32>
    %79 = vector.multi_reduction <add>, %78, %cst_43 [1] : vector<8x32xf32> to vector<8xf32>
    %80 = vector.shape_cast %79 : vector<8xf32> to vector<8x1xf32>
    %cst_44 = arith.constant 3.200000e+01 : f32
    %81 = vector.broadcast %cst_44 : f32 to vector<8x1xf32>
    %82 = arith.divf %80, %81 : vector<8x1xf32>
    %83 = vector.broadcast %75 : vector<8x1xf32> to vector<8x32xf32>
    %84 = arith.subf %69, %83 : vector<8x32xf32>
    %cst_45 = arith.constant 9.99999974E-6 : f32
    %85 = vector.broadcast %cst_45 : f32 to vector<8x1xf32>
    %86 = arith.addf %82, %85 : vector<8x1xf32>
    %87 = math.rsqrt %86 : vector<8x1xf32>
    %88 = vector.broadcast %87 : vector<8x1xf32> to vector<8x32xf32>
    %89 = arith.mulf %84, %88 : vector<8x32xf32>
    %90 = vector.broadcast %70 : vector<1x32xf32> to vector<8x32xf32>
    %91 = arith.mulf %89, %90 : vector<8x32xf32>
    %92 = vector.broadcast %71 : vector<1x32xf32> to vector<8x32xf32>
    %93 = arith.addf %91, %92 : vector<8x32xf32>
    %94 = arith.truncf %93 : vector<8x32xf32> to vector<8x32xbf16>
    %c0_46 = arith.constant 0 : index
    %c0_47 = arith.constant 0 : index
    %95 = vector.load %arg14[%c0_46, %c0_47] : memref<32x32xbf16, #tpu.memory_space<vmem>>, vector<32x32xbf16>
    %cst_48 = arith.constant dense<0.000000e+00> : vector<8x32xf32>
    %96 = tpu.matmul %94, %95, %cst_48 {dimension_numbers = #tpu.dot_dimension_numbers<[1], [0], [0], [1], [0, 0, 1, 1], [], []>} : vector<8x32xbf16>, vector<32x32xbf16>, vector<8x32xf32> -> vector<8x32xf32>
    %c0_49 = arith.constant 0 : index
    %c0_50 = arith.constant 0 : index
    %97 = vector.load %arg15[%c0_49, %c0_50] : memref<1x32xf32, #tpu.memory_space<vmem>>, vector<1x32xf32>
    %98 = vector.broadcast %97 : vector<1x32xf32> to vector<8x32xf32>
    %99 = arith.addf %96, %98 : vector<8x32xf32>
    %cst_51 = arith.constant 0.353553385 : f32
    %100 = vector.broadcast %cst_51 : f32 to vector<8x32xf32>
    %101 = arith.mulf %99, %100 : vector<8x32xf32>
    %102 = arith.truncf %3 : vector<16x32xf32> to vector<16x32xbf16>
    %c0_52 = arith.constant 0 : index
    %c0_53 = arith.constant 0 : index
    %103 = vector.load %arg16[%c0_52, %c0_53] : memref<32x32xbf16, #tpu.memory_space<vmem>>, vector<32x32xbf16>
    %cst_54 = arith.constant dense<0.000000e+00> : vector<16x32xf32>
    %104 = tpu.matmul %102, %103, %cst_54 {dimension_numbers = #tpu.dot_dimension_numbers<[1], [0], [0], [1], [0, 0, 1, 1], [], []>} : vector<16x32xbf16>, vector<32x32xbf16>, vector<16x32xf32> -> vector<16x32xf32>
    %c0_55 = arith.constant 0 : index
    %c0_56 = arith.constant 0 : index
    %105 = vector.load %arg17[%c0_55, %c0_56] : memref<1x32xf32, #tpu.memory_space<vmem>>, vector<1x32xf32>
    %106 = vector.broadcast %105 : vector<1x32xf32> to vector<16x32xf32>
    %107 = arith.addf %104, %106 : vector<16x32xf32>
    %108 = arith.truncf %3 : vector<16x32xf32> to vector<16x32xbf16>
    %c0_57 = arith.constant 0 : index
    %c0_58 = arith.constant 0 : index
    %109 = vector.load %arg18[%c0_57, %c0_58] : memref<32x32xbf16, #tpu.memory_space<vmem>>, vector<32x32xbf16>
    %cst_59 = arith.constant dense<0.000000e+00> : vector<16x32xf32>
    %110 = tpu.matmul %108, %109, %cst_59 {dimension_numbers = #tpu.dot_dimension_numbers<[1], [0], [0], [1], [0, 0, 1, 1], [], []>} : vector<16x32xbf16>, vector<32x32xbf16>, vector<16x32xf32> -> vector<16x32xf32>
    %c0_60 = arith.constant 0 : index
    %c0_61 = arith.constant 0 : index
    %111 = vector.load %arg19[%c0_60, %c0_61] : memref<1x32xf32, #tpu.memory_space<vmem>>, vector<1x32xf32>
    %112 = vector.broadcast %111 : vector<1x32xf32> to vector<16x32xf32>
    %113 = arith.addf %110, %112 : vector<16x32xf32>
    %114 = vector.shape_cast %101 : vector<8x32xf32> to vector<1x8x32xf32>
    %115 = tpu.transpose %114, [0, 2, 1] : vector<1x8x32xf32> -> vector<1x32x8xf32>
    %116 = vector.shape_cast %115 : vector<1x32x8xf32> to vector<4x8x8xf32>
    %117 = vector.shape_cast %107 : vector<16x32xf32> to vector<1x16x32xf32>
    %118 = tpu.transpose %117, [0, 2, 1] : vector<1x16x32xf32> -> vector<1x32x16xf32>
    %119 = vector.shape_cast %118 : vector<1x32x16xf32> to vector<4x8x16xf32>
    %120 = vector.shape_cast %113 : vector<16x32xf32> to vector<1x16x32xf32>
    %121 = tpu.transpose %120, [0, 2, 1] : vector<1x16x32xf32> -> vector<1x32x16xf32>
    %122 = vector.shape_cast %121 : vector<1x32x16xf32> to vector<4x8x16xf32>
    %123 = arith.truncf %116 : vector<4x8x8xf32> to vector<4x8x8xbf16>
    %124 = arith.truncf %119 : vector<4x8x16xf32> to vector<4x8x16xbf16>
    "tpu.trace_start"() <{level = 10 : i32, message = "ghq,ghk->gqk"}> : () -> ()
    %cst_62 = arith.constant dense<0.000000e+00> : vector<4x8x16xf32>
    %125 = tpu.matmul %123, %124, %cst_62 {dimension_numbers = #tpu.dot_dimension_numbers<[1], [1], [2], [2], [0, 0, 0, 2, 1, 2], [0], [0]>} : vector<4x8x8xbf16>, vector<4x8x16xbf16>, vector<4x8x16xf32> -> vector<4x8x16xf32>
    "tpu.trace_stop"() : () -> ()
    %126 = vector.shape_cast %125 : vector<4x8x16xf32> to vector<1x4x8x16xf32>
    %127 = vector.shape_cast %5 : vector<1x1x16xf32> to vector<1x1x1x16xf32>
    %128 = vector.broadcast %127 : vector<1x1x1x16xf32> to vector<1x4x8x16xf32>
    %129 = arith.addf %126, %128 : vector<1x4x8x16xf32>
    %130 = vector.shape_cast %129 : vector<1x4x8x16xf32> to vector<4x8x16xf32>
    %cst_63 = arith.constant dense<0xFF800000> : vector<4x8xf32>
    %131 = vector.multi_reduction <maximumf>, %130, %cst_63 [2] : vector<4x8x16xf32> to vector<4x8xf32>
    %132 = vector.shape_cast %131 : vector<4x8xf32> to vector<4x8x1xf32>
    %133 = vector.broadcast %132 : vector<4x8x1xf32> to vector<4x8x16xf32>
    %134 = arith.subf %130, %133 : vector<4x8x16xf32>
    %135 = math.exp %134 : vector<4x8x16xf32>
    %cst_64 = arith.constant dense<0.000000e+00> : vector<4x8xf32>
    %136 = vector.multi_reduction <add>, %135, %cst_64 [2] : vector<4x8x16xf32> to vector<4x8xf32>
    %137 = vector.shape_cast %136 : vector<4x8xf32> to vector<4x8x1xf32>
    %138 = tpu.reciprocal %137 {approx = true} : vector<4x8x1xf32> -> vector<4x8x1xf32>
    %139 = vector.broadcast %138 : vector<4x8x1xf32> to vector<4x8x16xf32>
    %140 = arith.mulf %135, %139 : vector<4x8x16xf32>
    %141 = arith.truncf %122 : vector<4x8x16xf32> to vector<4x8x16xbf16>
    %142 = arith.truncf %140 : vector<4x8x16xf32> to vector<4x8x16xbf16>
    "tpu.trace_start"() <{level = 10 : i32, message = "gdk,gqk->gdq"}> : () -> ()
    %cst_65 = arith.constant dense<0.000000e+00> : vector<4x8x8xf32>
    %143 = tpu.matmul %141, %142, %cst_65 {dimension_numbers = #tpu.dot_dimension_numbers<[2], [2], [1], [1], [0, 0, 0, 1, 1, 1], [0], [0]>} : vector<4x8x16xbf16>, vector<4x8x16xbf16>, vector<4x8x8xf32> -> vector<4x8x8xf32>
    "tpu.trace_stop"() : () -> ()
    %144 = vector.shape_cast %143 : vector<4x8x8xf32> to vector<1x32x8xf32>
    %145 = tpu.transpose %144, [0, 2, 1] : vector<1x32x8xf32> -> vector<1x8x32xf32>
    %146 = vector.shape_cast %145 : vector<1x8x32xf32> to vector<8x32xf32>
    %147 = arith.truncf %146 : vector<8x32xf32> to vector<8x32xbf16>
    %c0_66 = arith.constant 0 : index
    %c0_67 = arith.constant 0 : index
    %148 = vector.load %arg20[%c0_66, %c0_67] : memref<32x32xbf16, #tpu.memory_space<vmem>>, vector<32x32xbf16>
    %cst_68 = arith.constant dense<0.000000e+00> : vector<8x32xf32>
    %149 = tpu.matmul %147, %148, %cst_68 {dimension_numbers = #tpu.dot_dimension_numbers<[1], [0], [0], [1], [0, 0, 1, 1], [], []>} : vector<8x32xbf16>, vector<32x32xbf16>, vector<8x32xf32> -> vector<8x32xf32>
    %c0_69 = arith.constant 0 : index
    %c0_70 = arith.constant 0 : index
    %150 = vector.load %arg21[%c0_69, %c0_70] : memref<1x32xf32, #tpu.memory_space<vmem>>, vector<1x32xf32>
    %151 = vector.broadcast %150 : vector<1x32xf32> to vector<8x32xf32>
    %152 = arith.addf %149, %151 : vector<8x32xf32>
    %153 = arith.addf %93, %152 : vector<8x32xf32>
    %c0_71 = arith.constant 0 : index
    %c0_72 = arith.constant 0 : index
    %154 = vector.load %arg24[%c0_71, %c0_72] : memref<1x32xf32, #tpu.memory_space<vmem>>, vector<1x32xf32>
    %c0_73 = arith.constant 0 : index
    %c0_74 = arith.constant 0 : index
    %155 = vector.load %arg25[%c0_73, %c0_74] : memref<1x32xf32, #tpu.memory_space<vmem>>, vector<1x32xf32>
    %cst_75 = arith.constant dense<0.000000e+00> : vector<8xf32>
    %156 = vector.multi_reduction <add>, %153, %cst_75 [1] : vector<8x32xf32> to vector<8xf32>
    %157 = vector.shape_cast %156 : vector<8xf32> to vector<8x1xf32>
    %cst_76 = arith.constant 3.200000e+01 : f32
    %158 = vector.broadcast %cst_76 : f32 to vector<8x1xf32>
    %159 = arith.divf %157, %158 : vector<8x1xf32>
    %160 = vector.broadcast %159 : vector<8x1xf32> to vector<8x32xf32>
    %161 = arith.subf %153, %160 : vector<8x32xf32>
    %162 = arith.mulf %161, %161 : vector<8x32xf32>
    %cst_77 = arith.constant dense<0.000000e+00> : vector<8xf32>
    %163 = vector.multi_reduction <add>, %162, %cst_77 [1] : vector<8x32xf32> to vector<8xf32>
    %164 = vector.shape_cast %163 : vector<8xf32> to vector<8x1xf32>
    %cst_78 = arith.constant 3.200000e+01 : f32
    %165 = vector.broadcast %cst_78 : f32 to vector<8x1xf32>
    %166 = arith.divf %164, %165 : vector<8x1xf32>
    %167 = vector.broadcast %159 : vector<8x1xf32> to vector<8x32xf32>
    %168 = arith.subf %153, %167 : vector<8x32xf32>
    %cst_79 = arith.constant 9.99999974E-6 : f32
    %169 = vector.broadcast %cst_79 : f32 to vector<8x1xf32>
    %170 = arith.addf %166, %169 : vector<8x1xf32>
    %171 = math.rsqrt %170 : vector<8x1xf32>
    %172 = vector.broadcast %171 : vector<8x1xf32> to vector<8x32xf32>
    %173 = arith.mulf %168, %172 : vector<8x32xf32>
    %174 = vector.broadcast %154 : vector<1x32xf32> to vector<8x32xf32>
    %175 = arith.mulf %173, %174 : vector<8x32xf32>
    %176 = vector.broadcast %155 : vector<1x32xf32> to vector<8x32xf32>
    %177 = arith.addf %175, %176 : vector<8x32xf32>
    %178 = arith.truncf %177 : vector<8x32xf32> to vector<8x32xbf16>
    %cst_80 = arith.constant 0.000000e+00 : f32
    %179 = vector.broadcast %cst_80 : f32 to vector<8x32xf32>
    %c0_81 = arith.constant 0 : index
    %c0_82 = arith.constant 0 : index
    %180 = vector.load %arg28[%c0_81, %c0_82] : memref<32x128xbf16, #tpu.memory_space<vmem>>, vector<32x128xbf16>
    %cst_83 = arith.constant dense<0.000000e+00> : vector<8x128xf32>
    %181 = tpu.matmul %178, %180, %cst_83 {dimension_numbers = #tpu.dot_dimension_numbers<[1], [0], [0], [1], [0, 0, 1, 1], [], []>} : vector<8x32xbf16>, vector<32x128xbf16>, vector<8x128xf32> -> vector<8x128xf32>
    %c0_84 = arith.constant 0 : index
    %c0_85 = arith.constant 0 : index
    %182 = vector.load %arg29[%c0_84, %c0_85] : memref<1x128xf32, #tpu.memory_space<vmem>>, vector<1x128xf32>
    %183 = vector.broadcast %182 : vector<1x128xf32> to vector<8x128xf32>
    %184 = arith.addf %181, %183 : vector<8x128xf32>
    %cst_86 = arith.constant 5.000000e-01 : f32
    %185 = vector.broadcast %cst_86 : f32 to vector<8x128xf32>
    %186 = arith.mulf %184, %185 : vector<8x128xf32>
    %cst_87 = arith.constant 1.41421354 : f32
    %187 = vector.broadcast %cst_87 : f32 to vector<8x128xf32>
    %188 = arith.divf %184, %187 : vector<8x128xf32>
    %189 = math.erf %188 : vector<8x128xf32>
    %cst_88 = arith.constant 1.000000e+00 : f32
    %190 = vector.broadcast %cst_88 : f32 to vector<8x128xf32>
    %191 = arith.addf %190, %189 : vector<8x128xf32>
    %192 = arith.mulf %186, %191 : vector<8x128xf32>
    %193 = arith.truncf %192 : vector<8x128xf32> to vector<8x128xbf16>
    %c0_89 = arith.constant 0 : index
    %c0_90 = arith.constant 0 : index
    %194 = vector.load %arg30[%c0_89, %c0_90] : memref<128x32xbf16, #tpu.memory_space<vmem>>, vector<128x32xbf16>
    %cst_91 = arith.constant dense<0.000000e+00> : vector<8x32xf32>
    %195 = tpu.matmul %193, %194, %cst_91 {dimension_numbers = #tpu.dot_dimension_numbers<[1], [0], [0], [1], [0, 0, 1, 1], [], []>} : vector<8x128xbf16>, vector<128x32xbf16>, vector<8x32xf32> -> vector<8x32xf32>
    %196 = arith.addf %179, %195 : vector<8x32xf32>
    %c0_92 = arith.constant 0 : index
    %c0_93 = arith.constant 0 : index
    %197 = vector.load %arg31[%c0_92, %c0_93] : memref<1x32xf32, #tpu.memory_space<vmem>>, vector<1x32xf32>
    %198 = vector.broadcast %197 : vector<1x32xf32> to vector<8x32xf32>
    %199 = arith.addf %196, %198 : vector<8x32xf32>
    %200 = arith.addf %177, %199 : vector<8x32xf32>
    %c0_94 = arith.constant 0 : index
    %c0_95 = arith.constant 0 : index
    %201 = vector.load %arg26[%c0_94, %c0_95] : memref<1x32xf32, #tpu.memory_space<vmem>>, vector<1x32xf32>
    %c0_96 = arith.constant 0 : index
    %c0_97 = arith.constant 0 : index
    %202 = vector.load %arg27[%c0_96, %c0_97] : memref<1x32xf32, #tpu.memory_space<vmem>>, vector<1x32xf32>
    %cst_98 = arith.constant dense<0.000000e+00> : vector<8xf32>
    %203 = vector.multi_reduction <add>, %200, %cst_98 [1] : vector<8x32xf32> to vector<8xf32>
    %204 = vector.shape_cast %203 : vector<8xf32> to vector<8x1xf32>
    %cst_99 = arith.constant 3.200000e+01 : f32
    %205 = vector.broadcast %cst_99 : f32 to vector<8x1xf32>
    %206 = arith.divf %204, %205 : vector<8x1xf32>
    %207 = vector.broadcast %206 : vector<8x1xf32> to vector<8x32xf32>
    %208 = arith.subf %200, %207 : vector<8x32xf32>
    %209 = arith.mulf %208, %208 : vector<8x32xf32>
    %cst_100 = arith.constant dense<0.000000e+00> : vector<8xf32>
    %210 = vector.multi_reduction <add>, %209, %cst_100 [1] : vector<8x32xf32> to vector<8xf32>
    %211 = vector.shape_cast %210 : vector<8xf32> to vector<8x1xf32>
    %cst_101 = arith.constant 3.200000e+01 : f32
    %212 = vector.broadcast %cst_101 : f32 to vector<8x1xf32>
    %213 = arith.divf %211, %212 : vector<8x1xf32>
    %214 = vector.broadcast %206 : vector<8x1xf32> to vector<8x32xf32>
    %215 = arith.subf %200, %214 : vector<8x32xf32>
    %cst_102 = arith.constant 9.99999974E-6 : f32
    %216 = vector.broadcast %cst_102 : f32 to vector<8x1xf32>
    %217 = arith.addf %213, %216 : vector<8x1xf32>
    %218 = math.rsqrt %217 : vector<8x1xf32>
    %219 = vector.broadcast %218 : vector<8x1xf32> to vector<8x32xf32>
    %220 = arith.mulf %215, %219 : vector<8x32xf32>
    %221 = vector.broadcast %201 : vector<1x32xf32> to vector<8x32xf32>
    %222 = arith.mulf %220, %221 : vector<8x32xf32>
    %223 = vector.broadcast %202 : vector<1x32xf32> to vector<8x32xf32>
    %224 = arith.addf %222, %223 : vector<8x32xf32>
    %225 = vector.shape_cast %224 : vector<8x32xf32> to vector<1x8x32xf32>
    %c0_103 = arith.constant 0 : index
    %c0_104 = arith.constant 0 : index
    %c0_105 = arith.constant 0 : index
    %226 = vector.load %arg32[%c0_103, %c0_104, %c0_105] : memref<1x8x32xf32, #tpu.memory_space<vmem>>, vector<1x8x32xf32>
    tpu.vector_store %arg32[%c0_103, %c0_104, %c0_105], %225 {strides = array<i32>} : memref<1x8x32xf32, #tpu.memory_space<vmem>>, vector<1x8x32xf32>,
    return
  }
  func.func @transform_0(%arg0: i32) -> (i32, i32, i32) {
    %c0_i32 = arith.constant 0 : i32
    %c0_i32_0 = arith.constant 0 : i32
    %c0_i32_1 = arith.constant 0 : i32
    return %arg0, %c0_i32, %c0_i32_0 : i32, i32, i32
  }
  func.func @transform_1(%arg0: i32) -> (i32, i32, i32) {
    %c0_i32 = arith.constant 0 : i32
    %c0_i32_0 = arith.constant 0 : i32
    %c0_i32_1 = arith.constant 0 : i32
    return %arg0, %c0_i32, %c0_i32_0 : i32, i32, i32
  }
  func.func @transform_2(%arg0: i32) -> (i32, i32) {
    %c0_i32 = arith.constant 0 : i32
    %c0_i32_0 = arith.constant 0 : i32
    %c0_i32_1 = arith.constant 0 : i32
    return %c0_i32, %c0_i32_0 : i32, i32
  }
  func.func @transform_3(%arg0: i32) -> (i32, i32, i32) {
    %c0_i32 = arith.constant 0 : i32
    %c0_i32_0 = arith.constant 0 : i32
    %c0_i32_1 = arith.constant 0 : i32
    return %arg0, %c0_i32, %c0_i32_0 : i32, i32, i32
  }
  func.func @transform_4(%arg0: i32) -> (i32, i32, i32) {
    %c0_i32 = arith.constant 0 : i32
    %c0_i32_0 = arith.constant 0 : i32
    %c0_i32_1 = arith.constant 0 : i32
    return %arg0, %c0_i32, %c0_i32_0 : i32, i32, i32
  }
  func.func @transform_5(%arg0: i32) -> (i32, i32) {
    %c0_i32 = arith.constant 0 : i32
    %c0_i32_0 = arith.constant 0 : i32
    %c0_i32_1 = arith.constant 0 : i32
    return %c0_i32, %c0_i32_0 : i32, i32
  }
  func.func @transform_6(%arg0: i32) -> (i32, i32) {
    %c0_i32 = arith.constant 0 : i32
    %c0_i32_0 = arith.constant 0 : i32
    %c0_i32_1 = arith.constant 0 : i32
    return %c0_i32, %c0_i32_0 : i32, i32
  }
  func.func @transform_7(%arg0: i32) -> (i32, i32) {
    %c0_i32 = arith.constant 0 : i32
    %c0_i32_0 = arith.constant 0 : i32
    %c0_i32_1 = arith.constant 0 : i32
    return %c0_i32, %c0_i32_0 : i32, i32
  }
  func.func @transform_8(%arg0: i32) -> (i32, i32) {
    %c0_i32 = arith.constant 0 : i32
    %c0_i32_0 = arith.constant 0 : i32
    %c0_i32_1 = arith.constant 0 : i32
    return %c0_i32, %c0_i32_0 : i32, i32
  }
  func.func @transform_9(%arg0: i32) -> (i32, i32) {
    %c0_i32 = arith.constant 0 : i32
    %c0_i32_0 = arith.constant 0 : i32
    %c0_i32_1 = arith.constant 0 : i32
    return %c0_i32, %c0_i32_0 : i32, i32
  }
  func.func @transform_10(%arg0: i32) -> (i32, i32) {
    %c0_i32 = arith.constant 0 : i32
    %c0_i32_0 = arith.constant 0 : i32
    %c0_i32_1 = arith.constant 0 : i32
    return %c0_i32, %c0_i32_0 : i32, i32
  }
  func.func @transform_11(%arg0: i32) -> (i32, i32) {
    %c0_i32 = arith.constant 0 : i32
    %c0_i32_0 = arith.constant 0 : i32
    %c0_i32_1 = arith.constant 0 : i32
    return %c0_i32, %c0_i32_0 : i32, i32
  }
  func.func @transform_12(%arg0: i32) -> (i32, i32) {
    %c0_i32 = arith.constant 0 : i32
    %c0_i32_0 = arith.constant 0 : i32
    %c0_i32_1 = arith.constant 0 : i32
    return %c0_i32, %c0_i32_0 : i32, i32
  }
  func.func @transform_13(%arg0: i32) -> (i32, i32) {
    %c0_i32 = arith.constant 0 : i32
    %c0_i32_0 = arith.constant 0 : i32
    %c0_i32_1 = arith.constant 0 : i32
    return %c0_i32, %c0_i32_0 : i32, i32
  }
  func.func @transform_14(%arg0: i32) -> (i32, i32) {
    %c0_i32 = arith.constant 0 : i32
    %c0_i32_0 = arith.constant 0 : i32
    %c0_i32_1 = arith.constant 0 : i32
    return %c0_i32, %c0_i32_0 : i32, i32
  }
  func.func @transform_15(%arg0: i32) -> (i32, i32) {
    %c0_i32 = arith.constant 0 : i32
    %c0_i32_0 = arith.constant 0 : i32
    %c0_i32_1 = arith.constant 0 : i32
    return %c0_i32, %c0_i32_0 : i32, i32
  }
  func.func @transform_16(%arg0: i32) -> (i32, i32) {
    %c0_i32 = arith.constant 0 : i32
    %c0_i32_0 = arith.constant 0 : i32
    %c0_i32_1 = arith.constant 0 : i32
    return %c0_i32, %c0_i32_0 : i32, i32
  }
  func.func @transform_17(%arg0: i32) -> (i32, i32) {
    %c0_i32 = arith.constant 0 : i32
    %c0_i32_0 = arith.constant 0 : i32
    %c0_i32_1 = arith.constant 0 : i32
    return %c0_i32, %c0_i32_0 : i32, i32
  }
  func.func @transform_18(%arg0: i32) -> (i32, i32) {
    %c0_i32 = arith.constant 0 : i32
    %c0_i32_0 = arith.constant 0 : i32
    %c0_i32_1 = arith.constant 0 : i32
    return %c0_i32, %c0_i32_0 : i32, i32
  }
  func.func @transform_19(%arg0: i32) -> (i32, i32) {
    %c0_i32 = arith.constant 0 : i32
    %c0_i32_0 = arith.constant 0 : i32
    %c0_i32_1 = arith.constant 0 : i32
    return %c0_i32, %c0_i32_0 : i32, i32
  }
  func.func @transform_20(%arg0: i32) -> (i32, i32) {
    %c0_i32 = arith.constant 0 : i32
    %c0_i32_0 = arith.constant 0 : i32
    %c0_i32_1 = arith.constant 0 : i32
    return %c0_i32, %c0_i32_0 : i32, i32
  }
  func.func @transform_21(%arg0: i32) -> (i32, i32) {
    %c0_i32 = arith.constant 0 : i32
    %c0_i32_0 = arith.constant 0 : i32
    %c0_i32_1 = arith.constant 0 : i32
    return %c0_i32, %c0_i32_0 : i32, i32
  }
  func.func @transform_22(%arg0: i32) -> (i32, i32) {
    %c0_i32 = arith.constant 0 : i32
    %c0_i32_0 = arith.constant 0 : i32
    %c0_i32_1 = arith.constant 0 : i32
    return %c0_i32, %c0_i32_0 : i32, i32
  }
  func.func @transform_23(%arg0: i32) -> (i32, i32) {
    %c0_i32 = arith.constant 0 : i32
    %c0_i32_0 = arith.constant 0 : i32
    %c0_i32_1 = arith.constant 0 : i32
    return %c0_i32, %c0_i32_0 : i32, i32
  }
  func.func @transform_24(%arg0: i32) -> (i32, i32) {
    %c0_i32 = arith.constant 0 : i32
    %c0_i32_0 = arith.constant 0 : i32
    %c0_i32_1 = arith.constant 0 : i32
    return %c0_i32, %c0_i32_0 : i32, i32
  }
  func.func @transform_25(%arg0: i32) -> (i32, i32) {
    %c0_i32 = arith.constant 0 : i32
    %c0_i32_0 = arith.constant 0 : i32
    %c0_i32_1 = arith.constant 0 : i32
    return %c0_i32, %c0_i32_0 : i32, i32
  }
  func.func @transform_26(%arg0: i32) -> (i32, i32) {
    %c0_i32 = arith.constant 0 : i32
    %c0_i32_0 = arith.constant 0 : i32
    %c0_i32_1 = arith.constant 0 : i32
    return %c0_i32, %c0_i32_0 : i32, i32
  }
  func.func @transform_27(%arg0: i32) -> (i32, i32) {
    %c0_i32 = arith.constant 0 : i32
    %c0_i32_0 = arith.constant 0 : i32
    %c0_i32_1 = arith.constant 0 : i32
    return %c0_i32, %c0_i32_0 : i32, i32
  }
  func.func @transform_28(%arg0: i32) -> (i32, i32) {
    %c0_i32 = arith.constant 0 : i32
    %c0_i32_0 = arith.constant 0 : i32
    %c0_i32_1 = arith.constant 0 : i32
    return %c0_i32, %c0_i32_0 : i32, i32
  }
  func.func @transform_29(%arg0: i32) -> (i32, i32) {
    %c0_i32 = arith.constant 0 : i32
    %c0_i32_0 = arith.constant 0 : i32
    %c0_i32_1 = arith.constant 0 : i32
    return %c0_i32, %c0_i32_0 : i32, i32
  }
  func.func @transform_30(%arg0: i32) -> (i32, i32) {
    %c0_i32 = arith.constant 0 : i32
    %c0_i32_0 = arith.constant 0 : i32
    %c0_i32_1 = arith.constant 0 : i32
    return %c0_i32, %c0_i32_0 : i32, i32
  }
  func.func @transform_31(%arg0: i32) -> (i32, i32, i32) {
    %c0_i32 = arith.constant 0 : i32
    %c0_i32_0 = arith.constant 0 : i32
    %c0_i32_1 = arith.constant 0 : i32
    return %arg0, %c0_i32, %c0_i32_0 : i32, i32, i32
  }
}

module attributes {stable_mosaic.version = 11 : i64} {
  func.func @_decoder_layer_kernel(%arg0: i32, %arg1: memref<1x8x32xf32, #tpu.memory_space<vmem>>, %arg2: memref<1x16x32xf32, #tpu.memory_space<vmem>>, %arg3: memref<8x8xf32, #tpu.memory_space<vmem>>, %arg4: memref<1x1x8xf32, #tpu.memory_space<vmem>>, %arg5: memref<1x1x16xf32, #tpu.memory_space<vmem>>, %arg6: memref<32x32xbf16, #tpu.memory_space<vmem>>, %arg7: memref<1x32xf32, #tpu.memory_space<vmem>>, %arg8: memref<32x32xbf16, #tpu.memory_space<vmem>>, %arg9: memref<1x32xf32, #tpu.memory_space<vmem>>, %arg10: memref<32x32xbf16, #tpu.memory_space<vmem>>, %arg11: memref<1x32xf32, #tpu.memory_space<vmem>>, %arg12: memref<32x32xbf16, #tpu.memory_space<vmem>>, %arg13: memref<1x32xf32, #tpu.memory_space<vmem>>, %arg14: memref<32x32xbf16, #tpu.memory_space<vmem>>, %arg15: memref<1x32xf32, #tpu.memory_space<vmem>>, %arg16: memref<32x32xbf16, #tpu.memory_space<vmem>>, %arg17: memref<1x32xf32, #tpu.memory_space<vmem>>, %arg18: memref<32x32xbf16, #tpu.memory_space<vmem>>, %arg19: memref<1x32xf32, #tpu.memory_space<vmem>>, %arg20: memref<32x32xbf16, #tpu.memory_space<vmem>>, %arg21: memref<1x32xf32, #tpu.memory_space<vmem>>, %arg22: memref<1x32xf32, #tpu.memory_space<vmem>>, %arg23: memref<1x32xf32, #tpu.memory_space<vmem>>, %arg24: memref<1x32xf32, #tpu.memory_space<vmem>>, %arg25: memref<1x32xf32, #tpu.memory_space<vmem>>, %arg26: memref<1x32xf32, #tpu.memory_space<vmem>>, %arg27: memref<1x32xf32, #tpu.memory_space<vmem>>, %arg28: memref<32x128xbf16, #tpu.memory_space<vmem>>, %arg29: memref<1x128xf32, #tpu.memory_space<vmem>>, %arg30: memref<128x32xbf16, #tpu.memory_space<vmem>>, %arg31: memref<1x32xf32, #tpu.memory_space<vmem>>, %arg32: memref<1x8x32xf32, #tpu.memory_space<vmem>>) attributes {dimension_semantics = [#tpu.dimension_semantics<parallel>], iteration_bounds = array<i64: 2>, scalar_prefetch = 0 : i64, scratch_operands = 0 : i64, tpu.core_type = #tpu.core_type<tc>, window_params = [{transform_indices = @transform_0, window_bounds = array<i64: 1, 8, 32>}, {transform_indices = @transform_1, window_bounds = array<i64: 1, 16, 32>}, {pipeline_mode = #tpu.pipeline_mode<synchronous>, transform_indices = @transform_2, window_bounds = array<i64: 8, 8>}, {transform_indices = @transform_3, window_bounds = array<i64: 1, 1, 8>}, {transform_indices = @transform_4, window_bounds = array<i64: 1, 1, 16>}, {pipeline_mode = #tpu.pipeline_mode<synchronous>, transform_indices = @transform_5, window_bounds = array<i64: 32, 32>}, {pipeline_mode = #tpu.pipeline_mode<synchronous>, transform_indices = @transform_6, window_bounds = array<i64: 1, 32>}, {pipeline_mode = #tpu.pipeline_mode<synchronous>, transform_indices = @transform_7, window_bounds = array<i64: 32, 32>}, {pipeline_mode = #tpu.pipeline_mode<synchronous>, transform_indices = @transform_8, window_bounds = array<i64: 1, 32>}, {pipeline_mode = #tpu.pipeline_mode<synchronous>, transform_indices = @transform_9, window_bounds = array<i64: 32, 32>}, {pipeline_mode = #tpu.pipeline_mode<synchronous>, transform_indices = @transform_10, window_bounds = array<i64: 1, 32>}, {pipeline_mode = #tpu.pipeline_mode<synchronous>, transform_indices = @transform_11, window_bounds = array<i64: 32, 32>}, {pipeline_mode = #tpu.pipeline_mode<synchronous>, transform_indices = @transform_12, window_bounds = array<i64: 1, 32>}, {pipeline_mode = #tpu.pipeline_mode<synchronous>, transform_indices = @transform_13, window_bounds = array<i64: 32, 32>}, {pipeline_mode = #tpu.pipeline_mode<synchronous>, transform_indices = @transform_14, window_bounds = array<i64: 1, 32>}, {pipeline_mode = #tpu.pipeline_mode<synchronous>, transform_indices = @transform_15, window_bounds = array<i64: 32, 32>}, {pipeline_mode = #tpu.pipeline_mode<synchronous>, transform_indices = @transform_16, window_bounds = array<i64: 1, 32>}, {pipeline_mode = #tpu.pipeline_mode<synchronous>, transform_indices = @transform_17, window_bounds = array<i64: 32, 32>}, {pipeline_mode = #tpu.pipeline_mode<synchronous>, transform_indices = @transform_18, window_bounds = array<i64: 1, 32>}, {pipeline_mode = #tpu.pipeline_mode<synchronous>, transform_indices = @transform_19, window_bounds = array<i64: 32, 32>}, {pipeline_mode = #tpu.pipeline_mode<synchronous>, transform_indices = @transform_20, window_bounds = array<i64: 1, 32>}, {pipeline_mode = #tpu.pipeline_mode<synchronous>, transform_indices = @transform_21, window_bounds = array<i64: 1, 32>}, {pipeline_mode = #tpu.pipeline_mode<synchronous>, transform_indices = @transform_22, window_bounds = array<i64: 1, 32>}, {pipeline_mode = #tpu.pipeline_mode<synchronous>, transform_indices = @transform_23, window_bounds = array<i64: 1, 32>}, {pipeline_mode = #tpu.pipeline_mode<synchronous>, transform_indices = @transform_24, window_bounds = array<i64: 1, 32>}, {pipeline_mode = #tpu.pipeline_mode<synchronous>, transform_indices = @transform_25, window_bounds = array<i64: 1, 32>}, {pipeline_mode = #tpu.pipeline_mode<synchronous>, transform_indices = @transform_26, window_bounds = array<i64: 1, 32>}, {pipeline_mode = #tpu.pipeline_mode<synchronous>, transform_indices = @transform_27, window_bounds = array<i64: 32, 128>}, {pipeline_mode = #tpu.pipeline_mode<synchronous>, transform_indices = @transform_28, window_bounds = array<i64: 1, 128>}, {pipeline_mode = #tpu.pipeline_mode<synchronous>, transform_indices = @transform_29, window_bounds = array<i64: 128, 32>}, {pipeline_mode = #tpu.pipeline_mode<synchronous>, transform_indices = @transform_30, window_bounds = array<i64: 1, 32>}, {transform_indices = @transform_31, window_bounds = array<i64: 1, 8, 32>}]} {
    %c0 = arith.constant 0 : index
    %c0_0 = arith.constant 0 : index
    %c0_1 = arith.constant 0 : index
    %0 = vector.load %arg1[%c0, %c0_0, %c0_1] : memref<1x8x32xf32, #tpu.memory_space<vmem>>, vector<1x8x32xf32>
    %1 = vector.shape_cast %0 : vector<1x8x32xf32> to vector<8x32xf32>
    %c0_2 = arith.constant 0 : index
    %c0_3 = arith.constant 0 : index
    %c0_4 = arith.constant 0 : index
    %2 = vector.load %arg2[%c0_2, %c0_3, %c0_4] : memref<1x16x32xf32, #tpu.memory_space<vmem>>, vector<1x16x32xf32>
    %3 = vector.shape_cast %2 : vector<1x16x32xf32> to vector<16x32xf32>
    %c0_5 = arith.constant 0 : index
    %c0_6 = arith.constant 0 : index
    %c0_7 = arith.constant 0 : index
    %4 = vector.load %arg4[%c0_5, %c0_6, %c0_7] : memref<1x1x8xf32, #tpu.memory_space<vmem>>, vector<1x1x8xf32>
    %c0_8 = arith.constant 0 : index
    %c0_9 = arith.constant 0 : index
    %c0_10 = arith.constant 0 : index
    %5 = vector.load %arg5[%c0_8, %c0_9, %c0_10] : memref<1x1x16xf32, #tpu.memory_space<vmem>>, vector<1x1x16xf32>
    %6 = arith.truncf %1 : vector<8x32xf32> to vector<8x32xbf16>
    %c0_11 = arith.constant 0 : index
    %c0_12 = arith.constant 0 : index
    %7 = vector.load %arg6[%c0_11, %c0_12] : memref<32x32xbf16, #tpu.memory_space<vmem>>, vector<32x32xbf16>
    %cst = arith.constant dense<0.000000e+00> : vector<8x32xf32>
    %8 = tpu.matmul %6, %7, %cst {dimension_numbers = #tpu.dot_dimension_numbers<[1], [0], [0], [1], [0, 0, 1, 1], [], []>} : vector<8x32xbf16>, vector<32x32xbf16>, vector<8x32xf32> -> vector<8x32xf32>
    %c0_13 = arith.constant 0 : index
    %c0_14 = arith.constant 0 : index
    %9 = vector.load %arg7[%c0_13, %c0_14] : memref<1x32xf32, #tpu.memory_space<vmem>>, vector<1x32xf32>
    %10 = vector.broadcast %9 : vector<1x32xf32> to vector<8x32xf32>
    %11 = arith.addf %8, %10 : vector<8x32xf32>
    %cst_15 = arith.constant 0.353553385 : f32
    %12 = vector.broadcast %cst_15 : f32 to vector<8x32xf32>
    %13 = arith.mulf %11, %12 : vector<8x32xf32>
    %14 = arith.truncf %1 : vector<8x32xf32> to vector<8x32xbf16>
    %c0_16 = arith.constant 0 : index
    %c0_17 = arith.constant 0 : index
    %15 = vector.load %arg8[%c0_16, %c0_17] : memref<32x32xbf16, #tpu.memory_space<vmem>>, vector<32x32xbf16>
    %cst_18 = arith.constant dense<0.000000e+00> : vector<8x32xf32>
    %16 = tpu.matmul %14, %15, %cst_18 {dimension_numbers = #tpu.dot_dimension_numbers<[1], [0], [0], [1], [0, 0, 1, 1], [], []>} : vector<8x32xbf16>, vector<32x32xbf16>, vector<8x32xf32> -> vector<8x32xf32>
    %c0_19 = arith.constant 0 : index
    %c0_20 = arith.constant 0 : index
    %17 = vector.load %arg9[%c0_19, %c0_20] : memref<1x32xf32, #tpu.memory_space<vmem>>, vector<1x32xf32>
    %18 = vector.broadcast %17 : vector<1x32xf32> to vector<8x32xf32>
    %19 = arith.addf %16, %18 : vector<8x32xf32>
    %20 = arith.truncf %1 : vector<8x32xf32> to vector<8x32xbf16>
    %c0_21 = arith.constant 0 : index
    %c0_22 = arith.constant 0 : index
    %21 = vector.load %arg10[%c0_21, %c0_22] : memref<32x32xbf16, #tpu.memory_space<vmem>>, vector<32x32xbf16>
    %cst_23 = arith.constant dense<0.000000e+00> : vector<8x32xf32>
    %22 = tpu.matmul %20, %21, %cst_23 {dimension_numbers = #tpu.dot_dimension_numbers<[1], [0], [0], [1], [0, 0, 1, 1], [], []>} : vector<8x32xbf16>, vector<32x32xbf16>, vector<8x32xf32> -> vector<8x32xf32>
    %c0_24 = arith.constant 0 : index
    %c0_25 = arith.constant 0 : index
    %23 = vector.load %arg11[%c0_24, %c0_25] : memref<1x32xf32, #tpu.memory_space<vmem>>, vector<1x32xf32>
    %24 = vector.broadcast %23 : vector<1x32xf32> to vector<8x32xf32>
    %25 = arith.addf %22, %24 : vector<8x32xf32>
    %26 = vector.shape_cast %13 : vector<8x32xf32> to vector<1x8x32xf32>
    %27 = tpu.transpose %26, [0, 2, 1] : vector<1x8x32xf32> -> vector<1x32x8xf32>
    %28 = vector.shape_cast %27 : vector<1x32x8xf32> to vector<4x8x8xf32>
    %29 = vector.shape_cast %19 : vector<8x32xf32> to vector<1x8x32xf32>
    %30 = tpu.transpose %29, [0, 2, 1] : vector<1x8x32xf32> -> vector<1x32x8xf32>
    %31 = vector.shape_cast %30 : vector<1x32x8xf32> to vector<4x8x8xf32>
    %32 = vector.shape_cast %25 : vector<8x32xf32> to vector<1x8x32xf32>
    %33 = tpu.transpose %32, [0, 2, 1] : vector<1x8x32xf32> -> vector<1x32x8xf32>
    %34 = vector.shape_cast %33 : vector<1x32x8xf32> to vector<4x8x8xf32>
    %35 = tpu.transpose %28, [0, 2, 1] : vector<4x8x8xf32> -> vector<4x8x8xf32>
    %36 = arith.truncf %35 : vector<4x8x8xf32> to vector<4x8x8xbf16>
    %37 = arith.truncf %31 : vector<4x8x8xf32> to vector<4x8x8xbf16>
    "tpu.trace_start"() <{level = 10 : i32, message = "gqh,ghk->gqk"}> : () -> ()
    %cst_26 = arith.constant dense<0.000000e+00> : vector<4x8x8xf32>
    %38 = tpu.matmul %36, %37, %cst_26 {dimension_numbers = #tpu.dot_dimension_numbers<[2], [1], [1], [2], [0, 0, 0, 1, 1, 2], [0], [0]>} : vector<4x8x8xbf16>, vector<4x8x8xbf16>, vector<4x8x8xf32> -> vector<4x8x8xf32>
    "tpu.trace_stop"() : () -> ()
    %39 = vector.shape_cast %38 : vector<4x8x8xf32> to vector<1x4x8x8xf32>
    %40 = vector.shape_cast %4 : vector<1x1x8xf32> to vector<1x1x1x8xf32>
    %41 = vector.broadcast %40 : vector<1x1x1x8xf32> to vector<1x4x8x8xf32>
    %42 = arith.addf %39, %41 : vector<1x4x8x8xf32>
    %c0_27 = arith.constant 0 : index
    %c0_28 = arith.constant 0 : index
    %43 = vector.load %arg3[%c0_27, %c0_28] : memref<8x8xf32, #tpu.memory_space<vmem>>, vector<8x8xf32>
    %44 = vector.shape_cast %43 : vector<8x8xf32> to vector<1x1x8x8xf32>
    %45 = vector.broadcast %44 : vector<1x1x8x8xf32> to vector<1x4x8x8xf32>
    %46 = arith.addf %42, %45 : vector<1x4x8x8xf32>
    %47 = vector.shape_cast %46 : vector<1x4x8x8xf32> to vector<4x8x8xf32>
    %cst_29 = arith.constant dense<0xFF800000> : vector<4x8xf32>
    %48 = vector.multi_reduction <maximumf>, %47, %cst_29 [2] : vector<4x8x8xf32> to vector<4x8xf32>
    %49 = vector.shape_cast %48 : vector<4x8xf32> to vector<4x8x1xf32>
    %50 = vector.broadcast %49 : vector<4x8x1xf32> to vector<4x8x8xf32>
    %51 = arith.subf %47, %50 : vector<4x8x8xf32>
    %52 = math.exp %51 : vector<4x8x8xf32>
    %cst_30 = arith.constant dense<0.000000e+00> : vector<4x8xf32>
    %53 = vector.multi_reduction <add>, %52, %cst_30 [2] : vector<4x8x8xf32> to vector<4x8xf32>
    %54 = vector.shape_cast %53 : vector<4x8xf32> to vector<4x8x1xf32>
    %55 = tpu.reciprocal %54 {approx = true} : vector<4x8x1xf32> -> vector<4x8x1xf32>
    %56 = vector.broadcast %55 : vector<4x8x1xf32> to vector<4x8x8xf32>
    %57 = arith.mulf %52, %56 : vector<4x8x8xf32>
    %58 = arith.truncf %34 : vector<4x8x8xf32> to vector<4x8x8xbf16>
    %59 = arith.truncf %57 : vector<4x8x8xf32> to vector<4x8x8xbf16>
    "tpu.trace_start"() <{level = 10 : i32, message = "gdk,gqk->gdq"}> : () -> ()
    %cst_31 = arith.constant dense<0.000000e+00> : vector<4x8x8xf32>
    %60 = tpu.matmul %58, %59, %cst_31 {dimension_numbers = #tpu.dot_dimension_numbers<[2], [2], [1], [1], [0, 0, 0, 1, 1, 1], [0], [0]>} : vector<4x8x8xbf16>, vector<4x8x8xbf16>, vector<4x8x8xf32> -> vector<4x8x8xf32>
    "tpu.trace_stop"() : () -> ()
    %61 = vector.shape_cast %60 : vector<4x8x8xf32> to vector<1x32x8xf32>
    %62 = tpu.transpose %61, [0, 2, 1] : vector<1x32x8xf32> -> vector<1x8x32xf32>
    %63 = vector.shape_cast %62 : vector<1x8x32xf32> to vector<8x32xf32>
    %64 = arith.truncf %63 : vector<8x32xf32> to vector<8x32xbf16>
    %c0_32 = arith.constant 0 : index
    %c0_33 = arith.constant 0 : index
    %65 = vector.load %arg12[%c0_32, %c0_33] : memref<32x32xbf16, #tpu.memory_space<vmem>>, vector<32x32xbf16>
    %cst_34 = arith.constant dense<0.000000e+00> : vector<8x32xf32>
    %66 = tpu.matmul %64, %65, %cst_34 {dimension_numbers = #tpu.dot_dimension_numbers<[1], [0], [0], [1], [0, 0, 1, 1], [], []>} : vector<8x32xbf16>, vector<32x32xbf16>, vector<8x32xf32> -> vector<8x32xf32>
    %c0_35 = arith.constant 0 : index
    %c0_36 = arith.constant 0 : index
    %67 = vector.load %arg13[%c0_35, %c0_36] : memref<1x32xf32, #tpu.memory_space<vmem>>, vector<1x32xf32>
    %68 = vector.broadcast %67 : vector<1x32xf32> to vector<8x32xf32>
    %69 = arith.addf %66, %68 : vector<8x32xf32>
    %70 = arith.addf %1, %69 : vector<8x32xf32>
    %c0_37 = arith.constant 0 : index
    %c0_38 = arith.constant 0 : index
    %71 = vector.load %arg22[%c0_37, %c0_38] : memref<1x32xf32, #tpu.memory_space<vmem>>, vector<1x32xf32>
    %c0_39 = arith.constant 0 : index
    %c0_40 = arith.constant 0 : index
    %72 = vector.load %arg23[%c0_39, %c0_40] : memref<1x32xf32, #tpu.memory_space<vmem>>, vector<1x32xf32>
    %cst_41 = arith.constant dense<0.000000e+00> : vector<8xf32>
    %73 = vector.multi_reduction <add>, %70, %cst_41 [1] : vector<8x32xf32> to vector<8xf32>
    %74 = vector.shape_cast %73 : vector<8xf32> to vector<8x1xf32>
    %cst_42 = arith.constant 3.200000e+01 : f32
    %75 = vector.broadcast %cst_42 : f32 to vector<8x1xf32>
    %76 = arith.divf %74, %75 : vector<8x1xf32>
    %77 = vector.broadcast %76 : vector<8x1xf32> to vector<8x32xf32>
    %78 = arith.subf %70, %77 : vector<8x32xf32>
    %79 = arith.mulf %78, %78 : vector<8x32xf32>
    %cst_43 = arith.constant dense<0.000000e+00> : vector<8xf32>
    %80 = vector.multi_reduction <add>, %79, %cst_43 [1] : vector<8x32xf32> to vector<8xf32>
    %81 = vector.shape_cast %80 : vector<8xf32> to vector<8x1xf32>
    %cst_44 = arith.constant 3.200000e+01 : f32
    %82 = vector.broadcast %cst_44 : f32 to vector<8x1xf32>
    %83 = arith.divf %81, %82 : vector<8x1xf32>
    %84 = vector.broadcast %76 : vector<8x1xf32> to vector<8x32xf32>
    %85 = arith.subf %70, %84 : vector<8x32xf32>
    %cst_45 = arith.constant 9.99999974E-6 : f32
    %86 = vector.broadcast %cst_45 : f32 to vector<8x1xf32>
    %87 = arith.addf %83, %86 : vector<8x1xf32>
    %88 = math.rsqrt %87 : vector<8x1xf32>
    %89 = vector.broadcast %88 : vector<8x1xf32> to vector<8x32xf32>
    %90 = arith.mulf %85, %89 : vector<8x32xf32>
    %91 = vector.broadcast %71 : vector<1x32xf32> to vector<8x32xf32>
    %92 = arith.mulf %90, %91 : vector<8x32xf32>
    %93 = vector.broadcast %72 : vector<1x32xf32> to vector<8x32xf32>
    %94 = arith.addf %92, %93 : vector<8x32xf32>
    %95 = arith.truncf %94 : vector<8x32xf32> to vector<8x32xbf16>
    %c0_46 = arith.constant 0 : index
    %c0_47 = arith.constant 0 : index
    %96 = vector.load %arg14[%c0_46, %c0_47] : memref<32x32xbf16, #tpu.memory_space<vmem>>, vector<32x32xbf16>
    %cst_48 = arith.constant dense<0.000000e+00> : vector<8x32xf32>
    %97 = tpu.matmul %95, %96, %cst_48 {dimension_numbers = #tpu.dot_dimension_numbers<[1], [0], [0], [1], [0, 0, 1, 1], [], []>} : vector<8x32xbf16>, vector<32x32xbf16>, vector<8x32xf32> -> vector<8x32xf32>
    %c0_49 = arith.constant 0 : index
    %c0_50 = arith.constant 0 : index
    %98 = vector.load %arg15[%c0_49, %c0_50] : memref<1x32xf32, #tpu.memory_space<vmem>>, vector<1x32xf32>
    %99 = vector.broadcast %98 : vector<1x32xf32> to vector<8x32xf32>
    %100 = arith.addf %97, %99 : vector<8x32xf32>
    %cst_51 = arith.constant 0.353553385 : f32
    %101 = vector.broadcast %cst_51 : f32 to vector<8x32xf32>
    %102 = arith.mulf %100, %101 : vector<8x32xf32>
    %103 = arith.truncf %3 : vector<16x32xf32> to vector<16x32xbf16>
    %c0_52 = arith.constant 0 : index
    %c0_53 = arith.constant 0 : index
    %104 = vector.load %arg16[%c0_52, %c0_53] : memref<32x32xbf16, #tpu.memory_space<vmem>>, vector<32x32xbf16>
    %cst_54 = arith.constant dense<0.000000e+00> : vector<16x32xf32>
    %105 = tpu.matmul %103, %104, %cst_54 {dimension_numbers = #tpu.dot_dimension_numbers<[1], [0], [0], [1], [0, 0, 1, 1], [], []>} : vector<16x32xbf16>, vector<32x32xbf16>, vector<16x32xf32> -> vector<16x32xf32>
    %c0_55 = arith.constant 0 : index
    %c0_56 = arith.constant 0 : index
    %106 = vector.load %arg17[%c0_55, %c0_56] : memref<1x32xf32, #tpu.memory_space<vmem>>, vector<1x32xf32>
    %107 = vector.broadcast %106 : vector<1x32xf32> to vector<16x32xf32>
    %108 = arith.addf %105, %107 : vector<16x32xf32>
    %109 = arith.truncf %3 : vector<16x32xf32> to vector<16x32xbf16>
    %c0_57 = arith.constant 0 : index
    %c0_58 = arith.constant 0 : index
    %110 = vector.load %arg18[%c0_57, %c0_58] : memref<32x32xbf16, #tpu.memory_space<vmem>>, vector<32x32xbf16>
    %cst_59 = arith.constant dense<0.000000e+00> : vector<16x32xf32>
    %111 = tpu.matmul %109, %110, %cst_59 {dimension_numbers = #tpu.dot_dimension_numbers<[1], [0], [0], [1], [0, 0, 1, 1], [], []>} : vector<16x32xbf16>, vector<32x32xbf16>, vector<16x32xf32> -> vector<16x32xf32>
    %c0_60 = arith.constant 0 : index
    %c0_61 = arith.constant 0 : index
    %112 = vector.load %arg19[%c0_60, %c0_61] : memref<1x32xf32, #tpu.memory_space<vmem>>, vector<1x32xf32>
    %113 = vector.broadcast %112 : vector<1x32xf32> to vector<16x32xf32>
    %114 = arith.addf %111, %113 : vector<16x32xf32>
    %115 = vector.shape_cast %102 : vector<8x32xf32> to vector<1x8x32xf32>
    %116 = tpu.transpose %115, [0, 2, 1] : vector<1x8x32xf32> -> vector<1x32x8xf32>
    %117 = vector.shape_cast %116 : vector<1x32x8xf32> to vector<4x8x8xf32>
    %118 = vector.shape_cast %108 : vector<16x32xf32> to vector<1x16x32xf32>
    %119 = tpu.transpose %118, [0, 2, 1] : vector<1x16x32xf32> -> vector<1x32x16xf32>
    %120 = vector.shape_cast %119 : vector<1x32x16xf32> to vector<4x8x16xf32>
    %121 = vector.shape_cast %114 : vector<16x32xf32> to vector<1x16x32xf32>
    %122 = tpu.transpose %121, [0, 2, 1] : vector<1x16x32xf32> -> vector<1x32x16xf32>
    %123 = vector.shape_cast %122 : vector<1x32x16xf32> to vector<4x8x16xf32>
    %124 = tpu.transpose %117, [0, 2, 1] : vector<4x8x8xf32> -> vector<4x8x8xf32>
    %125 = arith.truncf %124 : vector<4x8x8xf32> to vector<4x8x8xbf16>
    %126 = arith.truncf %120 : vector<4x8x16xf32> to vector<4x8x16xbf16>
    "tpu.trace_start"() <{level = 10 : i32, message = "gqh,ghk->gqk"}> : () -> ()
    %cst_62 = arith.constant dense<0.000000e+00> : vector<4x8x16xf32>
    %127 = tpu.matmul %125, %126, %cst_62 {dimension_numbers = #tpu.dot_dimension_numbers<[2], [1], [1], [2], [0, 0, 0, 1, 1, 2], [0], [0]>} : vector<4x8x8xbf16>, vector<4x8x16xbf16>, vector<4x8x16xf32> -> vector<4x8x16xf32>
    "tpu.trace_stop"() : () -> ()
    %128 = vector.shape_cast %127 : vector<4x8x16xf32> to vector<1x4x8x16xf32>
    %129 = vector.shape_cast %5 : vector<1x1x16xf32> to vector<1x1x1x16xf32>
    %130 = vector.broadcast %129 : vector<1x1x1x16xf32> to vector<1x4x8x16xf32>
    %131 = arith.addf %128, %130 : vector<1x4x8x16xf32>
    %132 = vector.shape_cast %131 : vector<1x4x8x16xf32> to vector<4x8x16xf32>
    %cst_63 = arith.constant dense<0xFF800000> : vector<4x8xf32>
    %133 = vector.multi_reduction <maximumf>, %132, %cst_63 [2] : vector<4x8x16xf32> to vector<4x8xf32>
    %134 = vector.shape_cast %133 : vector<4x8xf32> to vector<4x8x1xf32>
    %135 = vector.broadcast %134 : vector<4x8x1xf32> to vector<4x8x16xf32>
    %136 = arith.subf %132, %135 : vector<4x8x16xf32>
    %137 = math.exp %136 : vector<4x8x16xf32>
    %cst_64 = arith.constant dense<0.000000e+00> : vector<4x8xf32>
    %138 = vector.multi_reduction <add>, %137, %cst_64 [2] : vector<4x8x16xf32> to vector<4x8xf32>
    %139 = vector.shape_cast %138 : vector<4x8xf32> to vector<4x8x1xf32>
    %140 = tpu.reciprocal %139 {approx = true} : vector<4x8x1xf32> -> vector<4x8x1xf32>
    %141 = vector.broadcast %140 : vector<4x8x1xf32> to vector<4x8x16xf32>
    %142 = arith.mulf %137, %141 : vector<4x8x16xf32>
    %143 = arith.truncf %123 : vector<4x8x16xf32> to vector<4x8x16xbf16>
    %144 = arith.truncf %142 : vector<4x8x16xf32> to vector<4x8x16xbf16>
    "tpu.trace_start"() <{level = 10 : i32, message = "gdk,gqk->gdq"}> : () -> ()
    %cst_65 = arith.constant dense<0.000000e+00> : vector<4x8x8xf32>
    %145 = tpu.matmul %143, %144, %cst_65 {dimension_numbers = #tpu.dot_dimension_numbers<[2], [2], [1], [1], [0, 0, 0, 1, 1, 1], [0], [0]>} : vector<4x8x16xbf16>, vector<4x8x16xbf16>, vector<4x8x8xf32> -> vector<4x8x8xf32>
    "tpu.trace_stop"() : () -> ()
    %146 = vector.shape_cast %145 : vector<4x8x8xf32> to vector<1x32x8xf32>
    %147 = tpu.transpose %146, [0, 2, 1] : vector<1x32x8xf32> -> vector<1x8x32xf32>
    %148 = vector.shape_cast %147 : vector<1x8x32xf32> to vector<8x32xf32>
    %149 = arith.truncf %148 : vector<8x32xf32> to vector<8x32xbf16>
    %c0_66 = arith.constant 0 : index
    %c0_67 = arith.constant 0 : index
    %150 = vector.load %arg20[%c0_66, %c0_67] : memref<32x32xbf16, #tpu.memory_space<vmem>>, vector<32x32xbf16>
    %cst_68 = arith.constant dense<0.000000e+00> : vector<8x32xf32>
    %151 = tpu.matmul %149, %150, %cst_68 {dimension_numbers = #tpu.dot_dimension_numbers<[1], [0], [0], [1], [0, 0, 1, 1], [], []>} : vector<8x32xbf16>, vector<32x32xbf16>, vector<8x32xf32> -> vector<8x32xf32>
    %c0_69 = arith.constant 0 : index
    %c0_70 = arith.constant 0 : index
    %152 = vector.load %arg21[%c0_69, %c0_70] : memref<1x32xf32, #tpu.memory_space<vmem>>, vector<1x32xf32>
    %153 = vector.broadcast %152 : vector<1x32xf32> to vector<8x32xf32>
    %154 = arith.addf %151, %153 : vector<8x32xf32>
    %155 = arith.addf %94, %154 : vector<8x32xf32>
    %c0_71 = arith.constant 0 : index
    %c0_72 = arith.constant 0 : index
    %156 = vector.load %arg24[%c0_71, %c0_72] : memref<1x32xf32, #tpu.memory_space<vmem>>, vector<1x32xf32>
    %c0_73 = arith.constant 0 : index
    %c0_74 = arith.constant 0 : index
    %157 = vector.load %arg25[%c0_73, %c0_74] : memref<1x32xf32, #tpu.memory_space<vmem>>, vector<1x32xf32>
    %cst_75 = arith.constant dense<0.000000e+00> : vector<8xf32>
    %158 = vector.multi_reduction <add>, %155, %cst_75 [1] : vector<8x32xf32> to vector<8xf32>
    %159 = vector.shape_cast %158 : vector<8xf32> to vector<8x1xf32>
    %cst_76 = arith.constant 3.200000e+01 : f32
    %160 = vector.broadcast %cst_76 : f32 to vector<8x1xf32>
    %161 = arith.divf %159, %160 : vector<8x1xf32>
    %162 = vector.broadcast %161 : vector<8x1xf32> to vector<8x32xf32>
    %163 = arith.subf %155, %162 : vector<8x32xf32>
    %164 = arith.mulf %163, %163 : vector<8x32xf32>
    %cst_77 = arith.constant dense<0.000000e+00> : vector<8xf32>
    %165 = vector.multi_reduction <add>, %164, %cst_77 [1] : vector<8x32xf32> to vector<8xf32>
    %166 = vector.shape_cast %165 : vector<8xf32> to vector<8x1xf32>
    %cst_78 = arith.constant 3.200000e+01 : f32
    %167 = vector.broadcast %cst_78 : f32 to vector<8x1xf32>
    %168 = arith.divf %166, %167 : vector<8x1xf32>
    %169 = vector.broadcast %161 : vector<8x1xf32> to vector<8x32xf32>
    %170 = arith.subf %155, %169 : vector<8x32xf32>
    %cst_79 = arith.constant 9.99999974E-6 : f32
    %171 = vector.broadcast %cst_79 : f32 to vector<8x1xf32>
    %172 = arith.addf %168, %171 : vector<8x1xf32>
    %173 = math.rsqrt %172 : vector<8x1xf32>
    %174 = vector.broadcast %173 : vector<8x1xf32> to vector<8x32xf32>
    %175 = arith.mulf %170, %174 : vector<8x32xf32>
    %176 = vector.broadcast %156 : vector<1x32xf32> to vector<8x32xf32>
    %177 = arith.mulf %175, %176 : vector<8x32xf32>
    %178 = vector.broadcast %157 : vector<1x32xf32> to vector<8x32xf32>
    %179 = arith.addf %177, %178 : vector<8x32xf32>
    %180 = arith.truncf %179 : vector<8x32xf32> to vector<8x32xbf16>
    %cst_80 = arith.constant 0.000000e+00 : f32
    %181 = vector.broadcast %cst_80 : f32 to vector<8x32xf32>
    %c0_81 = arith.constant 0 : index
    %c0_82 = arith.constant 0 : index
    %182 = vector.load %arg28[%c0_81, %c0_82] : memref<32x128xbf16, #tpu.memory_space<vmem>>, vector<32x128xbf16>
    %cst_83 = arith.constant dense<0.000000e+00> : vector<8x128xf32>
    %183 = tpu.matmul %180, %182, %cst_83 {dimension_numbers = #tpu.dot_dimension_numbers<[1], [0], [0], [1], [0, 0, 1, 1], [], []>} : vector<8x32xbf16>, vector<32x128xbf16>, vector<8x128xf32> -> vector<8x128xf32>
    %c0_84 = arith.constant 0 : index
    %c0_85 = arith.constant 0 : index
    %184 = vector.load %arg29[%c0_84, %c0_85] : memref<1x128xf32, #tpu.memory_space<vmem>>, vector<1x128xf32>
    %185 = vector.broadcast %184 : vector<1x128xf32> to vector<8x128xf32>
    %186 = arith.addf %183, %185 : vector<8x128xf32>
    %cst_86 = arith.constant 5.000000e-01 : f32
    %187 = vector.broadcast %cst_86 : f32 to vector<8x128xf32>
    %188 = arith.mulf %186, %187 : vector<8x128xf32>
    %cst_87 = arith.constant 1.41421354 : f32
    %189 = vector.broadcast %cst_87 : f32 to vector<8x128xf32>
    %190 = arith.divf %186, %189 : vector<8x128xf32>
    %191 = math.erf %190 : vector<8x128xf32>
    %cst_88 = arith.constant 1.000000e+00 : f32
    %192 = vector.broadcast %cst_88 : f32 to vector<8x128xf32>
    %193 = arith.addf %192, %191 : vector<8x128xf32>
    %194 = arith.mulf %188, %193 : vector<8x128xf32>
    %195 = arith.truncf %194 : vector<8x128xf32> to vector<8x128xbf16>
    %c0_89 = arith.constant 0 : index
    %c0_90 = arith.constant 0 : index
    %196 = vector.load %arg30[%c0_89, %c0_90] : memref<128x32xbf16, #tpu.memory_space<vmem>>, vector<128x32xbf16>
    %cst_91 = arith.constant dense<0.000000e+00> : vector<8x32xf32>
    %197 = tpu.matmul %195, %196, %cst_91 {dimension_numbers = #tpu.dot_dimension_numbers<[1], [0], [0], [1], [0, 0, 1, 1], [], []>} : vector<8x128xbf16>, vector<128x32xbf16>, vector<8x32xf32> -> vector<8x32xf32>
    %198 = arith.addf %181, %197 : vector<8x32xf32>
    %c0_92 = arith.constant 0 : index
    %c0_93 = arith.constant 0 : index
    %199 = vector.load %arg31[%c0_92, %c0_93] : memref<1x32xf32, #tpu.memory_space<vmem>>, vector<1x32xf32>
    %200 = vector.broadcast %199 : vector<1x32xf32> to vector<8x32xf32>
    %201 = arith.addf %198, %200 : vector<8x32xf32>
    %202 = arith.addf %179, %201 : vector<8x32xf32>
    %c0_94 = arith.constant 0 : index
    %c0_95 = arith.constant 0 : index
    %203 = vector.load %arg26[%c0_94, %c0_95] : memref<1x32xf32, #tpu.memory_space<vmem>>, vector<1x32xf32>
    %c0_96 = arith.constant 0 : index
    %c0_97 = arith.constant 0 : index
    %204 = vector.load %arg27[%c0_96, %c0_97] : memref<1x32xf32, #tpu.memory_space<vmem>>, vector<1x32xf32>
    %cst_98 = arith.constant dense<0.000000e+00> : vector<8xf32>
    %205 = vector.multi_reduction <add>, %202, %cst_98 [1] : vector<8x32xf32> to vector<8xf32>
    %206 = vector.shape_cast %205 : vector<8xf32> to vector<8x1xf32>
    %cst_99 = arith.constant 3.200000e+01 : f32
    %207 = vector.broadcast %cst_99 : f32 to vector<8x1xf32>
    %208 = arith.divf %206, %207 : vector<8x1xf32>
    %209 = vector.broadcast %208 : vector<8x1xf32> to vector<8x32xf32>
    %210 = arith.subf %202, %209 : vector<8x32xf32>
    %211 = arith.mulf %210, %210 : vector<8x32xf32>
    %cst_100 = arith.constant dense<0.000000e+00> : vector<8xf32>
    %212 = vector.multi_reduction <add>, %211, %cst_100 [1] : vector<8x32xf32> to vector<8xf32>
    %213 = vector.shape_cast %212 : vector<8xf32> to vector<8x1xf32>
    %cst_101 = arith.constant 3.200000e+01 : f32
    %214 = vector.broadcast %cst_101 : f32 to vector<8x1xf32>
    %215 = arith.divf %213, %214 : vector<8x1xf32>
    %216 = vector.broadcast %208 : vector<8x1xf32> to vector<8x32xf32>
    %217 = arith.subf %202, %216 : vector<8x32xf32>
    %cst_102 = arith.constant 9.99999974E-6 : f32
    %218 = vector.broadcast %cst_102 : f32 to vector<8x1xf32>
    %219 = arith.addf %215, %218 : vector<8x1xf32>
    %220 = math.rsqrt %219 : vector<8x1xf32>
    %221 = vector.broadcast %220 : vector<8x1xf32> to vector<8x32xf32>
    %222 = arith.mulf %217, %221 : vector<8x32xf32>
    %223 = vector.broadcast %203 : vector<1x32xf32> to vector<8x32xf32>
    %224 = arith.mulf %222, %223 : vector<8x32xf32>
    %225 = vector.broadcast %204 : vector<1x32xf32> to vector<8x32xf32>
    %226 = arith.addf %224, %225 : vector<8x32xf32>
    %227 = vector.shape_cast %226 : vector<8x32xf32> to vector<1x8x32xf32>
    %c0_103 = arith.constant 0 : index
    %c0_104 = arith.constant 0 : index
    %c0_105 = arith.constant 0 : index
    %228 = vector.load %arg32[%c0_103, %c0_104, %c0_105] : memref<1x8x32xf32, #tpu.memory_space<vmem>>, vector<1x8x32xf32>
    tpu.vector_store %arg32[%c0_103, %c0_104, %c0_105], %227 {strides = array<i32>} : memref<1x8x32xf32, #tpu.memory_space<vmem>>, vector<1x8x32xf32>,
    return
  }
  func.func @transform_0(%arg0: i32) -> (i32, i32, i32) {
    %c0_i32 = arith.constant 0 : i32
    %c0_i32_0 = arith.constant 0 : i32
    %c0_i32_1 = arith.constant 0 : i32
    return %arg0, %c0_i32, %c0_i32_0 : i32, i32, i32
  }
  func.func @transform_1(%arg0: i32) -> (i32, i32, i32) {
    %c0_i32 = arith.constant 0 : i32
    %c0_i32_0 = arith.constant 0 : i32
    %c0_i32_1 = arith.constant 0 : i32
    return %arg0, %c0_i32, %c0_i32_0 : i32, i32, i32
  }
  func.func @transform_2(%arg0: i32) -> (i32, i32) {
    %c0_i32 = arith.constant 0 : i32
    %c0_i32_0 = arith.constant 0 : i32
    %c0_i32_1 = arith.constant 0 : i32
    return %c0_i32, %c0_i32_0 : i32, i32
  }
  func.func @transform_3(%arg0: i32) -> (i32, i32, i32) {
    %c0_i32 = arith.constant 0 : i32
    %c0_i32_0 = arith.constant 0 : i32
    %c0_i32_1 = arith.constant 0 : i32
    return %arg0, %c0_i32, %c0_i32_0 : i32, i32, i32
  }
  func.func @transform_4(%arg0: i32) -> (i32, i32, i32) {
    %c0_i32 = arith.constant 0 : i32
    %c0_i32_0 = arith.constant 0 : i32
    %c0_i32_1 = arith.constant 0 : i32
    return %arg0, %c0_i32, %c0_i32_0 : i32, i32, i32
  }
  func.func @transform_5(%arg0: i32) -> (i32, i32) {
    %c0_i32 = arith.constant 0 : i32
    %c0_i32_0 = arith.constant 0 : i32
    %c0_i32_1 = arith.constant 0 : i32
    return %c0_i32, %c0_i32_0 : i32, i32
  }
  func.func @transform_6(%arg0: i32) -> (i32, i32) {
    %c0_i32 = arith.constant 0 : i32
    %c0_i32_0 = arith.constant 0 : i32
    %c0_i32_1 = arith.constant 0 : i32
    return %c0_i32, %c0_i32_0 : i32, i32
  }
  func.func @transform_7(%arg0: i32) -> (i32, i32) {
    %c0_i32 = arith.constant 0 : i32
    %c0_i32_0 = arith.constant 0 : i32
    %c0_i32_1 = arith.constant 0 : i32
    return %c0_i32, %c0_i32_0 : i32, i32
  }
  func.func @transform_8(%arg0: i32) -> (i32, i32) {
    %c0_i32 = arith.constant 0 : i32
    %c0_i32_0 = arith.constant 0 : i32
    %c0_i32_1 = arith.constant 0 : i32
    return %c0_i32, %c0_i32_0 : i32, i32
  }
  func.func @transform_9(%arg0: i32) -> (i32, i32) {
    %c0_i32 = arith.constant 0 : i32
    %c0_i32_0 = arith.constant 0 : i32
    %c0_i32_1 = arith.constant 0 : i32
    return %c0_i32, %c0_i32_0 : i32, i32
  }
  func.func @transform_10(%arg0: i32) -> (i32, i32) {
    %c0_i32 = arith.constant 0 : i32
    %c0_i32_0 = arith.constant 0 : i32
    %c0_i32_1 = arith.constant 0 : i32
    return %c0_i32, %c0_i32_0 : i32, i32
  }
  func.func @transform_11(%arg0: i32) -> (i32, i32) {
    %c0_i32 = arith.constant 0 : i32
    %c0_i32_0 = arith.constant 0 : i32
    %c0_i32_1 = arith.constant 0 : i32
    return %c0_i32, %c0_i32_0 : i32, i32
  }
  func.func @transform_12(%arg0: i32) -> (i32, i32) {
    %c0_i32 = arith.constant 0 : i32
    %c0_i32_0 = arith.constant 0 : i32
    %c0_i32_1 = arith.constant 0 : i32
    return %c0_i32, %c0_i32_0 : i32, i32
  }
  func.func @transform_13(%arg0: i32) -> (i32, i32) {
    %c0_i32 = arith.constant 0 : i32
    %c0_i32_0 = arith.constant 0 : i32
    %c0_i32_1 = arith.constant 0 : i32
    return %c0_i32, %c0_i32_0 : i32, i32
  }
  func.func @transform_14(%arg0: i32) -> (i32, i32) {
    %c0_i32 = arith.constant 0 : i32
    %c0_i32_0 = arith.constant 0 : i32
    %c0_i32_1 = arith.constant 0 : i32
    return %c0_i32, %c0_i32_0 : i32, i32
  }
  func.func @transform_15(%arg0: i32) -> (i32, i32) {
    %c0_i32 = arith.constant 0 : i32
    %c0_i32_0 = arith.constant 0 : i32
    %c0_i32_1 = arith.constant 0 : i32
    return %c0_i32, %c0_i32_0 : i32, i32
  }
  func.func @transform_16(%arg0: i32) -> (i32, i32) {
    %c0_i32 = arith.constant 0 : i32
    %c0_i32_0 = arith.constant 0 : i32
    %c0_i32_1 = arith.constant 0 : i32
    return %c0_i32, %c0_i32_0 : i32, i32
  }
  func.func @transform_17(%arg0: i32) -> (i32, i32) {
    %c0_i32 = arith.constant 0 : i32
    %c0_i32_0 = arith.constant 0 : i32
    %c0_i32_1 = arith.constant 0 : i32
    return %c0_i32, %c0_i32_0 : i32, i32
  }
  func.func @transform_18(%arg0: i32) -> (i32, i32) {
    %c0_i32 = arith.constant 0 : i32
    %c0_i32_0 = arith.constant 0 : i32
    %c0_i32_1 = arith.constant 0 : i32
    return %c0_i32, %c0_i32_0 : i32, i32
  }
  func.func @transform_19(%arg0: i32) -> (i32, i32) {
    %c0_i32 = arith.constant 0 : i32
    %c0_i32_0 = arith.constant 0 : i32
    %c0_i32_1 = arith.constant 0 : i32
    return %c0_i32, %c0_i32_0 : i32, i32
  }
  func.func @transform_20(%arg0: i32) -> (i32, i32) {
    %c0_i32 = arith.constant 0 : i32
    %c0_i32_0 = arith.constant 0 : i32
    %c0_i32_1 = arith.constant 0 : i32
    return %c0_i32, %c0_i32_0 : i32, i32
  }
  func.func @transform_21(%arg0: i32) -> (i32, i32) {
    %c0_i32 = arith.constant 0 : i32
    %c0_i32_0 = arith.constant 0 : i32
    %c0_i32_1 = arith.constant 0 : i32
    return %c0_i32, %c0_i32_0 : i32, i32
  }
  func.func @transform_22(%arg0: i32) -> (i32, i32) {
    %c0_i32 = arith.constant 0 : i32
    %c0_i32_0 = arith.constant 0 : i32
    %c0_i32_1 = arith.constant 0 : i32
    return %c0_i32, %c0_i32_0 : i32, i32
  }
  func.func @transform_23(%arg0: i32) -> (i32, i32) {
    %c0_i32 = arith.constant 0 : i32
    %c0_i32_0 = arith.constant 0 : i32
    %c0_i32_1 = arith.constant 0 : i32
    return %c0_i32, %c0_i32_0 : i32, i32
  }
  func.func @transform_24(%arg0: i32) -> (i32, i32) {
    %c0_i32 = arith.constant 0 : i32
    %c0_i32_0 = arith.constant 0 : i32
    %c0_i32_1 = arith.constant 0 : i32
    return %c0_i32, %c0_i32_0 : i32, i32
  }
  func.func @transform_25(%arg0: i32) -> (i32, i32) {
    %c0_i32 = arith.constant 0 : i32
    %c0_i32_0 = arith.constant 0 : i32
    %c0_i32_1 = arith.constant 0 : i32
    return %c0_i32, %c0_i32_0 : i32, i32
  }
  func.func @transform_26(%arg0: i32) -> (i32, i32) {
    %c0_i32 = arith.constant 0 : i32
    %c0_i32_0 = arith.constant 0 : i32
    %c0_i32_1 = arith.constant 0 : i32
    return %c0_i32, %c0_i32_0 : i32, i32
  }
  func.func @transform_27(%arg0: i32) -> (i32, i32) {
    %c0_i32 = arith.constant 0 : i32
    %c0_i32_0 = arith.constant 0 : i32
    %c0_i32_1 = arith.constant 0 : i32
    return %c0_i32, %c0_i32_0 : i32, i32
  }
  func.func @transform_28(%arg0: i32) -> (i32, i32) {
    %c0_i32 = arith.constant 0 : i32
    %c0_i32_0 = arith.constant 0 : i32
    %c0_i32_1 = arith.constant 0 : i32
    return %c0_i32, %c0_i32_0 : i32, i32
  }
  func.func @transform_29(%arg0: i32) -> (i32, i32) {
    %c0_i32 = arith.constant 0 : i32
    %c0_i32_0 = arith.constant 0 : i32
    %c0_i32_1 = arith.constant 0 : i32
    return %c0_i32, %c0_i32_0 : i32, i32
  }
  func.func @transform_30(%arg0: i32) -> (i32, i32) {
    %c0_i32 = arith.constant 0 : i32
    %c0_i32_0 = arith.constant 0 : i32
    %c0_i32_1 = arith.constant 0 : i32
    return %c0_i32, %c0_i32_0 : i32, i32
  }
  func.func @transform_31(%arg0: i32) -> (i32, i32, i32) {
    %c0_i32 = arith.constant 0 : i32
    %c0_i32_0 = arith.constant 0 : i32
    %c0_i32_1 = arith.constant 0 : i32
    return %arg0, %c0_i32, %c0_i32_0 : i32, i32, i32
  }
}

module attributes {stable_mosaic.version = 11 : i64} {
  func.func @_decoder_layer_kernel(%arg0: i32, %arg1: memref<1x8x32xf32, #tpu.memory_space<vmem>>, %arg2: memref<1x16x32xf32, #tpu.memory_space<vmem>>, %arg3: memref<8x8xf32, #tpu.memory_space<vmem>>, %arg4: memref<1x1x8xf32, #tpu.memory_space<vmem>>, %arg5: memref<1x1x16xf32, #tpu.memory_space<vmem>>, %arg6: memref<32x32xbf16, #tpu.memory_space<vmem>>, %arg7: memref<1x32xf32, #tpu.memory_space<vmem>>, %arg8: memref<32x32xbf16, #tpu.memory_space<vmem>>, %arg9: memref<1x32xf32, #tpu.memory_space<vmem>>, %arg10: memref<32x32xbf16, #tpu.memory_space<vmem>>, %arg11: memref<1x32xf32, #tpu.memory_space<vmem>>, %arg12: memref<32x32xbf16, #tpu.memory_space<vmem>>, %arg13: memref<1x32xf32, #tpu.memory_space<vmem>>, %arg14: memref<32x32xbf16, #tpu.memory_space<vmem>>, %arg15: memref<1x32xf32, #tpu.memory_space<vmem>>, %arg16: memref<32x32xbf16, #tpu.memory_space<vmem>>, %arg17: memref<1x32xf32, #tpu.memory_space<vmem>>, %arg18: memref<32x32xbf16, #tpu.memory_space<vmem>>, %arg19: memref<1x32xf32, #tpu.memory_space<vmem>>, %arg20: memref<32x32xbf16, #tpu.memory_space<vmem>>, %arg21: memref<1x32xf32, #tpu.memory_space<vmem>>, %arg22: memref<1x32xf32, #tpu.memory_space<vmem>>, %arg23: memref<1x32xf32, #tpu.memory_space<vmem>>, %arg24: memref<1x32xf32, #tpu.memory_space<vmem>>, %arg25: memref<1x32xf32, #tpu.memory_space<vmem>>, %arg26: memref<1x32xf32, #tpu.memory_space<vmem>>, %arg27: memref<1x32xf32, #tpu.memory_space<vmem>>, %arg28: memref<32x128xbf16, #tpu.memory_space<vmem>>, %arg29: memref<1x128xf32, #tpu.memory_space<vmem>>, %arg30: memref<128x32xbf16, #tpu.memory_space<vmem>>, %arg31: memref<1x32xf32, #tpu.memory_space<vmem>>, %arg32: memref<1x8x32xf32, #tpu.memory_space<vmem>>) attributes {dimension_semantics = [#tpu.dimension_semantics<parallel>], iteration_bounds = array<i64: 2>, scalar_prefetch = 0 : i64, scratch_operands = 0 : i64, tpu.core_type = #tpu.core_type<tc>, window_params = [{transform_indices = @transform_0, window_bounds = array<i64: 1, 8, 32>}, {transform_indices = @transform_1, window_bounds = array<i64: 1, 16, 32>}, {pipeline_mode = #tpu.pipeline_mode<synchronous>, transform_indices = @transform_2, window_bounds = array<i64: 8, 8>}, {transform_indices = @transform_3, window_bounds = array<i64: 1, 1, 8>}, {transform_indices = @transform_4, window_bounds = array<i64: 1, 1, 16>}, {pipeline_mode = #tpu.pipeline_mode<synchronous>, transform_indices = @transform_5, window_bounds = array<i64: 32, 32>}, {pipeline_mode = #tpu.pipeline_mode<synchronous>, transform_indices = @transform_6, window_bounds = array<i64: 1, 32>}, {pipeline_mode = #tpu.pipeline_mode<synchronous>, transform_indices = @transform_7, window_bounds = array<i64: 32, 32>}, {pipeline_mode = #tpu.pipeline_mode<synchronous>, transform_indices = @transform_8, window_bounds = array<i64: 1, 32>}, {pipeline_mode = #tpu.pipeline_mode<synchronous>, transform_indices = @transform_9, window_bounds = array<i64: 32, 32>}, {pipeline_mode = #tpu.pipeline_mode<synchronous>, transform_indices = @transform_10, window_bounds = array<i64: 1, 32>}, {pipeline_mode = #tpu.pipeline_mode<synchronous>, transform_indices = @transform_11, window_bounds = array<i64: 32, 32>}, {pipeline_mode = #tpu.pipeline_mode<synchronous>, transform_indices = @transform_12, window_bounds = array<i64: 1, 32>}, {pipeline_mode = #tpu.pipeline_mode<synchronous>, transform_indices = @transform_13, window_bounds = array<i64: 32, 32>}, {pipeline_mode = #tpu.pipeline_mode<synchronous>, transform_indices = @transform_14, window_bounds = array<i64: 1, 32>}, {pipeline_mode = #tpu.pipeline_mode<synchronous>, transform_indices = @transform_15, window_bounds = array<i64: 32, 32>}, {pipeline_mode = #tpu.pipeline_mode<synchronous>, transform_indices = @transform_16, window_bounds = array<i64: 1, 32>}, {pipeline_mode = #tpu.pipeline_mode<synchronous>, transform_indices = @transform_17, window_bounds = array<i64: 32, 32>}, {pipeline_mode = #tpu.pipeline_mode<synchronous>, transform_indices = @transform_18, window_bounds = array<i64: 1, 32>}, {pipeline_mode = #tpu.pipeline_mode<synchronous>, transform_indices = @transform_19, window_bounds = array<i64: 32, 32>}, {pipeline_mode = #tpu.pipeline_mode<synchronous>, transform_indices = @transform_20, window_bounds = array<i64: 1, 32>}, {pipeline_mode = #tpu.pipeline_mode<synchronous>, transform_indices = @transform_21, window_bounds = array<i64: 1, 32>}, {pipeline_mode = #tpu.pipeline_mode<synchronous>, transform_indices = @transform_22, window_bounds = array<i64: 1, 32>}, {pipeline_mode = #tpu.pipeline_mode<synchronous>, transform_indices = @transform_23, window_bounds = array<i64: 1, 32>}, {pipeline_mode = #tpu.pipeline_mode<synchronous>, transform_indices = @transform_24, window_bounds = array<i64: 1, 32>}, {pipeline_mode = #tpu.pipeline_mode<synchronous>, transform_indices = @transform_25, window_bounds = array<i64: 1, 32>}, {pipeline_mode = #tpu.pipeline_mode<synchronous>, transform_indices = @transform_26, window_bounds = array<i64: 1, 32>}, {pipeline_mode = #tpu.pipeline_mode<synchronous>, transform_indices = @transform_27, window_bounds = array<i64: 32, 128>}, {pipeline_mode = #tpu.pipeline_mode<synchronous>, transform_indices = @transform_28, window_bounds = array<i64: 1, 128>}, {pipeline_mode = #tpu.pipeline_mode<synchronous>, transform_indices = @transform_29, window_bounds = array<i64: 128, 32>}, {pipeline_mode = #tpu.pipeline_mode<synchronous>, transform_indices = @transform_30, window_bounds = array<i64: 1, 32>}, {transform_indices = @transform_31, window_bounds = array<i64: 1, 8, 32>}]} {
    %c0 = arith.constant 0 : index
    %c0_0 = arith.constant 0 : index
    %c0_1 = arith.constant 0 : index
    %0 = vector.load %arg1[%c0, %c0_0, %c0_1] : memref<1x8x32xf32, #tpu.memory_space<vmem>>, vector<1x8x32xf32>
    %1 = vector.shape_cast %0 : vector<1x8x32xf32> to vector<8x32xf32>
    %c0_2 = arith.constant 0 : index
    %c0_3 = arith.constant 0 : index
    %c0_4 = arith.constant 0 : index
    %2 = vector.load %arg2[%c0_2, %c0_3, %c0_4] : memref<1x16x32xf32, #tpu.memory_space<vmem>>, vector<1x16x32xf32>
    %3 = vector.shape_cast %2 : vector<1x16x32xf32> to vector<16x32xf32>
    %c0_5 = arith.constant 0 : index
    %c0_6 = arith.constant 0 : index
    %c0_7 = arith.constant 0 : index
    %4 = vector.load %arg4[%c0_5, %c0_6, %c0_7] : memref<1x1x8xf32, #tpu.memory_space<vmem>>, vector<1x1x8xf32>
    %c0_8 = arith.constant 0 : index
    %c0_9 = arith.constant 0 : index
    %c0_10 = arith.constant 0 : index
    %5 = vector.load %arg5[%c0_8, %c0_9, %c0_10] : memref<1x1x16xf32, #tpu.memory_space<vmem>>, vector<1x1x16xf32>
    %6 = arith.truncf %1 : vector<8x32xf32> to vector<8x32xbf16>
    %c0_11 = arith.constant 0 : index
    %c0_12 = arith.constant 0 : index
    %7 = vector.load %arg6[%c0_11, %c0_12] : memref<32x32xbf16, #tpu.memory_space<vmem>>, vector<32x32xbf16>
    %cst = arith.constant dense<0.000000e+00> : vector<8x32xf32>
    %8 = tpu.matmul %6, %7, %cst {dimension_numbers = #tpu.dot_dimension_numbers<[1], [0], [0], [1], [0, 0, 1, 1], [], []>} : vector<8x32xbf16>, vector<32x32xbf16>, vector<8x32xf32> -> vector<8x32xf32>
    %c0_13 = arith.constant 0 : index
    %c0_14 = arith.constant 0 : index
    %9 = vector.load %arg7[%c0_13, %c0_14] : memref<1x32xf32, #tpu.memory_space<vmem>>, vector<1x32xf32>
    %10 = vector.broadcast %9 : vector<1x32xf32> to vector<8x32xf32>
    %11 = arith.addf %8, %10 : vector<8x32xf32>
    %cst_15 = arith.constant 0.353553385 : f32
    %12 = vector.broadcast %cst_15 : f32 to vector<8x32xf32>
    %13 = arith.mulf %11, %12 : vector<8x32xf32>
    %14 = arith.truncf %1 : vector<8x32xf32> to vector<8x32xbf16>
    %c0_16 = arith.constant 0 : index
    %c0_17 = arith.constant 0 : index
    %15 = vector.load %arg8[%c0_16, %c0_17] : memref<32x32xbf16, #tpu.memory_space<vmem>>, vector<32x32xbf16>
    %cst_18 = arith.constant dense<0.000000e+00> : vector<8x32xf32>
    %16 = tpu.matmul %14, %15, %cst_18 {dimension_numbers = #tpu.dot_dimension_numbers<[1], [0], [0], [1], [0, 0, 1, 1], [], []>} : vector<8x32xbf16>, vector<32x32xbf16>, vector<8x32xf32> -> vector<8x32xf32>
    %c0_19 = arith.constant 0 : index
    %c0_20 = arith.constant 0 : index
    %17 = vector.load %arg9[%c0_19, %c0_20] : memref<1x32xf32, #tpu.memory_space<vmem>>, vector<1x32xf32>
    %18 = vector.broadcast %17 : vector<1x32xf32> to vector<8x32xf32>
    %19 = arith.addf %16, %18 : vector<8x32xf32>
    %20 = arith.truncf %1 : vector<8x32xf32> to vector<8x32xbf16>
    %c0_21 = arith.constant 0 : index
    %c0_22 = arith.constant 0 : index
    %21 = vector.load %arg10[%c0_21, %c0_22] : memref<32x32xbf16, #tpu.memory_space<vmem>>, vector<32x32xbf16>
    %cst_23 = arith.constant dense<0.000000e+00> : vector<8x32xf32>
    %22 = tpu.matmul %20, %21, %cst_23 {dimension_numbers = #tpu.dot_dimension_numbers<[1], [0], [0], [1], [0, 0, 1, 1], [], []>} : vector<8x32xbf16>, vector<32x32xbf16>, vector<8x32xf32> -> vector<8x32xf32>
    %c0_24 = arith.constant 0 : index
    %c0_25 = arith.constant 0 : index
    %23 = vector.load %arg11[%c0_24, %c0_25] : memref<1x32xf32, #tpu.memory_space<vmem>>, vector<1x32xf32>
    %24 = vector.broadcast %23 : vector<1x32xf32> to vector<8x32xf32>
    %25 = arith.addf %22, %24 : vector<8x32xf32>
    %26 = vector.shape_cast %13 : vector<8x32xf32> to vector<1x8x32xf32>
    %27 = tpu.transpose %26, [0, 2, 1] : vector<1x8x32xf32> -> vector<1x32x8xf32>
    %28 = vector.shape_cast %27 : vector<1x32x8xf32> to vector<4x8x8xf32>
    %29 = vector.shape_cast %19 : vector<8x32xf32> to vector<1x8x32xf32>
    %30 = tpu.transpose %29, [0, 2, 1] : vector<1x8x32xf32> -> vector<1x32x8xf32>
    %31 = vector.shape_cast %30 : vector<1x32x8xf32> to vector<4x8x8xf32>
    %32 = vector.shape_cast %25 : vector<8x32xf32> to vector<1x8x32xf32>
    %33 = tpu.transpose %32, [0, 2, 1] : vector<1x8x32xf32> -> vector<1x32x8xf32>
    %34 = vector.shape_cast %33 : vector<1x32x8xf32> to vector<4x8x8xf32>
    %35 = tpu.transpose %28, [0, 2, 1] : vector<4x8x8xf32> -> vector<4x8x8xf32>
    %36 = arith.truncf %35 : vector<4x8x8xf32> to vector<4x8x8xbf16>
    %37 = arith.truncf %31 : vector<4x8x8xf32> to vector<4x8x8xbf16>
    "tpu.trace_start"() <{level = 10 : i32, message = "gqh,ghk->gqk"}> : () -> ()
    %cst_26 = arith.constant dense<0.000000e+00> : vector<4x8x8xf32>
    %38 = tpu.matmul %36, %37, %cst_26 {dimension_numbers = #tpu.dot_dimension_numbers<[2], [1], [1], [2], [0, 0, 0, 1, 1, 2], [0], [0]>} : vector<4x8x8xbf16>, vector<4x8x8xbf16>, vector<4x8x8xf32> -> vector<4x8x8xf32>
    "tpu.trace_stop"() : () -> ()
    %39 = vector.shape_cast %38 : vector<4x8x8xf32> to vector<1x4x8x8xf32>
    %40 = vector.shape_cast %4 : vector<1x1x8xf32> to vector<1x1x1x8xf32>
    %41 = vector.broadcast %40 : vector<1x1x1x8xf32> to vector<1x4x8x8xf32>
    %42 = arith.addf %39, %41 : vector<1x4x8x8xf32>
    %c0_27 = arith.constant 0 : index
    %c0_28 = arith.constant 0 : index
    %43 = vector.load %arg3[%c0_27, %c0_28] : memref<8x8xf32, #tpu.memory_space<vmem>>, vector<8x8xf32>
    %44 = vector.shape_cast %43 : vector<8x8xf32> to vector<1x1x8x8xf32>
    %45 = vector.broadcast %44 : vector<1x1x8x8xf32> to vector<1x4x8x8xf32>
    %46 = arith.addf %42, %45 : vector<1x4x8x8xf32>
    %47 = vector.shape_cast %46 : vector<1x4x8x8xf32> to vector<4x8x8xf32>
    %cst_29 = arith.constant dense<0xFF800000> : vector<4x8xf32>
    %48 = vector.multi_reduction <maximumf>, %47, %cst_29 [2] : vector<4x8x8xf32> to vector<4x8xf32>
    %49 = vector.shape_cast %48 : vector<4x8xf32> to vector<4x8x1xf32>
    %50 = vector.broadcast %49 : vector<4x8x1xf32> to vector<4x8x8xf32>
    %51 = arith.subf %47, %50 : vector<4x8x8xf32>
    %52 = math.exp %51 : vector<4x8x8xf32>
    %cst_30 = arith.constant dense<0.000000e+00> : vector<4x8xf32>
    %53 = vector.multi_reduction <add>, %52, %cst_30 [2] : vector<4x8x8xf32> to vector<4x8xf32>
    %54 = vector.shape_cast %53 : vector<4x8xf32> to vector<4x8x1xf32>
    %55 = tpu.reciprocal %54 {approx = true} : vector<4x8x1xf32> -> vector<4x8x1xf32>
    %56 = vector.broadcast %55 : vector<4x8x1xf32> to vector<4x8x8xf32>
    %57 = arith.mulf %52, %56 : vector<4x8x8xf32>
    %58 = arith.truncf %34 : vector<4x8x8xf32> to vector<4x8x8xbf16>
    %59 = arith.truncf %57 : vector<4x8x8xf32> to vector<4x8x8xbf16>
    "tpu.trace_start"() <{level = 10 : i32, message = "gdk,gqk->gdq"}> : () -> ()
    %cst_31 = arith.constant dense<0.000000e+00> : vector<4x8x8xf32>
    %60 = tpu.matmul %58, %59, %cst_31 {dimension_numbers = #tpu.dot_dimension_numbers<[2], [2], [1], [1], [0, 0, 0, 1, 1, 1], [0], [0]>} : vector<4x8x8xbf16>, vector<4x8x8xbf16>, vector<4x8x8xf32> -> vector<4x8x8xf32>
    "tpu.trace_stop"() : () -> ()
    %61 = vector.shape_cast %60 : vector<4x8x8xf32> to vector<1x32x8xf32>
    %62 = tpu.transpose %61, [0, 2, 1] : vector<1x32x8xf32> -> vector<1x8x32xf32>
    %63 = vector.shape_cast %62 : vector<1x8x32xf32> to vector<8x32xf32>
    %64 = arith.truncf %63 : vector<8x32xf32> to vector<8x32xbf16>
    %c0_32 = arith.constant 0 : index
    %c0_33 = arith.constant 0 : index
    %65 = vector.load %arg12[%c0_32, %c0_33] : memref<32x32xbf16, #tpu.memory_space<vmem>>, vector<32x32xbf16>
    %cst_34 = arith.constant dense<0.000000e+00> : vector<8x32xf32>
    %66 = tpu.matmul %64, %65, %cst_34 {dimension_numbers = #tpu.dot_dimension_numbers<[1], [0], [0], [1], [0, 0, 1, 1], [], []>} : vector<8x32xbf16>, vector<32x32xbf16>, vector<8x32xf32> -> vector<8x32xf32>
    %c0_35 = arith.constant 0 : index
    %c0_36 = arith.constant 0 : index
    %67 = vector.load %arg13[%c0_35, %c0_36] : memref<1x32xf32, #tpu.memory_space<vmem>>, vector<1x32xf32>
    %68 = vector.broadcast %67 : vector<1x32xf32> to vector<8x32xf32>
    %69 = arith.addf %66, %68 : vector<8x32xf32>
    %70 = arith.addf %1, %69 : vector<8x32xf32>
    %c0_37 = arith.constant 0 : index
    %c0_38 = arith.constant 0 : index
    %71 = vector.load %arg22[%c0_37, %c0_38] : memref<1x32xf32, #tpu.memory_space<vmem>>, vector<1x32xf32>
    %c0_39 = arith.constant 0 : index
    %c0_40 = arith.constant 0 : index
    %72 = vector.load %arg23[%c0_39, %c0_40] : memref<1x32xf32, #tpu.memory_space<vmem>>, vector<1x32xf32>
    %cst_41 = arith.constant dense<0.000000e+00> : vector<8xf32>
    %73 = vector.multi_reduction <add>, %70, %cst_41 [1] : vector<8x32xf32> to vector<8xf32>
    %74 = vector.shape_cast %73 : vector<8xf32> to vector<8x1xf32>
    %cst_42 = arith.constant 3.200000e+01 : f32
    %75 = vector.broadcast %cst_42 : f32 to vector<8x1xf32>
    %76 = arith.divf %74, %75 : vector<8x1xf32>
    %77 = vector.broadcast %76 : vector<8x1xf32> to vector<8x32xf32>
    %78 = arith.subf %70, %77 : vector<8x32xf32>
    %79 = arith.mulf %78, %78 : vector<8x32xf32>
    %cst_43 = arith.constant dense<0.000000e+00> : vector<8xf32>
    %80 = vector.multi_reduction <add>, %79, %cst_43 [1] : vector<8x32xf32> to vector<8xf32>
    %81 = vector.shape_cast %80 : vector<8xf32> to vector<8x1xf32>
    %cst_44 = arith.constant 3.200000e+01 : f32
    %82 = vector.broadcast %cst_44 : f32 to vector<8x1xf32>
    %83 = arith.divf %81, %82 : vector<8x1xf32>
    %84 = vector.broadcast %76 : vector<8x1xf32> to vector<8x32xf32>
    %85 = arith.subf %70, %84 : vector<8x32xf32>
    %cst_45 = arith.constant 9.99999974E-6 : f32
    %86 = vector.broadcast %cst_45 : f32 to vector<8x1xf32>
    %87 = arith.addf %83, %86 : vector<8x1xf32>
    %88 = math.rsqrt %87 : vector<8x1xf32>
    %89 = vector.broadcast %88 : vector<8x1xf32> to vector<8x32xf32>
    %90 = arith.mulf %85, %89 : vector<8x32xf32>
    %91 = vector.broadcast %71 : vector<1x32xf32> to vector<8x32xf32>
    %92 = arith.mulf %90, %91 : vector<8x32xf32>
    %93 = vector.broadcast %72 : vector<1x32xf32> to vector<8x32xf32>
    %94 = arith.addf %92, %93 : vector<8x32xf32>
    %95 = arith.truncf %94 : vector<8x32xf32> to vector<8x32xbf16>
    %c0_46 = arith.constant 0 : index
    %c0_47 = arith.constant 0 : index
    %96 = vector.load %arg14[%c0_46, %c0_47] : memref<32x32xbf16, #tpu.memory_space<vmem>>, vector<32x32xbf16>
    %cst_48 = arith.constant dense<0.000000e+00> : vector<8x32xf32>
    %97 = tpu.matmul %95, %96, %cst_48 {dimension_numbers = #tpu.dot_dimension_numbers<[1], [0], [0], [1], [0, 0, 1, 1], [], []>} : vector<8x32xbf16>, vector<32x32xbf16>, vector<8x32xf32> -> vector<8x32xf32>
    %c0_49 = arith.constant 0 : index
    %c0_50 = arith.constant 0 : index
    %98 = vector.load %arg15[%c0_49, %c0_50] : memref<1x32xf32, #tpu.memory_space<vmem>>, vector<1x32xf32>
    %99 = vector.broadcast %98 : vector<1x32xf32> to vector<8x32xf32>
    %100 = arith.addf %97, %99 : vector<8x32xf32>
    %cst_51 = arith.constant 0.353553385 : f32
    %101 = vector.broadcast %cst_51 : f32 to vector<8x32xf32>
    %102 = arith.mulf %100, %101 : vector<8x32xf32>
    %103 = arith.truncf %3 : vector<16x32xf32> to vector<16x32xbf16>
    %c0_52 = arith.constant 0 : index
    %c0_53 = arith.constant 0 : index
    %104 = vector.load %arg16[%c0_52, %c0_53] : memref<32x32xbf16, #tpu.memory_space<vmem>>, vector<32x32xbf16>
    %cst_54 = arith.constant dense<0.000000e+00> : vector<16x32xf32>
    %105 = tpu.matmul %103, %104, %cst_54 {dimension_numbers = #tpu.dot_dimension_numbers<[1], [0], [0], [1], [0, 0, 1, 1], [], []>} : vector<16x32xbf16>, vector<32x32xbf16>, vector<16x32xf32> -> vector<16x32xf32>
    %c0_55 = arith.constant 0 : index
    %c0_56 = arith.constant 0 : index
    %106 = vector.load %arg17[%c0_55, %c0_56] : memref<1x32xf32, #tpu.memory_space<vmem>>, vector<1x32xf32>
    %107 = vector.broadcast %106 : vector<1x32xf32> to vector<16x32xf32>
    %108 = arith.addf %105, %107 : vector<16x32xf32>
    %109 = arith.truncf %3 : vector<16x32xf32> to vector<16x32xbf16>
    %c0_57 = arith.constant 0 : index
    %c0_58 = arith.constant 0 : index
    %110 = vector.load %arg18[%c0_57, %c0_58] : memref<32x32xbf16, #tpu.memory_space<vmem>>, vector<32x32xbf16>
    %cst_59 = arith.constant dense<0.000000e+00> : vector<16x32xf32>
    %111 = tpu.matmul %109, %110, %cst_59 {dimension_numbers = #tpu.dot_dimension_numbers<[1], [0], [0], [1], [0, 0, 1, 1], [], []>} : vector<16x32xbf16>, vector<32x32xbf16>, vector<16x32xf32> -> vector<16x32xf32>
    %c0_60 = arith.constant 0 : index
    %c0_61 = arith.constant 0 : index
    %112 = vector.load %arg19[%c0_60, %c0_61] : memref<1x32xf32, #tpu.memory_space<vmem>>, vector<1x32xf32>
    %113 = vector.broadcast %112 : vector<1x32xf32> to vector<16x32xf32>
    %114 = arith.addf %111, %113 : vector<16x32xf32>
    %115 = vector.shape_cast %102 : vector<8x32xf32> to vector<1x8x32xf32>
    %116 = tpu.transpose %115, [0, 2, 1] : vector<1x8x32xf32> -> vector<1x32x8xf32>
    %117 = vector.shape_cast %116 : vector<1x32x8xf32> to vector<4x8x8xf32>
    %118 = vector.shape_cast %108 : vector<16x32xf32> to vector<1x16x32xf32>
    %119 = tpu.transpose %118, [0, 2, 1] : vector<1x16x32xf32> -> vector<1x32x16xf32>
    %120 = vector.shape_cast %119 : vector<1x32x16xf32> to vector<4x8x16xf32>
    %121 = vector.shape_cast %114 : vector<16x32xf32> to vector<1x16x32xf32>
    %122 = tpu.transpose %121, [0, 2, 1] : vector<1x16x32xf32> -> vector<1x32x16xf32>
    %123 = vector.shape_cast %122 : vector<1x32x16xf32> to vector<4x8x16xf32>
    %124 = tpu.transpose %117, [0, 2, 1] : vector<4x8x8xf32> -> vector<4x8x8xf32>
    %125 = arith.truncf %124 : vector<4x8x8xf32> to vector<4x8x8xbf16>
    %126 = arith.truncf %120 : vector<4x8x16xf32> to vector<4x8x16xbf16>
    "tpu.trace_start"() <{level = 10 : i32, message = "gqh,ghk->gqk"}> : () -> ()
    %cst_62 = arith.constant dense<0.000000e+00> : vector<4x8x16xf32>
    %127 = tpu.matmul %125, %126, %cst_62 {dimension_numbers = #tpu.dot_dimension_numbers<[2], [1], [1], [2], [0, 0, 0, 1, 1, 2], [0], [0]>} : vector<4x8x8xbf16>, vector<4x8x16xbf16>, vector<4x8x16xf32> -> vector<4x8x16xf32>
    "tpu.trace_stop"() : () -> ()
    %128 = vector.shape_cast %127 : vector<4x8x16xf32> to vector<1x4x8x16xf32>
    %129 = vector.shape_cast %5 : vector<1x1x16xf32> to vector<1x1x1x16xf32>
    %130 = vector.broadcast %129 : vector<1x1x1x16xf32> to vector<1x4x8x16xf32>
    %131 = arith.addf %128, %130 : vector<1x4x8x16xf32>
    %132 = vector.shape_cast %131 : vector<1x4x8x16xf32> to vector<4x8x16xf32>
    %cst_63 = arith.constant dense<0xFF800000> : vector<4x8xf32>
    %133 = vector.multi_reduction <maximumf>, %132, %cst_63 [2] : vector<4x8x16xf32> to vector<4x8xf32>
    %134 = vector.shape_cast %133 : vector<4x8xf32> to vector<4x8x1xf32>
    %135 = vector.broadcast %134 : vector<4x8x1xf32> to vector<4x8x16xf32>
    %136 = arith.subf %132, %135 : vector<4x8x16xf32>
    %137 = math.exp %136 : vector<4x8x16xf32>
    %cst_64 = arith.constant dense<0.000000e+00> : vector<4x8xf32>
    %138 = vector.multi_reduction <add>, %137, %cst_64 [2] : vector<4x8x16xf32> to vector<4x8xf32>
    %139 = vector.shape_cast %138 : vector<4x8xf32> to vector<4x8x1xf32>
    %140 = tpu.reciprocal %139 {approx = true} : vector<4x8x1xf32> -> vector<4x8x1xf32>
    %141 = vector.broadcast %140 : vector<4x8x1xf32> to vector<4x8x16xf32>
    %142 = arith.mulf %137, %141 : vector<4x8x16xf32>
    %143 = arith.truncf %123 : vector<4x8x16xf32> to vector<4x8x16xbf16>
    %144 = arith.truncf %142 : vector<4x8x16xf32> to vector<4x8x16xbf16>
    "tpu.trace_start"() <{level = 10 : i32, message = "gdk,gqk->gdq"}> : () -> ()
    %cst_65 = arith.constant dense<0.000000e+00> : vector<4x8x8xf32>
    %145 = tpu.matmul %143, %144, %cst_65 {dimension_numbers = #tpu.dot_dimension_numbers<[2], [2], [1], [1], [0, 0, 0, 1, 1, 1], [0], [0]>} : vector<4x8x16xbf16>, vector<4x8x16xbf16>, vector<4x8x8xf32> -> vector<4x8x8xf32>
    "tpu.trace_stop"() : () -> ()
    %146 = vector.shape_cast %145 : vector<4x8x8xf32> to vector<1x32x8xf32>
    %147 = tpu.transpose %146, [0, 2, 1] : vector<1x32x8xf32> -> vector<1x8x32xf32>
    %148 = vector.shape_cast %147 : vector<1x8x32xf32> to vector<8x32xf32>
    %149 = arith.truncf %148 : vector<8x32xf32> to vector<8x32xbf16>
    %c0_66 = arith.constant 0 : index
    %c0_67 = arith.constant 0 : index
    %150 = vector.load %arg20[%c0_66, %c0_67] : memref<32x32xbf16, #tpu.memory_space<vmem>>, vector<32x32xbf16>
    %cst_68 = arith.constant dense<0.000000e+00> : vector<8x32xf32>
    %151 = tpu.matmul %149, %150, %cst_68 {dimension_numbers = #tpu.dot_dimension_numbers<[1], [0], [0], [1], [0, 0, 1, 1], [], []>} : vector<8x32xbf16>, vector<32x32xbf16>, vector<8x32xf32> -> vector<8x32xf32>
    %c0_69 = arith.constant 0 : index
    %c0_70 = arith.constant 0 : index
    %152 = vector.load %arg21[%c0_69, %c0_70] : memref<1x32xf32, #tpu.memory_space<vmem>>, vector<1x32xf32>
    %153 = vector.broadcast %152 : vector<1x32xf32> to vector<8x32xf32>
    %154 = arith.addf %151, %153 : vector<8x32xf32>
    %155 = arith.addf %94, %154 : vector<8x32xf32>
    %c0_71 = arith.constant 0 : index
    %c0_72 = arith.constant 0 : index
    %156 = vector.load %arg24[%c0_71, %c0_72] : memref<1x32xf32, #tpu.memory_space<vmem>>, vector<1x32xf32>
    %c0_73 = arith.constant 0 : index
    %c0_74 = arith.constant 0 : index
    %157 = vector.load %arg25[%c0_73, %c0_74] : memref<1x32xf32, #tpu.memory_space<vmem>>, vector<1x32xf32>
    %cst_75 = arith.constant dense<0.000000e+00> : vector<8xf32>
    %158 = vector.multi_reduction <add>, %155, %cst_75 [1] : vector<8x32xf32> to vector<8xf32>
    %159 = vector.shape_cast %158 : vector<8xf32> to vector<8x1xf32>
    %cst_76 = arith.constant 3.200000e+01 : f32
    %160 = vector.broadcast %cst_76 : f32 to vector<8x1xf32>
    %161 = arith.divf %159, %160 : vector<8x1xf32>
    %162 = vector.broadcast %161 : vector<8x1xf32> to vector<8x32xf32>
    %163 = arith.subf %155, %162 : vector<8x32xf32>
    %164 = arith.mulf %163, %163 : vector<8x32xf32>
    %cst_77 = arith.constant dense<0.000000e+00> : vector<8xf32>
    %165 = vector.multi_reduction <add>, %164, %cst_77 [1] : vector<8x32xf32> to vector<8xf32>
    %166 = vector.shape_cast %165 : vector<8xf32> to vector<8x1xf32>
    %cst_78 = arith.constant 3.200000e+01 : f32
    %167 = vector.broadcast %cst_78 : f32 to vector<8x1xf32>
    %168 = arith.divf %166, %167 : vector<8x1xf32>
    %169 = vector.broadcast %161 : vector<8x1xf32> to vector<8x32xf32>
    %170 = arith.subf %155, %169 : vector<8x32xf32>
    %cst_79 = arith.constant 9.99999974E-6 : f32
    %171 = vector.broadcast %cst_79 : f32 to vector<8x1xf32>
    %172 = arith.addf %168, %171 : vector<8x1xf32>
    %173 = math.rsqrt %172 : vector<8x1xf32>
    %174 = vector.broadcast %173 : vector<8x1xf32> to vector<8x32xf32>
    %175 = arith.mulf %170, %174 : vector<8x32xf32>
    %176 = vector.broadcast %156 : vector<1x32xf32> to vector<8x32xf32>
    %177 = arith.mulf %175, %176 : vector<8x32xf32>
    %178 = vector.broadcast %157 : vector<1x32xf32> to vector<8x32xf32>
    %179 = arith.addf %177, %178 : vector<8x32xf32>
    %180 = arith.truncf %179 : vector<8x32xf32> to vector<8x32xbf16>
    %cst_80 = arith.constant 0.000000e+00 : f32
    %181 = vector.broadcast %cst_80 : f32 to vector<8x32xf32>
    %c0_81 = arith.constant 0 : index
    %c0_82 = arith.constant 0 : index
    %182 = vector.load %arg28[%c0_81, %c0_82] : memref<32x128xbf16, #tpu.memory_space<vmem>>, vector<32x128xbf16>
    %cst_83 = arith.constant dense<0.000000e+00> : vector<8x128xf32>
    %183 = tpu.matmul %180, %182, %cst_83 {dimension_numbers = #tpu.dot_dimension_numbers<[1], [0], [0], [1], [0, 0, 1, 1], [], []>} : vector<8x32xbf16>, vector<32x128xbf16>, vector<8x128xf32> -> vector<8x128xf32>
    %c0_84 = arith.constant 0 : index
    %c0_85 = arith.constant 0 : index
    %184 = vector.load %arg29[%c0_84, %c0_85] : memref<1x128xf32, #tpu.memory_space<vmem>>, vector<1x128xf32>
    %185 = vector.broadcast %184 : vector<1x128xf32> to vector<8x128xf32>
    %186 = arith.addf %183, %185 : vector<8x128xf32>
    %cst_86 = arith.constant 5.000000e-01 : f32
    %187 = vector.broadcast %cst_86 : f32 to vector<8x128xf32>
    %188 = arith.mulf %186, %187 : vector<8x128xf32>
    %cst_87 = arith.constant 1.41421354 : f32
    %189 = vector.broadcast %cst_87 : f32 to vector<8x128xf32>
    %190 = arith.divf %186, %189 : vector<8x128xf32>
    %191 = math.erf %190 : vector<8x128xf32>
    %cst_88 = arith.constant 1.000000e+00 : f32
    %192 = vector.broadcast %cst_88 : f32 to vector<8x128xf32>
    %193 = arith.addf %192, %191 : vector<8x128xf32>
    %194 = arith.mulf %188, %193 : vector<8x128xf32>
    %195 = arith.truncf %194 : vector<8x128xf32> to vector<8x128xbf16>
    %c0_89 = arith.constant 0 : index
    %c0_90 = arith.constant 0 : index
    %196 = vector.load %arg30[%c0_89, %c0_90] : memref<128x32xbf16, #tpu.memory_space<vmem>>, vector<128x32xbf16>
    %cst_91 = arith.constant dense<0.000000e+00> : vector<8x32xf32>
    %197 = tpu.matmul %195, %196, %cst_91 {dimension_numbers = #tpu.dot_dimension_numbers<[1], [0], [0], [1], [0, 0, 1, 1], [], []>} : vector<8x128xbf16>, vector<128x32xbf16>, vector<8x32xf32> -> vector<8x32xf32>
    %198 = arith.addf %181, %197 : vector<8x32xf32>
    %c0_92 = arith.constant 0 : index
    %c0_93 = arith.constant 0 : index
    %199 = vector.load %arg31[%c0_92, %c0_93] : memref<1x32xf32, #tpu.memory_space<vmem>>, vector<1x32xf32>
    %200 = vector.broadcast %199 : vector<1x32xf32> to vector<8x32xf32>
    %201 = arith.addf %198, %200 : vector<8x32xf32>
    %202 = arith.addf %179, %201 : vector<8x32xf32>
    %c0_94 = arith.constant 0 : index
    %c0_95 = arith.constant 0 : index
    %203 = vector.load %arg26[%c0_94, %c0_95] : memref<1x32xf32, #tpu.memory_space<vmem>>, vector<1x32xf32>
    %c0_96 = arith.constant 0 : index
    %c0_97 = arith.constant 0 : index
    %204 = vector.load %arg27[%c0_96, %c0_97] : memref<1x32xf32, #tpu.memory_space<vmem>>, vector<1x32xf32>
    %cst_98 = arith.constant dense<0.000000e+00> : vector<8xf32>
    %205 = vector.multi_reduction <add>, %202, %cst_98 [1] : vector<8x32xf32> to vector<8xf32>
    %206 = vector.shape_cast %205 : vector<8xf32> to vector<8x1xf32>
    %cst_99 = arith.constant 3.200000e+01 : f32
    %207 = vector.broadcast %cst_99 : f32 to vector<8x1xf32>
    %208 = arith.divf %206, %207 : vector<8x1xf32>
    %209 = vector.broadcast %208 : vector<8x1xf32> to vector<8x32xf32>
    %210 = arith.subf %202, %209 : vector<8x32xf32>
    %211 = arith.mulf %210, %210 : vector<8x32xf32>
    %cst_100 = arith.constant dense<0.000000e+00> : vector<8xf32>
    %212 = vector.multi_reduction <add>, %211, %cst_100 [1] : vector<8x32xf32> to vector<8xf32>
    %213 = vector.shape_cast %212 : vector<8xf32> to vector<8x1xf32>
    %cst_101 = arith.constant 3.200000e+01 : f32
    %214 = vector.broadcast %cst_101 : f32 to vector<8x1xf32>
    %215 = arith.divf %213, %214 : vector<8x1xf32>
    %216 = vector.broadcast %208 : vector<8x1xf32> to vector<8x32xf32>
    %217 = arith.subf %202, %216 : vector<8x32xf32>
    %cst_102 = arith.constant 9.99999974E-6 : f32
    %218 = vector.broadcast %cst_102 : f32 to vector<8x1xf32>
    %219 = arith.addf %215, %218 : vector<8x1xf32>
    %220 = math.rsqrt %219 : vector<8x1xf32>
    %221 = vector.broadcast %220 : vector<8x1xf32> to vector<8x32xf32>
    %222 = arith.mulf %217, %221 : vector<8x32xf32>
    %223 = vector.broadcast %203 : vector<1x32xf32> to vector<8x32xf32>
    %224 = arith.mulf %222, %223 : vector<8x32xf32>
    %225 = vector.broadcast %204 : vector<1x32xf32> to vector<8x32xf32>
    %226 = arith.addf %224, %225 : vector<8x32xf32>
    %227 = vector.shape_cast %226 : vector<8x32xf32> to vector<1x8x32xf32>
    %c0_103 = arith.constant 0 : index
    %c0_104 = arith.constant 0 : index
    %c0_105 = arith.constant 0 : index
    %228 = vector.load %arg32[%c0_103, %c0_104, %c0_105] : memref<1x8x32xf32, #tpu.memory_space<vmem>>, vector<1x8x32xf32>
    tpu.vector_store %arg32[%c0_103, %c0_104, %c0_105], %227 {strides = array<i32>} : memref<1x8x32xf32, #tpu.memory_space<vmem>>, vector<1x8x32xf32>,
    return
  }
  func.func @transform_0(%arg0: i32) -> (i32, i32, i32) {
    %c0_i32 = arith.constant 0 : i32
    %c0_i32_0 = arith.constant 0 : i32
    %c0_i32_1 = arith.constant 0 : i32
    return %arg0, %c0_i32, %c0_i32_0 : i32, i32, i32
  }
  func.func @transform_1(%arg0: i32) -> (i32, i32, i32) {
    %c0_i32 = arith.constant 0 : i32
    %c0_i32_0 = arith.constant 0 : i32
    %c0_i32_1 = arith.constant 0 : i32
    return %arg0, %c0_i32, %c0_i32_0 : i32, i32, i32
  }
  func.func @transform_2(%arg0: i32) -> (i32, i32) {
    %c0_i32 = arith.constant 0 : i32
    %c0_i32_0 = arith.constant 0 : i32
    %c0_i32_1 = arith.constant 0 : i32
    return %c0_i32, %c0_i32_0 : i32, i32
  }
  func.func @transform_3(%arg0: i32) -> (i32, i32, i32) {
    %c0_i32 = arith.constant 0 : i32
    %c0_i32_0 = arith.constant 0 : i32
    %c0_i32_1 = arith.constant 0 : i32
    return %arg0, %c0_i32, %c0_i32_0 : i32, i32, i32
  }
  func.func @transform_4(%arg0: i32) -> (i32, i32, i32) {
    %c0_i32 = arith.constant 0 : i32
    %c0_i32_0 = arith.constant 0 : i32
    %c0_i32_1 = arith.constant 0 : i32
    return %arg0, %c0_i32, %c0_i32_0 : i32, i32, i32
  }
  func.func @transform_5(%arg0: i32) -> (i32, i32) {
    %c0_i32 = arith.constant 0 : i32
    %c0_i32_0 = arith.constant 0 : i32
    %c0_i32_1 = arith.constant 0 : i32
    return %c0_i32, %c0_i32_0 : i32, i32
  }
  func.func @transform_6(%arg0: i32) -> (i32, i32) {
    %c0_i32 = arith.constant 0 : i32
    %c0_i32_0 = arith.constant 0 : i32
    %c0_i32_1 = arith.constant 0 : i32
    return %c0_i32, %c0_i32_0 : i32, i32
  }
  func.func @transform_7(%arg0: i32) -> (i32, i32) {
    %c0_i32 = arith.constant 0 : i32
    %c0_i32_0 = arith.constant 0 : i32
    %c0_i32_1 = arith.constant 0 : i32
    return %c0_i32, %c0_i32_0 : i32, i32
  }
  func.func @transform_8(%arg0: i32) -> (i32, i32) {
    %c0_i32 = arith.constant 0 : i32
    %c0_i32_0 = arith.constant 0 : i32
    %c0_i32_1 = arith.constant 0 : i32
    return %c0_i32, %c0_i32_0 : i32, i32
  }
  func.func @transform_9(%arg0: i32) -> (i32, i32) {
    %c0_i32 = arith.constant 0 : i32
    %c0_i32_0 = arith.constant 0 : i32
    %c0_i32_1 = arith.constant 0 : i32
    return %c0_i32, %c0_i32_0 : i32, i32
  }
  func.func @transform_10(%arg0: i32) -> (i32, i32) {
    %c0_i32 = arith.constant 0 : i32
    %c0_i32_0 = arith.constant 0 : i32
    %c0_i32_1 = arith.constant 0 : i32
    return %c0_i32, %c0_i32_0 : i32, i32
  }
  func.func @transform_11(%arg0: i32) -> (i32, i32) {
    %c0_i32 = arith.constant 0 : i32
    %c0_i32_0 = arith.constant 0 : i32
    %c0_i32_1 = arith.constant 0 : i32
    return %c0_i32, %c0_i32_0 : i32, i32
  }
  func.func @transform_12(%arg0: i32) -> (i32, i32) {
    %c0_i32 = arith.constant 0 : i32
    %c0_i32_0 = arith.constant 0 : i32
    %c0_i32_1 = arith.constant 0 : i32
    return %c0_i32, %c0_i32_0 : i32, i32
  }
  func.func @transform_13(%arg0: i32) -> (i32, i32) {
    %c0_i32 = arith.constant 0 : i32
    %c0_i32_0 = arith.constant 0 : i32
    %c0_i32_1 = arith.constant 0 : i32
    return %c0_i32, %c0_i32_0 : i32, i32
  }
  func.func @transform_14(%arg0: i32) -> (i32, i32) {
    %c0_i32 = arith.constant 0 : i32
    %c0_i32_0 = arith.constant 0 : i32
    %c0_i32_1 = arith.constant 0 : i32
    return %c0_i32, %c0_i32_0 : i32, i32
  }
  func.func @transform_15(%arg0: i32) -> (i32, i32) {
    %c0_i32 = arith.constant 0 : i32
    %c0_i32_0 = arith.constant 0 : i32
    %c0_i32_1 = arith.constant 0 : i32
    return %c0_i32, %c0_i32_0 : i32, i32
  }
  func.func @transform_16(%arg0: i32) -> (i32, i32) {
    %c0_i32 = arith.constant 0 : i32
    %c0_i32_0 = arith.constant 0 : i32
    %c0_i32_1 = arith.constant 0 : i32
    return %c0_i32, %c0_i32_0 : i32, i32
  }
  func.func @transform_17(%arg0: i32) -> (i32, i32) {
    %c0_i32 = arith.constant 0 : i32
    %c0_i32_0 = arith.constant 0 : i32
    %c0_i32_1 = arith.constant 0 : i32
    return %c0_i32, %c0_i32_0 : i32, i32
  }
  func.func @transform_18(%arg0: i32) -> (i32, i32) {
    %c0_i32 = arith.constant 0 : i32
    %c0_i32_0 = arith.constant 0 : i32
    %c0_i32_1 = arith.constant 0 : i32
    return %c0_i32, %c0_i32_0 : i32, i32
  }
  func.func @transform_19(%arg0: i32) -> (i32, i32) {
    %c0_i32 = arith.constant 0 : i32
    %c0_i32_0 = arith.constant 0 : i32
    %c0_i32_1 = arith.constant 0 : i32
    return %c0_i32, %c0_i32_0 : i32, i32
  }
  func.func @transform_20(%arg0: i32) -> (i32, i32) {
    %c0_i32 = arith.constant 0 : i32
    %c0_i32_0 = arith.constant 0 : i32
    %c0_i32_1 = arith.constant 0 : i32
    return %c0_i32, %c0_i32_0 : i32, i32
  }
  func.func @transform_21(%arg0: i32) -> (i32, i32) {
    %c0_i32 = arith.constant 0 : i32
    %c0_i32_0 = arith.constant 0 : i32
    %c0_i32_1 = arith.constant 0 : i32
    return %c0_i32, %c0_i32_0 : i32, i32
  }
  func.func @transform_22(%arg0: i32) -> (i32, i32) {
    %c0_i32 = arith.constant 0 : i32
    %c0_i32_0 = arith.constant 0 : i32
    %c0_i32_1 = arith.constant 0 : i32
    return %c0_i32, %c0_i32_0 : i32, i32
  }
  func.func @transform_23(%arg0: i32) -> (i32, i32) {
    %c0_i32 = arith.constant 0 : i32
    %c0_i32_0 = arith.constant 0 : i32
    %c0_i32_1 = arith.constant 0 : i32
    return %c0_i32, %c0_i32_0 : i32, i32
  }
  func.func @transform_24(%arg0: i32) -> (i32, i32) {
    %c0_i32 = arith.constant 0 : i32
    %c0_i32_0 = arith.constant 0 : i32
    %c0_i32_1 = arith.constant 0 : i32
    return %c0_i32, %c0_i32_0 : i32, i32
  }
  func.func @transform_25(%arg0: i32) -> (i32, i32) {
    %c0_i32 = arith.constant 0 : i32
    %c0_i32_0 = arith.constant 0 : i32
    %c0_i32_1 = arith.constant 0 : i32
    return %c0_i32, %c0_i32_0 : i32, i32
  }
  func.func @transform_26(%arg0: i32) -> (i32, i32) {
    %c0_i32 = arith.constant 0 : i32
    %c0_i32_0 = arith.constant 0 : i32
    %c0_i32_1 = arith.constant 0 : i32
    return %c0_i32, %c0_i32_0 : i32, i32
  }
  func.func @transform_27(%arg0: i32) -> (i32, i32) {
    %c0_i32 = arith.constant 0 : i32
    %c0_i32_0 = arith.constant 0 : i32
    %c0_i32_1 = arith.constant 0 : i32
    return %c0_i32, %c0_i32_0 : i32, i32
  }
  func.func @transform_28(%arg0: i32) -> (i32, i32) {
    %c0_i32 = arith.constant 0 : i32
    %c0_i32_0 = arith.constant 0 : i32
    %c0_i32_1 = arith.constant 0 : i32
    return %c0_i32, %c0_i32_0 : i32, i32
  }
  func.func @transform_29(%arg0: i32) -> (i32, i32) {
    %c0_i32 = arith.constant 0 : i32
    %c0_i32_0 = arith.constant 0 : i32
    %c0_i32_1 = arith.constant 0 : i32
    return %c0_i32, %c0_i32_0 : i32, i32
  }
  func.func @transform_30(%arg0: i32) -> (i32, i32) {
    %c0_i32 = arith.constant 0 : i32
    %c0_i32_0 = arith.constant 0 : i32
    %c0_i32_1 = arith.constant 0 : i32
    return %c0_i32, %c0_i32_0 : i32, i32
  }
  func.func @transform_31(%arg0: i32) -> (i32, i32, i32) {
    %c0_i32 = arith.constant 0 : i32
    %c0_i32_0 = arith.constant 0 : i32
    %c0_i32_1 = arith.constant 0 : i32
    return %arg0, %c0_i32, %c0_i32_0 : i32, i32, i32
  }
}

</mosaic_0001>

<bundles_post_ra>
// kernel: tpu_custom_call.1
= control target key start
LH: loop header
LB: loop body
LE: loop exit
PB: predicated region body
PF: predicated region fallthrough
CT: control target
= control target key end

     0   :  { %s5020_s6 = smov 1   ;;  %s5021_s10 = smov 2   ;;  %s5799_s0 = inlined_call_operand.smem [shape: u32[32], index: -1, kind: input, shape index: {}] }
   0x1   :  { %s5084_s5 = sld [smem:[%s5799_s0]]   ;;  %s5022_s14 = smov 3  }
   0x2   :  { %s5089_s9 = sld [smem:[%s5799_s0 + %s5020_s6]]   ;;  %s5023_s18 = smov 4  }
   0x3   :  { %s5094_s13 = sld [smem:[%s5799_s0 + %s5021_s10]]   ;;  %s5024_s22 = smov 5  }
   0x4   :  { %s5099_s17 = sld [smem:[%s5799_s0 + %s5022_s14]]   ;;  %s5025_s26 = smov 6  }
   0x5   :  { %s5104_s21 = sld [smem:[%s5799_s0 + %s5023_s18]]   ;;  %s5026_s30 = smov 7  }
   0x6   :  { %s5109_s25 = sld [smem:[%s5799_s0 + %s5024_s22]]   ;;  %s5027_s4 = smov 8  }
   0x7   :  { %5817 = sst [smem:[#allocation47_spill]] %s5084_s5  ;;  %s5028_s10 = smov 9  }
   0x8   :  { %5818 = sst [smem:[#allocation48_spill]] %s5089_s9  ;;  %s5029_s15 = smov 10  }
   0x9   :  { %s5114_s29 = sld [smem:[%s5799_s0 + %s5025_s26]]   ;;  %s5030_s20 = smov 11  }
   0xa   :  { %5819 = sst [smem:[#allocation49_spill]] %s5099_s17  ;;  %s5031_s26 = smov 12  }
   0xb   :  { %s5119_s3 = sld [smem:[%s5799_s0 + %s5026_s30]]   ;;  %s5032_s1 = smov 13  }
   0xc   :  { %5820 = sst [smem:[#allocation50_spill]] %s5109_s25  ;;  %s5033_s7 = smov 14  }
   0xd   :  { %s5124_s8 = sld [smem:[%s5799_s0 + %s5027_s4]]   ;;  %s5035_s22 = smov 16  }
   0xe   :  { %s5129_s14 = sld [smem:[%s5799_s0 + %s5028_s10]]   ;;  %s5036_s28 = smov 17  }
   0xf   :  { %5821 = sst [smem:[#allocation51_spill]] %s5114_s29 }
  0x10   :  { %s5134_s19 = sld [smem:[%s5799_s0 + %s5029_s15]]   ;;  %s5034_s15 = smov 15  }
  0x11   :  { %5822 = sst [smem:[#allocation52_spill]] %s5119_s3 }
  0x12   :  { %s5139_s24 = sld [smem:[%s5799_s0 + %s5030_s20]]  }
  0x13   :  { %s5144_s30 = sld [smem:[%s5799_s0 + %s5031_s26]]  }
  0x14   :  { %5823 = sst [smem:[#allocation53_spill]] %s5129_s14 }
  0x15   :  { %s5149_s6 = sld [smem:[%s5799_s0 + %s5032_s1]]  }
  0x16   :  { %5824 = sst [smem:[#allocation54_spill]] %s5134_s19 }
  0x17   :  { %s5154_s12 = sld [smem:[%s5799_s0 + %s5033_s7]]   ;;  %s5037_s7 = smov 18  }
  0x18   :  { %s5159_s20 = sld [smem:[%s5799_s0 + %s5034_s15]]   ;;  %s5038_s15 = smov 19  }
  0x19   :  { %5825 = sst [smem:[#allocation55_spill]] %s5144_s30 }
  0x1a   :  { %s5164_s27 = sld [smem:[%s5799_s0 + %s5035_s22]]   ;;  %s5039_s22 = smov 20  }
  0x1b   :  { %5826 = sst [smem:[#allocation56_spill]] %s5149_s6 }
  0x1c   :  { %s5169_s4 = sld [smem:[%s5799_s0 + %s5036_s28]]   ;;  %s5040_s28 = smov 21  }
  0x1d   :  { %5827 = sst [smem:[#allocation57_spill]] %s5154_s12 }
  0x1e   :  { %5828 = sst [smem:[#allocation58_spill]] %s5159_s20 }
  0x1f   :  { %s5174_s9 = sld [smem:[%s5799_s0 + %s5037_s7]]   ;;  %s5041_s7 = smov 22  }
  0x20   :  { %5829 = sst [smem:[#allocation59_spill]] %s5164_s27 }
  0x21   :  { %s5179_s14 = sld [smem:[%s5799_s0 + %s5038_s15]]   ;;  %s5042_s15 = smov 23  }
  0x22   :  { %5830 = sst [smem:[#allocation60_spill]] %s5169_s4 }
  0x23   :  { %s5184_s3 = sld [smem:[%s5799_s0 + %s5039_s22]]   ;;  %s5043_s22 = smov 24  }
  0x24   :  { %s5189_s25 = sld [smem:[%s5799_s0 + %s5040_s28]]   ;;  %s5044_s28 = smov 25  }
  0x25   :  { %5831 = sst [smem:[#allocation61_spill]] %s5174_s9 }
  0x26   :  { %s5194_s5 = sld [smem:[%s5799_s0 + %s5041_s7]]   ;;  %s5045_s7 = smov 26  }
  0x27   :  { %5832 = sst [smem:[#allocation62_spill]] %s5179_s14 }
  0x28   :  { %s5199_s14 = sld [smem:[%s5799_s0 + %s5042_s15]]   ;;  %s5046_s15 = smov 27  }
  0x29   :  { %5833 = sst [smem:[#allocation63_spill]] %s5184_s3 }
  0x2a   :  { %5834 = sst [smem:[#allocation64_spill]] %s5189_s25 }
  0x2b   :  { %s5204_s3 = sld [smem:[%s5799_s0 + %s5043_s22]]   ;;  %s5047_s22 = smov 28  }
  0x2c   :  { %5835 = sst [smem:[#allocation65_spill]] %s5194_s5 }
  0x2d   :  { %s5209_s25 = sld [smem:[%s5799_s0 + %s5044_s28]]   ;;  %s5048_s28 = smov 29  }
  0x2e   :  { %5836 = sst [smem:[#allocation66_spill]] %s5199_s14 }
  0x2f   :  { %s5214_s4 = sld [smem:[%s5799_s0 + %s5045_s7]]   ;;  %s5049_s7 = smov 30  }
  0x30   :  { %s5219_s14 = sld [smem:[%s5799_s0 + %s5046_s15]]   ;;  %s5050_s15 = smov 31  }
  0x31   :  { %5837 = sst [smem:[#allocation67_spill]] %s5204_s3 }
  0x32   :  { %s5224_s20 = sld [smem:[%s5799_s0 + %s5047_s22]]  }
  0x33   :  { %5838 = sst [smem:[#allocation68_spill]] %s5209_s25 }
  0x34   :  { %s5229_s25 = sld [smem:[%s5799_s0 + %s5048_s28]]  }
  0x35   :  { %5839 = sst [smem:[#allocation69_spill]] %s5214_s4 }
  0x36   :  { %5840 = sst [smem:[#allocation70_spill]] %s5219_s14 }
  0x37   :  { %s5234_s4 = sld [smem:[%s5799_s0 + %s5049_s7]]  }
  0x38   :  { %5841 = sst [smem:[#allocation71_spill]] %s5224_s20 }
  0x39   :  { %s5239_s14 = sld [smem:[%s5799_s0 + %s5050_s15]]  }
  0x3d   :  { %5842 = sst [smem:[#allocation72_spill]] %s5234_s4 }
  0x3f   :  { %5843 = sst [smem:[#allocation73_spill]] %s5239_s14 }
  0x40   :  { %68 = vsyncpa [#allocation3], 0 }
  0x41   :  { %69 = vsyncpa [#allocation6], 0 }
  0x42   :  { %71 = vsyncpa [#allocation6 + $0x1], 0 }
  0x43   :  { %72 = vsyncpa [#allocation9], 0 }
  0x44   :  { %73 = vsyncpa [#allocation12], 0 }
  0x45   :  { %74 = vsyncpa [#allocation15], 0 }
  0x46   :  { %75 = vsyncpa [#allocation18], 0 }
  0x47   :  { %76 = vsyncpa [#allocation21], 0 }
  0x48   :  { %77 = vsyncpa [#allocation24], 0 }
  0x49   :  { %78 = vsyncpa [#allocation27], 0 }
  0x4a   :  { %79 = vsyncpa [#allocation30], 0 }
  0x4b   :  { %80 = vsyncpa [#allocation33], 0 }
  0x4c   :  { %81 = vsyncpa [#allocation4], 0 }
  0x4d   :  { %83 = vsyncpa [#allocation4 + $0x1], 0  ;;  %s5241_s22 = smov 0   ;;  %s5243_s23 = smov 0  }
  0x4e   :  { %s5245_s0 = smov 0   ;;  %s5247_s26 = smov 0  }
  0x4f LB: > { %s5844_s17 = sld [smem:[#allocation49_spill]]  ;;  %s5051_s28 = smov [#allocation8]   ;;  %s5006_s22 = sphi %s5241_s22, %s5911_s22   ;;  %s5018_s26 = sphi %s5247_s26, %s5914_s26   ;;  %s5014_s0 = sphi %s5245_s0, %s5913_s0   ;;  %s5010_s23 = sphi %s5243_s23, %s5912_s23  }
  0x50   : > { %s818_s1 = sshll.u32 %s5051_s28, 4  ;;  %s5262_s2 = sadd.s32 4294967295, %s5018_s26   ;;  %s819_s1 = int_to_ptr.vmem [resolvable:$true] %s818_s1 }
  0x51   : > { %p3681_p0 = scmp.ge.s32.totalorder %s5018_s26, 1  ;;  %p5806_p1 = scmp.eq.s32.totalorder %s5262_s2, 0 }
  0x52   : > { %p791_p2 = scmp.lt.s32.totalorder %s5018_s26, 3  ;;  %s5052_s10 = smov [#allocation11]  }
  0x53   : > { %s846_s11 = sshll.u32 %s5052_s10, 4  ;;  %s5053_s15 = smov [#allocation14]   ;;  %s5274_s11 = int_to_ptr.vmem [resolvable:$true] %s846_s11 }
  0x54   : > { %p5267_p3 = pnand %p3681_p0, %p791_p2  ;;  %s870_s16 = sshll.u32 %s5053_s15, 4  ;;  %s5282_s16 = int_to_ptr.vmem [resolvable:$true] %s870_s16 }
  0x55   : > { %s5054_s28 = smov [#allocation17]   ;;  %s4401_s10 = scalar_lea.vmem %s819_s1, 16 }
  0x56   : > { %s5845_s7 = scalar_select %p5267_p3, 1, 0 }
  0x57   : > { %p4134_p5 = pneg %p5267_p3  ;;  %s5284_s14 = sshll.u32 %s5054_s28, 4  ;;  %s895_s14 = int_to_ptr.vmem [resolvable:$true] %s5284_s14 }
  0x58   : > { %p4402_p8 = scmp.ne.s32.totalorder %s819_s1, %s4401_s10  ;;  %s4408_s15 = scalar_lea.vmem %s819_s1, 32 }
  0x59   : > { %p5278_p6 = pnand %p4134_p5, %p5806_p1  ;;  %p4409_p11 = scmp.lt.s32.totalorder %s819_s1, %s819_s1 }
  0x5a   : > { %p4410_p12 = scmp.lt.s32.totalorder %s4408_s15, %s4401_s10 }
  0x5b   : > { %s5846_s18 = scalar_select %p5278_p6, 1, 0 }
  0x5c   : > { %p5288_p7 = pneg %p5278_p6  ;;  %p4411_p13 = por %p4410_p12, %p4409_p11 }
  0x5e   : > { %p4404_p9 = pnand %p4402_p8, %p5288_p7 }
  0x60   : > { %p4405_p10 = pneg %p4404_p9 }
  0x62   : > { %p4412_p0 = pnand %p4411_p13, %p4405_p10 }
  0x64   : > { %4415 = shalt.err (!%p4412_p0)
}
  0x65   : > { %s5848_s29 = sld [smem:[#allocation51_spill]]  ;;  %s4427_s28 = scalar_lea.vmem %s5274_s11, 16 }
  0x66   : > { %p4428_p2 = scmp.ne.s32.totalorder %s5274_s11, %s4427_s28  ;;  %s4434_s20 = scalar_lea.vmem %s5274_s11, 32 }
  0x67   : > { %p4435_p9 = scmp.lt.s32.totalorder %s5274_s11, %s5274_s11  ;;  %p4436_p11 = scmp.lt.s32.totalorder %s4434_s20, %s4427_s28 }
  0x68   : > { %p4430_p5 = pnand %p4428_p2, %p5288_p7 }
  0x69   : > { %p4437_p10 = por %p4436_p11, %p4435_p9 }
  0x6a   : > { %p4431_p8 = pneg %p4430_p5 }
  0x6b   : > { %4140 = dma.hbm_to_vmem [thread:$0]  (!%p5278_p6), %s5848_s29, 16, %s819_s1, [#allocation9]  }
  0x6c   : > { %p4438_p12 = pnand %p4437_p10, %p4431_p8 }
  0x6e   : > { %4441 = shalt.err (!%p4438_p12)
}
  0x6f   : > { %s5849_s19 = sld [smem:[#allocation54_spill]]  ;;  %s4453_s1 = scalar_lea.vmem %s5282_s16, 16 }
  0x70   : > { %p4454_p13 = scmp.ne.s32.totalorder %s5282_s16, %s4453_s1  ;;  %s4460_s10 = scalar_lea.vmem %s5282_s16, 32 }
  0x71   : > { %p4461_p5 = scmp.lt.s32.totalorder %s5282_s16, %s5282_s16  ;;  %p4462_p8 = scmp.lt.s32.totalorder %s4460_s10, %s4453_s1 }
  0x72   : > { %p4456_p0 = pnand %p4454_p13, %p5288_p7 }
  0x73   : > { %p4463_p9 = por %p4462_p8, %p4461_p5 }
  0x74   : > { %p4457_p2 = pneg %p4456_p0 }
  0x75   : > { %4146 = dma.hbm_to_vmem [thread:$0]  (!%p5278_p6), %s5849_s19, 16, %s5274_s11, [#allocation12]  }
  0x76   : > { %p4464_p11 = pnand %p4463_p9, %p4457_p2 }
  0x78   : > { %4467 = shalt.err (!%p4464_p11)
}
  0x79   : > { %s5850_s30 = sld [smem:[#allocation55_spill]]  ;;  %s5055_s20 = smov [#allocation20]  }
  0x7a   : > { %s918_s11 = sshll.u32 %s5055_s20, 4  ;;  %s4479_s15 = scalar_lea.vmem %s895_s14, 16  ;;  %s919_s11 = int_to_ptr.vmem [resolvable:$true] %s918_s11 }
  0x7b   : > { %p4480_p10 = scmp.ne.s32.totalorder %s895_s14, %s4479_s15  ;;  %s4486_s28 = scalar_lea.vmem %s895_s14, 32 }
  0x7c   : > { %p4487_p0 = scmp.lt.s32.totalorder %s895_s14, %s895_s14  ;;  %p4488_p5 = scmp.lt.s32.totalorder %s4486_s28, %s4479_s15 }
  0x7d   : > { %p4482_p12 = pnand %p4480_p10, %p5288_p7 }
  0x7e   : > { %p4489_p2 = por %p4488_p5, %p4487_p0 }
  0x7f   : > { %4152 = dma.hbm_to_vmem [thread:$0]  (!%p5278_p6), %s5850_s30, 16, %s5282_s16, [#allocation15]  }
  0x80   : > { %p4483_p13 = pneg %p4482_p12 }
  0x82   : > { %p4490_p8 = pnand %p4489_p2, %p4483_p13 }
  0x84   : > { %4493 = shalt.err (!%p4490_p8)
}
  0x85   : > { %s5851_s12 = sld [smem:[#allocation57_spill]]  ;;  %s4505_s16 = scalar_lea.vmem %s919_s11, 16 }
  0x86   : > { %p4506_p9 = scmp.ne.s32.totalorder %s919_s11, %s4505_s16  ;;  %s4512_s1 = scalar_lea.vmem %s919_s11, 32 }
  0x87   : > { %p4513_p10 = scmp.lt.s32.totalorder %s919_s11, %s919_s11  ;;  %p4514_p12 = scmp.lt.s32.totalorder %s4512_s1, %s4505_s16 }
  0x88   : > { %p4508_p11 = pnand %p4506_p9, %p5288_p7 }
  0x89   : > { %p4515_p1 = por %p4514_p12, %p4513_p10 }
  0x8a   : > { %p4509_p4 = pneg %p4508_p11 }
  0x8b   : > { %4158 = dma.hbm_to_vmem [thread:$0]  (!%p5278_p6), %s5851_s12, 16, %s895_s14, [#allocation18]  }
  0x8c   : > { %p4516_p3 = pnand %p4515_p1, %p4509_p4 }
  0x8e   : > { %4519 = shalt.err (!%p4516_p3)
}
  0x8f   : > { %s5852_s27 = sld [smem:[#allocation59_spill]]  ;;  %s5056_s10 = smov [#allocation23]  }
  0x90   : > { %s942_s20 = sshll.u32 %s5056_s10, 4  ;;  %s5057_s14 = smov [#allocation26]   ;;  %s943_s20 = int_to_ptr.vmem [resolvable:$true] %s942_s20 }
  0x91   : > { %s970_s15 = sshll.u32 %s5057_s14, 4  ;;  %s4531_s28 = scalar_lea.vmem %s943_s20, 16  ;;  %s971_s15 = int_to_ptr.vmem [resolvable:$true] %s970_s15 }
  0x92   : > { %p4532_p13 = scmp.ne.s32.totalorder %s943_s20, %s4531_s28  ;;  %s4538_s12 = scalar_lea.vmem %s943_s20, 32 }
  0x93   : > { %p4539_p2 = scmp.lt.s32.totalorder %s943_s20, %s943_s20  ;;  %p4540_p8 = scmp.lt.s32.totalorder %s4538_s12, %s4531_s28 }
  0x94   : > { %p4534_p0 = pnand %p4532_p13, %p5288_p7 }
  0x95   : > { %4164 = dma.hbm_to_vmem [thread:$0]  (!%p5278_p6), %s5852_s27, 16, %s919_s11, [#allocation21]  }
  0x96   : > { %p4535_p5 = pneg %p4534_p0  ;;  %p4541_p1 = por %p4540_p8, %p4539_p2 }
  0x98   : > { %p4542_p3 = pnand %p4541_p1, %p4535_p5 }
  0x9a   : > { %4545 = shalt.err (!%p4542_p3)
}
  0x9b   : > { %s5853_s9 = sld [smem:[#allocation61_spill]]  ;;  %s4557_s11 = scalar_lea.vmem %s971_s15, 16 }
  0x9c   : > { %p4558_p4 = scmp.ne.s32.totalorder %s971_s15, %s4557_s11  ;;  %s4564_s16 = scalar_lea.vmem %s971_s15, 32 }
  0x9d   : > { %p4565_p10 = scmp.lt.s32.totalorder %s971_s15, %s971_s15  ;;  %p4566_p12 = scmp.lt.s32.totalorder %s4564_s16, %s4557_s11 }
  0x9e   : > { %p4560_p9 = pnand %p4558_p4, %p5288_p7 }
  0x9f   : > { %p4567_p13 = por %p4566_p12, %p4565_p10 }
  0xa0   : > { %p4561_p11 = pneg %p4560_p9 }
  0xa1   : > { %4170 = dma.hbm_to_vmem [thread:$0]  (!%p5278_p6), %s5853_s9, 16, %s943_s20, [#allocation24]  }
  0xa2   : > { %p4568_p0 = pnand %p4567_p13, %p4561_p11 }
  0xa4   : > { %4571 = shalt.err (!%p4568_p0)
}
  0xa5   : > { %s5854_s5 = sld [smem:[#allocation65_spill]]  ;;  %s5058_s12 = smov [#allocation29]  }
  0xa6   : > { %s992_s1 = sshll.u32 %s5058_s12, 4  ;;  %s993_s1 = int_to_ptr.vmem [resolvable:$true] %s992_s1 }
  0xa7   : > { %s4583_s10 = scalar_lea.vmem %s993_s1, 16  ;;  %s4590_s20 = scalar_lea.vmem %s993_s1, 32 }
  0xa8   : > { %p4584_p5 = scmp.ne.s32.totalorder %s993_s1, %s4583_s10  ;;  %p4591_p1 = scmp.lt.s32.totalorder %s993_s1, %s993_s1 }
  0xa9   : > { %p4592_p3 = scmp.lt.s32.totalorder %s4590_s20, %s4583_s10 }
  0xaa   : > { %p4586_p2 = pnand %p4584_p5, %p5288_p7 }
  0xab   : > { %4176 = dma.hbm_to_vmem [thread:$0]  (!%p5278_p6), %s5854_s5, 16, %s971_s15, [#allocation27]  }
  0xac   : > { %p4587_p8 = pneg %p4586_p2  ;;  %p4593_p4 = por %p4592_p3, %p4591_p1 }
  0xae   : > { %p4594_p9 = pnand %p4593_p4, %p4587_p8 }
  0xb0   : > { %4597 = shalt.err (!%p4594_p9)
}
  0xb1   : > { %s5855_s3 = sld [smem:[#allocation67_spill]]  ;;  %s3680_s14 = sadd.s32 4294967294, %s5018_s26  }
  0xb2   : > { %s5347_s15 = sadd.s32 1, %s5018_s26   ;;  %s169_s11 = sadd.s32 1, %s5014_s0 }
  0xb3   : > { %s166_s28 = ssub.s32 %s5018_s26, %s5347_s15  ;;  %p176_p10 = scmp.ne.s32.totalorder %s5014_s0, %s5010_s23 }
  0xb4   : > { %p167_p11 = scmp.eq.s32.totalorder %s166_s28, 0  ;;  %p177_p12 = scmp.eq.s32.totalorder %s5018_s26, 0 }
  0xb5   : > { %p182_p13 = scmp.ne.s32.totalorder %s5010_s23, %s5006_s22  ;;  %p5858_p5 = scmp.eq.s32.totalorder %s5262_s2, 0 }
  0xb6   : > { %s5358_s16 = scalar_select %p167_p11, %s5014_s0, %s169_s11  }
  0xb7   : > { %4182 = dma.hbm_to_vmem [thread:$0]  (!%p5278_p6), %s5855_s3, 16, %s993_s1, [#allocation30]  }
  0xb8   : > { %5856 = sst [smem:[#allocation74_spill]] %s5358_s16  ;;  %p5360_p0 = por %p177_p12, %p176_p10 }
  0xb9   : > { %p5366_p2 = por %p5858_p5, %p182_p13  ;;  %p778_p8 = scmp.eq.s32.totalorder %s5262_s2, 1 }
  0xba   : > { %p784_p1 = scmp.eq.s32.totalorder %s3680_s14, 1  ;;  %p4218_p3 = scmp.lt.s32.totalorder %s5018_s26, 2 }
  0xbb   : > { %s5859_s1 = scalar_select %p5366_p2, 1, 0 }
  0xbc   : > { %s1052_s10 = sand.u32 1, %s5018_s26   ;;  %p5373_p4 = por %p778_p8, %p176_p10 }
  0xbd   : > { %p5377_p9 = por %p784_p1, %p182_p13  ;;  %s5810_s11 = sand.u32 1, %s5014_s0  }
  0xbe   : > { %s5860_s20 = scalar_select %p5373_p4, 1, 0 }
  0xbf   : > { %s5861_s28 = scalar_select %p5377_p9, 1, 0 }
  0xc0   : > { %s3701_s3 = sshll.u32 %s5018_s26, 4  ;;  %s1055_s14 = scalar_lea.vmem [#allocation5], %s5810_s11 }
  0xc1   : > { %s5384_s5 = scalar_lea.hbm %s5844_s17, %s3701_s3  ;;  %s1062_s9 = sshll.u32 %s1055_s14, 4  ;;  %s5388_s9 = int_to_ptr.vmem [resolvable:$true] %s1062_s9 }
  0xc2   : > { %p5392_p11 = pnand %p4218_p3, %p5360_p0  ;;  %s5397_s27 = scalar_lea.hbm %s5104_s21, %s3701_s3 }
  0xc3   : > { %s5399_s29 = scalar_lea.sflag [#allocation6], %s1052_s10  ;;  %s4598_s30 = scalar_lea.hbm %s5384_s5, 16 }
  0xc4   : > { %s5862_s19 = scalar_select %p5392_p11, 1, 0 }
  0xc5   : > { %p4599_p10 = scmp.ne.s32.totalorder %s5384_s5, %s4598_s30  ;;  %p5814_p12 = pneg %p5392_p11 }
  0xc6   : > { %s4603_s14 = scalar_lea.hbm %s5844_s17, 32  ;;  %p4604_p8 = scmp.lt.s32.totalorder %s5384_s5, %s5844_s17 }
  0xc7   : > { %p4601_p13 = pnand %p5814_p12, %p4599_p10  ;;  %p4605_p0 = scmp.lt.s32.totalorder %s4603_s14, %s4598_s30 }
  0xc9   : > { %p4602_p5 = pneg %p4601_p13  ;;  %p4606_p1 = por %p4605_p0, %p4604_p8 }
  0xcb   : > { %p4607_p3 = pnand %p4606_p1, %p4602_p5 }
  0xcd   : > { %4610 = shalt.err (!%p4607_p3)
}
  0xce   : > { %s4611_s3 = scalar_lea.vmem %s5388_s9, 16  ;;  %s5059_s12 = smov [#allocation5]  }
  0xcf   : > { %p4612_p9 = scmp.ne.s32.totalorder %s5388_s9, %s4611_s3  ;;  %s4616_s10 = sshll.u32 %s5059_s12, 4  ;;  %s4617_s10 = int_to_ptr.vmem [resolvable:$false] %s4616_s10 }
  0xd0   : > { %s4618_s11 = scalar_lea.vmem %s4617_s10, 32  ;;  %p4619_p10 = scmp.lt.s32.totalorder %s5388_s9, %s4617_s10 }
  0xd1   : > { %p4614_p4 = pnand %p4612_p9, %p5814_p12  ;;  %p4620_p13 = scmp.lt.s32.totalorder %s4618_s11, %s4611_s3 }
  0xd3   : > { %p4615_p2 = pneg %p4614_p4  ;;  %p4621_p6 = por %p4620_p13, %p4619_p10 }
  0xd5   : > { %p4622_p8 = pnand %p4621_p6, %p4615_p2 }
  0xd7   : > { %4625 = shalt.err (!%p4622_p8)
}
  0xd8   : > { %4192 = dma.hbm_to_vmem [thread:$0]  (!%p5392_p11), %s5384_s5, 16, %s5388_s9, %s5399_s29  }
  0xd9   : > { %s5060_s30 = smov [#allocation2]   ;;  %s5061_s17 = smov [#allocation10]  }
  0xda   : > { %s804_s14 = sshll.u32 %s5060_s30, 4  ;;  %s832_s16 = sshll.u32 %s5061_s17, 4  ;;  %s805_s14 = int_to_ptr.vmem [resolvable:$true] %s804_s14  ;;  %s833_s16 = int_to_ptr.vmem [resolvable:$true] %s832_s16 }
  0xdb   : > { %s4637_s12 = scalar_lea.vmem %s805_s14, 128  ;;  %p4645_p0 = scmp.lt.s32.totalorder %s805_s14, %s805_s14 }
  0xdc   : > { %p4638_p4 = scmp.ne.s32.totalorder %s805_s14, %s4637_s12  ;;  %p4646_p6 = scmp.lt.s32.totalorder %s4637_s12, %s4637_s12 }
  0xde   : > { %p4640_p9 = pnand %p4638_p4, %p5288_p7  ;;  %p4647_p2 = por %p4646_p6, %p4645_p0 }
  0xe0   : > { %p4641_p5 = pneg %p4640_p9 }
  0xe2   : > { %p4648_p1 = pnand %p4647_p2, %p4641_p5 }
  0xe4   : > { %4651 = shalt.err (!%p4648_p1)
}
  0xe5   : > { %p5863_p3 = scmp.ne.s32.totalorder %s5846_s18, 0  ;;  %s4663_s5 = scalar_lea.vmem %s833_s16, 16 }
  0xe6   : > { %p4664_p10 = scmp.ne.s32.totalorder %s833_s16, %s4663_s5  ;;  %s4670_s9 = scalar_lea.vmem %s833_s16, 32 }
  0xe7   : > { %4137 = dma.hbm_to_vmem [thread:$0]  (!%p5863_p3), %s5094_s13, 128, %s805_s14, [#allocation3]  }
  0xe8   : > { %p4666_p13 = pnand %p4664_p10, %p5288_p7  ;;  %p4671_p12 = scmp.lt.s32.totalorder %s833_s16, %s833_s16 }
  0xe9   : > { %p4672_p4 = scmp.lt.s32.totalorder %s4670_s9, %s4663_s5 }
  0xea   : > { %p4667_p8 = pneg %p4666_p13 }
  0xeb   : > { %p4673_p9 = por %p4672_p4, %p4671_p12 }
  0xed   : > { %p4674_p11 = pnand %p4673_p9, %p4667_p8 }
  0xef   : > { %4677 = shalt.err (!%p4674_p11)
}
  0xf0   : > { %4143 = dma.hbm_to_vmem [thread:$0]  (!%p5863_p3), %s5124_s8, 16, %s833_s16, [#allocation9]  }
  0xf1   : > { %s5062_s17 = smov [#allocation13]  }
  0xf2   : > { %s856_s11 = sshll.u32 %s5062_s17, 4  ;;  %s857_s11 = int_to_ptr.vmem [resolvable:$true] %s856_s11 }
  0xf3   : > { %s4689_s3 = scalar_lea.vmem %s857_s11, 256  ;;  %p4697_p2 = scmp.lt.s32.totalorder %s857_s11, %s857_s11 }
  0xf4   : > { %p4690_p5 = scmp.ne.s32.totalorder %s857_s11, %s4689_s3  ;;  %p4698_p1 = scmp.lt.s32.totalorder %s4689_s3, %s4689_s3 }
  0xf6   : > { %p4692_p0 = pnand %p4690_p5, %p5288_p7  ;;  %p4699_p10 = por %p4698_p1, %p4697_p2 }
  0xf8   : > { %p4693_p6 = pneg %p4692_p0 }
  0xfa   : > { %p4700_p13 = pnand %p4699_p10, %p4693_p6 }
  0xfc   : > { %4703 = shalt.err (!%p4700_p13)
}
  0xfd   : > { %s5063_s10 = smov 64   ;;  %s5064_s30 = smov 4  }
  0xfe   : > { %4149 = dma.hbm_to_vmem [thread:$0]  (!%p5863_p3), %s5139_s24, 256, %s857_s11, [#allocation12], %s5063_s10, %s5063_s10, %s5064_s30  }
  0xff   : > { %s5065_s16 = smov [#allocation16]   ;;  %s5066_s12 = smov [#allocation19]  }
 0x100   : > { %s880_s14 = sshll.u32 %s5065_s16, 4  ;;  %s904_s5 = sshll.u32 %s5066_s12, 4  ;;  %s881_s14 = int_to_ptr.vmem [resolvable:$true] %s880_s14  ;;  %s905_s5 = int_to_ptr.vmem [resolvable:$true] %s904_s5 }
 0x101   : > { %s4715_s9 = scalar_lea.vmem %s881_s14, 256  ;;  %p4723_p4 = scmp.lt.s32.totalorder %s881_s14, %s881_s14 }
 0x102   : > { %p4716_p11 = scmp.ne.s32.totalorder %s881_s14, %s4715_s9  ;;  %p4724_p9 = scmp.lt.s32.totalorder %s4715_s9, %s4715_s9 }
 0x104   : > { %p4718_p12 = pnand %p4716_p11, %p5288_p7  ;;  %p4725_p5 = por %p4724_p9, %p4723_p4 }
 0x106   : > { %p4719_p8 = pneg %p4718_p12 }
 0x108   : > { %p4726_p0 = pnand %p4725_p5, %p4719_p8 }
 0x10a   : > { %4729 = shalt.err (!%p4726_p0)
}
 0x10b   : > { %s5864_s6 = sld [smem:[#allocation56_spill]]  ;;  %s4741_s17 = scalar_lea.vmem %s905_s5, 256 }
 0x10c   : > { %p4742_p6 = scmp.ne.s32.totalorder %s905_s5, %s4741_s17  ;;  %p4749_p10 = scmp.lt.s32.totalorder %s905_s5, %s905_s5 }
 0x10d   : > { %p4750_p13 = scmp.lt.s32.totalorder %s4741_s17, %s4741_s17 }
 0x10e   : > { %p4744_p2 = pnand %p4742_p6, %p5288_p7 }
 0x10f   : > { %p4751_p11 = por %p4750_p13, %p4749_p10 }
 0x110   : > { %p4745_p1 = pneg %p4744_p2 }
 0x111   : > { %4155 = dma.hbm_to_vmem [thread:$0]  (!%p5863_p3), %s5864_s6, 256, %s881_s14, [#allocation15], %s5063_s10, %s5063_s10, %s5064_s30  }
 0x112   : > { %p4752_p12 = pnand %p4751_p11, %p4745_p1 }
 0x114   : > { %4755 = shalt.err (!%p4752_p12)
}
 0x115   : > { %s5865_s11 = sld [smem:[#allocation58_spill]]  ;;  %s5067_s3 = smov [#allocation22]  }
 0x116   : > { %s928_s16 = sshll.u32 %s5067_s3, 4  ;;  %s5068_s14 = smov [#allocation25]   ;;  %s929_s16 = int_to_ptr.vmem [resolvable:$true] %s928_s16 }
 0x117   : > { %s959_s12 = sshll.u32 %s5068_s14, 4  ;;  %s4767_s9 = scalar_lea.vmem %s929_s16, 256  ;;  %s960_s12 = int_to_ptr.vmem [resolvable:$true] %s959_s12 }
 0x118   : > { %p4768_p8 = scmp.ne.s32.totalorder %s929_s16, %s4767_s9  ;;  %p4775_p5 = scmp.lt.s32.totalorder %s929_s16, %s929_s16 }
 0x119   : > { %p4776_p0 = scmp.lt.s32.totalorder %s4767_s9, %s4767_s9 }
 0x11a   : > { %p4770_p4 = pnand %p4768_p8, %p5288_p7 }
 0x11b   : > { %4161 = dma.hbm_to_vmem [thread:$0]  (!%p5863_p3), %s5865_s11, 256, %s905_s5, [#allocation18], %s5063_s10, %s5063_s10, %s5064_s30  }
 0x11c   : > { %p4771_p9 = pneg %p4770_p4  ;;  %p4777_p6 = por %p4776_p0, %p4775_p5 }
 0x11e   : > { %p4778_p2 = pnand %p4777_p6, %p4771_p9 }
 0x120   : > { %4781 = shalt.err (!%p4778_p2)
}
 0x121   : > { %s5866_s5 = sld [smem:[#allocation60_spill]]  ;;  %s4793_s17 = scalar_lea.vmem %s960_s12, 16 }
 0x122   : > { %p4794_p1 = scmp.ne.s32.totalorder %s960_s12, %s4793_s17  ;;  %s4800_s11 = scalar_lea.vmem %s960_s12, 32 }
 0x123   : > { %p4801_p11 = scmp.lt.s32.totalorder %s960_s12, %s960_s12  ;;  %p4802_p12 = scmp.lt.s32.totalorder %s4800_s11, %s4793_s17 }
 0x124   : > { %p4796_p10 = pnand %p4794_p1, %p5288_p7 }
 0x125   : > { %p4803_p8 = por %p4802_p12, %p4801_p11 }
 0x126   : > { %p4797_p13 = pneg %p4796_p10 }
 0x127   : > { %4167 = dma.hbm_to_vmem [thread:$0]  (!%p5863_p3), %s5866_s5, 256, %s929_s16, [#allocation21], %s5063_s10, %s5063_s10, %s5064_s30  }
 0x128   : > { %p4804_p4 = pnand %p4803_p8, %p4797_p13 }
 0x12a   : > { %4807 = shalt.err (!%p4804_p4)
}
 0x12b   : > { %s5867_s3 = sld [smem:[#allocation64_spill]]  ;;  %s5069_s14 = smov [#allocation28]  }
 0x12c   : > { %s981_s9 = sshll.u32 %s5069_s14, 4  ;;  %s5070_s6 = smov [#allocation31]   ;;  %s982_s9 = int_to_ptr.vmem [resolvable:$true] %s981_s9 }
 0x12d   : > { %s1003_s10 = sshll.u32 %s5070_s6, 4  ;;  %s4819_s30 = scalar_lea.vmem %s982_s9, 16  ;;  %s1004_s10 = int_to_ptr.vmem [resolvable:$true] %s1003_s10 }
 0x12e   : > { %p4820_p9 = scmp.ne.s32.totalorder %s982_s9, %s4819_s30  ;;  %s4826_s16 = scalar_lea.vmem %s982_s9, 32 }
 0x12f   : > { %p4827_p6 = scmp.lt.s32.totalorder %s982_s9, %s982_s9  ;;  %p4828_p2 = scmp.lt.s32.totalorder %s4826_s16, %s4819_s30 }
 0x130   : > { %p4822_p5 = pnand %p4820_p9, %p5288_p7 }
 0x131   : > { %4173 = dma.hbm_to_vmem [thread:$0]  (!%p5863_p3), %s5867_s3, 16, %s960_s12, [#allocation24]  }
 0x132   : > { %p4823_p0 = pneg %p4822_p5  ;;  %p4829_p1 = por %p4828_p2, %p4827_p6 }
 0x134   : > { %p4830_p10 = pnand %p4829_p1, %p4823_p0 }
 0x136   : > { %4833 = shalt.err (!%p4830_p10)
}
 0x137   : > { %s5868_s12 = sld [smem:[#allocation66_spill]]  ;;  %s4845_s5 = scalar_lea.vmem %s1004_s10, 16 }
 0x138   : > { %p4846_p13 = scmp.ne.s32.totalorder %s1004_s10, %s4845_s5  ;;  %s4852_s6 = scalar_lea.vmem %s1004_s10, 32 }
 0x139   : > { %p4853_p8 = scmp.lt.s32.totalorder %s1004_s10, %s1004_s10  ;;  %p4854_p4 = scmp.lt.s32.totalorder %s4852_s6, %s4845_s5 }
 0x13a   : > { %p4848_p11 = pnand %p4846_p13, %p5288_p7 }
 0x13b   : > { %p4855_p9 = por %p4854_p4, %p4853_p8 }
 0x13c   : > { %p4849_p12 = pneg %p4848_p11 }
 0x13d   : > { %4179 = dma.hbm_to_vmem [thread:$0]  (!%p5863_p3), %s5868_s12, 16, %s982_s9, [#allocation27]  }
 0x13e   : > { %p4856_p5 = pnand %p4855_p9, %p4849_p12 }
 0x140   : > { %4859 = shalt.err (!%p4856_p5)
}
 0x141   : > { %s5869_s17 = sld [smem:[#allocation68_spill]]  ;;  %s5870_s11 = sand.u32 1, %s5014_s0  }
 0x142   : > { %s1072_s3 = scalar_lea.vmem [#allocation7], %s5870_s11  ;;  %s5071_s9 = smov [#allocation32]  }
 0x143   : > { %s1079_s14 = sshll.u32 %s1072_s3, 4  ;;  %s1014_s30 = sshll.u32 %s5071_s9, 4  ;;  %s5481_s14 = int_to_ptr.vmem [resolvable:$true] %s1079_s14  ;;  %s1015_s30 = int_to_ptr.vmem [resolvable:$true] %s1014_s30 }
 0x144   : > { %s4871_s16 = scalar_lea.vmem %s1015_s30, 16  ;;  %s4878_s12 = scalar_lea.vmem %s1015_s30, 32 }
 0x145   : > { %p4872_p0 = scmp.ne.s32.totalorder %s1015_s30, %s4871_s16  ;;  %p4879_p1 = scmp.lt.s32.totalorder %s1015_s30, %s1015_s30 }
 0x146   : > { %p4880_p10 = scmp.lt.s32.totalorder %s4878_s12, %s4871_s16 }
 0x147   : > { %4185 = dma.hbm_to_vmem [thread:$0]  (!%p5863_p3), %s5869_s17, 16, %s1004_s10, [#allocation30]  }
 0x148   : > { %p4874_p6 = pnand %p4872_p0, %p5288_p7  ;;  %p4881_p13 = por %p4880_p10, %p4879_p1 }
 0x14a   : > { %p4875_p2 = pneg %p4874_p6 }
 0x14c   : > { %p4882_p11 = pnand %p4881_p13, %p4875_p2 }
 0x14e   : > { %4885 = shalt.err (!%p4882_p11)
}
 0x14f   : > { %s5871_s10 = sld [smem:[#allocation69_spill]]  ;;  %s4886_s5 = scalar_lea.hbm %s5397_s27, 16 }
 0x150   : > { %p4887_p12 = scmp.ne.s32.totalorder %s5397_s27, %s4886_s5  ;;  %p5872_p7 = scmp.ne.s32.totalorder %s5862_s19, 0 }
 0x151   : > { %s4891_s4 = scalar_lea.hbm %s5104_s21, 32  ;;  %p4892_p5 = scmp.lt.s32.totalorder %s5397_s27, %s5104_s21 }
 0x152   : > { %p5873_p8 = pneg %p5872_p7  ;;  %p4893_p0 = scmp.lt.s32.totalorder %s4891_s4, %s4886_s5 }
 0x154   : > { %p4889_p4 = pnand %p4887_p12, %p5873_p8  ;;  %p4894_p6 = por %p4893_p0, %p4892_p5 }
 0x155   : > { %4188 = dma.hbm_to_vmem [thread:$0]  (!%p5863_p3), %s5871_s10, 16, %s1015_s30, [#allocation33]  }
 0x156   : > { %p4890_p9 = pneg %p4889_p4 }
 0x158   : > { %p4895_p2 = pnand %p4894_p6, %p4890_p9 }
 0x15a   : > { %4898 = shalt.err (!%p4895_p2)
}
 0x15b   : > { %s4899_s18 = scalar_lea.vmem %s5481_s14, 16  ;;  %p5874_p3 = pmov %p5873_p8 }
 0x15c   : > { %p4900_p1 = scmp.ne.s32.totalorder %s5481_s14, %s4899_s18  ;;  %s5072_s6 = smov [#allocation7]  }
 0x15d   : > { %s4904_s17 = sshll.u32 %s5072_s6, 4  ;;  %s4905_s17 = int_to_ptr.vmem [resolvable:$false] %s4904_s17 }
 0x15e   : > { %p4902_p10 = pnand %p4900_p1, %p5874_p3  ;;  %s4906_s11 = scalar_lea.vmem %s4905_s17, 32 }
 0x15f   : > { %p4907_p11 = scmp.lt.s32.totalorder %s5481_s14, %s4905_s17  ;;  %p4908_p12 = scmp.lt.s32.totalorder %s4906_s11, %s4899_s18 }
 0x160   : > { %p4903_p13 = pneg %p4902_p10 }
 0x161   : > { %p4909_p8 = por %p4908_p12, %p4907_p11 }
 0x163   : > { %p4910_p4 = pnand %p4909_p8, %p4903_p13 }
 0x165   : > { %4913 = shalt.err (!%p4910_p4)
}
 0x166   : > { %4195 = dma.hbm_to_vmem [thread:$0]  (!%p5872_p7), %s5397_s27, 16, %s5481_s14, %s5399_s29  }
 0x167   : > { %p5875_p9 = scmp.ne.s32.totalorder %s5845_s7, 0 }
 0x168   : > { %p5876_p5 = scmp.eq.s32.totalorder (!%p5875_p9), %s5262_s2, 0 }
 0x169   : > { %1088 = sbr.rel (%p5875_p9) target bundleno = 4726 (0x1276), region = 144 }
 0x16e   : > { %4957 = dma.done.wait (%p5876_p5), [#allocation3], 128   ;;  %p5877_p0 = pmov %p5876_p5 }
 0x16f   : > { %s1094_s3 = sand.u32 1, %s5262_s2   ;;  %s5515_s9 = sand.u32 1, %s5010_s23  }
 0x170   : > { %4959 = vsyncadd (%p5877_p0), [#allocation3], 4294967168  ;;  %s1095_s19 = scalar_lea.sflag [#allocation6], %s1094_s3  ;;  %s1097_s30 = scalar_lea.vmem [#allocation5], %s5515_s9 }
 0x171   : > { %p5878_p6 = scmp.ne.s32.totalorder %s5859_s1, 0 }
 0x173   : > { %4961 = dma.done.wait (%p5878_p6), %s1095_s19, 32  }
 0x174   : > { %4963 = vsyncadd (%p5878_p6), %s1095_s19, 4294967264  ;;  %s1105_s29 = scalar_lea.vmem [#allocation7], %s5515_s9  ;;  %p5879_p7 = pmov %p5877_p0 }
 0x175   : > { %p5880_p2 = pmov %p5877_p0 }
 0x176   : > { %4965 = dma.done.wait (%p5879_p7), [#allocation9], 32  }
 0x177   : > { %4967 = vsyncadd (%p5880_p2), [#allocation9], 4294967264  ;;  %p5881_p1 = pmov %p5877_p0 }
 0x178   : > { %p5882_p3 = pmov %p5877_p0 }
 0x179   : > { %4969 = dma.done.wait (%p5881_p1), [#allocation12], 272  }
 0x17a   : > { %4971 = vsyncadd (%p5882_p3), [#allocation12], 4294967024  ;;  %p5883_p10 = pmov %p5877_p0 }
 0x17b   : > { %p5884_p13 = pmov %p5877_p0 }
 0x17c   : > { %4973 = dma.done.wait (%p5883_p10), [#allocation15], 272  }
 0x17d   : > { %4975 = vsyncadd (%p5884_p13), [#allocation15], 4294967024  ;;  %p5885_p11 = pmov %p5877_p0 }
 0x17e   : > { %p5886_p12 = pmov %p5877_p0 }
 0x17f   : > { %4977 = dma.done.wait (%p5885_p11), [#allocation18], 272  }
 0x180   : > { %4979 = vsyncadd (%p5886_p12), [#allocation18], 4294967024  ;;  %p5887_p8 = pmov %p5877_p0 }
 0x181   : > { %p5888_p4 = pmov %p5877_p0 }
 0x182   : > { %4981 = dma.done.wait (%p5887_p8), [#allocation21], 272  }
 0x183   : > { %4983 = vsyncadd (%p5888_p4), [#allocation21], 4294967024  ;;  %p5889_p9 = pmov %p5877_p0 }
 0x184   : > { %p5890_p5 = pmov %p5877_p0 }
 0x185   : > { %4985 = dma.done.wait (%p5889_p9), [#allocation24], 32  }
 0x186   : > { %4987 = vsyncadd (%p5890_p5), [#allocation24], 4294967264 }
 0x187   : > { %4989 = dma.done.wait (%p5877_p0), [#allocation27], 32   ;;  %p5891_p6 = pmov %p5877_p0 }
 0x188   : > { %p5892_p7 = pmov %p5877_p0 }
 0x189   : > { %4991 = vsyncadd (%p5891_p6), [#allocation27], 4294967264 }
 0x18a   : > { %4993 = dma.done.wait (%p5892_p7), [#allocation30], 32   ;;  %p5893_p2 = pmov %p5877_p0 }
 0x18b   : > { %p5894_p1 = pmov %p5877_p0 }
 0x18c   : > { %4995 = vsyncadd (%p5893_p2), [#allocation30], 4294967264 }
 0x18d   : > { %4997 = dma.done.wait (%p5894_p1), [#allocation33], 16   ;;  %p5895_p3 = pmov %p5877_p0 }
 0x18e   : > { %s5896_s27 = sld [smem:[#allocation47_spill]]  ;;  %p1264_p10 = scmp.lt.s32.totalorder %s5262_s2, 1  ;;  %v5073_v0 = vmov 0.0   ;;  %vm5074_vm0 = vmmov 0   ;;  %vm1303_vm1 = vcmask 261120   ;;  %vm1598_vm2 = vcmask 1043456  }
 0x18f   : > { %4999 = vsyncadd (%p5895_p3), [#allocation33], 4294967280  ;;  %s5897_s7 = sld [smem:[#allocation50_spill]]  ;;  %3868 = vmatprep.subr.bf16.mxu0 %v5073_v0  ;;  %3872 = vmatprep.mubr.msk.bf16.mxu0 %vm5074_vm0, %v5073_v0  ;;  %v3726_v7 = vld [vmem:[#allocation8] ss:$0 sm:$0xff]  ;;  %vm1594_vm3 = vcmask 64512  }
 0x190   : > { %s5898_s1 = sld [smem:[#allocation52_spill]]  ;;  %3892 = vmatprep.subr.bf16.mxu1 %v5073_v0  ;;  %3894 = vmatprep.mubr.msk.bf16.mxu1 %vm5074_vm0, %v5073_v0  ;;  %v3730_v16 = vld [vmem:[#allocation10] ss:$0 sm:$0xff]  ;;  %v3742_v50 = vld [vmem:[%s1097_s30] ss:$0 sm:$0xff]  ;;  %vm2771_vm4 = vcmask 130048  }
 0x191   : > { %s5564_s14 = scalar_select %p1264_p10, %s5262_s2, 1  ;;  %v1838_v52 = vld [vmem:[#allocation2] sm:$0xff] }
 0x192   : > { %s5899_s10 = sld [smem:[#allocation53_spill]]  ;;  %p5907_p11 = scmp.ne.s32.totalorder %s5860_s20, 0 }
 0x193   : > { %s3723_s16 = sshll.u32 %s5564_s14, 3  ;;  %s5900_s5 = sld [smem:[#allocation48_spill]] }
 0x194   : > { %s1267_s12 = scalar_lea.vmem %s5896_s27, %s3723_s16  ;;  %s3799_s4 = sshll.u32 %s5564_s14, 4 }
 0x195   : > { %v4324_v1 = vld [vmem:[%s5897_s7 + $0x8] sm:$0xff]   ;;  %v4325_v2 = vld [vmem:[%s5897_s7] sm:$0xff]   ;;  %s5901_s6 = sld [smem:[#allocation62_spill]]  ;;  %s3796_s27 = sshll.u32 %s5262_s2, 7 }
 0x196   : > { %3869 = vmatpush3.bf16.msra.mxu0 %v4324_v1  ;;  %v5573_v3 = vld [vmem:[%s1267_s12] sm:$0xff]  ;;  %v4326_v4 = vld [vmem:[%s5898_s1 + $0x8] sm:$0xff]   ;;  %s5902_s17 = sld [smem:[#allocation63_spill]] }
 0x197   : > { %3870 = vmatprep.subr.bf16.mxu0 %v5073_v0  ;;  %v1279_v5 = vpack.c.bf16 %v5573_v3, %v5573_v3  ;;  %v4327_v6 = vld [vmem:[%s5898_s1] sm:$0xff]   ;;  %s5903_s11 = sld [smem:[#allocation70_spill]] }
 0x198   : > { %v4328_v20 = vld [vmem:[%s5899_s10 + $0x8] sm:$0xff]   ;;  %v4329_v21 = vld [vmem:[%s5899_s10] sm:$0xff]   ;;  %s5904_s3 = sld [smem:[#allocation71_spill]] }
 0x199   : > { %s1272_s18 = scalar_lea.vmem %s5900_s5, %s3799_s4  ;;  %s5905_s19 = sld [smem:[#allocation72_spill]] }
 0x19a   : > { %3871 = vmatpush3.bf16.msra.mxu0 %v4325_v2  ;;  %s5906_s30 = sld [smem:[#allocation73_spill]]  ;;  %s3354_s5 = scalar_lea.sflag [#allocation4], %s5515_s9 }
 0x19b   : > { %3876 = vmatprep.subr.bf16.mxu0 %v5073_v0 }
 0x19d   : > { %3873 = vmatmul.mubr.msk.bf16.vlgmr.msra.gmra.mxu0 %vm1303_vm1, %v1279_v5 }
 0x19e   : > { %3877 = vmatpush3.bf16.msra.mxu0 %v4326_v4  ;;  %3880 = vmatprep.mubr.msk.bf16.mxu0 %vm5074_vm0, %v5073_v0 }
 0x19f   : > { %3878 = vmatprep.subr.bf16.mxu0 %v5073_v0 }
 0x1a0   : > { %s3365_s12 = scalar_lea.hbm %s5906_s30, %s3796_s27 }
 0x1a2   : > { %3879 = vmatpush3.bf16.msra.mxu0 %v4327_v6 }
 0x1a3   : > { %3884 = vmatprep.subr.bf16.mxu0 %v5073_v0 }
 0x1a5   : > { %3881 = vmatmul.mubr.msk.bf16.vlgmr.msra.gmra.mxu0 %vm1303_vm1, %v1279_v5 }
 0x1a6   : > { %3888 = vmatprep.mubr.msk.bf16.mxu0 %vm5074_vm0, %v5073_v0  ;;  %3885 = vmatpush3.bf16.msra.mxu0 %v4328_v20 }
 0x1a7   : > { %3886 = vmatprep.subr.bf16.mxu0 %v5073_v0 }
 0x1aa   : > { %3887 = vmatpush3.bf16.msra.mxu0 %v4329_v21 }
 0x1ab   : > { %3898 = vmatprep.subr.bf16.mxu0 %v5073_v0 }
 0x1ad   : > { %3889 = vmatmul.mubr.msk.bf16.vlgmr.msra.gmra.mxu0 %vm1303_vm1, %v1279_v5 }
 0x1ae   : > { %3900 = vmatprep.mubr.msk.bf16.mxu0 %vm5074_vm0, %v5073_v0 }
 0x25d   : > { %v1341_v8 = vpop.f32.mrf.mxu0 }
 0x25e   : > { %v1342_v9 = vadd.f32 %v3726_v7, %v1341_v8 }
 0x25f   : > { %v3874_v10 = vpop.f32.mrf.mxu0 }
 0x260   : > { %v1347_v11 = vmul.f32 0.35355338, %v1342_v9 }
 0x261   : > { %v1344_v12 = vpop.f32.mrf.mxu0 }
 0x262   : > { %1474 = vxpose.xlu0.b32.start.end [1/1] (short) (narrow) %v1347_v11, 32 }
 0x263   : > { %v3875_v13 = vpop.f32.mrf.mxu0 }
 0x265   : > { %v1405_v14 = vpop.f32.mrf.mxu0 }
 0x266   : > { %v1406_v18 = vadd.f32 %v3730_v16, %v1405_v14 }
 0x267   : > { %v3882_v15 = vpop.f32.mrf.mxu0 }
 0x269   : > { %v1408_v17 = vpop.f32.mrf.mxu0 }
 0x26b   : > { %v3883_v19 = vpop.f32.mrf.mxu0 }
 0x26d   : > { %v5600_v36 = vpop.f32.mrf.mxu0 }
 0x26f   : > { %1506 = vxpose.xlu0.b32.start.end [1/1] (short) (narrow) %v1406_v18, 32  ;;  %v3890_v37 = vpop.f32.mrf.mxu0 }
 0x271   : > { %v1471_v39 = vpop.f32.mrf.mxu0 }
 0x272   : > { %v3734_v39 = vld [vmem:[#allocation11] ss:$0 sm:$0xff] }
 0x273   : > { %v3891_v40 = vpop.f32.mrf.mxu0 }
 0x274   : > { %v1469_v40 = vadd.f32 %v3734_v39, %v5600_v36 }
 0x2de   : > { %v1490_v22 = vpop.trf.xlu0 }
 0x2df   : > { %v1570_v23 = vpack.c.bf16 %v1490_v22, %v1490_v22 }
 0x2e1   : > { %1578 = vxpose.xlu1.c.b16.start.end [1/1] (short) (narrow) %v1570_v23, 16 }
 0x2e2   : > { %v1491_v24 = vpop.trf.xlu0 }
 0x2e3   : > { %v1571_v25 = vpack.c.bf16 %v1491_v24, %v1491_v24 }
 0x2e5   : > { %1642 = vxpose.xlu1.c.b16.start.end [1/1] (short) (narrow) %v1571_v25, 16 }
 0x2e6   : > { %v1492_v26 = vpop.trf.xlu0 }
 0x2e7   : > { %v1572_v27 = vpack.c.bf16 %v1492_v26, %v1492_v26 }
 0x2e9   : > { %1704 = vxpose.xlu1.c.b16.start.end [1/1] (short) (narrow) %v1572_v27, 16 }
 0x2ea   : > { %v1493_v28 = vpop.trf.xlu0 }
 0x2eb   : > { %v1573_v29 = vpack.c.bf16 %v1493_v28, %v1493_v28 }
 0x2ed   : > { %1766 = vxpose.xlu1.c.b16.start.end [1/1] (short) (narrow) %v1573_v29, 16 }
 0x2ee   : > { %v1522_v30 = vpop.trf.xlu0 }
 0x2ef   : > { %v1574_v31 = vpack.c.bf16 %v1522_v30, %v1522_v30 }
 0x2f1   : > { %v1600_v32 = vsel %vm1598_vm2, %v1574_v31, 0 }
 0x2f2   : > { %3893 = vmatpush3.bf16.msra.mxu1 %v1600_v32  ;;  %v1523_v33 = vpop.trf.xlu0 }
 0x2f3   : > { %v1575_v34 = vpack.c.bf16 %v1523_v33, %v1523_v33  ;;  %3904 = vmatprep.subr.bf16.mxu1 %v5073_v0 }
 0x2f5   : > { %v1662_v35 = vsel %vm1598_vm2, %v1575_v34, 0 }
 0x2f6   : > { %3899 = vmatpush3.bf16.msra.mxu0 %v1662_v35  ;;  %v1524_v38 = vpop.trf.xlu0 }
 0x2f7   : > { %3910 = vmatprep.subr.bf16.mxu0 %v5073_v0  ;;  %v1576_v41 = vpack.c.bf16 %v1524_v38, %v1524_v38 }
 0x2f9   : > { %v1724_v43 = vsel %vm1598_vm2, %v1576_v41, 0 }
 0x2fa   : > { %v1525_v42 = vpop.trf.xlu0 }
 0x2fb   : > { %v1577_v44 = vpack.c.bf16 %v1525_v42, %v1525_v42 }
 0x2fd   : > { %v1786_v46 = vsel %vm1598_vm2, %v1577_v44, 0 }
 0x343   : > { %v1586_v45 = vpop.trf.xlu1 }
 0x344   : > { %3895 = vmatmul.mubr.msk.bf16.vlgmr.msra.gmra.mxu1 %vm1594_vm3, %v1586_v45 }
 0x345   : > { %3905 = vmatpush3.bf16.msra.mxu1 %v1724_v43  ;;  %3906 = vmatprep.mubr.msk.bf16.mxu1 %vm5074_vm0, %v5073_v0 }
 0x346   : > { %3916 = vmatprep.subr.bf16.mxu1 %v5073_v0 }
 0x347   : > { %v1650_v47 = vpop.trf.xlu1 }
 0x348   : > { %3901 = vmatmul.mubr.msk.bf16.vlgmr.msra.gmra.mxu0 %vm1594_vm3, %v1650_v47 }
 0x349   : > { %3911 = vmatpush3.bf16.msra.mxu0 %v1786_v46  ;;  %3912 = vmatprep.mubr.msk.bf16.mxu0 %vm5074_vm0, %v5073_v0 }
 0x34a   : > { %3922 = vmatprep.subr.bf16.mxu0 %v5073_v0 }
 0x34b   : > { %v1712_v48 = vpop.trf.xlu1 }
 0x34c   : > { %3907 = vmatmul.mubr.msk.bf16.vlgmr.msra.gmra.mxu1 %vm1594_vm3, %v1712_v48 }
 0x34d   : > { %3918 = vmatprep.mubr.msk.bf16.mxu1 %vm5074_vm0, %v5073_v0 }
 0x34f   : > { %v1774_v49 = vpop.trf.xlu1 }
 0x350   : > { %3913 = vmatmul.mubr.msk.bf16.vlgmr.msra.gmra.mxu0 %vm1594_vm3, %v1774_v49 }
 0x351   : > { %3924 = vmatprep.mubr.msk.bf16.mxu0 %vm5074_vm0, %v5073_v0 }
 0x404   : > { %v1636_v51 = vpop.f32.mrf.mxu1 }
 0x405   : > { %v1834_v53 = vadd.f32 %v3742_v50, %v1636_v51 }
 0x406   : > { %v3896_v54 = vpop.f32.mrf.mxu1 }
 0x407   : > { %v1839_v55 = vadd.f32 %v1838_v52, %v1834_v53 }
 0x408   : > { %v1639_v56 = vpop.f32.mrf.mxu1  ;;  %v1698_v57 = vpop.f32.mrf.mxu0 }
 0x409   : > { %v1835_v58 = vadd.f32 %v3742_v50, %v1698_v57  ;;  %v1843_v59 = vsel %vm1594_vm3, %v1839_v55, -inf }
 0x40a   : > { %1844 = vmax.xlane.f32.xlu1 %v1843_v59  ;;  %v3897_v60 = vpop.f32.mrf.mxu1  ;;  %v3902_v61 = vpop.f32.mrf.mxu0 }
 0x40b   : > { %v1840_v62 = vadd.f32 %v1838_v52, %v1835_v58 }
 0x40c   : > { %v1701_v63 = vpop.f32.mrf.mxu0  ;;  %v1760_v1 = vpop.f32.mrf.mxu1 }
 0x40d   : > { %v1836_v2 = vadd.f32 %v3742_v50, %v1760_v1  ;;  %v1846_v4 = vsel %vm1594_vm3, %v1840_v62, -inf }
 0x40e   : > { %v3908_v5 = vpop.f32.mrf.mxu1  ;;  %1847 = vmax.xlane.f32.xlu0 %v1846_v4  ;;  %v3903_v6 = vpop.f32.mrf.mxu0 }
 0x40f   : > { %v1841_v7 = vadd.f32 %v1838_v52, %v1836_v2  ;;  %v4330_v6 = vld [vmem:[#allocation13 + $0x8] sm:$0xff]  }
 0x410   : > { %v1763_v8 = vpop.f32.mrf.mxu1  ;;  %v1822_v9 = vpop.f32.mrf.mxu0 }
 0x411   : > { %v1837_v10 = vadd.f32 %v3742_v50, %v1822_v9  ;;  %v1849_v11 = vsel %vm1594_vm3, %v1841_v7, -inf }
 0x412   : > { %1850 = vmax.xlane.f32.xlu1 %v1849_v11  ;;  %v3909_v12 = vpop.f32.mrf.mxu1  ;;  %v3914_v13 = vpop.f32.mrf.mxu0 }
 0x413   : > { %v1842_v14 = vadd.f32 %v1838_v52, %v1837_v10 }
 0x414   : > { %v1825_v15 = vpop.f32.mrf.mxu0 }
 0x415   : > { %v1852_v16 = vsel %vm1594_vm3, %v1842_v14, -inf }
 0x416   : > { %1853 = vmax.xlane.f32.xlu1 %v1852_v16  ;;  %v3915_v17 = vpop.f32.mrf.mxu0 }
 0x493   : > { %v1845_v18 = vpop.xlane.xlu1 %1844 }
 0x494   : > { %v1855_v19 = vsub.f32 %v1839_v55, %v1845_v18 }
 0x496   : > { %v1859_v20 = vmul.f32 1.442695, %v1855_v19 }
 0x497   : > { %v1848_v21 = vpop.xlane.xlu0 %1847 }
 0x498   : > { %4350 = vpow2.f32 %v1859_v20  ;;  %v1856_v22 = vsub.f32 %v1840_v62, %v1848_v21 }
 0x49a   : > { %v1861_v23 = vmul.f32 1.442695, %v1856_v22 }
 0x49b   : > { %v1851_v24 = vpop.xlane.xlu1 %1850 }
 0x49c   : > { %4352 = vpow2.f32 %v1861_v23  ;;  %v1857_v25 = vsub.f32 %v1841_v7, %v1851_v24  ;;  %v4331_v7 = vld [vmem:[#allocation13] sm:$0xff]  }
 0x49e   : > { %v1863_v26 = vmul.f32 1.442695, %v1857_v25 }
 0x49f   : > { %v1854_v27 = vpop.xlane.xlu1 %1853 }
 0x4a0   : > { %4354 = vpow2.f32 %v1863_v26  ;;  %v1858_v28 = vsub.f32 %v1842_v14, %v1854_v27  ;;  %v3747_v26 = vld [vmem:[#allocation14] ss:$0 sm:$0xff] }
 0x4a2   : > { %v1865_v29 = vmul.f32 1.442695, %v1858_v28 }
 0x4a4   : > { %4356 = vpow2.f32 %v1865_v29 }
 0x4a5   : > { %v4351_v30 = vpop.eup %4350 }
 0x4a6   : > { %v1867_v31 = vsel %vm1594_vm3, %v4351_v30, 0.0 }
 0x4a7   : > { %1868 = vadd.xlane.f32.xlu1 %v1867_v31 }
 0x4a9   : > { %v4353_v32 = vpop.eup %4352 }
 0x4aa   : > { %v1870_v33 = vsel %vm1594_vm3, %v4353_v32, 0.0 }
 0x4ab   : > { %1871 = vadd.xlane.f32.xlu1 %v1870_v33 }
 0x4ad   : > { %v4355_v34 = vpop.eup %4354 }
 0x4ae   : > { %v1873_v35 = vsel %vm1594_vm3, %v4355_v34, 0.0 }
 0x4af   : > { %1874 = vadd.xlane.f32.xlu1 %v1873_v35 }
 0x4b1   : > { %v4357_v37 = vpop.eup %4356 }
 0x4b2   : > { %v1876_v38 = vsel %vm1594_vm3, %v4357_v37, 0.0 }
 0x4b3   : > { %1877 = vadd.xlane.f32.xlu1 %v1876_v38 }
 0x4e6   : > { %1538 = vxpose.xlu1.b32.start.end [1/1] (short) (narrow) %v1469_v40, 32  ;;  %v4332_v40 = vld [vmem:[#allocation16 + $0x8] sm:$0xff]  }
 0x530   : > { %v1869_v41 = vpop.xlane.xlu1 %1868 }
 0x531   : > { %4358 = vrcp.f32 %v1869_v41  ;;  %v4333_v41 = vld [vmem:[#allocation16] sm:$0xff]  }
 0x534   : > { %v1872_v42 = vpop.xlane.xlu1 %1871 }
 0x535   : > { %4360 = vrcp.f32 %v1872_v42  ;;  %v4335_v42 = vld [vmem:[#allocation19] sm:$0xff]  }
 0x538   : > { %v1875_v51 = vpop.xlane.xlu1 %1874 }
 0x539   : > { %4362 = vrcp.f32 %v1875_v51 }
 0x53c   : > { %v1878_v36 = vpop.xlane.xlu1 %1877 }
 0x53d   : > { %4364 = vrcp.f32 %v1878_v36  ;;  %v3752_v36 = vld [vmem:[#allocation26] ss:$0 sm:$0xff] }
 0x53e   : > { %v4359_v43 = vpop.eup %4358 }
 0x53f   : > { %v1883_v44 = vmul.f32 %v4359_v43, %v4351_v30  ;;  %v1275_v43 = vld [vmem:[%s1272_s18] sm:$0xff] }
 0x541   : > { %v1891_v45 = vpack.c.bf16 %v1883_v44, %v1883_v44  ;;  %v1276_v44 = vld [vmem:[%s1272_s18 + $0x8] sm:$0xff]  ;;  %s5075_s18 = smov [#allocation34]  }
 0x542   : > { %v4361_v46 = vpop.eup %4360 }
 0x543   : > { %v1899_v47 = vsel %vm1594_vm3, %v1891_v45, 0  ;;  %v1884_v48 = vmul.f32 %v4361_v46, %v4353_v32  ;;  %v2277_v45 = vpack.c.bf16 %v1276_v44, %v1275_v43 }
 0x544   : > { %3917 = vmatpush3.bf16.xpose.msra.mxu1 %v1899_v47 }
 0x545   : > { %v1892_v49 = vpack.c.bf16 %v1884_v48, %v1884_v48  ;;  %3928 = vmatprep.subr.bf16.mxu1 %v5073_v0 }
 0x546   : > { %v4363_v52 = vpop.eup %4362 }
 0x547   : > { %v1945_v50 = vsel %vm1594_vm3, %v1892_v49, 0  ;;  %v1885_v53 = vmul.f32 %v4363_v52, %v4355_v34 }
 0x548   : > { %3923 = vmatpush3.bf16.xpose.msra.mxu0 %v1945_v50  ;;  %v3751_v50 = vld [vmem:[#allocation25] ss:$0 sm:$0xff] }
 0x549   : > { %3934 = vmatprep.subr.bf16.mxu0 %v5073_v0  ;;  %v1893_v55 = vpack.c.bf16 %v1885_v53, %v1885_v53 }
 0x54a   : > { %v4365_v54 = vpop.eup %4364 }
 0x54b   : > { %v1886_v56 = vmul.f32 %v4365_v54, %v4357_v37  ;;  %v1991_v59 = vsel %vm1594_vm3, %v1893_v55, 0  ;;  %v3757_v55 = vld [vmem:[#allocation20] ss:$0 sm:$0xff] }
 0x54d   : > { %v1894_v60 = vpack.c.bf16 %v1886_v56, %v1886_v56 }
 0x54f   : > { %v2037_v63 = vsel %vm1594_vm3, %v1894_v60, 0 }
 0x562   : > { %v1554_v57 = vpop.trf.xlu1 }
 0x563   : > { %v1887_v58 = vpack.c.bf16 %v1554_v57, %v1554_v57 }
 0x565   : > { %3919 = vmatmul.mubr.msk.bf16.vlgmr.msra.gmra.mxu1 %vm1594_vm3, %v1887_v58 }
 0x566   : > { %3929 = vmatpush3.bf16.xpose.msra.mxu1 %v1991_v59  ;;  %v1555_v61 = vpop.trf.xlu1  ;;  %3930 = vmatprep.mubr.msk.bf16.mxu1 %vm5074_vm0, %v5073_v0 }
 0x567   : > { %v1888_v62 = vpack.c.bf16 %v1555_v61, %v1555_v61  ;;  %3940 = vmatprep.subr.bf16.mxu1 %v5073_v0 }
 0x569   : > { %3925 = vmatmul.mubr.msk.bf16.vlgmr.msra.gmra.mxu0 %vm1594_vm3, %v1888_v62  ;;  %v3753_v62 = vld [vmem:[#allocation17] ss:$0 sm:$0xff] }
 0x56a   : > { %3935 = vmatpush3.bf16.xpose.msra.mxu0 %v2037_v63  ;;  %v1556_v1 = vpop.trf.xlu1  ;;  %3936 = vmatprep.mubr.msk.bf16.mxu0 %vm5074_vm0, %v5073_v0 }
 0x56b   : > { %v1889_v2 = vpack.c.bf16 %v1556_v1, %v1556_v1  ;;  %3948 = vmatprep.subr.bf16.mxu0 %v5073_v0 }
 0x56d   : > { %3931 = vmatmul.mubr.msk.bf16.vlgmr.msra.gmra.mxu1 %vm1594_vm3, %v1889_v2 }
 0x56e   : > { %v1557_v4 = vpop.trf.xlu1  ;;  %3944 = vmatprep.mubr.msk.bf16.mxu1 %vm5074_vm0, %v5073_v0  ;;  %3941 = vmatpush3.bf16.msra.mxu1 %v4330_v6 }
 0x56f   : > { %v1890_v5 = vpack.c.bf16 %v1557_v4, %v1557_v4  ;;  %3942 = vmatprep.subr.bf16.mxu1 %v5073_v0 }
 0x571   : > { %3937 = vmatmul.mubr.msk.bf16.vlgmr.msra.gmra.mxu0 %vm1594_vm3, %v1890_v5 }
 0x572   : > { %3952 = vmatprep.mubr.msk.bf16.mxu0 %vm5074_vm0, %v5073_v0  ;;  %3943 = vmatpush3.bf16.msra.mxu1 %v4331_v7 }
 0x573   : > { %3956 = vmatprep.subr.bf16.mxu1 %v5073_v0  ;;  %3949 = vmatpush3.bf16.msra.mxu0 %v4332_v40 }
 0x574   : > { %3950 = vmatprep.subr.bf16.mxu0 %v5073_v0 }
 0x577   : > { %3951 = vmatpush3.bf16.msra.mxu0 %v4333_v41 }
 0x578   : > { %3964 = vmatprep.subr.bf16.mxu0 %v5073_v0 }
 0x625   : > { %v1935_v8 = vpop.f32.mrf.mxu1 }
 0x626   : > { %2079 = vxpose.xlu0.b32.start [1/4] (short) (narrow) %v1935_v8, 8  ;;  %v4336_v8 = vld [vmem:[#allocation22 + $0x8] sm:$0xff]  }
 0x627   : > { %v3920_v9 = vpop.f32.mrf.mxu1 }
 0x629   : > { %v1938_v10 = vpop.f32.mrf.mxu1  ;;  %v1981_v11 = vpop.f32.mrf.mxu0 }
 0x62a   : > { %2080 = vxpose.xlu0.b32.cont [2/4] (short) (narrow) %v1981_v11, 8  ;;  %v4337_v10 = vld [vmem:[#allocation22] sm:$0xff]  }
 0x62b   : > { %v3921_v12 = vpop.f32.mrf.mxu1  ;;  %v3926_v13 = vpop.f32.mrf.mxu0 }
 0x62d   : > { %v1984_v14 = vpop.f32.mrf.mxu0  ;;  %v2027_v15 = vpop.f32.mrf.mxu1 }
 0x62e   : > { %2081 = vxpose.xlu0.b32.cont [3/4] (short) (narrow) %v2027_v15, 8 }
 0x62f   : > { %v3927_v16 = vpop.f32.mrf.mxu0  ;;  %v3932_v17 = vpop.f32.mrf.mxu1 }
 0x631   : > { %v2030_v18 = vpop.f32.mrf.mxu1  ;;  %v2073_v19 = vpop.f32.mrf.mxu0 }
 0x632   : > { %2082 = vxpose.xlu0.b32.end [4/4] (short) (narrow) %v2073_v19, 8 }
 0x633   : > { %v3933_v20 = vpop.f32.mrf.mxu1  ;;  %v3938_v21 = vpop.f32.mrf.mxu0 }
 0x635   : > { %v2076_v22 = vpop.f32.mrf.mxu0 }
 0x637   : > { %v3939_v23 = vpop.f32.mrf.mxu0 }
 0x6a2   : > { %v2095_v24 = vpop.trf.xlu0 }
 0x6a3   : > { %v2111_v25 = vpack.c.bf16 %v2095_v24, %v2095_v24 }
 0x6a5   : > { %3945 = vmatmul.mubr.msk.bf16.vlgmr.msra.gmra.mxu1 %vm1303_vm1, %v2111_v25 }
 0x6a6   : > { %3960 = vmatprep.mubr.msk.bf16.mxu1 %vm5074_vm0, %v5073_v0 }
 0x765   : > { %v2172_v27 = vpop.f32.mrf.mxu1 }
 0x766   : > { %v2173_v28 = vadd.f32 %v3747_v26, %v2172_v27 }
 0x767   : > { %v3946_v29 = vpop.f32.mrf.mxu1 }
 0x768   : > { %v2178_v30 = vadd.f32 %v2173_v28, %v5573_v3  ;;  %v4334_v3 = vld [vmem:[#allocation19 + $0x8] sm:$0xff]  }
 0x769   : > { %v2175_v31 = vpop.f32.mrf.mxu1  ;;  %3957 = vmatpush3.bf16.msra.mxu1 %v4334_v3 }
 0x76a   : > { %v2181_v32 = vsel %vm1303_vm1, %v2178_v30, 0.0  ;;  %3958 = vmatprep.subr.bf16.mxu1 %v5073_v0 }
 0x76b   : > { %2182 = vadd.xlane.f32.xlu1 %v2181_v32  ;;  %v3947_v33 = vpop.f32.mrf.mxu1 }
 0x76d   : > { %3959 = vmatpush3.bf16.msra.mxu1 %v4335_v42 }
 0x76e   : > { %3972 = vmatprep.subr.bf16.mxu1 %v5073_v0 }
 0x770   : > { %3961 = vmatmul.mubr.msk.bf16.vlgmr.msra.gmra.mxu1 %vm1303_vm1, %v2277_v45 }
 0x771   : > { %3974 = vmatprep.mubr.msk.bf16.mxu1 %vm5074_vm0, %v5073_v0 }
 0x7f4   : > { %v2183_v34 = vpop.xlane.xlu1 %2182 }
 0x7f5   : > { %v2185_v35 = vmul.f32 0.03125, %v2183_v34 }
 0x7f7   : > { %v2186_v37 = vsub.f32 %v2178_v30, %v2185_v35 }
 0x7f9   : > { %v2187_v38 = vmul.f32 %v2186_v37, %v2186_v37 }
 0x7fb   : > { %v2188_v39 = vsel %vm1303_vm1, %v2187_v38, 0.0  ;;  %v3769_v38 = vld [vmem:[%s1105_s29] ss:$0 sm:$0xff]  ;;  %s3722_s29 = sshll.u32 %s5515_s9, 3 }
 0x7fc   : > { %2189 = vadd.xlane.f32.xlu0 %v2188_v39  ;;  %s1263_s14 = scalar_lea.vmem [#allocation34], %s3722_s29 }
 0x7fd   : > { %s3367_s16 = sshll.u32 %s1263_s14, 4  ;;  %s3368_s16 = int_to_ptr.vmem [resolvable:$true] %s3367_s16 }
 0x7fe   : > { %s4914_s4 = scalar_lea.vmem %s3368_s16, 128 }
 0x7ff   : > { %p4915_p13 = scmp.ne.s32.totalorder %s3368_s16, %s4914_s4 }
 0x801   : > { %p4916_p12 = pnand %p4915_p13, %p5907_p11 }
 0x803   : > { %p4917_p8 = pneg %p4916_p12 }
 0x830   : > { %v2338_v56 = vpop.f32.mrf.mxu1 }
 0x831   : > { %v2339_v57 = vadd.f32 %v3757_v55, %v2338_v56 }
 0x832   : > { %v3962_v58 = vpop.f32.mrf.mxu1 }
 0x833   : > { %2441 = vxpose.xlu0.b32.start [1/2] (short) (narrow) %v2339_v57, 32 }
 0x834   : > { %v2341_v59 = vpop.f32.mrf.mxu1 }
 0x835   : > { %v2342_v60 = vadd.f32 %v3757_v55, %v2341_v59 }
 0x836   : > { %v3963_v61 = vpop.f32.mrf.mxu1 }
 0x837   : > { %2442 = vxpose.xlu0.b32.end [2/2] (short) (narrow) %v2342_v60, 32 }
 0x885   : > { %v2190_v46 = vpop.xlane.xlu0 %2189 }
 0x886   : > { %v2191_v47 = vmul.f32 0.03125, %v2190_v46 }
 0x888   : > { %v2192_v48 = vadd.f32 1e-05, %v2191_v47 }
 0x88a   : > { %4366 = vrsqrt.f32 %v2192_v48 }
 0x897   : > { %v4367_v49 = vpop.eup %4366 }
 0x898   : > { %v2194_v51 = vmul.f32 %v4367_v49, %v2186_v37 }
 0x89a   : > { %v2201_v52 = vmul.f32 %v3751_v50, %v2194_v51 }
 0x89c   : > { %v5666_v53 = vadd.f32 %v3752_v36, %v2201_v52 }
 0x89e   : > { %v2209_v54 = vpack.c.bf16 %v5666_v53, %v5666_v53 }
 0x8a0   : > { %3953 = vmatmul.mubr.msk.bf16.vlgmr.msra.gmra.mxu0 %vm1303_vm1, %v2209_v54 }
 0x8a1   : > { %3968 = vmatprep.mubr.msk.bf16.mxu0 %vm5074_vm0, %v5073_v0  ;;  %3965 = vmatpush3.bf16.msra.mxu0 %v4336_v8 }
 0x8a2   : > { %3966 = vmatprep.subr.bf16.mxu0 %v5073_v0 }
 0x8a5   : > { %3967 = vmatpush3.bf16.msra.mxu0 %v4337_v10 }
 0x8a6   : > { %3978 = vmatprep.subr.bf16.mxu0 %v5073_v0 }
 0x8a8   : > { %3969 = vmatmul.mubr.msk.bf16.vlgmr.msra.gmra.mxu0 %vm1303_vm1, %v2277_v45 }
 0x8a9   : > { %3980 = vmatprep.mubr.msk.bf16.mxu0 %vm5074_vm0, %v5073_v0 }
 0x8af   : > { %v2457_v7 = vpop.trf.xlu0 }
 0x8b0   : > { %v2509_v9 = vpack.c.bf16 %v2457_v7, %v2457_v7 }
 0x8b2   : > { %v2533_v11 = vsel %vm1598_vm2, %v2509_v9, 0 }
 0x8b3   : > { %v2458_v12 = vpop.trf.xlu0  ;;  %3973 = vmatpush3.bf16.msra.mxu1 %v2533_v11 }
 0x8b4   : > { %v2510_v13 = vpack.c.bf16 %v2458_v12, %v2458_v12  ;;  %3984 = vmatprep.subr.bf16.mxu1 %v5073_v0 }
 0x8b6   : > { %v2595_v14 = vsel %vm1598_vm2, %v2510_v13, 0 }
 0x8b7   : > { %3979 = vmatpush3.bf16.msra.mxu0 %v2595_v14  ;;  %v2459_v26 = vpop.trf.xlu0 }
 0x8b8   : > { %3990 = vmatprep.subr.bf16.mxu0 %v5073_v0  ;;  %v2511_v28 = vpack.c.bf16 %v2459_v26, %v2459_v26 }
 0x8ba   : > { %v2657_v30 = vsel %vm1598_vm2, %v2511_v28, 0 }
 0x8bb   : > { %v2460_v29 = vpop.trf.xlu0 }
 0x8bc   : > { %v2512_v31 = vpack.c.bf16 %v2460_v29, %v2460_v29 }
 0x8be   : > { %v2719_v33 = vsel %vm1598_vm2, %v2512_v31, 0 }
 0x960   : > { %v2270_v63 = vpop.f32.mrf.mxu0 }
 0x961   : > { %v2271_v1 = vadd.f32 %v3753_v62, %v2270_v63 }
 0x962   : > { %v3954_v2 = vpop.f32.mrf.mxu0 }
 0x963   : > { %v2276_v4 = vmul.f32 0.35355338, %v2271_v1 }
 0x964   : > { %v2273_v5 = vpop.f32.mrf.mxu0 }
 0x965   : > { %2409 = vxpose.xlu1.b32.start.end [1/1] (short) (narrow) %v2276_v4, 32 }
 0x966   : > { %v3955_v6 = vpop.f32.mrf.mxu0 }
 0x968   : > { %v5682_v23 = vpop.f32.mrf.mxu0 }
 0x96a   : > { %v3970_v24 = vpop.f32.mrf.mxu0 }
 0x96c   : > { %v5684_v25 = vpop.f32.mrf.mxu0 }
 0x96e   : > { %v3971_v27 = vpop.f32.mrf.mxu0 }
 0x9e1   : > { %v2425_v15 = vpop.trf.xlu1 }
 0x9e2   : > { %v2505_v16 = vpack.c.bf16 %v2425_v15, %v2425_v15 }
 0x9e4   : > { %2513 = vxpose.xlu1.c.b16.start.end [1/1] (short) (narrow) %v2505_v16, 16 }
 0x9e5   : > { %v2426_v17 = vpop.trf.xlu1 }
 0x9e6   : > { %v2506_v18 = vpack.c.bf16 %v2426_v17, %v2426_v17 }
 0x9e8   : > { %2575 = vxpose.xlu0.c.b16.start.end [1/1] (short) (narrow) %v2506_v18, 16 }
 0x9e9   : > { %v2427_v19 = vpop.trf.xlu1 }
 0x9ea   : > { %v2507_v20 = vpack.c.bf16 %v2427_v19, %v2427_v19 }
 0x9ec   : > { %2637 = vxpose.xlu1.c.b16.start.end [1/1] (short) (narrow) %v2507_v20, 16  ;;  %v3761_v20 = vld [vmem:[#allocation23] ss:$0 sm:$0xff] }
 0x9ed   : > { %v2428_v21 = vpop.trf.xlu1 }
 0x9ee   : > { %v2508_v22 = vpack.c.bf16 %v2428_v21, %v2428_v21  ;;  %v2403_v21 = vadd.f32 %v3761_v20, %v5682_v23 }
 0x9f0   : > { %2699 = vxpose.xlu1.c.b16.start.end [1/1] (short) (narrow) %v2508_v22, 16  ;;  %v2406_v22 = vadd.f32 %v3761_v20, %v5684_v25 }
 0xa46   : > { %v2521_v32 = vpop.trf.xlu1 }
 0xa47   : > { %3975 = vmatmul.mubr.msk.bf16.vlgmr.msra.gmra.mxu1 %vm1594_vm3, %v2521_v32 }
 0xa48   : > { %3985 = vmatpush3.bf16.msra.mxu1 %v2657_v30  ;;  %3986 = vmatprep.mubr.msk.bf16.mxu1 %vm5074_vm0, %v5073_v0 }
 0xa49   : > { %3996 = vmatprep.subr.bf16.mxu1 %v5073_v0 }
 0xa4a   : > { %v2583_v34 = vpop.trf.xlu0 }
 0xa4b   : > { %3981 = vmatmul.mubr.msk.bf16.vlgmr.msra.gmra.mxu0 %vm1594_vm3, %v2583_v34 }
 0xa4c   : > { %3991 = vmatpush3.bf16.msra.mxu0 %v2719_v33  ;;  %3992 = vmatprep.mubr.msk.bf16.mxu0 %vm5074_vm0, %v5073_v0 }
 0xa4d   : > { %4002 = vmatprep.subr.bf16.mxu0 %v5073_v0 }
 0xa4e   : > { %v2645_v35 = vpop.trf.xlu1 }
 0xa4f   : > { %3987 = vmatmul.mubr.msk.bf16.vlgmr.msra.gmra.mxu1 %vm1594_vm3, %v2645_v35 }
 0xa50   : > { %3998 = vmatprep.mubr.msk.bf16.mxu1 %vm5074_vm0, %v5073_v0 }
 0xa52   : > { %v2707_v37 = vpop.trf.xlu1 }
 0xa53   : > { %3993 = vmatmul.mubr.msk.bf16.vlgmr.msra.gmra.mxu0 %vm1594_vm3, %v2707_v37 }
 0xa54   : > { %4004 = vmatprep.mubr.msk.bf16.mxu0 %vm5074_vm0, %v5073_v0 }
 0xb07   : > { %v2569_v39 = vpop.f32.mrf.mxu1 }
 0xb08   : > { %v2767_v40 = vadd.f32 %v3769_v38, %v2569_v39 }
 0xb09   : > { %v3976_v41 = vpop.f32.mrf.mxu1 }
 0xb0a   : > { %v2772_v3 = vsel %vm2771_vm4, %v2767_v40, -inf }
 0xb0b   : > { %2773 = vmax.xlane.f32.xlu1 %v2772_v3  ;;  %v2572_v42 = vpop.f32.mrf.mxu1  ;;  %v2631_v43 = vpop.f32.mrf.mxu0 }
 0xb0c   : > { %v2768_v44 = vadd.f32 %v3769_v38, %v2631_v43 }
 0xb0d   : > { %v3977_v45 = vpop.f32.mrf.mxu1  ;;  %v3982_v46 = vpop.f32.mrf.mxu0 }
 0xb0e   : > { %v2775_v47 = vsel %vm2771_vm4, %v2768_v44, -inf }
 0xb0f   : > { %v2693_v48 = vpop.f32.mrf.mxu1  ;;  %2776 = vmax.xlane.f32.xlu0 %v2775_v47  ;;  %v2634_v49 = vpop.f32.mrf.mxu0 }
 0xb10   : > { %v2769_v50 = vadd.f32 %v3769_v38, %v2693_v48 }
 0xb11   : > { %v3983_v51 = vpop.f32.mrf.mxu0  ;;  %v3988_v36 = vpop.f32.mrf.mxu1 }
 0xb12   : > { %v2778_v52 = vsel %vm2771_vm4, %v2769_v50, -inf  ;;  %v4338_v51 = vld [vmem:[%s5901_s6 + $0x8] sm:$0xff]   ;;  %v4339_v36 = vld [vmem:[%s5901_s6] sm:$0xff]  }
 0xb13   : > { %2779 = vmax.xlane.f32.xlu1 %v2778_v52  ;;  %v2696_v54 = vpop.f32.mrf.mxu1  ;;  %v2755_v55 = vpop.f32.mrf.mxu0 }
 0xb14   : > { %v2770_v56 = vadd.f32 %v3769_v38, %v2755_v55 }
 0xb15   : > { %v3989_v57 = vpop.f32.mrf.mxu1  ;;  %v3994_v58 = vpop.f32.mrf.mxu0 }
 0xb16   : > { %v2781_v59 = vsel %vm2771_vm4, %v2770_v56, -inf }
 0xb17   : > { %2782 = vmax.xlane.f32.xlu1 %v2781_v59  ;;  %v2758_v60 = vpop.f32.mrf.mxu0 }
 0xb19   : > { %v3995_v61 = vpop.f32.mrf.mxu0 }
 0xb94   : > { %v2774_v62 = vpop.xlane.xlu1 %2773 }
 0xb95   : > { %v2784_v63 = vsub.f32 %v2767_v40, %v2774_v62 }
 0xb97   : > { %v2788_v1 = vmul.f32 1.442695, %v2784_v63 }
 0xb98   : > { %v2777_v2 = vpop.xlane.xlu0 %2776 }
 0xb99   : > { %4368 = vpow2.f32 %v2788_v1  ;;  %v2785_v4 = vsub.f32 %v2768_v44, %v2777_v2 }
 0xb9b   : > { %v2790_v5 = vmul.f32 1.442695, %v2785_v4 }
 0xb9c   : > { %v2780_v6 = vpop.xlane.xlu1 %2779 }
 0xb9d   : > { %4370 = vpow2.f32 %v2790_v5  ;;  %v2786_v7 = vsub.f32 %v2769_v50, %v2780_v6 }
 0xb9f   : > { %v2792_v8 = vmul.f32 1.442695, %v2786_v7 }
 0xba0   : > { %v2783_v9 = vpop.xlane.xlu1 %2782 }
 0xba1   : > { %4372 = vpow2.f32 %v2792_v8  ;;  %v2787_v10 = vsub.f32 %v2770_v56, %v2783_v9  ;;  %v3774_v9 = vld [vmem:[%s5902_s17] ss:$0 sm:$0xff]  ;;  %s4918_s17 = sshll.u32 %s5075_s18, 4  ;;  %s4919_s17 = int_to_ptr.vmem [resolvable:$false] %s4918_s17 }
 0xba2   : > { %p4921_p4 = scmp.lt.s32.totalorder %s3368_s16, %s4919_s17 }
 0xba3   : > { %v2794_v11 = vmul.f32 1.442695, %v2787_v10 }
 0xba5   : > { %4374 = vpow2.f32 %v2794_v11 }
 0xba6   : > { %v4369_v12 = vpop.eup %4368 }
 0xba7   : > { %v2796_v13 = vsel %vm2771_vm4, %v4369_v12, 0.0 }
 0xba8   : > { %2797 = vadd.xlane.f32.xlu1 %v2796_v13 }
 0xbaa   : > { %v4371_v14 = vpop.eup %4370 }
 0xbab   : > { %v2799_v15 = vsel %vm2771_vm4, %v4371_v14, 0.0 }
 0xbac   : > { %2800 = vadd.xlane.f32.xlu1 %v2799_v15 }
 0xbae   : > { %v4373_v16 = vpop.eup %4372 }
 0xbaf   : > { %v2802_v17 = vsel %vm2771_vm4, %v4373_v16, 0.0 }
 0xbb0   : > { %2803 = vadd.xlane.f32.xlu0 %v2802_v17 }
 0xbb2   : > { %v4375_v18 = vpop.eup %4374 }
 0xbb3   : > { %v2805_v19 = vsel %vm2771_vm4, %v4375_v18, 0.0 }
 0xbb4   : > { %2806 = vadd.xlane.f32.xlu1 %v2805_v19 }
 0xbdd   : > { %2473 = vxpose.xlu0.b32.start [1/2] (short) (narrow) %v2403_v21, 32 }
 0xbe1   : > { %2474 = vxpose.xlu0.b32.end [2/2] (short) (narrow) %v2406_v22, 32  ;;  %v4340_v22 = vld [vmem:[%s5903_s11 + $0x8] sm:$0xff]  }
 0xc31   : > { %v2798_v24 = vpop.xlane.xlu1 %2797 }
 0xc32   : > { %4376 = vrcp.f32 %v2798_v24  ;;  %v4341_v24 = vld [vmem:[%s5903_s11] sm:$0xff]  }
 0xc35   : > { %v2801_v26 = vpop.xlane.xlu1 %2800 }
 0xc36   : > { %4378 = vrcp.f32 %v2801_v26  ;;  %v4343_v26 = vld [vmem:[%s5229_s25 + $0x30] sm:$0xff]  }
 0xc39   : > { %v2804_v29 = vpop.xlane.xlu0 %2803 }
 0xc3a   : > { %4380 = vrcp.f32 %v2804_v29 }
 0xc3d   : > { %v2807_v34 = vpop.xlane.xlu1 %2806 }
 0xc3e   : > { %4382 = vrcp.f32 %v2807_v34 }
 0xc3f   : > { %v4377_v27 = vpop.eup %4376 }
 0xc40   : > { %v2812_v28 = vmul.f32 %v4377_v27, %v4369_v12 }
 0xc42   : > { %v2820_v30 = vpack.c.bf16 %v2812_v28, %v2812_v28 }
 0xc43   : > { %v4379_v31 = vpop.eup %4378 }
 0xc44   : > { %v2828_v32 = vsel %vm2771_vm4, %v2820_v30, 0  ;;  %v2813_v33 = vmul.f32 %v4379_v31, %v4371_v14  ;;  %v3778_v31 = vld [vmem:[#allocation28] ss:$0 sm:$0xff] }
 0xc45   : > { %3997 = vmatpush3.bf16.xpose.msra.mxu1 %v2828_v32 }
 0xc46   : > { %v2821_v23 = vpack.c.bf16 %v2813_v33, %v2813_v33  ;;  %4008 = vmatprep.subr.bf16.mxu1 %v5073_v0  ;;  %v3779_v33 = vld [vmem:[#allocation29] ss:$0 sm:$0xff] }
 0xc47   : > { %v4381_v35 = vpop.eup %4380 }
 0xc48   : > { %v2874_v25 = vsel %vm2771_vm4, %v2821_v23, 0  ;;  %v2814_v37 = vmul.f32 %v4381_v35, %v4373_v16  ;;  %v4344_v35 = vld [vmem:[%s5229_s25 + $0x28] sm:$0xff]  }
 0xc49   : > { %4003 = vmatpush3.bf16.xpose.msra.mxu0 %v2874_v25 }
 0xc4a   : > { %4014 = vmatprep.subr.bf16.mxu0 %v5073_v0  ;;  %v2822_v39 = vpack.c.bf16 %v2814_v37, %v2814_v37  ;;  %v4345_v37 = vld [vmem:[%s5229_s25 + $0x20] sm:$0xff]  }
 0xc4b   : > { %v4383_v38 = vpop.eup %4382 }
 0xc4c   : > { %v2815_v40 = vmul.f32 %v4383_v38, %v4375_v18  ;;  %v2920_v42 = vsel %vm2771_vm4, %v2822_v39, 0  ;;  %v4346_v38 = vld [vmem:[%s5229_s25 + $0x18] sm:$0xff]   ;;  %v4347_v39 = vld [vmem:[%s5229_s25 + $0x10] sm:$0xff]  }
 0xc4e   : > { %v2823_v43 = vpack.c.bf16 %v2815_v40, %v2815_v40  ;;  %v4348_v40 = vld [vmem:[%s5229_s25 + $0x8] sm:$0xff]  }
 0xc50   : > { %v2966_v46 = vsel %vm2771_vm4, %v2823_v43, 0 }
 0xc59   : > { %v2489_v41 = vpop.trf.xlu0 }
 0xc5a   : > { %v2816_v3 = vpack.c.bf16 %v2489_v41, %v2489_v41  ;;  %v4349_v41 = vld [vmem:[%s5229_s25] sm:$0xff]  }
 0xc5c   : > { %3999 = vmatmul.mubr.msk.bf16.vlgmr.msra.gmra.mxu1 %vm2771_vm4, %v2816_v3  ;;  %v3780_v3 = vld [vmem:[%s5904_s3] ss:$0 sm:$0xff]  ;;  %s4920_s3 = scalar_lea.vmem %s4919_s17, 256 }
 0xc5d   : > { %4009 = vmatpush3.bf16.xpose.msra.mxu1 %v2920_v42  ;;  %v2490_v44 = vpop.trf.xlu0  ;;  %4010 = vmatprep.mubr.msk.bf16.mxu1 %vm5074_vm0, %v5073_v0  ;;  %p4922_p9 = scmp.lt.s32.totalorder %s4920_s3, %s4914_s4 }
 0xc5e   : > { %v2817_v45 = vpack.c.bf16 %v2490_v44, %v2490_v44  ;;  %4020 = vmatprep.subr.bf16.mxu1 %v5073_v0 }
 0xc5f   : > { %p4923_p5 = por %p4922_p9, %p4921_p4 }
 0xc60   : > { %4005 = vmatmul.mubr.msk.bf16.vlgmr.msra.gmra.mxu0 %vm2771_vm4, %v2817_v45 }
 0xc61   : > { %4015 = vmatpush3.bf16.xpose.msra.mxu0 %v2966_v46  ;;  %v2491_v47 = vpop.trf.xlu0  ;;  %4016 = vmatprep.mubr.msk.bf16.mxu0 %vm5074_vm0, %v5073_v0  ;;  %p4924_p0 = pnand %p4923_p5, %p4917_p8 }
 0xc62   : > { %v2818_v48 = vpack.c.bf16 %v2491_v47, %v2491_v47  ;;  %4028 = vmatprep.subr.bf16.mxu0 %v5073_v0 }
 0xc64   : > { %4011 = vmatmul.mubr.msk.bf16.vlgmr.msra.gmra.mxu1 %vm2771_vm4, %v2818_v48 }
 0xc65   : > { %v2492_v49 = vpop.trf.xlu0  ;;  %4024 = vmatprep.mubr.msk.bf16.mxu1 %vm5074_vm0, %v5073_v0  ;;  %4021 = vmatpush3.bf16.msra.mxu1 %v4338_v51 }
 0xc66   : > { %v2819_v50 = vpack.c.bf16 %v2492_v49, %v2492_v49  ;;  %4022 = vmatprep.subr.bf16.mxu1 %v5073_v0 }
 0xc68   : > { %4017 = vmatmul.mubr.msk.bf16.vlgmr.msra.gmra.mxu0 %vm2771_vm4, %v2819_v50 }
 0xc69   : > { %4032 = vmatprep.mubr.msk.bf16.mxu0 %vm5074_vm0, %v5073_v0  ;;  %4023 = vmatpush3.bf16.msra.mxu1 %v4339_v36 }
 0xc6a   : > { %4036 = vmatprep.subr.bf16.mxu1 %v5073_v0  ;;  %4029 = vmatpush3.bf16.msra.mxu0 %v4340_v22 }
 0xc6b   : > { %4030 = vmatprep.subr.bf16.mxu0 %v5073_v0 }
 0xc6e   : > { %4031 = vmatpush3.bf16.msra.mxu0 %v4341_v24 }
 0xd1c   : > { %v2864_v52 = vpop.f32.mrf.mxu1 }
 0xd1d   : > { %3008 = vxpose.xlu1.b32.start [1/4] (short) (narrow) %v2864_v52, 8  ;;  %v3784_v52 = vld [vmem:[%s5905_s19] ss:$0 sm:$0xff] }
 0xd1e   : > { %v4000_v54 = vpop.f32.mrf.mxu1 }
 0xd20   : > { %v2867_v55 = vpop.f32.mrf.mxu1  ;;  %v2910_v56 = vpop.f32.mrf.mxu0 }
 0xd21   : > { %3009 = vxpose.xlu1.b32.cont [2/4] (short) (narrow) %v2910_v56, 8 }
 0xd22   : > { %v4001_v57 = vpop.f32.mrf.mxu1  ;;  %v4006_v58 = vpop.f32.mrf.mxu0 }
 0xd24   : > { %v2913_v59 = vpop.f32.mrf.mxu0  ;;  %v2956_v60 = vpop.f32.mrf.mxu1 }
 0xd25   : > { %3010 = vxpose.xlu1.b32.cont [3/4] (short) (narrow) %v2956_v60, 8 }
 0xd26   : > { %v4007_v61 = vpop.f32.mrf.mxu0  ;;  %v4012_v62 = vpop.f32.mrf.mxu1 }
 0xd28   : > { %v2959_v63 = vpop.f32.mrf.mxu1  ;;  %v3002_v1 = vpop.f32.mrf.mxu0 }
 0xd29   : > { %3011 = vxpose.xlu1.b32.end [4/4] (short) (narrow) %v3002_v1, 8 }
 0xd2a   : > { %v4013_v2 = vpop.f32.mrf.mxu1  ;;  %v4018_v4 = vpop.f32.mrf.mxu0 }
 0xd2c   : > { %v3005_v5 = vpop.f32.mrf.mxu0 }
 0xd2e   : > { %v4019_v6 = vpop.f32.mrf.mxu0 }
 0xd99   : > { %v3024_v7 = vpop.trf.xlu1 }
 0xd9a   : > { %v3040_v8 = vpack.c.bf16 %v3024_v7, %v3024_v7  ;;  %v3793_v7 = vld [vmem:[#allocation31] ss:$0 sm:$0xff] }
 0xd9c   : > { %4025 = vmatmul.mubr.msk.bf16.vlgmr.msra.gmra.mxu1 %vm1303_vm1, %v3040_v8 }
 0xd9d   : > { %4052 = vmatprep.mubr.msk.bf16.mxu1 %vm5074_vm0, %v5073_v0 }
 0xe5c   : > { %v3101_v10 = vpop.f32.mrf.mxu1 }
 0xe5d   : > { %v3102_v11 = vadd.f32 %v3774_v9, %v3101_v10  ;;  %v3794_v9 = vld [vmem:[#allocation32] ss:$0 sm:$0xff] }
 0xe5e   : > { %v4026_v12 = vpop.f32.mrf.mxu1 }
 0xe5f   : > { %v3107_v13 = vadd.f32 %v3102_v11, %v5666_v53  ;;  %v4342_v53 = vld [vmem:[%s5229_s25 + $0x38] sm:$0xff]  }
 0xe60   : > { %v3104_v14 = vpop.f32.mrf.mxu1  ;;  %4037 = vmatpush3.bf16.msra.mxu1 %v4342_v53 }
 0xe61   : > { %v3110_v15 = vsel %vm1303_vm1, %v3107_v13, 0.0  ;;  %4038 = vmatprep.subr.bf16.mxu1 %v5073_v0 }
 0xe62   : > { %3111 = vadd.xlane.f32.xlu0 %v3110_v15  ;;  %v4027_v16 = vpop.f32.mrf.mxu1 }
 0xe64   : > { %4039 = vmatpush3.bf16.msra.mxu1 %v4343_v26 }
 0xe65   : > { %4040 = vmatprep.subr.bf16.mxu1 %v5073_v0 }
 0xe68   : > { %4041 = vmatpush3.bf16.msra.mxu1 %v4344_v35 }
 0xe69   : > { %4042 = vmatprep.subr.bf16.mxu1 %v5073_v0 }
 0xe6c   : > { %4043 = vmatpush3.bf16.msra.mxu1 %v4345_v37 }
 0xe6d   : > { %4044 = vmatprep.subr.bf16.mxu1 %v5073_v0 }
 0xe70   : > { %4045 = vmatpush3.bf16.msra.mxu1 %v4346_v38 }
 0xe71   : > { %4046 = vmatprep.subr.bf16.mxu1 %v5073_v0 }
 0xe74   : > { %4047 = vmatpush3.bf16.msra.mxu1 %v4347_v39 }
 0xe75   : > { %4048 = vmatprep.subr.bf16.mxu1 %v5073_v0 }
 0xe78   : > { %4049 = vmatpush3.bf16.msra.mxu1 %v4348_v40 }
 0xe79   : > { %4050 = vmatprep.subr.bf16.mxu1 %v5073_v0 }
 0xe7c   : > { %4051 = vmatpush3.bf16.msra.mxu1 %v4349_v41 }
 0xeeb   : > { %v3112_v17 = vpop.xlane.xlu0 %3111 }
 0xeec   : > { %v3113_v18 = vmul.f32 0.03125, %v3112_v17 }
 0xeee   : > { %v3114_v19 = vsub.f32 %v3107_v13, %v3113_v18 }
 0xef0   : > { %v3115_v20 = vmul.f32 %v3114_v19, %v3114_v19 }
 0xef2   : > { %v3116_v21 = vsel %vm1303_vm1, %v3115_v20, 0.0 }
 0xef3   : > { %3117 = vadd.xlane.f32.xlu1 %v3116_v21 }
 0xf7c   : > { %v3118_v27 = vpop.xlane.xlu1 %3117 }
 0xf7d   : > { %v3119_v28 = vmul.f32 0.03125, %v3118_v27 }
 0xf7f   : > { %v3120_v29 = vadd.f32 1e-05, %v3119_v28 }
 0xf81   : > { %4384 = vrsqrt.f32 %v3120_v29 }
 0xf8e   : > { %v4385_v30 = vpop.eup %4384 }
 0xf8f   : > { %v3122_v32 = vmul.f32 %v4385_v30, %v3114_v19 }
 0xf91   : > { %v3129_v34 = vmul.f32 %v3778_v31, %v3122_v32 }
 0xf93   : > { %v3136_v23 = vadd.f32 %v3779_v33, %v3129_v34 }
 0xf95   : > { %v3137_v25 = vpack.c.bf16 %v3136_v23, %v3136_v23 }
 0xf97   : > { %4033 = vmatmul.mubr.msk.bf16.vlgmr.msra.gmra.mxu0 %vm1303_vm1, %v3137_v25 }
0x1057   : > { %v3198_v42 = vpop.f32.mrf.mxu0 }
0x1058   : > { %v3199_v43 = vadd.f32 %v3780_v3, %v3198_v42 }
0x1059   : > { %v4034_v44 = vpop.f32.mrf.mxu0 }
0x105a   : > { %v3206_v45 = vmul.f32 0.70710677, %v3199_v43  ;;  %v3204_v49 = vmul.f32 0.5, %v3199_v43 }
0x105b   : > { %v3201_v46 = vpop.f32.mrf.mxu0 }
0x105c   : > { %4386 = verf.f32 %v3206_v45 }
0x105d   : > { %v4035_v47 = vpop.f32.mrf.mxu0 }
0x1069   : > { %v4387_v48 = vpop.eup %4386 }
0x106a   : > { %v3208_v50 = vadd.f32 1.0, %v4387_v48 }
0x106c   : > { %v3209_v51 = vmul.f32 %v3208_v50, %v3204_v49 }
0x106e   : > { %v3210_v36 = vpack.c.bf16 %v3209_v51, %v3209_v51 }
0x1070   : > { %4053 = vmatmul.mubr.bf16.vlgmr.msra.gmra.mxu1 %v3210_v36 }
0x1130   : > { %v3316_v54 = vpop.f32.mrf.mxu1 }
0x1131   : > { %v3317_v0 = vadd.f32 %v3784_v52, %v3316_v54 }
0x1132   : > { %v4054_v55 = vpop.f32.mrf.mxu1 }
0x1133   : > { %v3322_v56 = vadd.f32 %v3317_v0, %v3136_v23 }
0x1134   : > { %v3319_v57 = vpop.f32.mrf.mxu1 }
0x1135   : > { %v3325_v58 = vsel %vm1303_vm1, %v3322_v56, 0.0 }
0x1136   : > { %3326 = vadd.xlane.f32.xlu0 %v3325_v58  ;;  %v4055_v59 = vpop.f32.mrf.mxu1 }
0x11bf   : > { %v3327_v60 = vpop.xlane.xlu0 %3326 }
0x11c0   : > { %v3328_v61 = vmul.f32 0.03125, %v3327_v60 }
0x11c2   : > { %v3329_v62 = vsub.f32 %v3322_v56, %v3328_v61 }
0x11c4   : > { %v3330_v63 = vmul.f32 %v3329_v62, %v3329_v62 }
0x11c6   : > { %v3331_v1 = vsel %vm1303_vm1, %v3330_v63, 0.0 }
0x11c7   : > { %3332 = vadd.xlane.f32.xlu1 %v3331_v1 }
0x1250   : > { %v3333_v2 = vpop.xlane.xlu1 %3332 }
0x1251   : > { %v3334_v4 = vmul.f32 0.03125, %v3333_v2 }
0x1253   : > { %v3335_v5 = vadd.f32 1e-05, %v3334_v4 }
0x1255   : > { %4388 = vrsqrt.f32 %v3335_v5 }
0x1262   : > { %v4389_v6 = vpop.eup %4388 }
0x1263   : > { %v3337_v8 = vmul.f32 %v4389_v6, %v3329_v62 }
0x1265   : > { %v3344_v10 = vmul.f32 %v3793_v7, %v3337_v8 }
0x1267   : > { %v3351_v11 = vadd.f32 %v3794_v9, %v3344_v10 }
0x1269   : > { %3352 = vst.msk [vmem:[%s1263_s14] sm:$0xff] %vm1303_vm1, %v3351_v11 }
0x126a   : > { %4927 = shalt.err (!%p4924_p0)
}
0x126b   : > { %s4928_s2 = scalar_lea.hbm %s3365_s12, 128  ;;  %s4932_s9 = scalar_lea.hbm %s5906_s30, 256 }
0x126c   : > { %p4929_p6 = scmp.ne.s32.totalorder %s3365_s12, %s4928_s2  ;;  %p4933_p1 = scmp.lt.s32.totalorder %s3365_s12, %s5906_s30 }
0x126d   : > { %p4934_p3 = scmp.lt.s32.totalorder %s4932_s9, %s4928_s2 }
0x126e   : > { %p4930_p7 = pnand %p4929_p6, %p5907_p11 }
0x126f   : > { %p4935_p10 = por %p4934_p3, %p4933_p1 }
0x1270   : > { %p4931_p2 = pneg %p4930_p7 }
0x1272   : > { %p4936_p13 = pnand %p4935_p10, %p4931_p2 }
0x1274   : > { %4939 = shalt.err (!%p4936_p13)
}
0x1275   : > { %4132 = dma.vmem_to_hbm [thread:$0]  (%p5907_p11), %s3368_s16, 128, %s3365_s12, %s3354_s5  }
0x1276 PF: > { %s3379_s19 = sand.u32 1, %s5006_s22   ;;  %p5908_p12 = scmp.ne.s32.totalorder %s5861_s28, 0 }
0x1277   : > { %p5909_p8 = scmp.ge.s32.totalorder %s5018_s26, 2  ;;  %s3380_s29 = scalar_lea.sflag [#allocation4], %s3379_s19 }
0x1279   : > { %p4197_p4 = pnand %p5909_p8, %p5908_p12 }
0x127b   : > { %p4198_p9 = pneg %p4197_p4 }
0x127d   : > { %5001 = dma.done.wait (%p4198_p9), %s3380_s29, 128  }
0x127e   : > { %5003 = vsyncadd (%p4198_p9), %s3380_s29, 4294967168  ;;  %s5910_s27 = sld [smem:[#allocation74_spill]]  ;;  %p86_p5 = scmp.ge.s32.totalorder %s5347_s15, 4  }
0x127f   : > { %s5911_s22 = smov %s5010_s23  ;;  %s5912_s23 = smov %s5014_s0 }
0x1280   : > { %s5914_s26 = smov %s5347_s15  ;;  %88 = sbr.rel (!%p86_p5) target bundleno = 79 (0x4f), region = 310 }
0x1284   : > { %s5913_s0 = smov %s5910_s27 }
0x1285   :  { %3385 = vsyncpa [#allocation3], 1 }
0x1286   :  { %3387 = vsyncpa [#allocation3 + $0x1], 1 }
0x1287   :  { %3388 = vsyncpa [#allocation6], 1 }
0x1288   :  { %3390 = vsyncpa [#allocation6 + $0x1], 1 }
0x1289   :  { %3391 = vsyncpa [#allocation9], 1 }
0x128a   :  { %3392 = vsyncpa [#allocation12], 1 }
0x128b   :  { %3393 = vsyncpa [#allocation15], 1 }
0x128c   :  { %3394 = vsyncpa [#allocation18], 1 }
0x128d   :  { %3395 = vsyncpa [#allocation21], 1 }
0x128e   :  { %3396 = vsyncpa [#allocation24], 1 }
0x128f   :  { %3397 = vsyncpa [#allocation27], 1 }
0x1290   :  { %3398 = vsyncpa [#allocation30], 1 }
0x1291   :  { %3399 = vsyncpa [#allocation33], 1 }
0x1292   :  { %3400 = vsyncpa [#allocation4], 1 }
0x1293   :  { %3402 = vsyncpa [#allocation4 + $0x1], 1 }

// kernel: tpu_custom_call.1
= control target key start
LH: loop header
LB: loop body
LE: loop exit
PB: predicated region body
PF: predicated region fallthrough
CT: control target
= control target key end

     0   :  { %s5147_s6 = smov 1   ;;  %s5148_s10 = smov 2   ;;  %s5926_s0 = inlined_call_operand.smem [shape: u32[32], index: -1, kind: input, shape index: {}] }
   0x1   :  { %s5211_s5 = sld [smem:[%s5926_s0]]   ;;  %s5149_s14 = smov 3  }
   0x2   :  { %s5216_s9 = sld [smem:[%s5926_s0 + %s5147_s6]]   ;;  %s5150_s18 = smov 4  }
   0x3   :  { %s5221_s13 = sld [smem:[%s5926_s0 + %s5148_s10]]   ;;  %s5151_s22 = smov 5  }
   0x4   :  { %s5226_s17 = sld [smem:[%s5926_s0 + %s5149_s14]]   ;;  %s5152_s26 = smov 6  }
   0x5   :  { %s5231_s21 = sld [smem:[%s5926_s0 + %s5150_s18]]   ;;  %s5153_s30 = smov 7  }
   0x6   :  { %s5236_s25 = sld [smem:[%s5926_s0 + %s5151_s22]]   ;;  %s5154_s4 = smov 8  }
   0x7   :  { %5944 = sst [smem:[#allocation47_spill]] %s5211_s5  ;;  %s5155_s10 = smov 9  }
   0x8   :  { %5945 = sst [smem:[#allocation48_spill]] %s5216_s9  ;;  %s5156_s15 = smov 10  }
   0x9   :  { %s5241_s29 = sld [smem:[%s5926_s0 + %s5152_s26]]   ;;  %s5157_s20 = smov 11  }
   0xa   :  { %5946 = sst [smem:[#allocation49_spill]] %s5226_s17  ;;  %s5158_s26 = smov 12  }
   0xb   :  { %s5246_s3 = sld [smem:[%s5926_s0 + %s5153_s30]]   ;;  %s5159_s1 = smov 13  }
   0xc   :  { %5947 = sst [smem:[#allocation50_spill]] %s5236_s25  ;;  %s5160_s7 = smov 14  }
   0xd   :  { %s5251_s8 = sld [smem:[%s5926_s0 + %s5154_s4]]   ;;  %s5162_s22 = smov 16  }
   0xe   :  { %s5256_s14 = sld [smem:[%s5926_s0 + %s5155_s10]]   ;;  %s5163_s28 = smov 17  }
   0xf   :  { %5948 = sst [smem:[#allocation51_spill]] %s5241_s29 }
  0x10   :  { %s5261_s19 = sld [smem:[%s5926_s0 + %s5156_s15]]   ;;  %s5161_s15 = smov 15  }
  0x11   :  { %5949 = sst [smem:[#allocation52_spill]] %s5246_s3 }
  0x12   :  { %s5266_s24 = sld [smem:[%s5926_s0 + %s5157_s20]]  }
  0x13   :  { %s5271_s30 = sld [smem:[%s5926_s0 + %s5158_s26]]  }
  0x14   :  { %5950 = sst [smem:[#allocation53_spill]] %s5256_s14 }
  0x15   :  { %s5276_s6 = sld [smem:[%s5926_s0 + %s5159_s1]]  }
  0x16   :  { %5951 = sst [smem:[#allocation54_spill]] %s5261_s19 }
  0x17   :  { %s5281_s12 = sld [smem:[%s5926_s0 + %s5160_s7]]   ;;  %s5164_s7 = smov 18  }
  0x18   :  { %s5286_s20 = sld [smem:[%s5926_s0 + %s5161_s15]]   ;;  %s5165_s15 = smov 19  }
  0x19   :  { %5952 = sst [smem:[#allocation55_spill]] %s5271_s30 }
  0x1a   :  { %s5291_s27 = sld [smem:[%s5926_s0 + %s5162_s22]]   ;;  %s5166_s22 = smov 20  }
  0x1b   :  { %5953 = sst [smem:[#allocation56_spill]] %s5276_s6 }
  0x1c   :  { %s5296_s4 = sld [smem:[%s5926_s0 + %s5163_s28]]   ;;  %s5167_s28 = smov 21  }
  0x1d   :  { %5954 = sst [smem:[#allocation57_spill]] %s5281_s12 }
  0x1e   :  { %5955 = sst [smem:[#allocation58_spill]] %s5286_s20 }
  0x1f   :  { %s5301_s9 = sld [smem:[%s5926_s0 + %s5164_s7]]   ;;  %s5168_s7 = smov 22  }
  0x20   :  { %5956 = sst [smem:[#allocation59_spill]] %s5291_s27 }
  0x21   :  { %s5306_s14 = sld [smem:[%s5926_s0 + %s5165_s15]]   ;;  %s5169_s15 = smov 23  }
  0x22   :  { %5957 = sst [smem:[#allocation60_spill]] %s5296_s4 }
  0x23   :  { %s5311_s3 = sld [smem:[%s5926_s0 + %s5166_s22]]   ;;  %s5170_s22 = smov 24  }
  0x24   :  { %s5316_s25 = sld [smem:[%s5926_s0 + %s5167_s28]]   ;;  %s5171_s28 = smov 25  }
  0x25   :  { %5958 = sst [smem:[#allocation61_spill]] %s5301_s9 }
  0x26   :  { %s5321_s5 = sld [smem:[%s5926_s0 + %s5168_s7]]   ;;  %s5172_s7 = smov 26  }
  0x27   :  { %5959 = sst [smem:[#allocation62_spill]] %s5306_s14 }
  0x28   :  { %s5326_s14 = sld [smem:[%s5926_s0 + %s5169_s15]]   ;;  %s5173_s15 = smov 27  }
  0x29   :  { %5960 = sst [smem:[#allocation63_spill]] %s5311_s3 }
  0x2a   :  { %5961 = sst [smem:[#allocation64_spill]] %s5316_s25 }
  0x2b   :  { %s5331_s3 = sld [smem:[%s5926_s0 + %s5170_s22]]   ;;  %s5174_s22 = smov 28  }
  0x2c   :  { %5962 = sst [smem:[#allocation65_spill]] %s5321_s5 }
  0x2d   :  { %s5336_s25 = sld [smem:[%s5926_s0 + %s5171_s28]]   ;;  %s5175_s28 = smov 29  }
  0x2e   :  { %5963 = sst [smem:[#allocation66_spill]] %s5326_s14 }
  0x2f   :  { %s5341_s4 = sld [smem:[%s5926_s0 + %s5172_s7]]   ;;  %s5176_s7 = smov 30  }
  0x30   :  { %s5346_s14 = sld [smem:[%s5926_s0 + %s5173_s15]]   ;;  %s5177_s15 = smov 31  }
  0x31   :  { %5964 = sst [smem:[#allocation67_spill]] %s5331_s3 }
  0x32   :  { %s5351_s20 = sld [smem:[%s5926_s0 + %s5174_s22]]  }
  0x33   :  { %5965 = sst [smem:[#allocation68_spill]] %s5336_s25 }
  0x34   :  { %s5356_s25 = sld [smem:[%s5926_s0 + %s5175_s28]]  }
  0x35   :  { %5966 = sst [smem:[#allocation69_spill]] %s5341_s4 }
  0x36   :  { %5967 = sst [smem:[#allocation70_spill]] %s5346_s14 }
  0x37   :  { %s5361_s4 = sld [smem:[%s5926_s0 + %s5176_s7]]  }
  0x38   :  { %5968 = sst [smem:[#allocation71_spill]] %s5351_s20 }
  0x39   :  { %s5366_s14 = sld [smem:[%s5926_s0 + %s5177_s15]]  }
  0x3d   :  { %5969 = sst [smem:[#allocation72_spill]] %s5361_s4 }
  0x3f   :  { %5970 = sst [smem:[#allocation73_spill]] %s5366_s14 }
  0x40   :  { %68 = vsyncpa [#allocation3], 0 }
  0x41   :  { %69 = vsyncpa [#allocation6], 0 }
  0x42   :  { %71 = vsyncpa [#allocation6 + $0x1], 0 }
  0x43   :  { %72 = vsyncpa [#allocation9], 0 }
  0x44   :  { %73 = vsyncpa [#allocation12], 0 }
  0x45   :  { %74 = vsyncpa [#allocation15], 0 }
  0x46   :  { %75 = vsyncpa [#allocation18], 0 }
  0x47   :  { %76 = vsyncpa [#allocation21], 0 }
  0x48   :  { %77 = vsyncpa [#allocation24], 0 }
  0x49   :  { %78 = vsyncpa [#allocation27], 0 }
  0x4a   :  { %79 = vsyncpa [#allocation30], 0 }
  0x4b   :  { %80 = vsyncpa [#allocation33], 0 }
  0x4c   :  { %81 = vsyncpa [#allocation4], 0 }
  0x4d   :  { %83 = vsyncpa [#allocation4 + $0x1], 0  ;;  %s5368_s22 = smov 0   ;;  %s5370_s23 = smov 0  }
  0x4e   :  { %s5372_s0 = smov 0   ;;  %s5374_s26 = smov 0  }
  0x4f LB: > { %s5971_s17 = sld [smem:[#allocation49_spill]]  ;;  %s5178_s28 = smov [#allocation8]   ;;  %s5133_s22 = sphi %s5368_s22, %s6038_s22   ;;  %s5145_s26 = sphi %s5374_s26, %s6041_s26   ;;  %s5141_s0 = sphi %s5372_s0, %s6040_s0   ;;  %s5137_s23 = sphi %s5370_s23, %s6039_s23  }
  0x50   : > { %s818_s1 = sshll.u32 %s5178_s28, 4  ;;  %s5389_s2 = sadd.s32 4294967295, %s5145_s26   ;;  %s819_s1 = int_to_ptr.vmem [resolvable:$true] %s818_s1 }
  0x51   : > { %p3809_p0 = scmp.ge.s32.totalorder %s5145_s26, 1  ;;  %p5933_p1 = scmp.eq.s32.totalorder %s5389_s2, 0 }
  0x52   : > { %p791_p2 = scmp.lt.s32.totalorder %s5145_s26, 3  ;;  %s5179_s10 = smov [#allocation11]  }
  0x53   : > { %s846_s11 = sshll.u32 %s5179_s10, 4  ;;  %s5180_s15 = smov [#allocation14]   ;;  %s5401_s11 = int_to_ptr.vmem [resolvable:$true] %s846_s11 }
  0x54   : > { %p5394_p3 = pnand %p3809_p0, %p791_p2  ;;  %s870_s16 = sshll.u32 %s5180_s15, 4  ;;  %s5409_s16 = int_to_ptr.vmem [resolvable:$true] %s870_s16 }
  0x55   : > { %s5181_s28 = smov [#allocation17]   ;;  %s4528_s10 = scalar_lea.vmem %s819_s1, 16 }
  0x56   : > { %s5972_s7 = scalar_select %p5394_p3, 1, 0 }
  0x57   : > { %p4262_p5 = pneg %p5394_p3  ;;  %s5411_s14 = sshll.u32 %s5181_s28, 4  ;;  %s895_s14 = int_to_ptr.vmem [resolvable:$true] %s5411_s14 }
  0x58   : > { %p4529_p8 = scmp.ne.s32.totalorder %s819_s1, %s4528_s10  ;;  %s4535_s15 = scalar_lea.vmem %s819_s1, 32 }
  0x59   : > { %p5405_p6 = pnand %p4262_p5, %p5933_p1  ;;  %p4536_p11 = scmp.lt.s32.totalorder %s819_s1, %s819_s1 }
  0x5a   : > { %p4537_p12 = scmp.lt.s32.totalorder %s4535_s15, %s4528_s10 }
  0x5b   : > { %s5973_s18 = scalar_select %p5405_p6, 1, 0 }
  0x5c   : > { %p5415_p7 = pneg %p5405_p6  ;;  %p4538_p13 = por %p4537_p12, %p4536_p11 }
  0x5e   : > { %p4531_p9 = pnand %p4529_p8, %p5415_p7 }
  0x60   : > { %p4532_p10 = pneg %p4531_p9 }
  0x62   : > { %p4539_p0 = pnand %p4538_p13, %p4532_p10 }
  0x64   : > { %4542 = shalt.err (!%p4539_p0)
}
  0x65   : > { %s5975_s29 = sld [smem:[#allocation51_spill]]  ;;  %s4554_s28 = scalar_lea.vmem %s5401_s11, 16 }
  0x66   : > { %p4555_p2 = scmp.ne.s32.totalorder %s5401_s11, %s4554_s28  ;;  %s4561_s20 = scalar_lea.vmem %s5401_s11, 32 }
  0x67   : > { %p4562_p9 = scmp.lt.s32.totalorder %s5401_s11, %s5401_s11  ;;  %p4563_p11 = scmp.lt.s32.totalorder %s4561_s20, %s4554_s28 }
  0x68   : > { %p4557_p5 = pnand %p4555_p2, %p5415_p7 }
  0x69   : > { %p4564_p10 = por %p4563_p11, %p4562_p9 }
  0x6a   : > { %p4558_p8 = pneg %p4557_p5 }
  0x6b   : > { %4268 = dma.hbm_to_vmem [thread:$0]  (!%p5405_p6), %s5975_s29, 16, %s819_s1, [#allocation9]  }
  0x6c   : > { %p4565_p12 = pnand %p4564_p10, %p4558_p8 }
  0x6e   : > { %4568 = shalt.err (!%p4565_p12)
}
  0x6f   : > { %s5976_s19 = sld [smem:[#allocation54_spill]]  ;;  %s4580_s1 = scalar_lea.vmem %s5409_s16, 16 }
  0x70   : > { %p4581_p13 = scmp.ne.s32.totalorder %s5409_s16, %s4580_s1  ;;  %s4587_s10 = scalar_lea.vmem %s5409_s16, 32 }
  0x71   : > { %p4588_p5 = scmp.lt.s32.totalorder %s5409_s16, %s5409_s16  ;;  %p4589_p8 = scmp.lt.s32.totalorder %s4587_s10, %s4580_s1 }
  0x72   : > { %p4583_p0 = pnand %p4581_p13, %p5415_p7 }
  0x73   : > { %p4590_p9 = por %p4589_p8, %p4588_p5 }
  0x74   : > { %p4584_p2 = pneg %p4583_p0 }
  0x75   : > { %4274 = dma.hbm_to_vmem [thread:$0]  (!%p5405_p6), %s5976_s19, 16, %s5401_s11, [#allocation12]  }
  0x76   : > { %p4591_p11 = pnand %p4590_p9, %p4584_p2 }
  0x78   : > { %4594 = shalt.err (!%p4591_p11)
}
  0x79   : > { %s5977_s30 = sld [smem:[#allocation55_spill]]  ;;  %s5182_s20 = smov [#allocation20]  }
  0x7a   : > { %s918_s11 = sshll.u32 %s5182_s20, 4  ;;  %s4606_s15 = scalar_lea.vmem %s895_s14, 16  ;;  %s919_s11 = int_to_ptr.vmem [resolvable:$true] %s918_s11 }
  0x7b   : > { %p4607_p10 = scmp.ne.s32.totalorder %s895_s14, %s4606_s15  ;;  %s4613_s28 = scalar_lea.vmem %s895_s14, 32 }
  0x7c   : > { %p4614_p0 = scmp.lt.s32.totalorder %s895_s14, %s895_s14  ;;  %p4615_p5 = scmp.lt.s32.totalorder %s4613_s28, %s4606_s15 }
  0x7d   : > { %p4609_p12 = pnand %p4607_p10, %p5415_p7 }
  0x7e   : > { %p4616_p2 = por %p4615_p5, %p4614_p0 }
  0x7f   : > { %4280 = dma.hbm_to_vmem [thread:$0]  (!%p5405_p6), %s5977_s30, 16, %s5409_s16, [#allocation15]  }
  0x80   : > { %p4610_p13 = pneg %p4609_p12 }
  0x82   : > { %p4617_p8 = pnand %p4616_p2, %p4610_p13 }
  0x84   : > { %4620 = shalt.err (!%p4617_p8)
}
  0x85   : > { %s5978_s12 = sld [smem:[#allocation57_spill]]  ;;  %s4632_s16 = scalar_lea.vmem %s919_s11, 16 }
  0x86   : > { %p4633_p9 = scmp.ne.s32.totalorder %s919_s11, %s4632_s16  ;;  %s4639_s1 = scalar_lea.vmem %s919_s11, 32 }
  0x87   : > { %p4640_p10 = scmp.lt.s32.totalorder %s919_s11, %s919_s11  ;;  %p4641_p12 = scmp.lt.s32.totalorder %s4639_s1, %s4632_s16 }
  0x88   : > { %p4635_p11 = pnand %p4633_p9, %p5415_p7 }
  0x89   : > { %p4642_p1 = por %p4641_p12, %p4640_p10 }
  0x8a   : > { %p4636_p4 = pneg %p4635_p11 }
  0x8b   : > { %4286 = dma.hbm_to_vmem [thread:$0]  (!%p5405_p6), %s5978_s12, 16, %s895_s14, [#allocation18]  }
  0x8c   : > { %p4643_p3 = pnand %p4642_p1, %p4636_p4 }
  0x8e   : > { %4646 = shalt.err (!%p4643_p3)
}
  0x8f   : > { %s5979_s27 = sld [smem:[#allocation59_spill]]  ;;  %s5183_s10 = smov [#allocation23]  }
  0x90   : > { %s942_s20 = sshll.u32 %s5183_s10, 4  ;;  %s5184_s14 = smov [#allocation26]   ;;  %s943_s20 = int_to_ptr.vmem [resolvable:$true] %s942_s20 }
  0x91   : > { %s970_s15 = sshll.u32 %s5184_s14, 4  ;;  %s4658_s28 = scalar_lea.vmem %s943_s20, 16  ;;  %s971_s15 = int_to_ptr.vmem [resolvable:$true] %s970_s15 }
  0x92   : > { %p4659_p13 = scmp.ne.s32.totalorder %s943_s20, %s4658_s28  ;;  %s4665_s12 = scalar_lea.vmem %s943_s20, 32 }
  0x93   : > { %p4666_p2 = scmp.lt.s32.totalorder %s943_s20, %s943_s20  ;;  %p4667_p8 = scmp.lt.s32.totalorder %s4665_s12, %s4658_s28 }
  0x94   : > { %p4661_p0 = pnand %p4659_p13, %p5415_p7 }
  0x95   : > { %4292 = dma.hbm_to_vmem [thread:$0]  (!%p5405_p6), %s5979_s27, 16, %s919_s11, [#allocation21]  }
  0x96   : > { %p4662_p5 = pneg %p4661_p0  ;;  %p4668_p1 = por %p4667_p8, %p4666_p2 }
  0x98   : > { %p4669_p3 = pnand %p4668_p1, %p4662_p5 }
  0x9a   : > { %4672 = shalt.err (!%p4669_p3)
}
  0x9b   : > { %s5980_s9 = sld [smem:[#allocation61_spill]]  ;;  %s4684_s11 = scalar_lea.vmem %s971_s15, 16 }
  0x9c   : > { %p4685_p4 = scmp.ne.s32.totalorder %s971_s15, %s4684_s11  ;;  %s4691_s16 = scalar_lea.vmem %s971_s15, 32 }
  0x9d   : > { %p4692_p10 = scmp.lt.s32.totalorder %s971_s15, %s971_s15  ;;  %p4693_p12 = scmp.lt.s32.totalorder %s4691_s16, %s4684_s11 }
  0x9e   : > { %p4687_p9 = pnand %p4685_p4, %p5415_p7 }
  0x9f   : > { %p4694_p13 = por %p4693_p12, %p4692_p10 }
  0xa0   : > { %p4688_p11 = pneg %p4687_p9 }
  0xa1   : > { %4298 = dma.hbm_to_vmem [thread:$0]  (!%p5405_p6), %s5980_s9, 16, %s943_s20, [#allocation24]  }
  0xa2   : > { %p4695_p0 = pnand %p4694_p13, %p4688_p11 }
  0xa4   : > { %4698 = shalt.err (!%p4695_p0)
}
  0xa5   : > { %s5981_s5 = sld [smem:[#allocation65_spill]]  ;;  %s5185_s12 = smov [#allocation29]  }
  0xa6   : > { %s992_s1 = sshll.u32 %s5185_s12, 4  ;;  %s993_s1 = int_to_ptr.vmem [resolvable:$true] %s992_s1 }
  0xa7   : > { %s4710_s10 = scalar_lea.vmem %s993_s1, 16  ;;  %s4717_s20 = scalar_lea.vmem %s993_s1, 32 }
  0xa8   : > { %p4711_p5 = scmp.ne.s32.totalorder %s993_s1, %s4710_s10  ;;  %p4718_p1 = scmp.lt.s32.totalorder %s993_s1, %s993_s1 }
  0xa9   : > { %p4719_p3 = scmp.lt.s32.totalorder %s4717_s20, %s4710_s10 }
  0xaa   : > { %p4713_p2 = pnand %p4711_p5, %p5415_p7 }
  0xab   : > { %4304 = dma.hbm_to_vmem [thread:$0]  (!%p5405_p6), %s5981_s5, 16, %s971_s15, [#allocation27]  }
  0xac   : > { %p4714_p8 = pneg %p4713_p2  ;;  %p4720_p4 = por %p4719_p3, %p4718_p1 }
  0xae   : > { %p4721_p9 = pnand %p4720_p4, %p4714_p8 }
  0xb0   : > { %4724 = shalt.err (!%p4721_p9)
}
  0xb1   : > { %s5982_s3 = sld [smem:[#allocation67_spill]]  ;;  %s3808_s14 = sadd.s32 4294967294, %s5145_s26  }
  0xb2   : > { %s5474_s15 = sadd.s32 1, %s5145_s26   ;;  %s169_s11 = sadd.s32 1, %s5141_s0 }
  0xb3   : > { %s166_s28 = ssub.s32 %s5145_s26, %s5474_s15  ;;  %p176_p10 = scmp.ne.s32.totalorder %s5141_s0, %s5137_s23 }
  0xb4   : > { %p167_p11 = scmp.eq.s32.totalorder %s166_s28, 0  ;;  %p177_p12 = scmp.eq.s32.totalorder %s5145_s26, 0 }
  0xb5   : > { %p182_p13 = scmp.ne.s32.totalorder %s5137_s23, %s5133_s22  ;;  %p5985_p5 = scmp.eq.s32.totalorder %s5389_s2, 0 }
  0xb6   : > { %s5485_s16 = scalar_select %p167_p11, %s5141_s0, %s169_s11  }
  0xb7   : > { %4310 = dma.hbm_to_vmem [thread:$0]  (!%p5405_p6), %s5982_s3, 16, %s993_s1, [#allocation30]  }
  0xb8   : > { %5983 = sst [smem:[#allocation74_spill]] %s5485_s16  ;;  %p5487_p0 = por %p177_p12, %p176_p10 }
  0xb9   : > { %p5493_p2 = por %p5985_p5, %p182_p13  ;;  %p778_p8 = scmp.eq.s32.totalorder %s5389_s2, 1 }
  0xba   : > { %p784_p1 = scmp.eq.s32.totalorder %s3808_s14, 1  ;;  %p4346_p3 = scmp.lt.s32.totalorder %s5145_s26, 2 }
  0xbb   : > { %s5986_s1 = scalar_select %p5493_p2, 1, 0 }
  0xbc   : > { %s1052_s10 = sand.u32 1, %s5145_s26   ;;  %p5500_p4 = por %p778_p8, %p176_p10 }
  0xbd   : > { %p5504_p9 = por %p784_p1, %p182_p13  ;;  %s5937_s11 = sand.u32 1, %s5141_s0  }
  0xbe   : > { %s5987_s20 = scalar_select %p5500_p4, 1, 0 }
  0xbf   : > { %s5988_s28 = scalar_select %p5504_p9, 1, 0 }
  0xc0   : > { %s3829_s3 = sshll.u32 %s5145_s26, 4  ;;  %s1055_s14 = scalar_lea.vmem [#allocation5], %s5937_s11 }
  0xc1   : > { %s5511_s5 = scalar_lea.hbm %s5971_s17, %s3829_s3  ;;  %s1062_s9 = sshll.u32 %s1055_s14, 4  ;;  %s5515_s9 = int_to_ptr.vmem [resolvable:$true] %s1062_s9 }
  0xc2   : > { %p5519_p11 = pnand %p4346_p3, %p5487_p0  ;;  %s5524_s27 = scalar_lea.hbm %s5231_s21, %s3829_s3 }
  0xc3   : > { %s5526_s29 = scalar_lea.sflag [#allocation6], %s1052_s10  ;;  %s4725_s30 = scalar_lea.hbm %s5511_s5, 16 }
  0xc4   : > { %s5989_s19 = scalar_select %p5519_p11, 1, 0 }
  0xc5   : > { %p4726_p10 = scmp.ne.s32.totalorder %s5511_s5, %s4725_s30  ;;  %p5941_p12 = pneg %p5519_p11 }
  0xc6   : > { %s4730_s14 = scalar_lea.hbm %s5971_s17, 32  ;;  %p4731_p8 = scmp.lt.s32.totalorder %s5511_s5, %s5971_s17 }
  0xc7   : > { %p4728_p13 = pnand %p5941_p12, %p4726_p10  ;;  %p4732_p0 = scmp.lt.s32.totalorder %s4730_s14, %s4725_s30 }
  0xc9   : > { %p4729_p5 = pneg %p4728_p13  ;;  %p4733_p1 = por %p4732_p0, %p4731_p8 }
  0xcb   : > { %p4734_p3 = pnand %p4733_p1, %p4729_p5 }
  0xcd   : > { %4737 = shalt.err (!%p4734_p3)
}
  0xce   : > { %s4738_s3 = scalar_lea.vmem %s5515_s9, 16  ;;  %s5186_s12 = smov [#allocation5]  }
  0xcf   : > { %p4739_p9 = scmp.ne.s32.totalorder %s5515_s9, %s4738_s3  ;;  %s4743_s10 = sshll.u32 %s5186_s12, 4  ;;  %s4744_s10 = int_to_ptr.vmem [resolvable:$false] %s4743_s10 }
  0xd0   : > { %s4745_s11 = scalar_lea.vmem %s4744_s10, 32  ;;  %p4746_p10 = scmp.lt.s32.totalorder %s5515_s9, %s4744_s10 }
  0xd1   : > { %p4741_p4 = pnand %p4739_p9, %p5941_p12  ;;  %p4747_p13 = scmp.lt.s32.totalorder %s4745_s11, %s4738_s3 }
  0xd3   : > { %p4742_p2 = pneg %p4741_p4  ;;  %p4748_p6 = por %p4747_p13, %p4746_p10 }
  0xd5   : > { %p4749_p8 = pnand %p4748_p6, %p4742_p2 }
  0xd7   : > { %4752 = shalt.err (!%p4749_p8)
}
  0xd8   : > { %4320 = dma.hbm_to_vmem [thread:$0]  (!%p5519_p11), %s5511_s5, 16, %s5515_s9, %s5526_s29  }
  0xd9   : > { %s5187_s30 = smov [#allocation2]   ;;  %s5188_s17 = smov [#allocation10]  }
  0xda   : > { %s804_s14 = sshll.u32 %s5187_s30, 4  ;;  %s832_s16 = sshll.u32 %s5188_s17, 4  ;;  %s805_s14 = int_to_ptr.vmem [resolvable:$true] %s804_s14  ;;  %s833_s16 = int_to_ptr.vmem [resolvable:$true] %s832_s16 }
  0xdb   : > { %s4764_s12 = scalar_lea.vmem %s805_s14, 128  ;;  %p4772_p0 = scmp.lt.s32.totalorder %s805_s14, %s805_s14 }
  0xdc   : > { %p4765_p4 = scmp.ne.s32.totalorder %s805_s14, %s4764_s12  ;;  %p4773_p6 = scmp.lt.s32.totalorder %s4764_s12, %s4764_s12 }
  0xde   : > { %p4767_p9 = pnand %p4765_p4, %p5415_p7  ;;  %p4774_p2 = por %p4773_p6, %p4772_p0 }
  0xe0   : > { %p4768_p5 = pneg %p4767_p9 }
  0xe2   : > { %p4775_p1 = pnand %p4774_p2, %p4768_p5 }
  0xe4   : > { %4778 = shalt.err (!%p4775_p1)
}
  0xe5   : > { %p5990_p3 = scmp.ne.s32.totalorder %s5973_s18, 0  ;;  %s4790_s5 = scalar_lea.vmem %s833_s16, 16 }
  0xe6   : > { %p4791_p10 = scmp.ne.s32.totalorder %s833_s16, %s4790_s5  ;;  %s4797_s9 = scalar_lea.vmem %s833_s16, 32 }
  0xe7   : > { %4265 = dma.hbm_to_vmem [thread:$0]  (!%p5990_p3), %s5221_s13, 128, %s805_s14, [#allocation3]  }
  0xe8   : > { %p4793_p13 = pnand %p4791_p10, %p5415_p7  ;;  %p4798_p12 = scmp.lt.s32.totalorder %s833_s16, %s833_s16 }
  0xe9   : > { %p4799_p4 = scmp.lt.s32.totalorder %s4797_s9, %s4790_s5 }
  0xea   : > { %p4794_p8 = pneg %p4793_p13 }
  0xeb   : > { %p4800_p9 = por %p4799_p4, %p4798_p12 }
  0xed   : > { %p4801_p11 = pnand %p4800_p9, %p4794_p8 }
  0xef   : > { %4804 = shalt.err (!%p4801_p11)
}
  0xf0   : > { %4271 = dma.hbm_to_vmem [thread:$0]  (!%p5990_p3), %s5251_s8, 16, %s833_s16, [#allocation9]  }
  0xf1   : > { %s5189_s17 = smov [#allocation13]  }
  0xf2   : > { %s856_s11 = sshll.u32 %s5189_s17, 4  ;;  %s857_s11 = int_to_ptr.vmem [resolvable:$true] %s856_s11 }
  0xf3   : > { %s4816_s3 = scalar_lea.vmem %s857_s11, 256  ;;  %p4824_p2 = scmp.lt.s32.totalorder %s857_s11, %s857_s11 }
  0xf4   : > { %p4817_p5 = scmp.ne.s32.totalorder %s857_s11, %s4816_s3  ;;  %p4825_p1 = scmp.lt.s32.totalorder %s4816_s3, %s4816_s3 }
  0xf6   : > { %p4819_p0 = pnand %p4817_p5, %p5415_p7  ;;  %p4826_p10 = por %p4825_p1, %p4824_p2 }
  0xf8   : > { %p4820_p6 = pneg %p4819_p0 }
  0xfa   : > { %p4827_p13 = pnand %p4826_p10, %p4820_p6 }
  0xfc   : > { %4830 = shalt.err (!%p4827_p13)
}
  0xfd   : > { %s5190_s10 = smov 64   ;;  %s5191_s30 = smov 4  }
  0xfe   : > { %4277 = dma.hbm_to_vmem [thread:$0]  (!%p5990_p3), %s5266_s24, 256, %s857_s11, [#allocation12], %s5190_s10, %s5190_s10, %s5191_s30  }
  0xff   : > { %s5192_s16 = smov [#allocation16]   ;;  %s5193_s12 = smov [#allocation19]  }
 0x100   : > { %s880_s14 = sshll.u32 %s5192_s16, 4  ;;  %s904_s5 = sshll.u32 %s5193_s12, 4  ;;  %s881_s14 = int_to_ptr.vmem [resolvable:$true] %s880_s14  ;;  %s905_s5 = int_to_ptr.vmem [resolvable:$true] %s904_s5 }
 0x101   : > { %s4842_s9 = scalar_lea.vmem %s881_s14, 256  ;;  %p4850_p4 = scmp.lt.s32.totalorder %s881_s14, %s881_s14 }
 0x102   : > { %p4843_p11 = scmp.ne.s32.totalorder %s881_s14, %s4842_s9  ;;  %p4851_p9 = scmp.lt.s32.totalorder %s4842_s9, %s4842_s9 }
 0x104   : > { %p4845_p12 = pnand %p4843_p11, %p5415_p7  ;;  %p4852_p5 = por %p4851_p9, %p4850_p4 }
 0x106   : > { %p4846_p8 = pneg %p4845_p12 }
 0x108   : > { %p4853_p0 = pnand %p4852_p5, %p4846_p8 }
 0x10a   : > { %4856 = shalt.err (!%p4853_p0)
}
 0x10b   : > { %s5991_s6 = sld [smem:[#allocation56_spill]]  ;;  %s4868_s17 = scalar_lea.vmem %s905_s5, 256 }
 0x10c   : > { %p4869_p6 = scmp.ne.s32.totalorder %s905_s5, %s4868_s17  ;;  %p4876_p10 = scmp.lt.s32.totalorder %s905_s5, %s905_s5 }
 0x10d   : > { %p4877_p13 = scmp.lt.s32.totalorder %s4868_s17, %s4868_s17 }
 0x10e   : > { %p4871_p2 = pnand %p4869_p6, %p5415_p7 }
 0x10f   : > { %p4878_p11 = por %p4877_p13, %p4876_p10 }
 0x110   : > { %p4872_p1 = pneg %p4871_p2 }
 0x111   : > { %4283 = dma.hbm_to_vmem [thread:$0]  (!%p5990_p3), %s5991_s6, 256, %s881_s14, [#allocation15], %s5190_s10, %s5190_s10, %s5191_s30  }
 0x112   : > { %p4879_p12 = pnand %p4878_p11, %p4872_p1 }
 0x114   : > { %4882 = shalt.err (!%p4879_p12)
}
 0x115   : > { %s5992_s11 = sld [smem:[#allocation58_spill]]  ;;  %s5194_s3 = smov [#allocation22]  }
 0x116   : > { %s928_s16 = sshll.u32 %s5194_s3, 4  ;;  %s5195_s14 = smov [#allocation25]   ;;  %s929_s16 = int_to_ptr.vmem [resolvable:$true] %s928_s16 }
 0x117   : > { %s959_s12 = sshll.u32 %s5195_s14, 4  ;;  %s4894_s9 = scalar_lea.vmem %s929_s16, 256  ;;  %s960_s12 = int_to_ptr.vmem [resolvable:$true] %s959_s12 }
 0x118   : > { %p4895_p8 = scmp.ne.s32.totalorder %s929_s16, %s4894_s9  ;;  %p4902_p5 = scmp.lt.s32.totalorder %s929_s16, %s929_s16 }
 0x119   : > { %p4903_p0 = scmp.lt.s32.totalorder %s4894_s9, %s4894_s9 }
 0x11a   : > { %p4897_p4 = pnand %p4895_p8, %p5415_p7 }
 0x11b   : > { %4289 = dma.hbm_to_vmem [thread:$0]  (!%p5990_p3), %s5992_s11, 256, %s905_s5, [#allocation18], %s5190_s10, %s5190_s10, %s5191_s30  }
 0x11c   : > { %p4898_p9 = pneg %p4897_p4  ;;  %p4904_p6 = por %p4903_p0, %p4902_p5 }
 0x11e   : > { %p4905_p2 = pnand %p4904_p6, %p4898_p9 }
 0x120   : > { %4908 = shalt.err (!%p4905_p2)
}
 0x121   : > { %s5993_s5 = sld [smem:[#allocation60_spill]]  ;;  %s4920_s17 = scalar_lea.vmem %s960_s12, 16 }
 0x122   : > { %p4921_p1 = scmp.ne.s32.totalorder %s960_s12, %s4920_s17  ;;  %s4927_s11 = scalar_lea.vmem %s960_s12, 32 }
 0x123   : > { %p4928_p11 = scmp.lt.s32.totalorder %s960_s12, %s960_s12  ;;  %p4929_p12 = scmp.lt.s32.totalorder %s4927_s11, %s4920_s17 }
 0x124   : > { %p4923_p10 = pnand %p4921_p1, %p5415_p7 }
 0x125   : > { %p4930_p8 = por %p4929_p12, %p4928_p11 }
 0x126   : > { %p4924_p13 = pneg %p4923_p10 }
 0x127   : > { %4295 = dma.hbm_to_vmem [thread:$0]  (!%p5990_p3), %s5993_s5, 256, %s929_s16, [#allocation21], %s5190_s10, %s5190_s10, %s5191_s30  }
 0x128   : > { %p4931_p4 = pnand %p4930_p8, %p4924_p13 }
 0x12a   : > { %4934 = shalt.err (!%p4931_p4)
}
 0x12b   : > { %s5994_s3 = sld [smem:[#allocation64_spill]]  ;;  %s5196_s14 = smov [#allocation28]  }
 0x12c   : > { %s981_s9 = sshll.u32 %s5196_s14, 4  ;;  %s5197_s6 = smov [#allocation31]   ;;  %s982_s9 = int_to_ptr.vmem [resolvable:$true] %s981_s9 }
 0x12d   : > { %s1003_s10 = sshll.u32 %s5197_s6, 4  ;;  %s4946_s30 = scalar_lea.vmem %s982_s9, 16  ;;  %s1004_s10 = int_to_ptr.vmem [resolvable:$true] %s1003_s10 }
 0x12e   : > { %p4947_p9 = scmp.ne.s32.totalorder %s982_s9, %s4946_s30  ;;  %s4953_s16 = scalar_lea.vmem %s982_s9, 32 }
 0x12f   : > { %p4954_p6 = scmp.lt.s32.totalorder %s982_s9, %s982_s9  ;;  %p4955_p2 = scmp.lt.s32.totalorder %s4953_s16, %s4946_s30 }
 0x130   : > { %p4949_p5 = pnand %p4947_p9, %p5415_p7 }
 0x131   : > { %4301 = dma.hbm_to_vmem [thread:$0]  (!%p5990_p3), %s5994_s3, 16, %s960_s12, [#allocation24]  }
 0x132   : > { %p4950_p0 = pneg %p4949_p5  ;;  %p4956_p1 = por %p4955_p2, %p4954_p6 }
 0x134   : > { %p4957_p10 = pnand %p4956_p1, %p4950_p0 }
 0x136   : > { %4960 = shalt.err (!%p4957_p10)
}
 0x137   : > { %s5995_s12 = sld [smem:[#allocation66_spill]]  ;;  %s4972_s5 = scalar_lea.vmem %s1004_s10, 16 }
 0x138   : > { %p4973_p13 = scmp.ne.s32.totalorder %s1004_s10, %s4972_s5  ;;  %s4979_s6 = scalar_lea.vmem %s1004_s10, 32 }
 0x139   : > { %p4980_p8 = scmp.lt.s32.totalorder %s1004_s10, %s1004_s10  ;;  %p4981_p4 = scmp.lt.s32.totalorder %s4979_s6, %s4972_s5 }
 0x13a   : > { %p4975_p11 = pnand %p4973_p13, %p5415_p7 }
 0x13b   : > { %p4982_p9 = por %p4981_p4, %p4980_p8 }
 0x13c   : > { %p4976_p12 = pneg %p4975_p11 }
 0x13d   : > { %4307 = dma.hbm_to_vmem [thread:$0]  (!%p5990_p3), %s5995_s12, 16, %s982_s9, [#allocation27]  }
 0x13e   : > { %p4983_p5 = pnand %p4982_p9, %p4976_p12 }
 0x140   : > { %4986 = shalt.err (!%p4983_p5)
}
 0x141   : > { %s5996_s17 = sld [smem:[#allocation68_spill]]  ;;  %s5997_s11 = sand.u32 1, %s5141_s0  }
 0x142   : > { %s1072_s3 = scalar_lea.vmem [#allocation7], %s5997_s11  ;;  %s5198_s9 = smov [#allocation32]  }
 0x143   : > { %s1079_s14 = sshll.u32 %s1072_s3, 4  ;;  %s1014_s30 = sshll.u32 %s5198_s9, 4  ;;  %s5608_s14 = int_to_ptr.vmem [resolvable:$true] %s1079_s14  ;;  %s1015_s30 = int_to_ptr.vmem [resolvable:$true] %s1014_s30 }
 0x144   : > { %s4998_s16 = scalar_lea.vmem %s1015_s30, 16  ;;  %s5005_s12 = scalar_lea.vmem %s1015_s30, 32 }
 0x145   : > { %p4999_p0 = scmp.ne.s32.totalorder %s1015_s30, %s4998_s16  ;;  %p5006_p1 = scmp.lt.s32.totalorder %s1015_s30, %s1015_s30 }
 0x146   : > { %p5007_p10 = scmp.lt.s32.totalorder %s5005_s12, %s4998_s16 }
 0x147   : > { %4313 = dma.hbm_to_vmem [thread:$0]  (!%p5990_p3), %s5996_s17, 16, %s1004_s10, [#allocation30]  }
 0x148   : > { %p5001_p6 = pnand %p4999_p0, %p5415_p7  ;;  %p5008_p13 = por %p5007_p10, %p5006_p1 }
 0x14a   : > { %p5002_p2 = pneg %p5001_p6 }
 0x14c   : > { %p5009_p11 = pnand %p5008_p13, %p5002_p2 }
 0x14e   : > { %5012 = shalt.err (!%p5009_p11)
}
 0x14f   : > { %s5998_s10 = sld [smem:[#allocation69_spill]]  ;;  %s5013_s5 = scalar_lea.hbm %s5524_s27, 16 }
 0x150   : > { %p5014_p12 = scmp.ne.s32.totalorder %s5524_s27, %s5013_s5  ;;  %p5999_p7 = scmp.ne.s32.totalorder %s5989_s19, 0 }
 0x151   : > { %s5018_s4 = scalar_lea.hbm %s5231_s21, 32  ;;  %p5019_p5 = scmp.lt.s32.totalorder %s5524_s27, %s5231_s21 }
 0x152   : > { %p6000_p8 = pneg %p5999_p7  ;;  %p5020_p0 = scmp.lt.s32.totalorder %s5018_s4, %s5013_s5 }
 0x154   : > { %p5016_p4 = pnand %p5014_p12, %p6000_p8  ;;  %p5021_p6 = por %p5020_p0, %p5019_p5 }
 0x155   : > { %4316 = dma.hbm_to_vmem [thread:$0]  (!%p5990_p3), %s5998_s10, 16, %s1015_s30, [#allocation33]  }
 0x156   : > { %p5017_p9 = pneg %p5016_p4 }
 0x158   : > { %p5022_p2 = pnand %p5021_p6, %p5017_p9 }
 0x15a   : > { %5025 = shalt.err (!%p5022_p2)
}
 0x15b   : > { %s5026_s18 = scalar_lea.vmem %s5608_s14, 16  ;;  %p6001_p3 = pmov %p6000_p8 }
 0x15c   : > { %p5027_p1 = scmp.ne.s32.totalorder %s5608_s14, %s5026_s18  ;;  %s5199_s6 = smov [#allocation7]  }
 0x15d   : > { %s5031_s17 = sshll.u32 %s5199_s6, 4  ;;  %s5032_s17 = int_to_ptr.vmem [resolvable:$false] %s5031_s17 }
 0x15e   : > { %p5029_p10 = pnand %p5027_p1, %p6001_p3  ;;  %s5033_s11 = scalar_lea.vmem %s5032_s17, 32 }
 0x15f   : > { %p5034_p11 = scmp.lt.s32.totalorder %s5608_s14, %s5032_s17  ;;  %p5035_p12 = scmp.lt.s32.totalorder %s5033_s11, %s5026_s18 }
 0x160   : > { %p5030_p13 = pneg %p5029_p10 }
 0x161   : > { %p5036_p8 = por %p5035_p12, %p5034_p11 }
 0x163   : > { %p5037_p4 = pnand %p5036_p8, %p5030_p13 }
 0x165   : > { %5040 = shalt.err (!%p5037_p4)
}
 0x166   : > { %4323 = dma.hbm_to_vmem [thread:$0]  (!%p5999_p7), %s5524_s27, 16, %s5608_s14, %s5526_s29  }
 0x167   : > { %p6002_p9 = scmp.ne.s32.totalorder %s5972_s7, 0 }
 0x168   : > { %p6003_p5 = scmp.eq.s32.totalorder (!%p6002_p9), %s5389_s2, 0 }
 0x169   : > { %1088 = sbr.rel (%p6002_p9) target bundleno = 4780 (0x12ac), region = 144 }
 0x16e   : > { %5084 = dma.done.wait (%p6003_p5), [#allocation3], 128   ;;  %p6004_p0 = pmov %p6003_p5 }
 0x16f   : > { %s1094_s3 = sand.u32 1, %s5389_s2   ;;  %s5642_s9 = sand.u32 1, %s5137_s23  }
 0x170   : > { %5086 = vsyncadd (%p6004_p0), [#allocation3], 4294967168  ;;  %s1095_s19 = scalar_lea.sflag [#allocation6], %s1094_s3  ;;  %s1097_s30 = scalar_lea.vmem [#allocation5], %s5642_s9 }
 0x171   : > { %p6005_p6 = scmp.ne.s32.totalorder %s5986_s1, 0 }
 0x173   : > { %5088 = dma.done.wait (%p6005_p6), %s1095_s19, 32  }
 0x174   : > { %5090 = vsyncadd (%p6005_p6), %s1095_s19, 4294967264  ;;  %s1105_s29 = scalar_lea.vmem [#allocation7], %s5642_s9  ;;  %p6006_p7 = pmov %p6004_p0 }
 0x175   : > { %p6007_p2 = pmov %p6004_p0 }
 0x176   : > { %5092 = dma.done.wait (%p6006_p7), [#allocation9], 32  }
 0x177   : > { %5094 = vsyncadd (%p6007_p2), [#allocation9], 4294967264  ;;  %p6008_p1 = pmov %p6004_p0 }
 0x178   : > { %p6009_p3 = pmov %p6004_p0 }
 0x179   : > { %5096 = dma.done.wait (%p6008_p1), [#allocation12], 272  }
 0x17a   : > { %5098 = vsyncadd (%p6009_p3), [#allocation12], 4294967024  ;;  %p6010_p10 = pmov %p6004_p0 }
 0x17b   : > { %p6011_p13 = pmov %p6004_p0 }
 0x17c   : > { %5100 = dma.done.wait (%p6010_p10), [#allocation15], 272  }
 0x17d   : > { %5102 = vsyncadd (%p6011_p13), [#allocation15], 4294967024  ;;  %p6012_p11 = pmov %p6004_p0 }
 0x17e   : > { %p6013_p12 = pmov %p6004_p0 }
 0x17f   : > { %5104 = dma.done.wait (%p6012_p11), [#allocation18], 272  }
 0x180   : > { %5106 = vsyncadd (%p6013_p12), [#allocation18], 4294967024  ;;  %p6014_p8 = pmov %p6004_p0 }
 0x181   : > { %p6015_p4 = pmov %p6004_p0 }
 0x182   : > { %5108 = dma.done.wait (%p6014_p8), [#allocation21], 272  }
 0x183   : > { %5110 = vsyncadd (%p6015_p4), [#allocation21], 4294967024  ;;  %p6016_p9 = pmov %p6004_p0 }
 0x184   : > { %p6017_p5 = pmov %p6004_p0 }
 0x185   : > { %5112 = dma.done.wait (%p6016_p9), [#allocation24], 32  }
 0x186   : > { %5114 = vsyncadd (%p6017_p5), [#allocation24], 4294967264 }
 0x187   : > { %5116 = dma.done.wait (%p6004_p0), [#allocation27], 32   ;;  %p6018_p6 = pmov %p6004_p0 }
 0x188   : > { %p6019_p7 = pmov %p6004_p0 }
 0x189   : > { %5118 = vsyncadd (%p6018_p6), [#allocation27], 4294967264 }
 0x18a   : > { %5120 = dma.done.wait (%p6019_p7), [#allocation30], 32   ;;  %p6020_p2 = pmov %p6004_p0 }
 0x18b   : > { %p6021_p1 = pmov %p6004_p0 }
 0x18c   : > { %5122 = vsyncadd (%p6020_p2), [#allocation30], 4294967264 }
 0x18d   : > { %5124 = dma.done.wait (%p6021_p1), [#allocation33], 16   ;;  %p6022_p3 = pmov %p6004_p0 }
 0x18e   : > { %s6023_s27 = sld [smem:[#allocation47_spill]]  ;;  %p1264_p10 = scmp.lt.s32.totalorder %s5389_s2, 1  ;;  %v5200_v0 = vmov 0.0   ;;  %vm5201_vm0 = vmmov 0   ;;  %vm1303_vm1 = vcmask 261120   ;;  %vm1710_vm2 = vcmask 1043456  }
 0x18f   : > { %5126 = vsyncadd (%p6022_p3), [#allocation33], 4294967280  ;;  %s6024_s7 = sld [smem:[#allocation50_spill]]  ;;  %3996 = vmatprep.subr.bf16.mxu0 %v5200_v0  ;;  %4000 = vmatprep.mubr.msk.bf16.mxu0 %vm5201_vm0, %v5200_v0  ;;  %v3854_v7 = vld [vmem:[#allocation8] ss:$0 sm:$0xff]  ;;  %vm1706_vm3 = vcmask 64512  }
 0x190   : > { %s6025_s1 = sld [smem:[#allocation52_spill]]  ;;  %4020 = vmatprep.subr.bf16.mxu1 %v5200_v0  ;;  %4022 = vmatprep.mubr.msk.bf16.mxu1 %vm5201_vm0, %v5200_v0  ;;  %v3858_v16 = vld [vmem:[#allocation10] ss:$0 sm:$0xff]  ;;  %v3870_v50 = vld [vmem:[%s1097_s30] ss:$0 sm:$0xff]  ;;  %vm2899_vm4 = vcmask 130048  }
 0x191   : > { %s5691_s14 = scalar_select %p1264_p10, %s5389_s2, 1  ;;  %v1902_v52 = vld [vmem:[#allocation2] sm:$0xff] }
 0x192   : > { %s6026_s10 = sld [smem:[#allocation53_spill]]  ;;  %p6034_p11 = scmp.ne.s32.totalorder %s5987_s20, 0 }
 0x193   : > { %s3851_s16 = sshll.u32 %s5691_s14, 3  ;;  %s6027_s5 = sld [smem:[#allocation48_spill]] }
 0x194   : > { %s1267_s12 = scalar_lea.vmem %s6023_s27, %s3851_s16  ;;  %s3927_s4 = sshll.u32 %s5691_s14, 4 }
 0x195   : > { %v4451_v1 = vld [vmem:[%s6024_s7 + $0x8] sm:$0xff]   ;;  %v4452_v2 = vld [vmem:[%s6024_s7] sm:$0xff]   ;;  %s6028_s6 = sld [smem:[#allocation62_spill]]  ;;  %s3924_s27 = sshll.u32 %s5389_s2, 7 }
 0x196   : > { %3997 = vmatpush3.bf16.msra.mxu0 %v4451_v1  ;;  %v5700_v3 = vld [vmem:[%s1267_s12] sm:$0xff]  ;;  %v4453_v4 = vld [vmem:[%s6025_s1 + $0x8] sm:$0xff]   ;;  %s6029_s17 = sld [smem:[#allocation63_spill]] }
 0x197   : > { %3998 = vmatprep.subr.bf16.mxu0 %v5200_v0  ;;  %v1279_v5 = vpack.c.bf16 %v5700_v3, %v5700_v3  ;;  %v4454_v6 = vld [vmem:[%s6025_s1] sm:$0xff]   ;;  %s6030_s11 = sld [smem:[#allocation70_spill]] }
 0x198   : > { %v4455_v20 = vld [vmem:[%s6026_s10 + $0x8] sm:$0xff]   ;;  %v4456_v21 = vld [vmem:[%s6026_s10] sm:$0xff]   ;;  %s6031_s3 = sld [smem:[#allocation71_spill]] }
 0x199   : > { %s1272_s18 = scalar_lea.vmem %s6027_s5, %s3927_s4  ;;  %s6032_s19 = sld [smem:[#allocation72_spill]] }
 0x19a   : > { %3999 = vmatpush3.bf16.msra.mxu0 %v4452_v2  ;;  %s6033_s30 = sld [smem:[#allocation73_spill]]  ;;  %s3482_s5 = scalar_lea.sflag [#allocation4], %s5642_s9 }
 0x19b   : > { %4004 = vmatprep.subr.bf16.mxu0 %v5200_v0 }
 0x19d   : > { %4001 = vmatmul.mubr.msk.bf16.vlgmr.msra.gmra.mxu0 %vm1303_vm1, %v1279_v5 }
 0x19e   : > { %4005 = vmatpush3.bf16.msra.mxu0 %v4453_v4  ;;  %4008 = vmatprep.mubr.msk.bf16.mxu0 %vm5201_vm0, %v5200_v0 }
 0x19f   : > { %4006 = vmatprep.subr.bf16.mxu0 %v5200_v0 }
 0x1a0   : > { %s3493_s12 = scalar_lea.hbm %s6033_s30, %s3924_s27 }
 0x1a2   : > { %4007 = vmatpush3.bf16.msra.mxu0 %v4454_v6 }
 0x1a3   : > { %4012 = vmatprep.subr.bf16.mxu0 %v5200_v0 }
 0x1a5   : > { %4009 = vmatmul.mubr.msk.bf16.vlgmr.msra.gmra.mxu0 %vm1303_vm1, %v1279_v5 }
 0x1a6   : > { %4016 = vmatprep.mubr.msk.bf16.mxu0 %vm5201_vm0, %v5200_v0  ;;  %4013 = vmatpush3.bf16.msra.mxu0 %v4455_v20 }
 0x1a7   : > { %4014 = vmatprep.subr.bf16.mxu0 %v5200_v0 }
 0x1aa   : > { %4015 = vmatpush3.bf16.msra.mxu0 %v4456_v21 }
 0x1ab   : > { %4026 = vmatprep.subr.bf16.mxu0 %v5200_v0 }
 0x1ad   : > { %4017 = vmatmul.mubr.msk.bf16.vlgmr.msra.gmra.mxu0 %vm1303_vm1, %v1279_v5 }
 0x1ae   : > { %4028 = vmatprep.mubr.msk.bf16.mxu0 %vm5201_vm0, %v5200_v0 }
 0x25d   : > { %v1341_v8 = vpop.f32.mrf.mxu0 }
 0x25e   : > { %v1342_v9 = vadd.f32 %v3854_v7, %v1341_v8 }
 0x25f   : > { %v4002_v10 = vpop.f32.mrf.mxu0 }
 0x260   : > { %v1347_v11 = vmul.f32 0.35355338, %v1342_v9 }
 0x261   : > { %v1344_v12 = vpop.f32.mrf.mxu0 }
 0x262   : > { %1474 = vxpose.xlu0.b32.start.end [1/1] (short) (narrow) %v1347_v11, 32 }
 0x263   : > { %v4003_v13 = vpop.f32.mrf.mxu0 }
 0x265   : > { %v1405_v14 = vpop.f32.mrf.mxu0 }
 0x266   : > { %v1406_v18 = vadd.f32 %v3858_v16, %v1405_v14 }
 0x267   : > { %v4010_v15 = vpop.f32.mrf.mxu0 }
 0x269   : > { %v1408_v17 = vpop.f32.mrf.mxu0 }
 0x26b   : > { %v4011_v19 = vpop.f32.mrf.mxu0 }
 0x26d   : > { %v5727_v32 = vpop.f32.mrf.mxu0 }
 0x26f   : > { %1506 = vxpose.xlu0.b32.start.end [1/1] (short) (narrow) %v1406_v18, 32  ;;  %v4018_v33 = vpop.f32.mrf.mxu0 }
 0x271   : > { %v1471_v34 = vpop.f32.mrf.mxu0 }
 0x273   : > { %v4019_v35 = vpop.f32.mrf.mxu0 }
 0x2de   : > { %v1490_v22 = vpop.trf.xlu0 }
 0x2df   : > { %1570 = vxpose.xlu1.b32.start.end [1/1] (short) (narrow) %v1490_v22, 8 }
 0x2e2   : > { %v1491_v23 = vpop.trf.xlu0 }
 0x2e3   : > { %1602 = vxpose.xlu1.b32.start.end [1/1] (short) (narrow) %v1491_v23, 8 }
 0x2e6   : > { %v1492_v24 = vpop.trf.xlu0 }
 0x2e7   : > { %1634 = vxpose.xlu1.b32.start.end [1/1] (short) (narrow) %v1492_v24, 8 }
 0x2ea   : > { %v1493_v25 = vpop.trf.xlu0 }
 0x2eb   : > { %1666 = vxpose.xlu1.b32.start.end [1/1] (short) (narrow) %v1493_v25, 8 }
 0x2ee   : > { %v1522_v26 = vpop.trf.xlu0 }
 0x2ef   : > { %v1702_v27 = vpack.c.bf16 %v1522_v26, %v1522_v26 }
 0x2f1   : > { %v1712_v28 = vsel %vm1710_vm2, %v1702_v27, 0 }
 0x2f2   : > { %4021 = vmatpush3.bf16.msra.mxu1 %v1712_v28  ;;  %v1523_v29 = vpop.trf.xlu0 }
 0x2f3   : > { %v1703_v30 = vpack.c.bf16 %v1523_v29, %v1523_v29  ;;  %4032 = vmatprep.subr.bf16.mxu1 %v5200_v0 }
 0x2f5   : > { %v1758_v31 = vsel %vm1710_vm2, %v1703_v30, 0 }
 0x2f6   : > { %4027 = vmatpush3.bf16.msra.mxu0 %v1758_v31  ;;  %v1524_v36 = vpop.trf.xlu0 }
 0x2f7   : > { %4038 = vmatprep.subr.bf16.mxu0 %v5200_v0  ;;  %v1704_v37 = vpack.c.bf16 %v1524_v36, %v1524_v36 }
 0x2f9   : > { %v1804_v40 = vsel %vm1710_vm2, %v1704_v37, 0 }
 0x2fa   : > { %v1525_v38 = vpop.trf.xlu0 }
 0x2fb   : > { %v1705_v42 = vpack.c.bf16 %v1525_v38, %v1525_v38 }
 0x2fd   : > { %v1850_v45 = vsel %vm1710_vm2, %v1705_v42, 0 }
 0x35b   : > { %v1586_v39 = vpop.trf.xlu1 }
 0x35c   : > { %v1698_v41 = vpack.c.bf16 %v1586_v39, %v1586_v39  ;;  %v3862_v39 = vld [vmem:[#allocation11] ss:$0 sm:$0xff] }
 0x35e   : > { %4023 = vmatmul.mubr.msk.bf16.vlgmr.msra.gmra.mxu1 %vm1706_vm3, %v1698_v41 }
 0x35f   : > { %4033 = vmatpush3.bf16.msra.mxu1 %v1804_v40  ;;  %v1618_v43 = vpop.trf.xlu1  ;;  %4034 = vmatprep.mubr.msk.bf16.mxu1 %vm5201_vm0, %v5200_v0  ;;  %v1469_v40 = vadd.f32 %v3862_v39, %v5727_v32 }
 0x360   : > { %v1699_v44 = vpack.c.bf16 %v1618_v43, %v1618_v43  ;;  %4044 = vmatprep.subr.bf16.mxu1 %v5200_v0 }
 0x362   : > { %4029 = vmatmul.mubr.msk.bf16.vlgmr.msra.gmra.mxu0 %vm1706_vm3, %v1699_v44 }
 0x363   : > { %v1650_v46 = vpop.trf.xlu1  ;;  %4039 = vmatpush3.bf16.msra.mxu0 %v1850_v45  ;;  %4040 = vmatprep.mubr.msk.bf16.mxu0 %vm5201_vm0, %v5200_v0 }
 0x364   : > { %v1700_v47 = vpack.c.bf16 %v1650_v46, %v1650_v46  ;;  %4050 = vmatprep.subr.bf16.mxu0 %v5200_v0 }
 0x366   : > { %4035 = vmatmul.mubr.msk.bf16.vlgmr.msra.gmra.mxu1 %vm1706_vm3, %v1700_v47 }
 0x367   : > { %v1682_v48 = vpop.trf.xlu1  ;;  %4046 = vmatprep.mubr.msk.bf16.mxu1 %vm5201_vm0, %v5200_v0 }
 0x368   : > { %v1701_v49 = vpack.c.bf16 %v1682_v48, %v1682_v48 }
 0x36a   : > { %4041 = vmatmul.mubr.msk.bf16.vlgmr.msra.gmra.mxu0 %vm1706_vm3, %v1701_v49 }
 0x36b   : > { %4052 = vmatprep.mubr.msk.bf16.mxu0 %vm5201_vm0, %v5200_v0 }
 0x41e   : > { %v1748_v51 = vpop.f32.mrf.mxu1 }
 0x41f   : > { %v1898_v53 = vadd.f32 %v3870_v50, %v1748_v51 }
 0x420   : > { %v4024_v54 = vpop.f32.mrf.mxu1 }
 0x421   : > { %v1903_v55 = vadd.f32 %v1902_v52, %v1898_v53 }
 0x422   : > { %v1751_v56 = vpop.f32.mrf.mxu1  ;;  %v1794_v57 = vpop.f32.mrf.mxu0 }
 0x423   : > { %v1899_v58 = vadd.f32 %v3870_v50, %v1794_v57  ;;  %v1907_v59 = vsel %vm1706_vm3, %v1903_v55, -inf }
 0x424   : > { %1908 = vmax.xlane.f32.xlu1 %v1907_v59  ;;  %v4025_v60 = vpop.f32.mrf.mxu1  ;;  %v4030_v61 = vpop.f32.mrf.mxu0 }
 0x425   : > { %v1904_v62 = vadd.f32 %v1902_v52, %v1899_v58 }
 0x426   : > { %v1797_v63 = vpop.f32.mrf.mxu0  ;;  %v1840_v1 = vpop.f32.mrf.mxu1 }
 0x427   : > { %v1900_v2 = vadd.f32 %v3870_v50, %v1840_v1  ;;  %v1910_v4 = vsel %vm1706_vm3, %v1904_v62, -inf }
 0x428   : > { %v4036_v5 = vpop.f32.mrf.mxu1  ;;  %1911 = vmax.xlane.f32.xlu0 %v1910_v4  ;;  %v4031_v6 = vpop.f32.mrf.mxu0 }
 0x429   : > { %v1905_v7 = vadd.f32 %v1902_v52, %v1900_v2  ;;  %v4457_v6 = vld [vmem:[#allocation13 + $0x8] sm:$0xff]  }
 0x42a   : > { %v1843_v8 = vpop.f32.mrf.mxu1  ;;  %v1886_v9 = vpop.f32.mrf.mxu0 }
 0x42b   : > { %v1901_v10 = vadd.f32 %v3870_v50, %v1886_v9  ;;  %v1913_v11 = vsel %vm1706_vm3, %v1905_v7, -inf }
 0x42c   : > { %1914 = vmax.xlane.f32.xlu1 %v1913_v11  ;;  %v4037_v12 = vpop.f32.mrf.mxu1  ;;  %v4042_v13 = vpop.f32.mrf.mxu0 }
 0x42d   : > { %v1906_v14 = vadd.f32 %v1902_v52, %v1901_v10 }
 0x42e   : > { %v1889_v15 = vpop.f32.mrf.mxu0 }
 0x42f   : > { %v1916_v16 = vsel %vm1706_vm3, %v1906_v14, -inf }
 0x430   : > { %1917 = vmax.xlane.f32.xlu1 %v1916_v16  ;;  %v4043_v17 = vpop.f32.mrf.mxu0 }
 0x4ad   : > { %v1909_v18 = vpop.xlane.xlu1 %1908 }
 0x4ae   : > { %v1919_v19 = vsub.f32 %v1903_v55, %v1909_v18 }
 0x4b0   : > { %v1923_v20 = vmul.f32 1.442695, %v1919_v19 }
 0x4b1   : > { %v1912_v21 = vpop.xlane.xlu0 %1911 }
 0x4b2   : > { %4477 = vpow2.f32 %v1923_v20  ;;  %v1920_v22 = vsub.f32 %v1904_v62, %v1912_v21 }
 0x4b4   : > { %v1925_v23 = vmul.f32 1.442695, %v1920_v22 }
 0x4b5   : > { %v1915_v24 = vpop.xlane.xlu1 %1914 }
 0x4b6   : > { %4479 = vpow2.f32 %v1925_v23  ;;  %v1921_v25 = vsub.f32 %v1905_v7, %v1915_v24  ;;  %v4458_v7 = vld [vmem:[#allocation13] sm:$0xff]  }
 0x4b8   : > { %v1927_v26 = vmul.f32 1.442695, %v1921_v25 }
 0x4b9   : > { %v1918_v27 = vpop.xlane.xlu1 %1917 }
 0x4ba   : > { %4481 = vpow2.f32 %v1927_v26  ;;  %v1922_v28 = vsub.f32 %v1906_v14, %v1918_v27  ;;  %v3875_v26 = vld [vmem:[#allocation14] ss:$0 sm:$0xff] }
 0x4bc   : > { %v1929_v29 = vmul.f32 1.442695, %v1922_v28 }
 0x4be   : > { %4483 = vpow2.f32 %v1929_v29 }
 0x4bf   : > { %v4478_v30 = vpop.eup %4477 }
 0x4c0   : > { %v1931_v31 = vsel %vm1706_vm3, %v4478_v30, 0.0 }
 0x4c1   : > { %1932 = vadd.xlane.f32.xlu1 %v1931_v31 }
 0x4c3   : > { %v4480_v33 = vpop.eup %4479 }
 0x4c4   : > { %v1934_v34 = vsel %vm1706_vm3, %v4480_v33, 0.0 }
 0x4c5   : > { %1935 = vadd.xlane.f32.xlu1 %v1934_v34 }
 0x4c7   : > { %v4482_v35 = vpop.eup %4481 }
 0x4c8   : > { %v1937_v36 = vsel %vm1706_vm3, %v4482_v35, 0.0 }
 0x4c9   : > { %1938 = vadd.xlane.f32.xlu1 %v1937_v36 }
 0x4cb   : > { %v4484_v37 = vpop.eup %4483 }
 0x4cc   : > { %v1940_v38 = vsel %vm1706_vm3, %v4484_v37, 0.0 }
 0x4cd   : > { %1941 = vadd.xlane.f32.xlu0 %v1940_v38 }
 0x4fc   : > { %1538 = vxpose.xlu1.b32.start.end [1/1] (short) (narrow) %v1469_v40, 32  ;;  %v4459_v40 = vld [vmem:[#allocation16 + $0x8] sm:$0xff]  }
 0x54a   : > { %v1933_v41 = vpop.xlane.xlu1 %1932 }
 0x54b   : > { %4485 = vrcp.f32 %v1933_v41  ;;  %v4460_v41 = vld [vmem:[#allocation16] sm:$0xff]  }
 0x54e   : > { %v1936_v42 = vpop.xlane.xlu1 %1935 }
 0x54f   : > { %4487 = vrcp.f32 %v1936_v42  ;;  %v4462_v42 = vld [vmem:[#allocation19] sm:$0xff]  }
 0x552   : > { %v1939_v50 = vpop.xlane.xlu1 %1938 }
 0x553   : > { %4489 = vrcp.f32 %v1939_v50  ;;  %v3879_v50 = vld [vmem:[#allocation25] ss:$0 sm:$0xff] }
 0x556   : > { %v1942_v32 = vpop.xlane.xlu0 %1941 }
 0x557   : > { %4491 = vrcp.f32 %v1942_v32  ;;  %v3880_v32 = vld [vmem:[#allocation26] ss:$0 sm:$0xff] }
 0x558   : > { %v4486_v43 = vpop.eup %4485 }
 0x559   : > { %v1947_v44 = vmul.f32 %v4486_v43, %v4478_v30  ;;  %v1275_v43 = vld [vmem:[%s1272_s18] sm:$0xff] }
 0x55b   : > { %v1955_v45 = vpack.c.bf16 %v1947_v44, %v1947_v44  ;;  %v1276_v44 = vld [vmem:[%s1272_s18 + $0x8] sm:$0xff]  ;;  %s5202_s18 = smov [#allocation34]  }
 0x55c   : > { %v4488_v46 = vpop.eup %4487 }
 0x55d   : > { %v1963_v47 = vsel %vm1706_vm3, %v1955_v45, 0  ;;  %v1948_v48 = vmul.f32 %v4488_v46, %v4480_v33  ;;  %v2341_v45 = vpack.c.bf16 %v1276_v44, %v1275_v43 }
 0x55e   : > { %4045 = vmatpush3.bf16.xpose.msra.mxu1 %v1963_v47 }
 0x55f   : > { %v1956_v49 = vpack.c.bf16 %v1948_v48, %v1948_v48  ;;  %4056 = vmatprep.subr.bf16.mxu1 %v5200_v0 }
 0x560   : > { %v4490_v52 = vpop.eup %4489 }
 0x561   : > { %v2009_v51 = vsel %vm1706_vm3, %v1956_v49, 0  ;;  %v1949_v53 = vmul.f32 %v4490_v52, %v4482_v35 }
 0x562   : > { %4051 = vmatpush3.bf16.xpose.msra.mxu0 %v2009_v51 }
 0x563   : > { %4062 = vmatprep.subr.bf16.mxu0 %v5200_v0  ;;  %v1957_v55 = vpack.c.bf16 %v1949_v53, %v1949_v53 }
 0x564   : > { %v4492_v54 = vpop.eup %4491 }
 0x565   : > { %v1950_v56 = vmul.f32 %v4492_v54, %v4484_v37  ;;  %v2055_v59 = vsel %vm1706_vm3, %v1957_v55, 0  ;;  %v3885_v55 = vld [vmem:[#allocation20] ss:$0 sm:$0xff] }
 0x567   : > { %v1958_v60 = vpack.c.bf16 %v1950_v56, %v1950_v56 }
 0x569   : > { %v2101_v63 = vsel %vm1706_vm3, %v1958_v60, 0 }
 0x578   : > { %v1554_v57 = vpop.trf.xlu1 }
 0x579   : > { %v1951_v58 = vpack.c.bf16 %v1554_v57, %v1554_v57 }
 0x57b   : > { %4047 = vmatmul.mubr.msk.bf16.vlgmr.msra.gmra.mxu1 %vm1706_vm3, %v1951_v58 }
 0x57c   : > { %4057 = vmatpush3.bf16.xpose.msra.mxu1 %v2055_v59  ;;  %v1555_v61 = vpop.trf.xlu1  ;;  %4058 = vmatprep.mubr.msk.bf16.mxu1 %vm5201_vm0, %v5200_v0 }
 0x57d   : > { %v1952_v62 = vpack.c.bf16 %v1555_v61, %v1555_v61  ;;  %4068 = vmatprep.subr.bf16.mxu1 %v5200_v0 }
 0x57f   : > { %4053 = vmatmul.mubr.msk.bf16.vlgmr.msra.gmra.mxu0 %vm1706_vm3, %v1952_v62  ;;  %v3881_v62 = vld [vmem:[#allocation17] ss:$0 sm:$0xff] }
 0x580   : > { %4063 = vmatpush3.bf16.xpose.msra.mxu0 %v2101_v63  ;;  %v1556_v1 = vpop.trf.xlu1  ;;  %4064 = vmatprep.mubr.msk.bf16.mxu0 %vm5201_vm0, %v5200_v0 }
 0x581   : > { %v1953_v2 = vpack.c.bf16 %v1556_v1, %v1556_v1  ;;  %4076 = vmatprep.subr.bf16.mxu0 %v5200_v0 }
 0x583   : > { %4059 = vmatmul.mubr.msk.bf16.vlgmr.msra.gmra.mxu1 %vm1706_vm3, %v1953_v2 }
 0x584   : > { %v1557_v4 = vpop.trf.xlu1  ;;  %4072 = vmatprep.mubr.msk.bf16.mxu1 %vm5201_vm0, %v5200_v0  ;;  %4069 = vmatpush3.bf16.msra.mxu1 %v4457_v6 }
 0x585   : > { %v1954_v5 = vpack.c.bf16 %v1557_v4, %v1557_v4  ;;  %4070 = vmatprep.subr.bf16.mxu1 %v5200_v0 }
 0x587   : > { %4065 = vmatmul.mubr.msk.bf16.vlgmr.msra.gmra.mxu0 %vm1706_vm3, %v1954_v5 }
 0x588   : > { %4080 = vmatprep.mubr.msk.bf16.mxu0 %vm5201_vm0, %v5200_v0  ;;  %4071 = vmatpush3.bf16.msra.mxu1 %v4458_v7  ;;  %v4463_v7 = vld [vmem:[#allocation22 + $0x8] sm:$0xff]  }
 0x589   : > { %4084 = vmatprep.subr.bf16.mxu1 %v5200_v0  ;;  %4077 = vmatpush3.bf16.msra.mxu0 %v4459_v40 }
 0x58a   : > { %4078 = vmatprep.subr.bf16.mxu0 %v5200_v0 }
 0x58d   : > { %4079 = vmatpush3.bf16.msra.mxu0 %v4460_v41 }
 0x58e   : > { %4092 = vmatprep.subr.bf16.mxu0 %v5200_v0 }
 0x63b   : > { %v1999_v8 = vpop.f32.mrf.mxu1 }
 0x63c   : > { %2143 = vxpose.xlu0.b32.start [1/4] (short) (narrow) %v1999_v8, 8 }
 0x63d   : > { %v4048_v9 = vpop.f32.mrf.mxu1 }
 0x63f   : > { %v2002_v10 = vpop.f32.mrf.mxu1  ;;  %v2045_v11 = vpop.f32.mrf.mxu0 }
 0x640   : > { %2144 = vxpose.xlu0.b32.cont [2/4] (short) (narrow) %v2045_v11, 8  ;;  %v4464_v10 = vld [vmem:[#allocation22] sm:$0xff]  }
 0x641   : > { %v4049_v12 = vpop.f32.mrf.mxu1  ;;  %v4054_v13 = vpop.f32.mrf.mxu0 }
 0x643   : > { %v2048_v14 = vpop.f32.mrf.mxu0  ;;  %v2091_v15 = vpop.f32.mrf.mxu1 }
 0x644   : > { %2145 = vxpose.xlu0.b32.cont [3/4] (short) (narrow) %v2091_v15, 8 }
 0x645   : > { %v4055_v16 = vpop.f32.mrf.mxu0  ;;  %v4060_v17 = vpop.f32.mrf.mxu1 }
 0x647   : > { %v2094_v18 = vpop.f32.mrf.mxu1  ;;  %v2137_v19 = vpop.f32.mrf.mxu0 }
 0x648   : > { %2146 = vxpose.xlu0.b32.end [4/4] (short) (narrow) %v2137_v19, 8 }
 0x649   : > { %v4061_v20 = vpop.f32.mrf.mxu1  ;;  %v4066_v21 = vpop.f32.mrf.mxu0 }
 0x64b   : > { %v2140_v22 = vpop.f32.mrf.mxu0 }
 0x64d   : > { %v4067_v23 = vpop.f32.mrf.mxu0 }
 0x6b8   : > { %v2159_v24 = vpop.trf.xlu0 }
 0x6b9   : > { %v2175_v25 = vpack.c.bf16 %v2159_v24, %v2159_v24 }
 0x6bb   : > { %4073 = vmatmul.mubr.msk.bf16.vlgmr.msra.gmra.mxu1 %vm1303_vm1, %v2175_v25 }
 0x6bc   : > { %4088 = vmatprep.mubr.msk.bf16.mxu1 %vm5201_vm0, %v5200_v0 }
 0x77b   : > { %v2236_v27 = vpop.f32.mrf.mxu1 }
 0x77c   : > { %v2237_v28 = vadd.f32 %v3875_v26, %v2236_v27 }
 0x77d   : > { %v4074_v29 = vpop.f32.mrf.mxu1 }
 0x77e   : > { %v2242_v30 = vadd.f32 %v2237_v28, %v5700_v3  ;;  %v4461_v3 = vld [vmem:[#allocation19 + $0x8] sm:$0xff]  }
 0x77f   : > { %v2239_v31 = vpop.f32.mrf.mxu1  ;;  %4085 = vmatpush3.bf16.msra.mxu1 %v4461_v3 }
 0x780   : > { %v2245_v33 = vsel %vm1303_vm1, %v2242_v30, 0.0  ;;  %4086 = vmatprep.subr.bf16.mxu1 %v5200_v0 }
 0x781   : > { %2246 = vadd.xlane.f32.xlu1 %v2245_v33  ;;  %v4075_v34 = vpop.f32.mrf.mxu1 }
 0x783   : > { %4087 = vmatpush3.bf16.msra.mxu1 %v4462_v42 }
 0x784   : > { %4100 = vmatprep.subr.bf16.mxu1 %v5200_v0 }
 0x786   : > { %4089 = vmatmul.mubr.msk.bf16.vlgmr.msra.gmra.mxu1 %vm1303_vm1, %v2341_v45 }
 0x787   : > { %4102 = vmatprep.mubr.msk.bf16.mxu1 %vm5201_vm0, %v5200_v0 }
 0x80a   : > { %v2247_v35 = vpop.xlane.xlu1 %2246 }
 0x80b   : > { %v2249_v36 = vmul.f32 0.03125, %v2247_v35 }
 0x80d   : > { %v2250_v37 = vsub.f32 %v2242_v30, %v2249_v36 }
 0x80f   : > { %v2251_v38 = vmul.f32 %v2250_v37, %v2250_v37 }
 0x811   : > { %v2252_v39 = vsel %vm1303_vm1, %v2251_v38, 0.0  ;;  %v3897_v38 = vld [vmem:[%s1105_s29] ss:$0 sm:$0xff]  ;;  %s3850_s29 = sshll.u32 %s5642_s9, 3 }
 0x812   : > { %2253 = vadd.xlane.f32.xlu0 %v2252_v39  ;;  %s1263_s14 = scalar_lea.vmem [#allocation34], %s3850_s29 }
 0x813   : > { %s3495_s16 = sshll.u32 %s1263_s14, 4  ;;  %s3496_s16 = int_to_ptr.vmem [resolvable:$true] %s3495_s16 }
 0x814   : > { %s5041_s4 = scalar_lea.vmem %s3496_s16, 128 }
 0x815   : > { %p5042_p13 = scmp.ne.s32.totalorder %s3496_s16, %s5041_s4 }
 0x817   : > { %p5043_p12 = pnand %p5042_p13, %p6034_p11 }
 0x819   : > { %p5044_p8 = pneg %p5043_p12 }
 0x846   : > { %v2402_v56 = vpop.f32.mrf.mxu1 }
 0x847   : > { %v2403_v57 = vadd.f32 %v3885_v55, %v2402_v56 }
 0x848   : > { %v4090_v58 = vpop.f32.mrf.mxu1 }
 0x849   : > { %2505 = vxpose.xlu0.b32.start [1/2] (short) (narrow) %v2403_v57, 32 }
 0x84a   : > { %v2405_v59 = vpop.f32.mrf.mxu1 }
 0x84b   : > { %v2406_v60 = vadd.f32 %v3885_v55, %v2405_v59 }
 0x84c   : > { %v4091_v61 = vpop.f32.mrf.mxu1 }
 0x84d   : > { %2506 = vxpose.xlu0.b32.end [2/2] (short) (narrow) %v2406_v60, 32 }
 0x89b   : > { %v2254_v46 = vpop.xlane.xlu0 %2253 }
 0x89c   : > { %v2255_v47 = vmul.f32 0.03125, %v2254_v46 }
 0x89e   : > { %v2256_v48 = vadd.f32 1e-05, %v2255_v47 }
 0x8a0   : > { %4493 = vrsqrt.f32 %v2256_v48 }
 0x8ad   : > { %v4494_v49 = vpop.eup %4493 }
 0x8ae   : > { %v2258_v51 = vmul.f32 %v4494_v49, %v2250_v37 }
 0x8b0   : > { %v2265_v52 = vmul.f32 %v3879_v50, %v2258_v51 }
 0x8b2   : > { %v5793_v53 = vadd.f32 %v3880_v32, %v2265_v52 }
 0x8b4   : > { %v2273_v54 = vpack.c.bf16 %v5793_v53, %v5793_v53 }
 0x8b6   : > { %4081 = vmatmul.mubr.msk.bf16.vlgmr.msra.gmra.mxu0 %vm1303_vm1, %v2273_v54 }
 0x8b7   : > { %4096 = vmatprep.mubr.msk.bf16.mxu0 %vm5201_vm0, %v5200_v0  ;;  %4093 = vmatpush3.bf16.msra.mxu0 %v4463_v7 }
 0x8b8   : > { %4094 = vmatprep.subr.bf16.mxu0 %v5200_v0 }
 0x8bb   : > { %4095 = vmatpush3.bf16.msra.mxu0 %v4464_v10 }
 0x8bc   : > { %4106 = vmatprep.subr.bf16.mxu0 %v5200_v0 }
 0x8be   : > { %4097 = vmatmul.mubr.msk.bf16.vlgmr.msra.gmra.mxu0 %vm1303_vm1, %v2341_v45 }
 0x8bf   : > { %4108 = vmatprep.mubr.msk.bf16.mxu0 %vm5201_vm0, %v5200_v0 }
 0x8c5   : > { %v2521_v8 = vpop.trf.xlu0 }
 0x8c6   : > { %v2701_v9 = vpack.c.bf16 %v2521_v8, %v2521_v8 }
 0x8c8   : > { %v2709_v11 = vsel %vm1710_vm2, %v2701_v9, 0 }
 0x8c9   : > { %4101 = vmatpush3.bf16.msra.mxu1 %v2709_v11  ;;  %v2522_v12 = vpop.trf.xlu0 }
 0x8ca   : > { %v2702_v13 = vpack.c.bf16 %v2522_v12, %v2522_v12  ;;  %4112 = vmatprep.subr.bf16.mxu1 %v5200_v0 }
 0x8cc   : > { %v2755_v14 = vsel %vm1710_vm2, %v2702_v13, 0 }
 0x8cd   : > { %4107 = vmatpush3.bf16.msra.mxu0 %v2755_v14  ;;  %v2523_v23 = vpop.trf.xlu0 }
 0x8ce   : > { %4118 = vmatprep.subr.bf16.mxu0 %v5200_v0  ;;  %v2703_v25 = vpack.c.bf16 %v2523_v23, %v2523_v23 }
 0x8d0   : > { %v2801_v28 = vsel %vm1710_vm2, %v2703_v25, 0 }
 0x8d1   : > { %v2524_v24 = vpop.trf.xlu0 }
 0x8d2   : > { %v2704_v29 = vpack.c.bf16 %v2524_v24, %v2524_v24 }
 0x8d4   : > { %v2847_v33 = vsel %vm1710_vm2, %v2704_v29, 0 }
 0x976   : > { %v2334_v63 = vpop.f32.mrf.mxu0 }
 0x977   : > { %v2335_v1 = vadd.f32 %v3881_v62, %v2334_v63 }
 0x978   : > { %v4082_v2 = vpop.f32.mrf.mxu0 }
 0x979   : > { %v2340_v4 = vmul.f32 0.35355338, %v2335_v1 }
 0x97a   : > { %v2337_v5 = vpop.f32.mrf.mxu0 }
 0x97b   : > { %2473 = vxpose.xlu1.b32.start.end [1/1] (short) (narrow) %v2340_v4, 32 }
 0x97c   : > { %v4083_v6 = vpop.f32.mrf.mxu0 }
 0x97e   : > { %v5809_v19 = vpop.f32.mrf.mxu0 }
 0x980   : > { %v4098_v20 = vpop.f32.mrf.mxu0 }
 0x982   : > { %v5811_v21 = vpop.f32.mrf.mxu0 }
 0x984   : > { %v4099_v22 = vpop.f32.mrf.mxu0 }
 0x985   : > { %v3889_v22 = vld [vmem:[#allocation23] ss:$0 sm:$0xff] }
 0x986   : > { %v2467_v23 = vadd.f32 %v3889_v22, %v5809_v19  ;;  %v2470_v24 = vadd.f32 %v3889_v22, %v5811_v21 }
 0x9f7   : > { %v2489_v15 = vpop.trf.xlu1 }
 0x9f8   : > { %2569 = vxpose.xlu1.b32.start.end [1/1] (short) (narrow) %v2489_v15, 8 }
 0x9fb   : > { %v2490_v16 = vpop.trf.xlu1 }
 0x9fc   : > { %2601 = vxpose.xlu0.b32.start.end [1/1] (short) (narrow) %v2490_v16, 8 }
 0x9ff   : > { %v2491_v17 = vpop.trf.xlu1 }
 0xa00   : > { %2633 = vxpose.xlu0.b32.start.end [1/1] (short) (narrow) %v2491_v17, 8 }
 0xa03   : > { %v2492_v18 = vpop.trf.xlu1 }
 0xa04   : > { %2665 = vxpose.xlu1.b32.start.end [1/1] (short) (narrow) %v2492_v18, 8 }
 0xa74   : > { %v2585_v26 = vpop.trf.xlu1 }
 0xa75   : > { %v2697_v27 = vpack.c.bf16 %v2585_v26, %v2585_v26 }
 0xa77   : > { %4103 = vmatmul.mubr.msk.bf16.vlgmr.msra.gmra.mxu1 %vm1706_vm3, %v2697_v27 }
 0xa78   : > { %4113 = vmatpush3.bf16.msra.mxu1 %v2801_v28  ;;  %v2617_v30 = vpop.trf.xlu0  ;;  %4114 = vmatprep.mubr.msk.bf16.mxu1 %vm5201_vm0, %v5200_v0 }
 0xa79   : > { %v2698_v31 = vpack.c.bf16 %v2617_v30, %v2617_v30  ;;  %4124 = vmatprep.subr.bf16.mxu1 %v5200_v0 }
 0xa7b   : > { %4109 = vmatmul.mubr.msk.bf16.vlgmr.msra.gmra.mxu0 %vm1706_vm3, %v2698_v31 }
 0xa7c   : > { %4119 = vmatpush3.bf16.msra.mxu0 %v2847_v33  ;;  %v2649_v34 = vpop.trf.xlu0  ;;  %4120 = vmatprep.mubr.msk.bf16.mxu0 %vm5201_vm0, %v5200_v0 }
 0xa7d   : > { %v2699_v35 = vpack.c.bf16 %v2649_v34, %v2649_v34  ;;  %4130 = vmatprep.subr.bf16.mxu0 %v5200_v0 }
 0xa7f   : > { %4115 = vmatmul.mubr.msk.bf16.vlgmr.msra.gmra.mxu1 %vm1706_vm3, %v2699_v35 }
 0xa80   : > { %v2681_v36 = vpop.trf.xlu1  ;;  %4126 = vmatprep.mubr.msk.bf16.mxu1 %vm5201_vm0, %v5200_v0 }
 0xa81   : > { %v2700_v37 = vpack.c.bf16 %v2681_v36, %v2681_v36 }
 0xa83   : > { %4121 = vmatmul.mubr.msk.bf16.vlgmr.msra.gmra.mxu0 %vm1706_vm3, %v2700_v37 }
 0xa84   : > { %4132 = vmatprep.mubr.msk.bf16.mxu0 %vm5201_vm0, %v5200_v0 }
 0xb37   : > { %v2745_v39 = vpop.f32.mrf.mxu1 }
 0xb38   : > { %v2895_v40 = vadd.f32 %v3897_v38, %v2745_v39 }
 0xb39   : > { %v4104_v41 = vpop.f32.mrf.mxu1 }
 0xb3a   : > { %v2900_v3 = vsel %vm2899_vm4, %v2895_v40, -inf }
 0xb3b   : > { %2901 = vmax.xlane.f32.xlu0 %v2900_v3  ;;  %v2748_v42 = vpop.f32.mrf.mxu1  ;;  %v2791_v43 = vpop.f32.mrf.mxu0 }
 0xb3c   : > { %v2896_v44 = vadd.f32 %v3897_v38, %v2791_v43 }
 0xb3d   : > { %v4105_v45 = vpop.f32.mrf.mxu1  ;;  %v4110_v46 = vpop.f32.mrf.mxu0 }
 0xb3e   : > { %v2903_v47 = vsel %vm2899_vm4, %v2896_v44, -inf }
 0xb3f   : > { %v2837_v48 = vpop.f32.mrf.mxu1  ;;  %2904 = vmax.xlane.f32.xlu1 %v2903_v47  ;;  %v2794_v49 = vpop.f32.mrf.mxu0 }
 0xb40   : > { %v2897_v50 = vadd.f32 %v3897_v38, %v2837_v48 }
 0xb41   : > { %v4111_v51 = vpop.f32.mrf.mxu0  ;;  %v4116_v32 = vpop.f32.mrf.mxu1 }
 0xb42   : > { %v2906_v52 = vsel %vm2899_vm4, %v2897_v50, -inf  ;;  %v4465_v51 = vld [vmem:[%s6028_s6 + $0x8] sm:$0xff]   ;;  %v4466_v32 = vld [vmem:[%s6028_s6] sm:$0xff]  }
 0xb43   : > { %v2840_v54 = vpop.f32.mrf.mxu1  ;;  %2907 = vmax.xlane.f32.xlu1 %v2906_v52  ;;  %v2883_v55 = vpop.f32.mrf.mxu0 }
 0xb44   : > { %v2898_v56 = vadd.f32 %v3897_v38, %v2883_v55 }
 0xb45   : > { %v4117_v57 = vpop.f32.mrf.mxu1  ;;  %v4122_v58 = vpop.f32.mrf.mxu0 }
 0xb46   : > { %v2909_v59 = vsel %vm2899_vm4, %v2898_v56, -inf }
 0xb47   : > { %2910 = vmax.xlane.f32.xlu0 %v2909_v59  ;;  %v2886_v60 = vpop.f32.mrf.mxu0 }
 0xb49   : > { %v4123_v61 = vpop.f32.mrf.mxu0 }
 0xbc4   : > { %v2902_v62 = vpop.xlane.xlu0 %2901 }
 0xbc5   : > { %v2912_v63 = vsub.f32 %v2895_v40, %v2902_v62 }
 0xbc7   : > { %v2916_v1 = vmul.f32 1.442695, %v2912_v63 }
 0xbc8   : > { %v2905_v2 = vpop.xlane.xlu1 %2904 }
 0xbc9   : > { %4495 = vpow2.f32 %v2916_v1  ;;  %v2913_v4 = vsub.f32 %v2896_v44, %v2905_v2 }
 0xbcb   : > { %v2918_v5 = vmul.f32 1.442695, %v2913_v4 }
 0xbcc   : > { %v2908_v6 = vpop.xlane.xlu1 %2907 }
 0xbcd   : > { %4497 = vpow2.f32 %v2918_v5  ;;  %v2914_v7 = vsub.f32 %v2897_v50, %v2908_v6 }
 0xbcf   : > { %v2920_v8 = vmul.f32 1.442695, %v2914_v7 }
 0xbd0   : > { %v2911_v9 = vpop.xlane.xlu0 %2910 }
 0xbd1   : > { %4499 = vpow2.f32 %v2920_v8  ;;  %v2915_v10 = vsub.f32 %v2898_v56, %v2911_v9  ;;  %v3902_v9 = vld [vmem:[%s6029_s17] ss:$0 sm:$0xff]  ;;  %s5045_s17 = sshll.u32 %s5202_s18, 4  ;;  %s5046_s17 = int_to_ptr.vmem [resolvable:$false] %s5045_s17 }
 0xbd2   : > { %p5048_p4 = scmp.lt.s32.totalorder %s3496_s16, %s5046_s17 }
 0xbd3   : > { %v2922_v11 = vmul.f32 1.442695, %v2915_v10 }
 0xbd5   : > { %4501 = vpow2.f32 %v2922_v11 }
 0xbd6   : > { %v4496_v12 = vpop.eup %4495 }
 0xbd7   : > { %v2924_v13 = vsel %vm2899_vm4, %v4496_v12, 0.0 }
 0xbd8   : > { %2925 = vadd.xlane.f32.xlu1 %v2924_v13 }
 0xbda   : > { %v4498_v14 = vpop.eup %4497 }
 0xbdb   : > { %v2927_v15 = vsel %vm2899_vm4, %v4498_v14, 0.0 }
 0xbdc   : > { %2928 = vadd.xlane.f32.xlu0 %v2927_v15 }
 0xbde   : > { %v4500_v16 = vpop.eup %4499 }
 0xbdf   : > { %v2930_v17 = vsel %vm2899_vm4, %v4500_v16, 0.0 }
 0xbe0   : > { %2931 = vadd.xlane.f32.xlu1 %v2930_v17 }
 0xbe2   : > { %v4502_v18 = vpop.eup %4501 }
 0xbe3   : > { %v2933_v20 = vsel %vm2899_vm4, %v4502_v18, 0.0 }
 0xbe4   : > { %2934 = vadd.xlane.f32.xlu0 %v2933_v20 }
 0xc13   : > { %2537 = vxpose.xlu1.b32.start [1/2] (short) (narrow) %v2467_v23, 32 }
 0xc17   : > { %2538 = vxpose.xlu1.b32.end [2/2] (short) (narrow) %v2470_v24, 32  ;;  %v4467_v24 = vld [vmem:[%s6030_s11 + $0x8] sm:$0xff]  }
 0xc61   : > { %v2926_v25 = vpop.xlane.xlu1 %2925 }
 0xc62   : > { %4503 = vrcp.f32 %v2926_v25  ;;  %v4468_v25 = vld [vmem:[%s6030_s11] sm:$0xff]  }
 0xc65   : > { %v2929_v26 = vpop.xlane.xlu0 %2928 }
 0xc66   : > { %4505 = vrcp.f32 %v2929_v26  ;;  %v4470_v26 = vld [vmem:[%s5356_s25 + $0x30] sm:$0xff]  }
 0xc69   : > { %v2932_v19 = vpop.xlane.xlu1 %2931 }
 0xc6a   : > { %4507 = vrcp.f32 %v2932_v19 }
 0xc6d   : > { %v2935_v21 = vpop.xlane.xlu0 %2934 }
 0xc6e   : > { %4509 = vrcp.f32 %v2935_v21 }
 0xc6f   : > { %v4504_v27 = vpop.eup %4503 }
 0xc70   : > { %v2940_v28 = vmul.f32 %v4504_v27, %v4496_v12 }
 0xc72   : > { %v2948_v29 = vpack.c.bf16 %v2940_v28, %v2940_v28 }
 0xc73   : > { %v4506_v30 = vpop.eup %4505 }
 0xc74   : > { %v2956_v31 = vsel %vm2899_vm4, %v2948_v29, 0  ;;  %v2941_v33 = vmul.f32 %v4506_v30, %v4498_v14 }
 0xc75   : > { %4125 = vmatpush3.bf16.xpose.msra.mxu1 %v2956_v31  ;;  %v3906_v31 = vld [vmem:[#allocation28] ss:$0 sm:$0xff] }
 0xc76   : > { %v2949_v34 = vpack.c.bf16 %v2941_v33, %v2941_v33  ;;  %4136 = vmatprep.subr.bf16.mxu1 %v5200_v0 }
 0xc77   : > { %v4508_v36 = vpop.eup %4507 }
 0xc78   : > { %v3002_v35 = vsel %vm2899_vm4, %v2949_v34, 0  ;;  %v2942_v37 = vmul.f32 %v4508_v36, %v4500_v16  ;;  %v3907_v34 = vld [vmem:[#allocation29] ss:$0 sm:$0xff]  ;;  %v4471_v36 = vld [vmem:[%s5356_s25 + $0x28] sm:$0xff]  }
 0xc79   : > { %4131 = vmatpush3.bf16.xpose.msra.mxu0 %v3002_v35 }
 0xc7a   : > { %4142 = vmatprep.subr.bf16.mxu0 %v5200_v0  ;;  %v2950_v39 = vpack.c.bf16 %v2942_v37, %v2942_v37  ;;  %v4472_v37 = vld [vmem:[%s5356_s25 + $0x20] sm:$0xff]  }
 0xc7b   : > { %v4510_v38 = vpop.eup %4509 }
 0xc7c   : > { %v2943_v40 = vmul.f32 %v4510_v38, %v4502_v18  ;;  %v3048_v42 = vsel %vm2899_vm4, %v2950_v39, 0  ;;  %v4473_v38 = vld [vmem:[%s5356_s25 + $0x18] sm:$0xff]   ;;  %v4474_v39 = vld [vmem:[%s5356_s25 + $0x10] sm:$0xff]  }
 0xc7e   : > { %v2951_v43 = vpack.c.bf16 %v2943_v40, %v2943_v40  ;;  %v4475_v40 = vld [vmem:[%s5356_s25 + $0x8] sm:$0xff]  }
 0xc80   : > { %v3094_v46 = vsel %vm2899_vm4, %v2951_v43, 0 }
 0xc8f   : > { %v2553_v41 = vpop.trf.xlu1 }
 0xc90   : > { %v2944_v3 = vpack.c.bf16 %v2553_v41, %v2553_v41  ;;  %v4476_v41 = vld [vmem:[%s5356_s25] sm:$0xff]  }
 0xc92   : > { %4127 = vmatmul.mubr.msk.bf16.vlgmr.msra.gmra.mxu1 %vm2899_vm4, %v2944_v3  ;;  %v3908_v3 = vld [vmem:[%s6031_s3] ss:$0 sm:$0xff]  ;;  %s5047_s3 = scalar_lea.vmem %s5046_s17, 256 }
 0xc93   : > { %4137 = vmatpush3.bf16.xpose.msra.mxu1 %v3048_v42  ;;  %v2554_v44 = vpop.trf.xlu1  ;;  %4138 = vmatprep.mubr.msk.bf16.mxu1 %vm5201_vm0, %v5200_v0  ;;  %p5049_p9 = scmp.lt.s32.totalorder %s5047_s3, %s5041_s4 }
 0xc94   : > { %v2945_v45 = vpack.c.bf16 %v2554_v44, %v2554_v44  ;;  %4148 = vmatprep.subr.bf16.mxu1 %v5200_v0 }
 0xc95   : > { %p5050_p5 = por %p5049_p9, %p5048_p4 }
 0xc96   : > { %4133 = vmatmul.mubr.msk.bf16.vlgmr.msra.gmra.mxu0 %vm2899_vm4, %v2945_v45 }
 0xc97   : > { %4143 = vmatpush3.bf16.xpose.msra.mxu0 %v3094_v46  ;;  %v2555_v47 = vpop.trf.xlu1  ;;  %4144 = vmatprep.mubr.msk.bf16.mxu0 %vm5201_vm0, %v5200_v0  ;;  %p5051_p0 = pnand %p5050_p5, %p5044_p8 }
 0xc98   : > { %v2946_v48 = vpack.c.bf16 %v2555_v47, %v2555_v47  ;;  %4156 = vmatprep.subr.bf16.mxu0 %v5200_v0 }
 0xc9a   : > { %4139 = vmatmul.mubr.msk.bf16.vlgmr.msra.gmra.mxu1 %vm2899_vm4, %v2946_v48 }
 0xc9b   : > { %v2556_v49 = vpop.trf.xlu1  ;;  %4152 = vmatprep.mubr.msk.bf16.mxu1 %vm5201_vm0, %v5200_v0  ;;  %4149 = vmatpush3.bf16.msra.mxu1 %v4465_v51 }
 0xc9c   : > { %v2947_v50 = vpack.c.bf16 %v2556_v49, %v2556_v49  ;;  %4150 = vmatprep.subr.bf16.mxu1 %v5200_v0 }
 0xc9e   : > { %4145 = vmatmul.mubr.msk.bf16.vlgmr.msra.gmra.mxu0 %vm2899_vm4, %v2947_v50 }
 0xc9f   : > { %4160 = vmatprep.mubr.msk.bf16.mxu0 %vm5201_vm0, %v5200_v0  ;;  %4151 = vmatpush3.bf16.msra.mxu1 %v4466_v32 }
 0xca0   : > { %4164 = vmatprep.subr.bf16.mxu1 %v5200_v0  ;;  %4157 = vmatpush3.bf16.msra.mxu0 %v4467_v24 }
 0xca1   : > { %4158 = vmatprep.subr.bf16.mxu0 %v5200_v0 }
 0xca4   : > { %4159 = vmatpush3.bf16.msra.mxu0 %v4468_v25 }
 0xd52   : > { %v2992_v52 = vpop.f32.mrf.mxu1 }
 0xd53   : > { %3136 = vxpose.xlu0.b32.start [1/4] (short) (narrow) %v2992_v52, 8  ;;  %v3912_v52 = vld [vmem:[%s6032_s19] ss:$0 sm:$0xff] }
 0xd54   : > { %v4128_v54 = vpop.f32.mrf.mxu1 }
 0xd56   : > { %v2995_v55 = vpop.f32.mrf.mxu1  ;;  %v3038_v56 = vpop.f32.mrf.mxu0 }
 0xd57   : > { %3137 = vxpose.xlu0.b32.cont [2/4] (short) (narrow) %v3038_v56, 8 }
 0xd58   : > { %v4129_v57 = vpop.f32.mrf.mxu1  ;;  %v4134_v58 = vpop.f32.mrf.mxu0 }
 0xd5a   : > { %v3041_v59 = vpop.f32.mrf.mxu0  ;;  %v3084_v60 = vpop.f32.mrf.mxu1 }
 0xd5b   : > { %3138 = vxpose.xlu0.b32.cont [3/4] (short) (narrow) %v3084_v60, 8 }
 0xd5c   : > { %v4135_v61 = vpop.f32.mrf.mxu0  ;;  %v4140_v62 = vpop.f32.mrf.mxu1 }
 0xd5e   : > { %v3087_v63 = vpop.f32.mrf.mxu1  ;;  %v3130_v1 = vpop.f32.mrf.mxu0 }
 0xd5f   : > { %3139 = vxpose.xlu0.b32.end [4/4] (short) (narrow) %v3130_v1, 8 }
 0xd60   : > { %v4141_v2 = vpop.f32.mrf.mxu1  ;;  %v4146_v4 = vpop.f32.mrf.mxu0 }
 0xd62   : > { %v3133_v5 = vpop.f32.mrf.mxu0 }
 0xd64   : > { %v4147_v6 = vpop.f32.mrf.mxu0 }
 0xdcf   : > { %v3152_v7 = vpop.trf.xlu0 }
 0xdd0   : > { %v3168_v8 = vpack.c.bf16 %v3152_v7, %v3152_v7  ;;  %v3921_v7 = vld [vmem:[#allocation31] ss:$0 sm:$0xff] }
 0xdd2   : > { %4153 = vmatmul.mubr.msk.bf16.vlgmr.msra.gmra.mxu1 %vm1303_vm1, %v3168_v8 }
 0xdd3   : > { %4180 = vmatprep.mubr.msk.bf16.mxu1 %vm5201_vm0, %v5200_v0 }
 0xe92   : > { %v3229_v10 = vpop.f32.mrf.mxu1 }
 0xe93   : > { %v3230_v11 = vadd.f32 %v3902_v9, %v3229_v10  ;;  %v3922_v9 = vld [vmem:[#allocation32] ss:$0 sm:$0xff] }
 0xe94   : > { %v4154_v12 = vpop.f32.mrf.mxu1 }
 0xe95   : > { %v3235_v13 = vadd.f32 %v3230_v11, %v5793_v53  ;;  %v4469_v53 = vld [vmem:[%s5356_s25 + $0x38] sm:$0xff]  }
 0xe96   : > { %v3232_v14 = vpop.f32.mrf.mxu1  ;;  %4165 = vmatpush3.bf16.msra.mxu1 %v4469_v53 }
 0xe97   : > { %v3238_v15 = vsel %vm1303_vm1, %v3235_v13, 0.0  ;;  %4166 = vmatprep.subr.bf16.mxu1 %v5200_v0 }
 0xe98   : > { %3239 = vadd.xlane.f32.xlu1 %v3238_v15  ;;  %v4155_v16 = vpop.f32.mrf.mxu1 }
 0xe9a   : > { %4167 = vmatpush3.bf16.msra.mxu1 %v4470_v26 }
 0xe9b   : > { %4168 = vmatprep.subr.bf16.mxu1 %v5200_v0 }
 0xe9e   : > { %4169 = vmatpush3.bf16.msra.mxu1 %v4471_v36 }
 0xe9f   : > { %4170 = vmatprep.subr.bf16.mxu1 %v5200_v0 }
 0xea2   : > { %4171 = vmatpush3.bf16.msra.mxu1 %v4472_v37 }
 0xea3   : > { %4172 = vmatprep.subr.bf16.mxu1 %v5200_v0 }
 0xea6   : > { %4173 = vmatpush3.bf16.msra.mxu1 %v4473_v38 }
 0xea7   : > { %4174 = vmatprep.subr.bf16.mxu1 %v5200_v0 }
 0xeaa   : > { %4175 = vmatpush3.bf16.msra.mxu1 %v4474_v39 }
 0xeab   : > { %4176 = vmatprep.subr.bf16.mxu1 %v5200_v0 }
 0xeae   : > { %4177 = vmatpush3.bf16.msra.mxu1 %v4475_v40 }
 0xeaf   : > { %4178 = vmatprep.subr.bf16.mxu1 %v5200_v0 }
 0xeb2   : > { %4179 = vmatpush3.bf16.msra.mxu1 %v4476_v41 }
 0xf21   : > { %v3240_v17 = vpop.xlane.xlu1 %3239 }
 0xf22   : > { %v3241_v18 = vmul.f32 0.03125, %v3240_v17 }
 0xf24   : > { %v3242_v20 = vsub.f32 %v3235_v13, %v3241_v18 }
 0xf26   : > { %v3243_v22 = vmul.f32 %v3242_v20, %v3242_v20 }
 0xf28   : > { %v3244_v23 = vsel %vm1303_vm1, %v3243_v22, 0.0 }
 0xf29   : > { %3245 = vadd.xlane.f32.xlu0 %v3244_v23 }
 0xfb2   : > { %v3246_v27 = vpop.xlane.xlu0 %3245 }
 0xfb3   : > { %v3247_v28 = vmul.f32 0.03125, %v3246_v27 }
 0xfb5   : > { %v3248_v29 = vadd.f32 1e-05, %v3247_v28 }
 0xfb7   : > { %4511 = vrsqrt.f32 %v3248_v29 }
 0xfc4   : > { %v4512_v30 = vpop.eup %4511 }
 0xfc5   : > { %v3250_v33 = vmul.f32 %v4512_v30, %v3242_v20 }
 0xfc7   : > { %v3257_v19 = vmul.f32 %v3906_v31, %v3250_v33 }
 0xfc9   : > { %v3264_v35 = vadd.f32 %v3907_v34, %v3257_v19 }
 0xfcb   : > { %v3265_v21 = vpack.c.bf16 %v3264_v35, %v3264_v35 }
 0xfcd   : > { %4161 = vmatmul.mubr.msk.bf16.vlgmr.msra.gmra.mxu0 %vm1303_vm1, %v3265_v21 }
0x108d   : > { %v3326_v42 = vpop.f32.mrf.mxu0 }
0x108e   : > { %v3327_v43 = vadd.f32 %v3908_v3, %v3326_v42 }
0x108f   : > { %v4162_v44 = vpop.f32.mrf.mxu0 }
0x1090   : > { %v3334_v45 = vmul.f32 0.70710677, %v3327_v43  ;;  %v3332_v49 = vmul.f32 0.5, %v3327_v43 }
0x1091   : > { %v3329_v46 = vpop.f32.mrf.mxu0 }
0x1092   : > { %4513 = verf.f32 %v3334_v45 }
0x1093   : > { %v4163_v47 = vpop.f32.mrf.mxu0 }
0x109f   : > { %v4514_v48 = vpop.eup %4513 }
0x10a0   : > { %v3336_v50 = vadd.f32 1.0, %v4514_v48 }
0x10a2   : > { %v3337_v51 = vmul.f32 %v3336_v50, %v3332_v49 }
0x10a4   : > { %v3338_v32 = vpack.c.bf16 %v3337_v51, %v3337_v51 }
0x10a6   : > { %4181 = vmatmul.mubr.bf16.vlgmr.msra.gmra.mxu1 %v3338_v32 }
0x1166   : > { %v3444_v54 = vpop.f32.mrf.mxu1 }
0x1167   : > { %v3445_v0 = vadd.f32 %v3912_v52, %v3444_v54 }
0x1168   : > { %v4182_v55 = vpop.f32.mrf.mxu1 }
0x1169   : > { %v3450_v56 = vadd.f32 %v3445_v0, %v3264_v35 }
0x116a   : > { %v3447_v57 = vpop.f32.mrf.mxu1 }
0x116b   : > { %v3453_v58 = vsel %vm1303_vm1, %v3450_v56, 0.0 }
0x116c   : > { %3454 = vadd.xlane.f32.xlu1 %v3453_v58  ;;  %v4183_v59 = vpop.f32.mrf.mxu1 }
0x11f5   : > { %v3455_v60 = vpop.xlane.xlu1 %3454 }
0x11f6   : > { %v3456_v61 = vmul.f32 0.03125, %v3455_v60 }
0x11f8   : > { %v3457_v62 = vsub.f32 %v3450_v56, %v3456_v61 }
0x11fa   : > { %v3458_v63 = vmul.f32 %v3457_v62, %v3457_v62 }
0x11fc   : > { %v3459_v1 = vsel %vm1303_vm1, %v3458_v63, 0.0 }
0x11fd   : > { %3460 = vadd.xlane.f32.xlu0 %v3459_v1 }
0x1286   : > { %v3461_v2 = vpop.xlane.xlu0 %3460 }
0x1287   : > { %v3462_v4 = vmul.f32 0.03125, %v3461_v2 }
0x1289   : > { %v3463_v5 = vadd.f32 1e-05, %v3462_v4 }
0x128b   : > { %4515 = vrsqrt.f32 %v3463_v5 }
0x1298   : > { %v4516_v6 = vpop.eup %4515 }
0x1299   : > { %v3465_v8 = vmul.f32 %v4516_v6, %v3457_v62 }
0x129b   : > { %v3472_v10 = vmul.f32 %v3921_v7, %v3465_v8 }
0x129d   : > { %v3479_v11 = vadd.f32 %v3922_v9, %v3472_v10 }
0x129f   : > { %3480 = vst.msk [vmem:[%s1263_s14] sm:$0xff] %vm1303_vm1, %v3479_v11 }
0x12a0   : > { %5054 = shalt.err (!%p5051_p0)
}
0x12a1   : > { %s5055_s2 = scalar_lea.hbm %s3493_s12, 128  ;;  %s5059_s9 = scalar_lea.hbm %s6033_s30, 256 }
0x12a2   : > { %p5056_p6 = scmp.ne.s32.totalorder %s3493_s12, %s5055_s2  ;;  %p5060_p1 = scmp.lt.s32.totalorder %s3493_s12, %s6033_s30 }
0x12a3   : > { %p5061_p3 = scmp.lt.s32.totalorder %s5059_s9, %s5055_s2 }
0x12a4   : > { %p5057_p7 = pnand %p5056_p6, %p6034_p11 }
0x12a5   : > { %p5062_p10 = por %p5061_p3, %p5060_p1 }
0x12a6   : > { %p5058_p2 = pneg %p5057_p7 }
0x12a8   : > { %p5063_p13 = pnand %p5062_p10, %p5058_p2 }
0x12aa   : > { %5066 = shalt.err (!%p5063_p13)
}
0x12ab   : > { %4260 = dma.vmem_to_hbm [thread:$0]  (%p6034_p11), %s3496_s16, 128, %s3493_s12, %s3482_s5  }
0x12ac PF: > { %s3507_s19 = sand.u32 1, %s5133_s22   ;;  %p6035_p12 = scmp.ne.s32.totalorder %s5988_s28, 0 }
0x12ad   : > { %p6036_p8 = scmp.ge.s32.totalorder %s5145_s26, 2  ;;  %s3508_s29 = scalar_lea.sflag [#allocation4], %s3507_s19 }
0x12af   : > { %p4325_p4 = pnand %p6036_p8, %p6035_p12 }
0x12b1   : > { %p4326_p9 = pneg %p4325_p4 }
0x12b3   : > { %5128 = dma.done.wait (%p4326_p9), %s3508_s29, 128  }
0x12b4   : > { %5130 = vsyncadd (%p4326_p9), %s3508_s29, 4294967168  ;;  %s6037_s27 = sld [smem:[#allocation74_spill]]  ;;  %p86_p5 = scmp.ge.s32.totalorder %s5474_s15, 4  }
0x12b5   : > { %s6038_s22 = smov %s5137_s23  ;;  %s6039_s23 = smov %s5141_s0 }
0x12b6   : > { %s6041_s26 = smov %s5474_s15  ;;  %88 = sbr.rel (!%p86_p5) target bundleno = 79 (0x4f), region = 310 }
0x12ba   : > { %s6040_s0 = smov %s6037_s27 }
0x12bb   :  { %3513 = vsyncpa [#allocation3], 1 }
0x12bc   :  { %3515 = vsyncpa [#allocation3 + $0x1], 1 }
0x12bd   :  { %3516 = vsyncpa [#allocation6], 1 }
0x12be   :  { %3518 = vsyncpa [#allocation6 + $0x1], 1 }
0x12bf   :  { %3519 = vsyncpa [#allocation9], 1 }
0x12c0   :  { %3520 = vsyncpa [#allocation12], 1 }
0x12c1   :  { %3521 = vsyncpa [#allocation15], 1 }
0x12c2   :  { %3522 = vsyncpa [#allocation18], 1 }
0x12c3   :  { %3523 = vsyncpa [#allocation21], 1 }
0x12c4   :  { %3524 = vsyncpa [#allocation24], 1 }
0x12c5   :  { %3525 = vsyncpa [#allocation27], 1 }
0x12c6   :  { %3526 = vsyncpa [#allocation30], 1 }
0x12c7   :  { %3527 = vsyncpa [#allocation33], 1 }
0x12c8   :  { %3528 = vsyncpa [#allocation4], 1 }
0x12c9   :  { %3530 = vsyncpa [#allocation4 + $0x1], 1 }

// kernel: tpu_custom_call.1
= control target key start
LH: loop header
LB: loop body
LE: loop exit
PB: predicated region body
PF: predicated region fallthrough
CT: control target
= control target key end

     0   :  { %s5147_s6 = smov 1   ;;  %s5148_s10 = smov 2   ;;  %s5926_s0 = inlined_call_operand.smem [shape: u32[32], index: -1, kind: input, shape index: {}] }
   0x1   :  { %s5211_s5 = sld [smem:[%s5926_s0]]   ;;  %s5149_s14 = smov 3  }
   0x2   :  { %s5216_s9 = sld [smem:[%s5926_s0 + %s5147_s6]]   ;;  %s5150_s18 = smov 4  }
   0x3   :  { %s5221_s13 = sld [smem:[%s5926_s0 + %s5148_s10]]   ;;  %s5151_s22 = smov 5  }
   0x4   :  { %s5226_s17 = sld [smem:[%s5926_s0 + %s5149_s14]]   ;;  %s5152_s26 = smov 6  }
   0x5   :  { %s5231_s21 = sld [smem:[%s5926_s0 + %s5150_s18]]   ;;  %s5153_s30 = smov 7  }
   0x6   :  { %s5236_s25 = sld [smem:[%s5926_s0 + %s5151_s22]]   ;;  %s5154_s4 = smov 8  }
   0x7   :  { %5944 = sst [smem:[#allocation47_spill]] %s5211_s5  ;;  %s5155_s10 = smov 9  }
   0x8   :  { %5945 = sst [smem:[#allocation48_spill]] %s5216_s9  ;;  %s5156_s15 = smov 10  }
   0x9   :  { %s5241_s29 = sld [smem:[%s5926_s0 + %s5152_s26]]   ;;  %s5157_s20 = smov 11  }
   0xa   :  { %5946 = sst [smem:[#allocation49_spill]] %s5226_s17  ;;  %s5158_s26 = smov 12  }
   0xb   :  { %s5246_s3 = sld [smem:[%s5926_s0 + %s5153_s30]]   ;;  %s5159_s1 = smov 13  }
   0xc   :  { %5947 = sst [smem:[#allocation50_spill]] %s5236_s25  ;;  %s5160_s7 = smov 14  }
   0xd   :  { %s5251_s8 = sld [smem:[%s5926_s0 + %s5154_s4]]   ;;  %s5162_s22 = smov 16  }
   0xe   :  { %s5256_s14 = sld [smem:[%s5926_s0 + %s5155_s10]]   ;;  %s5163_s28 = smov 17  }
   0xf   :  { %5948 = sst [smem:[#allocation51_spill]] %s5241_s29 }
  0x10   :  { %s5261_s19 = sld [smem:[%s5926_s0 + %s5156_s15]]   ;;  %s5161_s15 = smov 15  }
  0x11   :  { %5949 = sst [smem:[#allocation52_spill]] %s5246_s3 }
  0x12   :  { %s5266_s24 = sld [smem:[%s5926_s0 + %s5157_s20]]  }
  0x13   :  { %s5271_s30 = sld [smem:[%s5926_s0 + %s5158_s26]]  }
  0x14   :  { %5950 = sst [smem:[#allocation53_spill]] %s5256_s14 }
  0x15   :  { %s5276_s6 = sld [smem:[%s5926_s0 + %s5159_s1]]  }
  0x16   :  { %5951 = sst [smem:[#allocation54_spill]] %s5261_s19 }
  0x17   :  { %s5281_s12 = sld [smem:[%s5926_s0 + %s5160_s7]]   ;;  %s5164_s7 = smov 18  }
  0x18   :  { %s5286_s20 = sld [smem:[%s5926_s0 + %s5161_s15]]   ;;  %s5165_s15 = smov 19  }
  0x19   :  { %5952 = sst [smem:[#allocation55_spill]] %s5271_s30 }
  0x1a   :  { %s5291_s27 = sld [smem:[%s5926_s0 + %s5162_s22]]   ;;  %s5166_s22 = smov 20  }
  0x1b   :  { %5953 = sst [smem:[#allocation56_spill]] %s5276_s6 }
  0x1c   :  { %s5296_s4 = sld [smem:[%s5926_s0 + %s5163_s28]]   ;;  %s5167_s28 = smov 21  }
  0x1d   :  { %5954 = sst [smem:[#allocation57_spill]] %s5281_s12 }
  0x1e   :  { %5955 = sst [smem:[#allocation58_spill]] %s5286_s20 }
  0x1f   :  { %s5301_s9 = sld [smem:[%s5926_s0 + %s5164_s7]]   ;;  %s5168_s7 = smov 22  }
  0x20   :  { %5956 = sst [smem:[#allocation59_spill]] %s5291_s27 }
  0x21   :  { %s5306_s14 = sld [smem:[%s5926_s0 + %s5165_s15]]   ;;  %s5169_s15 = smov 23  }
  0x22   :  { %5957 = sst [smem:[#allocation60_spill]] %s5296_s4 }
  0x23   :  { %s5311_s3 = sld [smem:[%s5926_s0 + %s5166_s22]]   ;;  %s5170_s22 = smov 24  }
  0x24   :  { %s5316_s25 = sld [smem:[%s5926_s0 + %s5167_s28]]   ;;  %s5171_s28 = smov 25  }
  0x25   :  { %5958 = sst [smem:[#allocation61_spill]] %s5301_s9 }
  0x26   :  { %s5321_s5 = sld [smem:[%s5926_s0 + %s5168_s7]]   ;;  %s5172_s7 = smov 26  }
  0x27   :  { %5959 = sst [smem:[#allocation62_spill]] %s5306_s14 }
  0x28   :  { %s5326_s14 = sld [smem:[%s5926_s0 + %s5169_s15]]   ;;  %s5173_s15 = smov 27  }
  0x29   :  { %5960 = sst [smem:[#allocation63_spill]] %s5311_s3 }
  0x2a   :  { %5961 = sst [smem:[#allocation64_spill]] %s5316_s25 }
  0x2b   :  { %s5331_s3 = sld [smem:[%s5926_s0 + %s5170_s22]]   ;;  %s5174_s22 = smov 28  }
  0x2c   :  { %5962 = sst [smem:[#allocation65_spill]] %s5321_s5 }
  0x2d   :  { %s5336_s25 = sld [smem:[%s5926_s0 + %s5171_s28]]   ;;  %s5175_s28 = smov 29  }
  0x2e   :  { %5963 = sst [smem:[#allocation66_spill]] %s5326_s14 }
  0x2f   :  { %s5341_s4 = sld [smem:[%s5926_s0 + %s5172_s7]]   ;;  %s5176_s7 = smov 30  }
  0x30   :  { %s5346_s14 = sld [smem:[%s5926_s0 + %s5173_s15]]   ;;  %s5177_s15 = smov 31  }
  0x31   :  { %5964 = sst [smem:[#allocation67_spill]] %s5331_s3 }
  0x32   :  { %s5351_s20 = sld [smem:[%s5926_s0 + %s5174_s22]]  }
  0x33   :  { %5965 = sst [smem:[#allocation68_spill]] %s5336_s25 }
  0x34   :  { %s5356_s25 = sld [smem:[%s5926_s0 + %s5175_s28]]  }
  0x35   :  { %5966 = sst [smem:[#allocation69_spill]] %s5341_s4 }
  0x36   :  { %5967 = sst [smem:[#allocation70_spill]] %s5346_s14 }
  0x37   :  { %s5361_s4 = sld [smem:[%s5926_s0 + %s5176_s7]]  }
  0x38   :  { %5968 = sst [smem:[#allocation71_spill]] %s5351_s20 }
  0x39   :  { %s5366_s14 = sld [smem:[%s5926_s0 + %s5177_s15]]  }
  0x3d   :  { %5969 = sst [smem:[#allocation72_spill]] %s5361_s4 }
  0x3f   :  { %5970 = sst [smem:[#allocation73_spill]] %s5366_s14 }
  0x40   :  { %68 = vsyncpa [#allocation3], 0 }
  0x41   :  { %69 = vsyncpa [#allocation6], 0 }
  0x42   :  { %71 = vsyncpa [#allocation6 + $0x1], 0 }
  0x43   :  { %72 = vsyncpa [#allocation9], 0 }
  0x44   :  { %73 = vsyncpa [#allocation12], 0 }
  0x45   :  { %74 = vsyncpa [#allocation15], 0 }
  0x46   :  { %75 = vsyncpa [#allocation18], 0 }
  0x47   :  { %76 = vsyncpa [#allocation21], 0 }
  0x48   :  { %77 = vsyncpa [#allocation24], 0 }
  0x49   :  { %78 = vsyncpa [#allocation27], 0 }
  0x4a   :  { %79 = vsyncpa [#allocation30], 0 }
  0x4b   :  { %80 = vsyncpa [#allocation33], 0 }
  0x4c   :  { %81 = vsyncpa [#allocation4], 0 }
  0x4d   :  { %83 = vsyncpa [#allocation4 + $0x1], 0  ;;  %s5368_s22 = smov 0   ;;  %s5370_s23 = smov 0  }
  0x4e   :  { %s5372_s0 = smov 0   ;;  %s5374_s26 = smov 0  }
  0x4f LB: > { %s5971_s17 = sld [smem:[#allocation49_spill]]  ;;  %s5178_s28 = smov [#allocation8]   ;;  %s5133_s22 = sphi %s5368_s22, %s6038_s22   ;;  %s5145_s26 = sphi %s5374_s26, %s6041_s26   ;;  %s5141_s0 = sphi %s5372_s0, %s6040_s0   ;;  %s5137_s23 = sphi %s5370_s23, %s6039_s23  }
  0x50   : > { %s818_s1 = sshll.u32 %s5178_s28, 4  ;;  %s5389_s2 = sadd.s32 4294967295, %s5145_s26   ;;  %s819_s1 = int_to_ptr.vmem [resolvable:$true] %s818_s1 }
  0x51   : > { %p3809_p0 = scmp.ge.s32.totalorder %s5145_s26, 1  ;;  %p5933_p1 = scmp.eq.s32.totalorder %s5389_s2, 0 }
  0x52   : > { %p791_p2 = scmp.lt.s32.totalorder %s5145_s26, 3  ;;  %s5179_s10 = smov [#allocation11]  }
  0x53   : > { %s846_s11 = sshll.u32 %s5179_s10, 4  ;;  %s5180_s15 = smov [#allocation14]   ;;  %s5401_s11 = int_to_ptr.vmem [resolvable:$true] %s846_s11 }
  0x54   : > { %p5394_p3 = pnand %p3809_p0, %p791_p2  ;;  %s870_s16 = sshll.u32 %s5180_s15, 4  ;;  %s5409_s16 = int_to_ptr.vmem [resolvable:$true] %s870_s16 }
  0x55   : > { %s5181_s28 = smov [#allocation17]   ;;  %s4528_s10 = scalar_lea.vmem %s819_s1, 16 }
  0x56   : > { %s5972_s7 = scalar_select %p5394_p3, 1, 0 }
  0x57   : > { %p4262_p5 = pneg %p5394_p3  ;;  %s5411_s14 = sshll.u32 %s5181_s28, 4  ;;  %s895_s14 = int_to_ptr.vmem [resolvable:$true] %s5411_s14 }
  0x58   : > { %p4529_p8 = scmp.ne.s32.totalorder %s819_s1, %s4528_s10  ;;  %s4535_s15 = scalar_lea.vmem %s819_s1, 32 }
  0x59   : > { %p5405_p6 = pnand %p4262_p5, %p5933_p1  ;;  %p4536_p11 = scmp.lt.s32.totalorder %s819_s1, %s819_s1 }
  0x5a   : > { %p4537_p12 = scmp.lt.s32.totalorder %s4535_s15, %s4528_s10 }
  0x5b   : > { %s5973_s18 = scalar_select %p5405_p6, 1, 0 }
  0x5c   : > { %p5415_p7 = pneg %p5405_p6  ;;  %p4538_p13 = por %p4537_p12, %p4536_p11 }
  0x5e   : > { %p4531_p9 = pnand %p4529_p8, %p5415_p7 }
  0x60   : > { %p4532_p10 = pneg %p4531_p9 }
  0x62   : > { %p4539_p0 = pnand %p4538_p13, %p4532_p10 }
  0x64   : > { %4542 = shalt.err (!%p4539_p0)
}
  0x65   : > { %s5975_s29 = sld [smem:[#allocation51_spill]]  ;;  %s4554_s28 = scalar_lea.vmem %s5401_s11, 16 }
  0x66   : > { %p4555_p2 = scmp.ne.s32.totalorder %s5401_s11, %s4554_s28  ;;  %s4561_s20 = scalar_lea.vmem %s5401_s11, 32 }
  0x67   : > { %p4562_p9 = scmp.lt.s32.totalorder %s5401_s11, %s5401_s11  ;;  %p4563_p11 = scmp.lt.s32.totalorder %s4561_s20, %s4554_s28 }
  0x68   : > { %p4557_p5 = pnand %p4555_p2, %p5415_p7 }
  0x69   : > { %p4564_p10 = por %p4563_p11, %p4562_p9 }
  0x6a   : > { %p4558_p8 = pneg %p4557_p5 }
  0x6b   : > { %4268 = dma.hbm_to_vmem [thread:$0]  (!%p5405_p6), %s5975_s29, 16, %s819_s1, [#allocation9]  }
  0x6c   : > { %p4565_p12 = pnand %p4564_p10, %p4558_p8 }
  0x6e   : > { %4568 = shalt.err (!%p4565_p12)
}
  0x6f   : > { %s5976_s19 = sld [smem:[#allocation54_spill]]  ;;  %s4580_s1 = scalar_lea.vmem %s5409_s16, 16 }
  0x70   : > { %p4581_p13 = scmp.ne.s32.totalorder %s5409_s16, %s4580_s1  ;;  %s4587_s10 = scalar_lea.vmem %s5409_s16, 32 }
  0x71   : > { %p4588_p5 = scmp.lt.s32.totalorder %s5409_s16, %s5409_s16  ;;  %p4589_p8 = scmp.lt.s32.totalorder %s4587_s10, %s4580_s1 }
  0x72   : > { %p4583_p0 = pnand %p4581_p13, %p5415_p7 }
  0x73   : > { %p4590_p9 = por %p4589_p8, %p4588_p5 }
  0x74   : > { %p4584_p2 = pneg %p4583_p0 }
  0x75   : > { %4274 = dma.hbm_to_vmem [thread:$0]  (!%p5405_p6), %s5976_s19, 16, %s5401_s11, [#allocation12]  }
  0x76   : > { %p4591_p11 = pnand %p4590_p9, %p4584_p2 }
  0x78   : > { %4594 = shalt.err (!%p4591_p11)
}
  0x79   : > { %s5977_s30 = sld [smem:[#allocation55_spill]]  ;;  %s5182_s20 = smov [#allocation20]  }
  0x7a   : > { %s918_s11 = sshll.u32 %s5182_s20, 4  ;;  %s4606_s15 = scalar_lea.vmem %s895_s14, 16  ;;  %s919_s11 = int_to_ptr.vmem [resolvable:$true] %s918_s11 }
  0x7b   : > { %p4607_p10 = scmp.ne.s32.totalorder %s895_s14, %s4606_s15  ;;  %s4613_s28 = scalar_lea.vmem %s895_s14, 32 }
  0x7c   : > { %p4614_p0 = scmp.lt.s32.totalorder %s895_s14, %s895_s14  ;;  %p4615_p5 = scmp.lt.s32.totalorder %s4613_s28, %s4606_s15 }
  0x7d   : > { %p4609_p12 = pnand %p4607_p10, %p5415_p7 }
  0x7e   : > { %p4616_p2 = por %p4615_p5, %p4614_p0 }
  0x7f   : > { %4280 = dma.hbm_to_vmem [thread:$0]  (!%p5405_p6), %s5977_s30, 16, %s5409_s16, [#allocation15]  }
  0x80   : > { %p4610_p13 = pneg %p4609_p12 }
  0x82   : > { %p4617_p8 = pnand %p4616_p2, %p4610_p13 }
  0x84   : > { %4620 = shalt.err (!%p4617_p8)
}
  0x85   : > { %s5978_s12 = sld [smem:[#allocation57_spill]]  ;;  %s4632_s16 = scalar_lea.vmem %s919_s11, 16 }
  0x86   : > { %p4633_p9 = scmp.ne.s32.totalorder %s919_s11, %s4632_s16  ;;  %s4639_s1 = scalar_lea.vmem %s919_s11, 32 }
  0x87   : > { %p4640_p10 = scmp.lt.s32.totalorder %s919_s11, %s919_s11  ;;  %p4641_p12 = scmp.lt.s32.totalorder %s4639_s1, %s4632_s16 }
  0x88   : > { %p4635_p11 = pnand %p4633_p9, %p5415_p7 }
  0x89   : > { %p4642_p1 = por %p4641_p12, %p4640_p10 }
  0x8a   : > { %p4636_p4 = pneg %p4635_p11 }
  0x8b   : > { %4286 = dma.hbm_to_vmem [thread:$0]  (!%p5405_p6), %s5978_s12, 16, %s895_s14, [#allocation18]  }
  0x8c   : > { %p4643_p3 = pnand %p4642_p1, %p4636_p4 }
  0x8e   : > { %4646 = shalt.err (!%p4643_p3)
}
  0x8f   : > { %s5979_s27 = sld [smem:[#allocation59_spill]]  ;;  %s5183_s10 = smov [#allocation23]  }
  0x90   : > { %s942_s20 = sshll.u32 %s5183_s10, 4  ;;  %s5184_s14 = smov [#allocation26]   ;;  %s943_s20 = int_to_ptr.vmem [resolvable:$true] %s942_s20 }
  0x91   : > { %s970_s15 = sshll.u32 %s5184_s14, 4  ;;  %s4658_s28 = scalar_lea.vmem %s943_s20, 16  ;;  %s971_s15 = int_to_ptr.vmem [resolvable:$true] %s970_s15 }
  0x92   : > { %p4659_p13 = scmp.ne.s32.totalorder %s943_s20, %s4658_s28  ;;  %s4665_s12 = scalar_lea.vmem %s943_s20, 32 }
  0x93   : > { %p4666_p2 = scmp.lt.s32.totalorder %s943_s20, %s943_s20  ;;  %p4667_p8 = scmp.lt.s32.totalorder %s4665_s12, %s4658_s28 }
  0x94   : > { %p4661_p0 = pnand %p4659_p13, %p5415_p7 }
  0x95   : > { %4292 = dma.hbm_to_vmem [thread:$0]  (!%p5405_p6), %s5979_s27, 16, %s919_s11, [#allocation21]  }
  0x96   : > { %p4662_p5 = pneg %p4661_p0  ;;  %p4668_p1 = por %p4667_p8, %p4666_p2 }
  0x98   : > { %p4669_p3 = pnand %p4668_p1, %p4662_p5 }
  0x9a   : > { %4672 = shalt.err (!%p4669_p3)
}
  0x9b   : > { %s5980_s9 = sld [smem:[#allocation61_spill]]  ;;  %s4684_s11 = scalar_lea.vmem %s971_s15, 16 }
  0x9c   : > { %p4685_p4 = scmp.ne.s32.totalorder %s971_s15, %s4684_s11  ;;  %s4691_s16 = scalar_lea.vmem %s971_s15, 32 }
  0x9d   : > { %p4692_p10 = scmp.lt.s32.totalorder %s971_s15, %s971_s15  ;;  %p4693_p12 = scmp.lt.s32.totalorder %s4691_s16, %s4684_s11 }
  0x9e   : > { %p4687_p9 = pnand %p4685_p4, %p5415_p7 }
  0x9f   : > { %p4694_p13 = por %p4693_p12, %p4692_p10 }
  0xa0   : > { %p4688_p11 = pneg %p4687_p9 }
  0xa1   : > { %4298 = dma.hbm_to_vmem [thread:$0]  (!%p5405_p6), %s5980_s9, 16, %s943_s20, [#allocation24]  }
  0xa2   : > { %p4695_p0 = pnand %p4694_p13, %p4688_p11 }
  0xa4   : > { %4698 = shalt.err (!%p4695_p0)
}
  0xa5   : > { %s5981_s5 = sld [smem:[#allocation65_spill]]  ;;  %s5185_s12 = smov [#allocation29]  }
  0xa6   : > { %s992_s1 = sshll.u32 %s5185_s12, 4  ;;  %s993_s1 = int_to_ptr.vmem [resolvable:$true] %s992_s1 }
  0xa7   : > { %s4710_s10 = scalar_lea.vmem %s993_s1, 16  ;;  %s4717_s20 = scalar_lea.vmem %s993_s1, 32 }
  0xa8   : > { %p4711_p5 = scmp.ne.s32.totalorder %s993_s1, %s4710_s10  ;;  %p4718_p1 = scmp.lt.s32.totalorder %s993_s1, %s993_s1 }
  0xa9   : > { %p4719_p3 = scmp.lt.s32.totalorder %s4717_s20, %s4710_s10 }
  0xaa   : > { %p4713_p2 = pnand %p4711_p5, %p5415_p7 }
  0xab   : > { %4304 = dma.hbm_to_vmem [thread:$0]  (!%p5405_p6), %s5981_s5, 16, %s971_s15, [#allocation27]  }
  0xac   : > { %p4714_p8 = pneg %p4713_p2  ;;  %p4720_p4 = por %p4719_p3, %p4718_p1 }
  0xae   : > { %p4721_p9 = pnand %p4720_p4, %p4714_p8 }
  0xb0   : > { %4724 = shalt.err (!%p4721_p9)
}
  0xb1   : > { %s5982_s3 = sld [smem:[#allocation67_spill]]  ;;  %s3808_s14 = sadd.s32 4294967294, %s5145_s26  }
  0xb2   : > { %s5474_s15 = sadd.s32 1, %s5145_s26   ;;  %s169_s11 = sadd.s32 1, %s5141_s0 }
  0xb3   : > { %s166_s28 = ssub.s32 %s5145_s26, %s5474_s15  ;;  %p176_p10 = scmp.ne.s32.totalorder %s5141_s0, %s5137_s23 }
  0xb4   : > { %p167_p11 = scmp.eq.s32.totalorder %s166_s28, 0  ;;  %p177_p12 = scmp.eq.s32.totalorder %s5145_s26, 0 }
  0xb5   : > { %p182_p13 = scmp.ne.s32.totalorder %s5137_s23, %s5133_s22  ;;  %p5985_p5 = scmp.eq.s32.totalorder %s5389_s2, 0 }
  0xb6   : > { %s5485_s16 = scalar_select %p167_p11, %s5141_s0, %s169_s11  }
  0xb7   : > { %4310 = dma.hbm_to_vmem [thread:$0]  (!%p5405_p6), %s5982_s3, 16, %s993_s1, [#allocation30]  }
  0xb8   : > { %5983 = sst [smem:[#allocation74_spill]] %s5485_s16  ;;  %p5487_p0 = por %p177_p12, %p176_p10 }
  0xb9   : > { %p5493_p2 = por %p5985_p5, %p182_p13  ;;  %p778_p8 = scmp.eq.s32.totalorder %s5389_s2, 1 }
  0xba   : > { %p784_p1 = scmp.eq.s32.totalorder %s3808_s14, 1  ;;  %p4346_p3 = scmp.lt.s32.totalorder %s5145_s26, 2 }
  0xbb   : > { %s5986_s1 = scalar_select %p5493_p2, 1, 0 }
  0xbc   : > { %s1052_s10 = sand.u32 1, %s5145_s26   ;;  %p5500_p4 = por %p778_p8, %p176_p10 }
  0xbd   : > { %p5504_p9 = por %p784_p1, %p182_p13  ;;  %s5937_s11 = sand.u32 1, %s5141_s0  }
  0xbe   : > { %s5987_s20 = scalar_select %p5500_p4, 1, 0 }
  0xbf   : > { %s5988_s28 = scalar_select %p5504_p9, 1, 0 }
  0xc0   : > { %s3829_s3 = sshll.u32 %s5145_s26, 4  ;;  %s1055_s14 = scalar_lea.vmem [#allocation5], %s5937_s11 }
  0xc1   : > { %s5511_s5 = scalar_lea.hbm %s5971_s17, %s3829_s3  ;;  %s1062_s9 = sshll.u32 %s1055_s14, 4  ;;  %s5515_s9 = int_to_ptr.vmem [resolvable:$true] %s1062_s9 }
  0xc2   : > { %p5519_p11 = pnand %p4346_p3, %p5487_p0  ;;  %s5524_s27 = scalar_lea.hbm %s5231_s21, %s3829_s3 }
  0xc3   : > { %s5526_s29 = scalar_lea.sflag [#allocation6], %s1052_s10  ;;  %s4725_s30 = scalar_lea.hbm %s5511_s5, 16 }
  0xc4   : > { %s5989_s19 = scalar_select %p5519_p11, 1, 0 }
  0xc5   : > { %p4726_p10 = scmp.ne.s32.totalorder %s5511_s5, %s4725_s30  ;;  %p5941_p12 = pneg %p5519_p11 }
  0xc6   : > { %s4730_s14 = scalar_lea.hbm %s5971_s17, 32  ;;  %p4731_p8 = scmp.lt.s32.totalorder %s5511_s5, %s5971_s17 }
  0xc7   : > { %p4728_p13 = pnand %p5941_p12, %p4726_p10  ;;  %p4732_p0 = scmp.lt.s32.totalorder %s4730_s14, %s4725_s30 }
  0xc9   : > { %p4729_p5 = pneg %p4728_p13  ;;  %p4733_p1 = por %p4732_p0, %p4731_p8 }
  0xcb   : > { %p4734_p3 = pnand %p4733_p1, %p4729_p5 }
  0xcd   : > { %4737 = shalt.err (!%p4734_p3)
}
  0xce   : > { %s4738_s3 = scalar_lea.vmem %s5515_s9, 16  ;;  %s5186_s12 = smov [#allocation5]  }
  0xcf   : > { %p4739_p9 = scmp.ne.s32.totalorder %s5515_s9, %s4738_s3  ;;  %s4743_s10 = sshll.u32 %s5186_s12, 4  ;;  %s4744_s10 = int_to_ptr.vmem [resolvable:$false] %s4743_s10 }
  0xd0   : > { %s4745_s11 = scalar_lea.vmem %s4744_s10, 32  ;;  %p4746_p10 = scmp.lt.s32.totalorder %s5515_s9, %s4744_s10 }
  0xd1   : > { %p4741_p4 = pnand %p4739_p9, %p5941_p12  ;;  %p4747_p13 = scmp.lt.s32.totalorder %s4745_s11, %s4738_s3 }
  0xd3   : > { %p4742_p2 = pneg %p4741_p4  ;;  %p4748_p6 = por %p4747_p13, %p4746_p10 }
  0xd5   : > { %p4749_p8 = pnand %p4748_p6, %p4742_p2 }
  0xd7   : > { %4752 = shalt.err (!%p4749_p8)
}
  0xd8   : > { %4320 = dma.hbm_to_vmem [thread:$0]  (!%p5519_p11), %s5511_s5, 16, %s5515_s9, %s5526_s29  }
  0xd9   : > { %s5187_s30 = smov [#allocation2]   ;;  %s5188_s17 = smov [#allocation10]  }
  0xda   : > { %s804_s14 = sshll.u32 %s5187_s30, 4  ;;  %s832_s16 = sshll.u32 %s5188_s17, 4  ;;  %s805_s14 = int_to_ptr.vmem [resolvable:$true] %s804_s14  ;;  %s833_s16 = int_to_ptr.vmem [resolvable:$true] %s832_s16 }
  0xdb   : > { %s4764_s12 = scalar_lea.vmem %s805_s14, 128  ;;  %p4772_p0 = scmp.lt.s32.totalorder %s805_s14, %s805_s14 }
  0xdc   : > { %p4765_p4 = scmp.ne.s32.totalorder %s805_s14, %s4764_s12  ;;  %p4773_p6 = scmp.lt.s32.totalorder %s4764_s12, %s4764_s12 }
  0xde   : > { %p4767_p9 = pnand %p4765_p4, %p5415_p7  ;;  %p4774_p2 = por %p4773_p6, %p4772_p0 }
  0xe0   : > { %p4768_p5 = pneg %p4767_p9 }
  0xe2   : > { %p4775_p1 = pnand %p4774_p2, %p4768_p5 }
  0xe4   : > { %4778 = shalt.err (!%p4775_p1)
}
  0xe5   : > { %p5990_p3 = scmp.ne.s32.totalorder %s5973_s18, 0  ;;  %s4790_s5 = scalar_lea.vmem %s833_s16, 16 }
  0xe6   : > { %p4791_p10 = scmp.ne.s32.totalorder %s833_s16, %s4790_s5  ;;  %s4797_s9 = scalar_lea.vmem %s833_s16, 32 }
  0xe7   : > { %4265 = dma.hbm_to_vmem [thread:$0]  (!%p5990_p3), %s5221_s13, 128, %s805_s14, [#allocation3]  }
  0xe8   : > { %p4793_p13 = pnand %p4791_p10, %p5415_p7  ;;  %p4798_p12 = scmp.lt.s32.totalorder %s833_s16, %s833_s16 }
  0xe9   : > { %p4799_p4 = scmp.lt.s32.totalorder %s4797_s9, %s4790_s5 }
  0xea   : > { %p4794_p8 = pneg %p4793_p13 }
  0xeb   : > { %p4800_p9 = por %p4799_p4, %p4798_p12 }
  0xed   : > { %p4801_p11 = pnand %p4800_p9, %p4794_p8 }
  0xef   : > { %4804 = shalt.err (!%p4801_p11)
}
  0xf0   : > { %4271 = dma.hbm_to_vmem [thread:$0]  (!%p5990_p3), %s5251_s8, 16, %s833_s16, [#allocation9]  }
  0xf1   : > { %s5189_s17 = smov [#allocation13]  }
  0xf2   : > { %s856_s11 = sshll.u32 %s5189_s17, 4  ;;  %s857_s11 = int_to_ptr.vmem [resolvable:$true] %s856_s11 }
  0xf3   : > { %s4816_s3 = scalar_lea.vmem %s857_s11, 256  ;;  %p4824_p2 = scmp.lt.s32.totalorder %s857_s11, %s857_s11 }
  0xf4   : > { %p4817_p5 = scmp.ne.s32.totalorder %s857_s11, %s4816_s3  ;;  %p4825_p1 = scmp.lt.s32.totalorder %s4816_s3, %s4816_s3 }
  0xf6   : > { %p4819_p0 = pnand %p4817_p5, %p5415_p7  ;;  %p4826_p10 = por %p4825_p1, %p4824_p2 }
  0xf8   : > { %p4820_p6 = pneg %p4819_p0 }
  0xfa   : > { %p4827_p13 = pnand %p4826_p10, %p4820_p6 }
  0xfc   : > { %4830 = shalt.err (!%p4827_p13)
}
  0xfd   : > { %s5190_s10 = smov 64   ;;  %s5191_s30 = smov 4  }
  0xfe   : > { %4277 = dma.hbm_to_vmem [thread:$0]  (!%p5990_p3), %s5266_s24, 256, %s857_s11, [#allocation12], %s5190_s10, %s5190_s10, %s5191_s30  }
  0xff   : > { %s5192_s16 = smov [#allocation16]   ;;  %s5193_s12 = smov [#allocation19]  }
 0x100   : > { %s880_s14 = sshll.u32 %s5192_s16, 4  ;;  %s904_s5 = sshll.u32 %s5193_s12, 4  ;;  %s881_s14 = int_to_ptr.vmem [resolvable:$true] %s880_s14  ;;  %s905_s5 = int_to_ptr.vmem [resolvable:$true] %s904_s5 }
 0x101   : > { %s4842_s9 = scalar_lea.vmem %s881_s14, 256  ;;  %p4850_p4 = scmp.lt.s32.totalorder %s881_s14, %s881_s14 }
 0x102   : > { %p4843_p11 = scmp.ne.s32.totalorder %s881_s14, %s4842_s9  ;;  %p4851_p9 = scmp.lt.s32.totalorder %s4842_s9, %s4842_s9 }
 0x104   : > { %p4845_p12 = pnand %p4843_p11, %p5415_p7  ;;  %p4852_p5 = por %p4851_p9, %p4850_p4 }
 0x106   : > { %p4846_p8 = pneg %p4845_p12 }
 0x108   : > { %p4853_p0 = pnand %p4852_p5, %p4846_p8 }
 0x10a   : > { %4856 = shalt.err (!%p4853_p0)
}
 0x10b   : > { %s5991_s6 = sld [smem:[#allocation56_spill]]  ;;  %s4868_s17 = scalar_lea.vmem %s905_s5, 256 }
 0x10c   : > { %p4869_p6 = scmp.ne.s32.totalorder %s905_s5, %s4868_s17  ;;  %p4876_p10 = scmp.lt.s32.totalorder %s905_s5, %s905_s5 }
 0x10d   : > { %p4877_p13 = scmp.lt.s32.totalorder %s4868_s17, %s4868_s17 }
 0x10e   : > { %p4871_p2 = pnand %p4869_p6, %p5415_p7 }
 0x10f   : > { %p4878_p11 = por %p4877_p13, %p4876_p10 }
 0x110   : > { %p4872_p1 = pneg %p4871_p2 }
 0x111   : > { %4283 = dma.hbm_to_vmem [thread:$0]  (!%p5990_p3), %s5991_s6, 256, %s881_s14, [#allocation15], %s5190_s10, %s5190_s10, %s5191_s30  }
 0x112   : > { %p4879_p12 = pnand %p4878_p11, %p4872_p1 }
 0x114   : > { %4882 = shalt.err (!%p4879_p12)
}
 0x115   : > { %s5992_s11 = sld [smem:[#allocation58_spill]]  ;;  %s5194_s3 = smov [#allocation22]  }
 0x116   : > { %s928_s16 = sshll.u32 %s5194_s3, 4  ;;  %s5195_s14 = smov [#allocation25]   ;;  %s929_s16 = int_to_ptr.vmem [resolvable:$true] %s928_s16 }
 0x117   : > { %s959_s12 = sshll.u32 %s5195_s14, 4  ;;  %s4894_s9 = scalar_lea.vmem %s929_s16, 256  ;;  %s960_s12 = int_to_ptr.vmem [resolvable:$true] %s959_s12 }
 0x118   : > { %p4895_p8 = scmp.ne.s32.totalorder %s929_s16, %s4894_s9  ;;  %p4902_p5 = scmp.lt.s32.totalorder %s929_s16, %s929_s16 }
 0x119   : > { %p4903_p0 = scmp.lt.s32.totalorder %s4894_s9, %s4894_s9 }
 0x11a   : > { %p4897_p4 = pnand %p4895_p8, %p5415_p7 }
 0x11b   : > { %4289 = dma.hbm_to_vmem [thread:$0]  (!%p5990_p3), %s5992_s11, 256, %s905_s5, [#allocation18], %s5190_s10, %s5190_s10, %s5191_s30  }
 0x11c   : > { %p4898_p9 = pneg %p4897_p4  ;;  %p4904_p6 = por %p4903_p0, %p4902_p5 }
 0x11e   : > { %p4905_p2 = pnand %p4904_p6, %p4898_p9 }
 0x120   : > { %4908 = shalt.err (!%p4905_p2)
}
 0x121   : > { %s5993_s5 = sld [smem:[#allocation60_spill]]  ;;  %s4920_s17 = scalar_lea.vmem %s960_s12, 16 }
 0x122   : > { %p4921_p1 = scmp.ne.s32.totalorder %s960_s12, %s4920_s17  ;;  %s4927_s11 = scalar_lea.vmem %s960_s12, 32 }
 0x123   : > { %p4928_p11 = scmp.lt.s32.totalorder %s960_s12, %s960_s12  ;;  %p4929_p12 = scmp.lt.s32.totalorder %s4927_s11, %s4920_s17 }
 0x124   : > { %p4923_p10 = pnand %p4921_p1, %p5415_p7 }
 0x125   : > { %p4930_p8 = por %p4929_p12, %p4928_p11 }
 0x126   : > { %p4924_p13 = pneg %p4923_p10 }
 0x127   : > { %4295 = dma.hbm_to_vmem [thread:$0]  (!%p5990_p3), %s5993_s5, 256, %s929_s16, [#allocation21], %s5190_s10, %s5190_s10, %s5191_s30  }
 0x128   : > { %p4931_p4 = pnand %p4930_p8, %p4924_p13 }
 0x12a   : > { %4934 = shalt.err (!%p4931_p4)
}
 0x12b   : > { %s5994_s3 = sld [smem:[#allocation64_spill]]  ;;  %s5196_s14 = smov [#allocation28]  }
 0x12c   : > { %s981_s9 = sshll.u32 %s5196_s14, 4  ;;  %s5197_s6 = smov [#allocation31]   ;;  %s982_s9 = int_to_ptr.vmem [resolvable:$true] %s981_s9 }
 0x12d   : > { %s1003_s10 = sshll.u32 %s5197_s6, 4  ;;  %s4946_s30 = scalar_lea.vmem %s982_s9, 16  ;;  %s1004_s10 = int_to_ptr.vmem [resolvable:$true] %s1003_s10 }
 0x12e   : > { %p4947_p9 = scmp.ne.s32.totalorder %s982_s9, %s4946_s30  ;;  %s4953_s16 = scalar_lea.vmem %s982_s9, 32 }
 0x12f   : > { %p4954_p6 = scmp.lt.s32.totalorder %s982_s9, %s982_s9  ;;  %p4955_p2 = scmp.lt.s32.totalorder %s4953_s16, %s4946_s30 }
 0x130   : > { %p4949_p5 = pnand %p4947_p9, %p5415_p7 }
 0x131   : > { %4301 = dma.hbm_to_vmem [thread:$0]  (!%p5990_p3), %s5994_s3, 16, %s960_s12, [#allocation24]  }
 0x132   : > { %p4950_p0 = pneg %p4949_p5  ;;  %p4956_p1 = por %p4955_p2, %p4954_p6 }
 0x134   : > { %p4957_p10 = pnand %p4956_p1, %p4950_p0 }
 0x136   : > { %4960 = shalt.err (!%p4957_p10)
}
 0x137   : > { %s5995_s12 = sld [smem:[#allocation66_spill]]  ;;  %s4972_s5 = scalar_lea.vmem %s1004_s10, 16 }
 0x138   : > { %p4973_p13 = scmp.ne.s32.totalorder %s1004_s10, %s4972_s5  ;;  %s4979_s6 = scalar_lea.vmem %s1004_s10, 32 }
 0x139   : > { %p4980_p8 = scmp.lt.s32.totalorder %s1004_s10, %s1004_s10  ;;  %p4981_p4 = scmp.lt.s32.totalorder %s4979_s6, %s4972_s5 }
 0x13a   : > { %p4975_p11 = pnand %p4973_p13, %p5415_p7 }
 0x13b   : > { %p4982_p9 = por %p4981_p4, %p4980_p8 }
 0x13c   : > { %p4976_p12 = pneg %p4975_p11 }
 0x13d   : > { %4307 = dma.hbm_to_vmem [thread:$0]  (!%p5990_p3), %s5995_s12, 16, %s982_s9, [#allocation27]  }
 0x13e   : > { %p4983_p5 = pnand %p4982_p9, %p4976_p12 }
 0x140   : > { %4986 = shalt.err (!%p4983_p5)
}
 0x141   : > { %s5996_s17 = sld [smem:[#allocation68_spill]]  ;;  %s5997_s11 = sand.u32 1, %s5141_s0  }
 0x142   : > { %s1072_s3 = scalar_lea.vmem [#allocation7], %s5997_s11  ;;  %s5198_s9 = smov [#allocation32]  }
 0x143   : > { %s1079_s14 = sshll.u32 %s1072_s3, 4  ;;  %s1014_s30 = sshll.u32 %s5198_s9, 4  ;;  %s5608_s14 = int_to_ptr.vmem [resolvable:$true] %s1079_s14  ;;  %s1015_s30 = int_to_ptr.vmem [resolvable:$true] %s1014_s30 }
 0x144   : > { %s4998_s16 = scalar_lea.vmem %s1015_s30, 16  ;;  %s5005_s12 = scalar_lea.vmem %s1015_s30, 32 }
 0x145   : > { %p4999_p0 = scmp.ne.s32.totalorder %s1015_s30, %s4998_s16  ;;  %p5006_p1 = scmp.lt.s32.totalorder %s1015_s30, %s1015_s30 }
 0x146   : > { %p5007_p10 = scmp.lt.s32.totalorder %s5005_s12, %s4998_s16 }
 0x147   : > { %4313 = dma.hbm_to_vmem [thread:$0]  (!%p5990_p3), %s5996_s17, 16, %s1004_s10, [#allocation30]  }
 0x148   : > { %p5001_p6 = pnand %p4999_p0, %p5415_p7  ;;  %p5008_p13 = por %p5007_p10, %p5006_p1 }
 0x14a   : > { %p5002_p2 = pneg %p5001_p6 }
 0x14c   : > { %p5009_p11 = pnand %p5008_p13, %p5002_p2 }
 0x14e   : > { %5012 = shalt.err (!%p5009_p11)
}
 0x14f   : > { %s5998_s10 = sld [smem:[#allocation69_spill]]  ;;  %s5013_s5 = scalar_lea.hbm %s5524_s27, 16 }
 0x150   : > { %p5014_p12 = scmp.ne.s32.totalorder %s5524_s27, %s5013_s5  ;;  %p5999_p7 = scmp.ne.s32.totalorder %s5989_s19, 0 }
 0x151   : > { %s5018_s4 = scalar_lea.hbm %s5231_s21, 32  ;;  %p5019_p5 = scmp.lt.s32.totalorder %s5524_s27, %s5231_s21 }
 0x152   : > { %p6000_p8 = pneg %p5999_p7  ;;  %p5020_p0 = scmp.lt.s32.totalorder %s5018_s4, %s5013_s5 }
 0x154   : > { %p5016_p4 = pnand %p5014_p12, %p6000_p8  ;;  %p5021_p6 = por %p5020_p0, %p5019_p5 }
 0x155   : > { %4316 = dma.hbm_to_vmem [thread:$0]  (!%p5990_p3), %s5998_s10, 16, %s1015_s30, [#allocation33]  }
 0x156   : > { %p5017_p9 = pneg %p5016_p4 }
 0x158   : > { %p5022_p2 = pnand %p5021_p6, %p5017_p9 }
 0x15a   : > { %5025 = shalt.err (!%p5022_p2)
}
 0x15b   : > { %s5026_s18 = scalar_lea.vmem %s5608_s14, 16  ;;  %p6001_p3 = pmov %p6000_p8 }
 0x15c   : > { %p5027_p1 = scmp.ne.s32.totalorder %s5608_s14, %s5026_s18  ;;  %s5199_s6 = smov [#allocation7]  }
 0x15d   : > { %s5031_s17 = sshll.u32 %s5199_s6, 4  ;;  %s5032_s17 = int_to_ptr.vmem [resolvable:$false] %s5031_s17 }
 0x15e   : > { %p5029_p10 = pnand %p5027_p1, %p6001_p3  ;;  %s5033_s11 = scalar_lea.vmem %s5032_s17, 32 }
 0x15f   : > { %p5034_p11 = scmp.lt.s32.totalorder %s5608_s14, %s5032_s17  ;;  %p5035_p12 = scmp.lt.s32.totalorder %s5033_s11, %s5026_s18 }
 0x160   : > { %p5030_p13 = pneg %p5029_p10 }
 0x161   : > { %p5036_p8 = por %p5035_p12, %p5034_p11 }
 0x163   : > { %p5037_p4 = pnand %p5036_p8, %p5030_p13 }
 0x165   : > { %5040 = shalt.err (!%p5037_p4)
}
 0x166   : > { %4323 = dma.hbm_to_vmem [thread:$0]  (!%p5999_p7), %s5524_s27, 16, %s5608_s14, %s5526_s29  }
 0x167   : > { %p6002_p9 = scmp.ne.s32.totalorder %s5972_s7, 0 }
 0x168   : > { %p6003_p5 = scmp.eq.s32.totalorder (!%p6002_p9), %s5389_s2, 0 }
 0x169   : > { %1088 = sbr.rel (%p6002_p9) target bundleno = 4780 (0x12ac), region = 144 }
 0x16e   : > { %5084 = dma.done.wait (%p6003_p5), [#allocation3], 128   ;;  %p6004_p0 = pmov %p6003_p5 }
 0x16f   : > { %s1094_s3 = sand.u32 1, %s5389_s2   ;;  %s5642_s9 = sand.u32 1, %s5137_s23  }
 0x170   : > { %5086 = vsyncadd (%p6004_p0), [#allocation3], 4294967168  ;;  %s1095_s19 = scalar_lea.sflag [#allocation6], %s1094_s3  ;;  %s1097_s30 = scalar_lea.vmem [#allocation5], %s5642_s9 }
 0x171   : > { %p6005_p6 = scmp.ne.s32.totalorder %s5986_s1, 0 }
 0x173   : > { %5088 = dma.done.wait (%p6005_p6), %s1095_s19, 32  }
 0x174   : > { %5090 = vsyncadd (%p6005_p6), %s1095_s19, 4294967264  ;;  %s1105_s29 = scalar_lea.vmem [#allocation7], %s5642_s9  ;;  %p6006_p7 = pmov %p6004_p0 }
 0x175   : > { %p6007_p2 = pmov %p6004_p0 }
 0x176   : > { %5092 = dma.done.wait (%p6006_p7), [#allocation9], 32  }
 0x177   : > { %5094 = vsyncadd (%p6007_p2), [#allocation9], 4294967264  ;;  %p6008_p1 = pmov %p6004_p0 }
 0x178   : > { %p6009_p3 = pmov %p6004_p0 }
 0x179   : > { %5096 = dma.done.wait (%p6008_p1), [#allocation12], 272  }
 0x17a   : > { %5098 = vsyncadd (%p6009_p3), [#allocation12], 4294967024  ;;  %p6010_p10 = pmov %p6004_p0 }
 0x17b   : > { %p6011_p13 = pmov %p6004_p0 }
 0x17c   : > { %5100 = dma.done.wait (%p6010_p10), [#allocation15], 272  }
 0x17d   : > { %5102 = vsyncadd (%p6011_p13), [#allocation15], 4294967024  ;;  %p6012_p11 = pmov %p6004_p0 }
 0x17e   : > { %p6013_p12 = pmov %p6004_p0 }
 0x17f   : > { %5104 = dma.done.wait (%p6012_p11), [#allocation18], 272  }
 0x180   : > { %5106 = vsyncadd (%p6013_p12), [#allocation18], 4294967024  ;;  %p6014_p8 = pmov %p6004_p0 }
 0x181   : > { %p6015_p4 = pmov %p6004_p0 }
 0x182   : > { %5108 = dma.done.wait (%p6014_p8), [#allocation21], 272  }
 0x183   : > { %5110 = vsyncadd (%p6015_p4), [#allocation21], 4294967024  ;;  %p6016_p9 = pmov %p6004_p0 }
 0x184   : > { %p6017_p5 = pmov %p6004_p0 }
 0x185   : > { %5112 = dma.done.wait (%p6016_p9), [#allocation24], 32  }
 0x186   : > { %5114 = vsyncadd (%p6017_p5), [#allocation24], 4294967264 }
 0x187   : > { %5116 = dma.done.wait (%p6004_p0), [#allocation27], 32   ;;  %p6018_p6 = pmov %p6004_p0 }
 0x188   : > { %p6019_p7 = pmov %p6004_p0 }
 0x189   : > { %5118 = vsyncadd (%p6018_p6), [#allocation27], 4294967264 }
 0x18a   : > { %5120 = dma.done.wait (%p6019_p7), [#allocation30], 32   ;;  %p6020_p2 = pmov %p6004_p0 }
 0x18b   : > { %p6021_p1 = pmov %p6004_p0 }
 0x18c   : > { %5122 = vsyncadd (%p6020_p2), [#allocation30], 4294967264 }
 0x18d   : > { %5124 = dma.done.wait (%p6021_p1), [#allocation33], 16   ;;  %p6022_p3 = pmov %p6004_p0 }
 0x18e   : > { %s6023_s27 = sld [smem:[#allocation47_spill]]  ;;  %p1264_p10 = scmp.lt.s32.totalorder %s5389_s2, 1  ;;  %v5200_v0 = vmov 0.0   ;;  %vm5201_vm0 = vmmov 0   ;;  %vm1303_vm1 = vcmask 261120   ;;  %vm1710_vm2 = vcmask 1043456  }
 0x18f   : > { %5126 = vsyncadd (%p6022_p3), [#allocation33], 4294967280  ;;  %s6024_s7 = sld [smem:[#allocation50_spill]]  ;;  %3996 = vmatprep.subr.bf16.mxu0 %v5200_v0  ;;  %4000 = vmatprep.mubr.msk.bf16.mxu0 %vm5201_vm0, %v5200_v0  ;;  %v3854_v7 = vld [vmem:[#allocation8] ss:$0 sm:$0xff]  ;;  %vm1706_vm3 = vcmask 64512  }
 0x190   : > { %s6025_s1 = sld [smem:[#allocation52_spill]]  ;;  %4020 = vmatprep.subr.bf16.mxu1 %v5200_v0  ;;  %4022 = vmatprep.mubr.msk.bf16.mxu1 %vm5201_vm0, %v5200_v0  ;;  %v3858_v16 = vld [vmem:[#allocation10] ss:$0 sm:$0xff]  ;;  %v3870_v50 = vld [vmem:[%s1097_s30] ss:$0 sm:$0xff]  ;;  %vm2899_vm4 = vcmask 130048  }
 0x191   : > { %s5691_s14 = scalar_select %p1264_p10, %s5389_s2, 1  ;;  %v1902_v52 = vld [vmem:[#allocation2] sm:$0xff] }
 0x192   : > { %s6026_s10 = sld [smem:[#allocation53_spill]]  ;;  %p6034_p11 = scmp.ne.s32.totalorder %s5987_s20, 0 }
 0x193   : > { %s3851_s16 = sshll.u32 %s5691_s14, 3  ;;  %s6027_s5 = sld [smem:[#allocation48_spill]] }
 0x194   : > { %s1267_s12 = scalar_lea.vmem %s6023_s27, %s3851_s16  ;;  %s3927_s4 = sshll.u32 %s5691_s14, 4 }
 0x195   : > { %v4451_v1 = vld [vmem:[%s6024_s7 + $0x8] sm:$0xff]   ;;  %v4452_v2 = vld [vmem:[%s6024_s7] sm:$0xff]   ;;  %s6028_s6 = sld [smem:[#allocation62_spill]]  ;;  %s3924_s27 = sshll.u32 %s5389_s2, 7 }
 0x196   : > { %3997 = vmatpush3.bf16.msra.mxu0 %v4451_v1  ;;  %v5700_v3 = vld [vmem:[%s1267_s12] sm:$0xff]  ;;  %v4453_v4 = vld [vmem:[%s6025_s1 + $0x8] sm:$0xff]   ;;  %s6029_s17 = sld [smem:[#allocation63_spill]] }
 0x197   : > { %3998 = vmatprep.subr.bf16.mxu0 %v5200_v0  ;;  %v1279_v5 = vpack.c.bf16 %v5700_v3, %v5700_v3  ;;  %v4454_v6 = vld [vmem:[%s6025_s1] sm:$0xff]   ;;  %s6030_s11 = sld [smem:[#allocation70_spill]] }
 0x198   : > { %v4455_v20 = vld [vmem:[%s6026_s10 + $0x8] sm:$0xff]   ;;  %v4456_v21 = vld [vmem:[%s6026_s10] sm:$0xff]   ;;  %s6031_s3 = sld [smem:[#allocation71_spill]] }
 0x199   : > { %s1272_s18 = scalar_lea.vmem %s6027_s5, %s3927_s4  ;;  %s6032_s19 = sld [smem:[#allocation72_spill]] }
 0x19a   : > { %3999 = vmatpush3.bf16.msra.mxu0 %v4452_v2  ;;  %s6033_s30 = sld [smem:[#allocation73_spill]]  ;;  %s3482_s5 = scalar_lea.sflag [#allocation4], %s5642_s9 }
 0x19b   : > { %4004 = vmatprep.subr.bf16.mxu0 %v5200_v0 }
 0x19d   : > { %4001 = vmatmul.mubr.msk.bf16.vlgmr.msra.gmra.mxu0 %vm1303_vm1, %v1279_v5 }
 0x19e   : > { %4005 = vmatpush3.bf16.msra.mxu0 %v4453_v4  ;;  %4008 = vmatprep.mubr.msk.bf16.mxu0 %vm5201_vm0, %v5200_v0 }
 0x19f   : > { %4006 = vmatprep.subr.bf16.mxu0 %v5200_v0 }
 0x1a0   : > { %s3493_s12 = scalar_lea.hbm %s6033_s30, %s3924_s27 }
 0x1a2   : > { %4007 = vmatpush3.bf16.msra.mxu0 %v4454_v6 }
 0x1a3   : > { %4012 = vmatprep.subr.bf16.mxu0 %v5200_v0 }
 0x1a5   : > { %4009 = vmatmul.mubr.msk.bf16.vlgmr.msra.gmra.mxu0 %vm1303_vm1, %v1279_v5 }
 0x1a6   : > { %4016 = vmatprep.mubr.msk.bf16.mxu0 %vm5201_vm0, %v5200_v0  ;;  %4013 = vmatpush3.bf16.msra.mxu0 %v4455_v20 }
 0x1a7   : > { %4014 = vmatprep.subr.bf16.mxu0 %v5200_v0 }
 0x1aa   : > { %4015 = vmatpush3.bf16.msra.mxu0 %v4456_v21 }
 0x1ab   : > { %4026 = vmatprep.subr.bf16.mxu0 %v5200_v0 }
 0x1ad   : > { %4017 = vmatmul.mubr.msk.bf16.vlgmr.msra.gmra.mxu0 %vm1303_vm1, %v1279_v5 }
 0x1ae   : > { %4028 = vmatprep.mubr.msk.bf16.mxu0 %vm5201_vm0, %v5200_v0 }
 0x25d   : > { %v1341_v8 = vpop.f32.mrf.mxu0 }
 0x25e   : > { %v1342_v9 = vadd.f32 %v3854_v7, %v1341_v8 }
 0x25f   : > { %v4002_v10 = vpop.f32.mrf.mxu0 }
 0x260   : > { %v1347_v11 = vmul.f32 0.35355338, %v1342_v9 }
 0x261   : > { %v1344_v12 = vpop.f32.mrf.mxu0 }
 0x262   : > { %1474 = vxpose.xlu0.b32.start.end [1/1] (short) (narrow) %v1347_v11, 32 }
 0x263   : > { %v4003_v13 = vpop.f32.mrf.mxu0 }
 0x265   : > { %v1405_v14 = vpop.f32.mrf.mxu0 }
 0x266   : > { %v1406_v18 = vadd.f32 %v3858_v16, %v1405_v14 }
 0x267   : > { %v4010_v15 = vpop.f32.mrf.mxu0 }
 0x269   : > { %v1408_v17 = vpop.f32.mrf.mxu0 }
 0x26b   : > { %v4011_v19 = vpop.f32.mrf.mxu0 }
 0x26d   : > { %v5727_v32 = vpop.f32.mrf.mxu0 }
 0x26f   : > { %1506 = vxpose.xlu0.b32.start.end [1/1] (short) (narrow) %v1406_v18, 32  ;;  %v4018_v33 = vpop.f32.mrf.mxu0 }
 0x271   : > { %v1471_v34 = vpop.f32.mrf.mxu0 }
 0x273   : > { %v4019_v35 = vpop.f32.mrf.mxu0 }
 0x2de   : > { %v1490_v22 = vpop.trf.xlu0 }
 0x2df   : > { %1570 = vxpose.xlu1.b32.start.end [1/1] (short) (narrow) %v1490_v22, 8 }
 0x2e2   : > { %v1491_v23 = vpop.trf.xlu0 }
 0x2e3   : > { %1602 = vxpose.xlu1.b32.start.end [1/1] (short) (narrow) %v1491_v23, 8 }
 0x2e6   : > { %v1492_v24 = vpop.trf.xlu0 }
 0x2e7   : > { %1634 = vxpose.xlu1.b32.start.end [1/1] (short) (narrow) %v1492_v24, 8 }
 0x2ea   : > { %v1493_v25 = vpop.trf.xlu0 }
 0x2eb   : > { %1666 = vxpose.xlu1.b32.start.end [1/1] (short) (narrow) %v1493_v25, 8 }
 0x2ee   : > { %v1522_v26 = vpop.trf.xlu0 }
 0x2ef   : > { %v1702_v27 = vpack.c.bf16 %v1522_v26, %v1522_v26 }
 0x2f1   : > { %v1712_v28 = vsel %vm1710_vm2, %v1702_v27, 0 }
 0x2f2   : > { %4021 = vmatpush3.bf16.msra.mxu1 %v1712_v28  ;;  %v1523_v29 = vpop.trf.xlu0 }
 0x2f3   : > { %v1703_v30 = vpack.c.bf16 %v1523_v29, %v1523_v29  ;;  %4032 = vmatprep.subr.bf16.mxu1 %v5200_v0 }
 0x2f5   : > { %v1758_v31 = vsel %vm1710_vm2, %v1703_v30, 0 }
 0x2f6   : > { %4027 = vmatpush3.bf16.msra.mxu0 %v1758_v31  ;;  %v1524_v36 = vpop.trf.xlu0 }
 0x2f7   : > { %4038 = vmatprep.subr.bf16.mxu0 %v5200_v0  ;;  %v1704_v37 = vpack.c.bf16 %v1524_v36, %v1524_v36 }
 0x2f9   : > { %v1804_v40 = vsel %vm1710_vm2, %v1704_v37, 0 }
 0x2fa   : > { %v1525_v38 = vpop.trf.xlu0 }
 0x2fb   : > { %v1705_v42 = vpack.c.bf16 %v1525_v38, %v1525_v38 }
 0x2fd   : > { %v1850_v45 = vsel %vm1710_vm2, %v1705_v42, 0 }
 0x35b   : > { %v1586_v39 = vpop.trf.xlu1 }
 0x35c   : > { %v1698_v41 = vpack.c.bf16 %v1586_v39, %v1586_v39  ;;  %v3862_v39 = vld [vmem:[#allocation11] ss:$0 sm:$0xff] }
 0x35e   : > { %4023 = vmatmul.mubr.msk.bf16.vlgmr.msra.gmra.mxu1 %vm1706_vm3, %v1698_v41 }
 0x35f   : > { %4033 = vmatpush3.bf16.msra.mxu1 %v1804_v40  ;;  %v1618_v43 = vpop.trf.xlu1  ;;  %4034 = vmatprep.mubr.msk.bf16.mxu1 %vm5201_vm0, %v5200_v0  ;;  %v1469_v40 = vadd.f32 %v3862_v39, %v5727_v32 }
 0x360   : > { %v1699_v44 = vpack.c.bf16 %v1618_v43, %v1618_v43  ;;  %4044 = vmatprep.subr.bf16.mxu1 %v5200_v0 }
 0x362   : > { %4029 = vmatmul.mubr.msk.bf16.vlgmr.msra.gmra.mxu0 %vm1706_vm3, %v1699_v44 }
 0x363   : > { %v1650_v46 = vpop.trf.xlu1  ;;  %4039 = vmatpush3.bf16.msra.mxu0 %v1850_v45  ;;  %4040 = vmatprep.mubr.msk.bf16.mxu0 %vm5201_vm0, %v5200_v0 }
 0x364   : > { %v1700_v47 = vpack.c.bf16 %v1650_v46, %v1650_v46  ;;  %4050 = vmatprep.subr.bf16.mxu0 %v5200_v0 }
 0x366   : > { %4035 = vmatmul.mubr.msk.bf16.vlgmr.msra.gmra.mxu1 %vm1706_vm3, %v1700_v47 }
 0x367   : > { %v1682_v48 = vpop.trf.xlu1  ;;  %4046 = vmatprep.mubr.msk.bf16.mxu1 %vm5201_vm0, %v5200_v0 }
 0x368   : > { %v1701_v49 = vpack.c.bf16 %v1682_v48, %v1682_v48 }
 0x36a   : > { %4041 = vmatmul.mubr.msk.bf16.vlgmr.msra.gmra.mxu0 %vm1706_vm3, %v1701_v49 }
 0x36b   : > { %4052 = vmatprep.mubr.msk.bf16.mxu0 %vm5201_vm0, %v5200_v0 }
 0x41e   : > { %v1748_v51 = vpop.f32.mrf.mxu1 }
 0x41f   : > { %v1898_v53 = vadd.f32 %v3870_v50, %v1748_v51 }
 0x420   : > { %v4024_v54 = vpop.f32.mrf.mxu1 }
 0x421   : > { %v1903_v55 = vadd.f32 %v1902_v52, %v1898_v53 }
 0x422   : > { %v1751_v56 = vpop.f32.mrf.mxu1  ;;  %v1794_v57 = vpop.f32.mrf.mxu0 }
 0x423   : > { %v1899_v58 = vadd.f32 %v3870_v50, %v1794_v57  ;;  %v1907_v59 = vsel %vm1706_vm3, %v1903_v55, -inf }
 0x424   : > { %1908 = vmax.xlane.f32.xlu1 %v1907_v59  ;;  %v4025_v60 = vpop.f32.mrf.mxu1  ;;  %v4030_v61 = vpop.f32.mrf.mxu0 }
 0x425   : > { %v1904_v62 = vadd.f32 %v1902_v52, %v1899_v58 }
 0x426   : > { %v1797_v63 = vpop.f32.mrf.mxu0  ;;  %v1840_v1 = vpop.f32.mrf.mxu1 }
 0x427   : > { %v1900_v2 = vadd.f32 %v3870_v50, %v1840_v1  ;;  %v1910_v4 = vsel %vm1706_vm3, %v1904_v62, -inf }
 0x428   : > { %v4036_v5 = vpop.f32.mrf.mxu1  ;;  %1911 = vmax.xlane.f32.xlu0 %v1910_v4  ;;  %v4031_v6 = vpop.f32.mrf.mxu0 }
 0x429   : > { %v1905_v7 = vadd.f32 %v1902_v52, %v1900_v2  ;;  %v4457_v6 = vld [vmem:[#allocation13 + $0x8] sm:$0xff]  }
 0x42a   : > { %v1843_v8 = vpop.f32.mrf.mxu1  ;;  %v1886_v9 = vpop.f32.mrf.mxu0 }
 0x42b   : > { %v1901_v10 = vadd.f32 %v3870_v50, %v1886_v9  ;;  %v1913_v11 = vsel %vm1706_vm3, %v1905_v7, -inf }
 0x42c   : > { %1914 = vmax.xlane.f32.xlu1 %v1913_v11  ;;  %v4037_v12 = vpop.f32.mrf.mxu1  ;;  %v4042_v13 = vpop.f32.mrf.mxu0 }
 0x42d   : > { %v1906_v14 = vadd.f32 %v1902_v52, %v1901_v10 }
 0x42e   : > { %v1889_v15 = vpop.f32.mrf.mxu0 }
 0x42f   : > { %v1916_v16 = vsel %vm1706_vm3, %v1906_v14, -inf }
 0x430   : > { %1917 = vmax.xlane.f32.xlu1 %v1916_v16  ;;  %v4043_v17 = vpop.f32.mrf.mxu0 }
 0x4ad   : > { %v1909_v18 = vpop.xlane.xlu1 %1908 }
 0x4ae   : > { %v1919_v19 = vsub.f32 %v1903_v55, %v1909_v18 }
 0x4b0   : > { %v1923_v20 = vmul.f32 1.442695, %v1919_v19 }
 0x4b1   : > { %v1912_v21 = vpop.xlane.xlu0 %1911 }
 0x4b2   : > { %4477 = vpow2.f32 %v1923_v20  ;;  %v1920_v22 = vsub.f32 %v1904_v62, %v1912_v21 }
 0x4b4   : > { %v1925_v23 = vmul.f32 1.442695, %v1920_v22 }
 0x4b5   : > { %v1915_v24 = vpop.xlane.xlu1 %1914 }
 0x4b6   : > { %4479 = vpow2.f32 %v1925_v23  ;;  %v1921_v25 = vsub.f32 %v1905_v7, %v1915_v24  ;;  %v4458_v7 = vld [vmem:[#allocation13] sm:$0xff]  }
 0x4b8   : > { %v1927_v26 = vmul.f32 1.442695, %v1921_v25 }
 0x4b9   : > { %v1918_v27 = vpop.xlane.xlu1 %1917 }
 0x4ba   : > { %4481 = vpow2.f32 %v1927_v26  ;;  %v1922_v28 = vsub.f32 %v1906_v14, %v1918_v27  ;;  %v3875_v26 = vld [vmem:[#allocation14] ss:$0 sm:$0xff] }
 0x4bc   : > { %v1929_v29 = vmul.f32 1.442695, %v1922_v28 }
 0x4be   : > { %4483 = vpow2.f32 %v1929_v29 }
 0x4bf   : > { %v4478_v30 = vpop.eup %4477 }
 0x4c0   : > { %v1931_v31 = vsel %vm1706_vm3, %v4478_v30, 0.0 }
 0x4c1   : > { %1932 = vadd.xlane.f32.xlu1 %v1931_v31 }
 0x4c3   : > { %v4480_v33 = vpop.eup %4479 }
 0x4c4   : > { %v1934_v34 = vsel %vm1706_vm3, %v4480_v33, 0.0 }
 0x4c5   : > { %1935 = vadd.xlane.f32.xlu1 %v1934_v34 }
 0x4c7   : > { %v4482_v35 = vpop.eup %4481 }
 0x4c8   : > { %v1937_v36 = vsel %vm1706_vm3, %v4482_v35, 0.0 }
 0x4c9   : > { %1938 = vadd.xlane.f32.xlu1 %v1937_v36 }
 0x4cb   : > { %v4484_v37 = vpop.eup %4483 }
 0x4cc   : > { %v1940_v38 = vsel %vm1706_vm3, %v4484_v37, 0.0 }
 0x4cd   : > { %1941 = vadd.xlane.f32.xlu0 %v1940_v38 }
 0x4fc   : > { %1538 = vxpose.xlu1.b32.start.end [1/1] (short) (narrow) %v1469_v40, 32  ;;  %v4459_v40 = vld [vmem:[#allocation16 + $0x8] sm:$0xff]  }
 0x54a   : > { %v1933_v41 = vpop.xlane.xlu1 %1932 }
 0x54b   : > { %4485 = vrcp.f32 %v1933_v41  ;;  %v4460_v41 = vld [vmem:[#allocation16] sm:$0xff]  }
 0x54e   : > { %v1936_v42 = vpop.xlane.xlu1 %1935 }
 0x54f   : > { %4487 = vrcp.f32 %v1936_v42  ;;  %v4462_v42 = vld [vmem:[#allocation19] sm:$0xff]  }
 0x552   : > { %v1939_v50 = vpop.xlane.xlu1 %1938 }
 0x553   : > { %4489 = vrcp.f32 %v1939_v50  ;;  %v3879_v50 = vld [vmem:[#allocation25] ss:$0 sm:$0xff] }
 0x556   : > { %v1942_v32 = vpop.xlane.xlu0 %1941 }
 0x557   : > { %4491 = vrcp.f32 %v1942_v32  ;;  %v3880_v32 = vld [vmem:[#allocation26] ss:$0 sm:$0xff] }
 0x558   : > { %v4486_v43 = vpop.eup %4485 }
 0x559   : > { %v1947_v44 = vmul.f32 %v4486_v43, %v4478_v30  ;;  %v1275_v43 = vld [vmem:[%s1272_s18] sm:$0xff] }
 0x55b   : > { %v1955_v45 = vpack.c.bf16 %v1947_v44, %v1947_v44  ;;  %v1276_v44 = vld [vmem:[%s1272_s18 + $0x8] sm:$0xff]  ;;  %s5202_s18 = smov [#allocation34]  }
 0x55c   : > { %v4488_v46 = vpop.eup %4487 }
 0x55d   : > { %v1963_v47 = vsel %vm1706_vm3, %v1955_v45, 0  ;;  %v1948_v48 = vmul.f32 %v4488_v46, %v4480_v33  ;;  %v2341_v45 = vpack.c.bf16 %v1276_v44, %v1275_v43 }
 0x55e   : > { %4045 = vmatpush3.bf16.xpose.msra.mxu1 %v1963_v47 }
 0x55f   : > { %v1956_v49 = vpack.c.bf16 %v1948_v48, %v1948_v48  ;;  %4056 = vmatprep.subr.bf16.mxu1 %v5200_v0 }
 0x560   : > { %v4490_v52 = vpop.eup %4489 }
 0x561   : > { %v2009_v51 = vsel %vm1706_vm3, %v1956_v49, 0  ;;  %v1949_v53 = vmul.f32 %v4490_v52, %v4482_v35 }
 0x562   : > { %4051 = vmatpush3.bf16.xpose.msra.mxu0 %v2009_v51 }
 0x563   : > { %4062 = vmatprep.subr.bf16.mxu0 %v5200_v0  ;;  %v1957_v55 = vpack.c.bf16 %v1949_v53, %v1949_v53 }
 0x564   : > { %v4492_v54 = vpop.eup %4491 }
 0x565   : > { %v1950_v56 = vmul.f32 %v4492_v54, %v4484_v37  ;;  %v2055_v59 = vsel %vm1706_vm3, %v1957_v55, 0  ;;  %v3885_v55 = vld [vmem:[#allocation20] ss:$0 sm:$0xff] }
 0x567   : > { %v1958_v60 = vpack.c.bf16 %v1950_v56, %v1950_v56 }
 0x569   : > { %v2101_v63 = vsel %vm1706_vm3, %v1958_v60, 0 }
 0x578   : > { %v1554_v57 = vpop.trf.xlu1 }
 0x579   : > { %v1951_v58 = vpack.c.bf16 %v1554_v57, %v1554_v57 }
 0x57b   : > { %4047 = vmatmul.mubr.msk.bf16.vlgmr.msra.gmra.mxu1 %vm1706_vm3, %v1951_v58 }
 0x57c   : > { %4057 = vmatpush3.bf16.xpose.msra.mxu1 %v2055_v59  ;;  %v1555_v61 = vpop.trf.xlu1  ;;  %4058 = vmatprep.mubr.msk.bf16.mxu1 %vm5201_vm0, %v5200_v0 }
 0x57d   : > { %v1952_v62 = vpack.c.bf16 %v1555_v61, %v1555_v61  ;;  %4068 = vmatprep.subr.bf16.mxu1 %v5200_v0 }
 0x57f   : > { %4053 = vmatmul.mubr.msk.bf16.vlgmr.msra.gmra.mxu0 %vm1706_vm3, %v1952_v62  ;;  %v3881_v62 = vld [vmem:[#allocation17] ss:$0 sm:$0xff] }
 0x580   : > { %4063 = vmatpush3.bf16.xpose.msra.mxu0 %v2101_v63  ;;  %v1556_v1 = vpop.trf.xlu1  ;;  %4064 = vmatprep.mubr.msk.bf16.mxu0 %vm5201_vm0, %v5200_v0 }
 0x581   : > { %v1953_v2 = vpack.c.bf16 %v1556_v1, %v1556_v1  ;;  %4076 = vmatprep.subr.bf16.mxu0 %v5200_v0 }
 0x583   : > { %4059 = vmatmul.mubr.msk.bf16.vlgmr.msra.gmra.mxu1 %vm1706_vm3, %v1953_v2 }
 0x584   : > { %v1557_v4 = vpop.trf.xlu1  ;;  %4072 = vmatprep.mubr.msk.bf16.mxu1 %vm5201_vm0, %v5200_v0  ;;  %4069 = vmatpush3.bf16.msra.mxu1 %v4457_v6 }
 0x585   : > { %v1954_v5 = vpack.c.bf16 %v1557_v4, %v1557_v4  ;;  %4070 = vmatprep.subr.bf16.mxu1 %v5200_v0 }
 0x587   : > { %4065 = vmatmul.mubr.msk.bf16.vlgmr.msra.gmra.mxu0 %vm1706_vm3, %v1954_v5 }
 0x588   : > { %4080 = vmatprep.mubr.msk.bf16.mxu0 %vm5201_vm0, %v5200_v0  ;;  %4071 = vmatpush3.bf16.msra.mxu1 %v4458_v7  ;;  %v4463_v7 = vld [vmem:[#allocation22 + $0x8] sm:$0xff]  }
 0x589   : > { %4084 = vmatprep.subr.bf16.mxu1 %v5200_v0  ;;  %4077 = vmatpush3.bf16.msra.mxu0 %v4459_v40 }
 0x58a   : > { %4078 = vmatprep.subr.bf16.mxu0 %v5200_v0 }
 0x58d   : > { %4079 = vmatpush3.bf16.msra.mxu0 %v4460_v41 }
 0x58e   : > { %4092 = vmatprep.subr.bf16.mxu0 %v5200_v0 }
 0x63b   : > { %v1999_v8 = vpop.f32.mrf.mxu1 }
 0x63c   : > { %2143 = vxpose.xlu0.b32.start [1/4] (short) (narrow) %v1999_v8, 8 }
 0x63d   : > { %v4048_v9 = vpop.f32.mrf.mxu1 }
 0x63f   : > { %v2002_v10 = vpop.f32.mrf.mxu1  ;;  %v2045_v11 = vpop.f32.mrf.mxu0 }
 0x640   : > { %2144 = vxpose.xlu0.b32.cont [2/4] (short) (narrow) %v2045_v11, 8  ;;  %v4464_v10 = vld [vmem:[#allocation22] sm:$0xff]  }
 0x641   : > { %v4049_v12 = vpop.f32.mrf.mxu1  ;;  %v4054_v13 = vpop.f32.mrf.mxu0 }
 0x643   : > { %v2048_v14 = vpop.f32.mrf.mxu0  ;;  %v2091_v15 = vpop.f32.mrf.mxu1 }
 0x644   : > { %2145 = vxpose.xlu0.b32.cont [3/4] (short) (narrow) %v2091_v15, 8 }
 0x645   : > { %v4055_v16 = vpop.f32.mrf.mxu0  ;;  %v4060_v17 = vpop.f32.mrf.mxu1 }
 0x647   : > { %v2094_v18 = vpop.f32.mrf.mxu1  ;;  %v2137_v19 = vpop.f32.mrf.mxu0 }
 0x648   : > { %2146 = vxpose.xlu0.b32.end [4/4] (short) (narrow) %v2137_v19, 8 }
 0x649   : > { %v4061_v20 = vpop.f32.mrf.mxu1  ;;  %v4066_v21 = vpop.f32.mrf.mxu0 }
 0x64b   : > { %v2140_v22 = vpop.f32.mrf.mxu0 }
 0x64d   : > { %v4067_v23 = vpop.f32.mrf.mxu0 }
 0x6b8   : > { %v2159_v24 = vpop.trf.xlu0 }
 0x6b9   : > { %v2175_v25 = vpack.c.bf16 %v2159_v24, %v2159_v24 }
 0x6bb   : > { %4073 = vmatmul.mubr.msk.bf16.vlgmr.msra.gmra.mxu1 %vm1303_vm1, %v2175_v25 }
 0x6bc   : > { %4088 = vmatprep.mubr.msk.bf16.mxu1 %vm5201_vm0, %v5200_v0 }
 0x77b   : > { %v2236_v27 = vpop.f32.mrf.mxu1 }
 0x77c   : > { %v2237_v28 = vadd.f32 %v3875_v26, %v2236_v27 }
 0x77d   : > { %v4074_v29 = vpop.f32.mrf.mxu1 }
 0x77e   : > { %v2242_v30 = vadd.f32 %v2237_v28, %v5700_v3  ;;  %v4461_v3 = vld [vmem:[#allocation19 + $0x8] sm:$0xff]  }
 0x77f   : > { %v2239_v31 = vpop.f32.mrf.mxu1  ;;  %4085 = vmatpush3.bf16.msra.mxu1 %v4461_v3 }
 0x780   : > { %v2245_v33 = vsel %vm1303_vm1, %v2242_v30, 0.0  ;;  %4086 = vmatprep.subr.bf16.mxu1 %v5200_v0 }
 0x781   : > { %2246 = vadd.xlane.f32.xlu1 %v2245_v33  ;;  %v4075_v34 = vpop.f32.mrf.mxu1 }
 0x783   : > { %4087 = vmatpush3.bf16.msra.mxu1 %v4462_v42 }
 0x784   : > { %4100 = vmatprep.subr.bf16.mxu1 %v5200_v0 }
 0x786   : > { %4089 = vmatmul.mubr.msk.bf16.vlgmr.msra.gmra.mxu1 %vm1303_vm1, %v2341_v45 }
 0x787   : > { %4102 = vmatprep.mubr.msk.bf16.mxu1 %vm5201_vm0, %v5200_v0 }
 0x80a   : > { %v2247_v35 = vpop.xlane.xlu1 %2246 }
 0x80b   : > { %v2249_v36 = vmul.f32 0.03125, %v2247_v35 }
 0x80d   : > { %v2250_v37 = vsub.f32 %v2242_v30, %v2249_v36 }
 0x80f   : > { %v2251_v38 = vmul.f32 %v2250_v37, %v2250_v37 }
 0x811   : > { %v2252_v39 = vsel %vm1303_vm1, %v2251_v38, 0.0  ;;  %v3897_v38 = vld [vmem:[%s1105_s29] ss:$0 sm:$0xff]  ;;  %s3850_s29 = sshll.u32 %s5642_s9, 3 }
 0x812   : > { %2253 = vadd.xlane.f32.xlu0 %v2252_v39  ;;  %s1263_s14 = scalar_lea.vmem [#allocation34], %s3850_s29 }
 0x813   : > { %s3495_s16 = sshll.u32 %s1263_s14, 4  ;;  %s3496_s16 = int_to_ptr.vmem [resolvable:$true] %s3495_s16 }
 0x814   : > { %s5041_s4 = scalar_lea.vmem %s3496_s16, 128 }
 0x815   : > { %p5042_p13 = scmp.ne.s32.totalorder %s3496_s16, %s5041_s4 }
 0x817   : > { %p5043_p12 = pnand %p5042_p13, %p6034_p11 }
 0x819   : > { %p5044_p8 = pneg %p5043_p12 }
 0x846   : > { %v2402_v56 = vpop.f32.mrf.mxu1 }
 0x847   : > { %v2403_v57 = vadd.f32 %v3885_v55, %v2402_v56 }
 0x848   : > { %v4090_v58 = vpop.f32.mrf.mxu1 }
 0x849   : > { %2505 = vxpose.xlu0.b32.start [1/2] (short) (narrow) %v2403_v57, 32 }
 0x84a   : > { %v2405_v59 = vpop.f32.mrf.mxu1 }
 0x84b   : > { %v2406_v60 = vadd.f32 %v3885_v55, %v2405_v59 }
 0x84c   : > { %v4091_v61 = vpop.f32.mrf.mxu1 }
 0x84d   : > { %2506 = vxpose.xlu0.b32.end [2/2] (short) (narrow) %v2406_v60, 32 }
 0x89b   : > { %v2254_v46 = vpop.xlane.xlu0 %2253 }
 0x89c   : > { %v2255_v47 = vmul.f32 0.03125, %v2254_v46 }
 0x89e   : > { %v2256_v48 = vadd.f32 1e-05, %v2255_v47 }
 0x8a0   : > { %4493 = vrsqrt.f32 %v2256_v48 }
 0x8ad   : > { %v4494_v49 = vpop.eup %4493 }
 0x8ae   : > { %v2258_v51 = vmul.f32 %v4494_v49, %v2250_v37 }
 0x8b0   : > { %v2265_v52 = vmul.f32 %v3879_v50, %v2258_v51 }
 0x8b2   : > { %v5793_v53 = vadd.f32 %v3880_v32, %v2265_v52 }
 0x8b4   : > { %v2273_v54 = vpack.c.bf16 %v5793_v53, %v5793_v53 }
 0x8b6   : > { %4081 = vmatmul.mubr.msk.bf16.vlgmr.msra.gmra.mxu0 %vm1303_vm1, %v2273_v54 }
 0x8b7   : > { %4096 = vmatprep.mubr.msk.bf16.mxu0 %vm5201_vm0, %v5200_v0  ;;  %4093 = vmatpush3.bf16.msra.mxu0 %v4463_v7 }
 0x8b8   : > { %4094 = vmatprep.subr.bf16.mxu0 %v5200_v0 }
 0x8bb   : > { %4095 = vmatpush3.bf16.msra.mxu0 %v4464_v10 }
 0x8bc   : > { %4106 = vmatprep.subr.bf16.mxu0 %v5200_v0 }
 0x8be   : > { %4097 = vmatmul.mubr.msk.bf16.vlgmr.msra.gmra.mxu0 %vm1303_vm1, %v2341_v45 }
 0x8bf   : > { %4108 = vmatprep.mubr.msk.bf16.mxu0 %vm5201_vm0, %v5200_v0 }
 0x8c5   : > { %v2521_v8 = vpop.trf.xlu0 }
 0x8c6   : > { %v2701_v9 = vpack.c.bf16 %v2521_v8, %v2521_v8 }
 0x8c8   : > { %v2709_v11 = vsel %vm1710_vm2, %v2701_v9, 0 }
 0x8c9   : > { %4101 = vmatpush3.bf16.msra.mxu1 %v2709_v11  ;;  %v2522_v12 = vpop.trf.xlu0 }
 0x8ca   : > { %v2702_v13 = vpack.c.bf16 %v2522_v12, %v2522_v12  ;;  %4112 = vmatprep.subr.bf16.mxu1 %v5200_v0 }
 0x8cc   : > { %v2755_v14 = vsel %vm1710_vm2, %v2702_v13, 0 }
 0x8cd   : > { %4107 = vmatpush3.bf16.msra.mxu0 %v2755_v14  ;;  %v2523_v23 = vpop.trf.xlu0 }
 0x8ce   : > { %4118 = vmatprep.subr.bf16.mxu0 %v5200_v0  ;;  %v2703_v25 = vpack.c.bf16 %v2523_v23, %v2523_v23 }
 0x8d0   : > { %v2801_v28 = vsel %vm1710_vm2, %v2703_v25, 0 }
 0x8d1   : > { %v2524_v24 = vpop.trf.xlu0 }
 0x8d2   : > { %v2704_v29 = vpack.c.bf16 %v2524_v24, %v2524_v24 }
 0x8d4   : > { %v2847_v33 = vsel %vm1710_vm2, %v2704_v29, 0 }
 0x976   : > { %v2334_v63 = vpop.f32.mrf.mxu0 }
 0x977   : > { %v2335_v1 = vadd.f32 %v3881_v62, %v2334_v63 }
 0x978   : > { %v4082_v2 = vpop.f32.mrf.mxu0 }
 0x979   : > { %v2340_v4 = vmul.f32 0.35355338, %v2335_v1 }
 0x97a   : > { %v2337_v5 = vpop.f32.mrf.mxu0 }
 0x97b   : > { %2473 = vxpose.xlu1.b32.start.end [1/1] (short) (narrow) %v2340_v4, 32 }
 0x97c   : > { %v4083_v6 = vpop.f32.mrf.mxu0 }
 0x97e   : > { %v5809_v19 = vpop.f32.mrf.mxu0 }
 0x980   : > { %v4098_v20 = vpop.f32.mrf.mxu0 }
 0x982   : > { %v5811_v21 = vpop.f32.mrf.mxu0 }
 0x984   : > { %v4099_v22 = vpop.f32.mrf.mxu0 }
 0x985   : > { %v3889_v22 = vld [vmem:[#allocation23] ss:$0 sm:$0xff] }
 0x986   : > { %v2467_v23 = vadd.f32 %v3889_v22, %v5809_v19  ;;  %v2470_v24 = vadd.f32 %v3889_v22, %v5811_v21 }
 0x9f7   : > { %v2489_v15 = vpop.trf.xlu1 }
 0x9f8   : > { %2569 = vxpose.xlu1.b32.start.end [1/1] (short) (narrow) %v2489_v15, 8 }
 0x9fb   : > { %v2490_v16 = vpop.trf.xlu1 }
 0x9fc   : > { %2601 = vxpose.xlu0.b32.start.end [1/1] (short) (narrow) %v2490_v16, 8 }
 0x9ff   : > { %v2491_v17 = vpop.trf.xlu1 }
 0xa00   : > { %2633 = vxpose.xlu0.b32.start.end [1/1] (short) (narrow) %v2491_v17, 8 }
 0xa03   : > { %v2492_v18 = vpop.trf.xlu1 }
 0xa04   : > { %2665 = vxpose.xlu1.b32.start.end [1/1] (short) (narrow) %v2492_v18, 8 }
 0xa74   : > { %v2585_v26 = vpop.trf.xlu1 }
 0xa75   : > { %v2697_v27 = vpack.c.bf16 %v2585_v26, %v2585_v26 }
 0xa77   : > { %4103 = vmatmul.mubr.msk.bf16.vlgmr.msra.gmra.mxu1 %vm1706_vm3, %v2697_v27 }
 0xa78   : > { %4113 = vmatpush3.bf16.msra.mxu1 %v2801_v28  ;;  %v2617_v30 = vpop.trf.xlu0  ;;  %4114 = vmatprep.mubr.msk.bf16.mxu1 %vm5201_vm0, %v5200_v0 }
 0xa79   : > { %v2698_v31 = vpack.c.bf16 %v2617_v30, %v2617_v30  ;;  %4124 = vmatprep.subr.bf16.mxu1 %v5200_v0 }
 0xa7b   : > { %4109 = vmatmul.mubr.msk.bf16.vlgmr.msra.gmra.mxu0 %vm1706_vm3, %v2698_v31 }
 0xa7c   : > { %4119 = vmatpush3.bf16.msra.mxu0 %v2847_v33  ;;  %v2649_v34 = vpop.trf.xlu0  ;;  %4120 = vmatprep.mubr.msk.bf16.mxu0 %vm5201_vm0, %v5200_v0 }
 0xa7d   : > { %v2699_v35 = vpack.c.bf16 %v2649_v34, %v2649_v34  ;;  %4130 = vmatprep.subr.bf16.mxu0 %v5200_v0 }
 0xa7f   : > { %4115 = vmatmul.mubr.msk.bf16.vlgmr.msra.gmra.mxu1 %vm1706_vm3, %v2699_v35 }
 0xa80   : > { %v2681_v36 = vpop.trf.xlu1  ;;  %4126 = vmatprep.mubr.msk.bf16.mxu1 %vm5201_vm0, %v5200_v0 }
 0xa81   : > { %v2700_v37 = vpack.c.bf16 %v2681_v36, %v2681_v36 }
 0xa83   : > { %4121 = vmatmul.mubr.msk.bf16.vlgmr.msra.gmra.mxu0 %vm1706_vm3, %v2700_v37 }
 0xa84   : > { %4132 = vmatprep.mubr.msk.bf16.mxu0 %vm5201_vm0, %v5200_v0 }
 0xb37   : > { %v2745_v39 = vpop.f32.mrf.mxu1 }
 0xb38   : > { %v2895_v40 = vadd.f32 %v3897_v38, %v2745_v39 }
 0xb39   : > { %v4104_v41 = vpop.f32.mrf.mxu1 }
 0xb3a   : > { %v2900_v3 = vsel %vm2899_vm4, %v2895_v40, -inf }
 0xb3b   : > { %2901 = vmax.xlane.f32.xlu0 %v2900_v3  ;;  %v2748_v42 = vpop.f32.mrf.mxu1  ;;  %v2791_v43 = vpop.f32.mrf.mxu0 }
 0xb3c   : > { %v2896_v44 = vadd.f32 %v3897_v38, %v2791_v43 }
 0xb3d   : > { %v4105_v45 = vpop.f32.mrf.mxu1  ;;  %v4110_v46 = vpop.f32.mrf.mxu0 }
 0xb3e   : > { %v2903_v47 = vsel %vm2899_vm4, %v2896_v44, -inf }
 0xb3f   : > { %v2837_v48 = vpop.f32.mrf.mxu1  ;;  %2904 = vmax.xlane.f32.xlu1 %v2903_v47  ;;  %v2794_v49 = vpop.f32.mrf.mxu0 }
 0xb40   : > { %v2897_v50 = vadd.f32 %v3897_v38, %v2837_v48 }
 0xb41   : > { %v4111_v51 = vpop.f32.mrf.mxu0  ;;  %v4116_v32 = vpop.f32.mrf.mxu1 }
 0xb42   : > { %v2906_v52 = vsel %vm2899_vm4, %v2897_v50, -inf  ;;  %v4465_v51 = vld [vmem:[%s6028_s6 + $0x8] sm:$0xff]   ;;  %v4466_v32 = vld [vmem:[%s6028_s6] sm:$0xff]  }
 0xb43   : > { %v2840_v54 = vpop.f32.mrf.mxu1  ;;  %2907 = vmax.xlane.f32.xlu1 %v2906_v52  ;;  %v2883_v55 = vpop.f32.mrf.mxu0 }
 0xb44   : > { %v2898_v56 = vadd.f32 %v3897_v38, %v2883_v55 }
 0xb45   : > { %v4117_v57 = vpop.f32.mrf.mxu1  ;;  %v4122_v58 = vpop.f32.mrf.mxu0 }
 0xb46   : > { %v2909_v59 = vsel %vm2899_vm4, %v2898_v56, -inf }
 0xb47   : > { %2910 = vmax.xlane.f32.xlu0 %v2909_v59  ;;  %v2886_v60 = vpop.f32.mrf.mxu0 }
 0xb49   : > { %v4123_v61 = vpop.f32.mrf.mxu0 }
 0xbc4   : > { %v2902_v62 = vpop.xlane.xlu0 %2901 }
 0xbc5   : > { %v2912_v63 = vsub.f32 %v2895_v40, %v2902_v62 }
 0xbc7   : > { %v2916_v1 = vmul.f32 1.442695, %v2912_v63 }
 0xbc8   : > { %v2905_v2 = vpop.xlane.xlu1 %2904 }
 0xbc9   : > { %4495 = vpow2.f32 %v2916_v1  ;;  %v2913_v4 = vsub.f32 %v2896_v44, %v2905_v2 }
 0xbcb   : > { %v2918_v5 = vmul.f32 1.442695, %v2913_v4 }
 0xbcc   : > { %v2908_v6 = vpop.xlane.xlu1 %2907 }
 0xbcd   : > { %4497 = vpow2.f32 %v2918_v5  ;;  %v2914_v7 = vsub.f32 %v2897_v50, %v2908_v6 }
 0xbcf   : > { %v2920_v8 = vmul.f32 1.442695, %v2914_v7 }
 0xbd0   : > { %v2911_v9 = vpop.xlane.xlu0 %2910 }
 0xbd1   : > { %4499 = vpow2.f32 %v2920_v8  ;;  %v2915_v10 = vsub.f32 %v2898_v56, %v2911_v9  ;;  %v3902_v9 = vld [vmem:[%s6029_s17] ss:$0 sm:$0xff]  ;;  %s5045_s17 = sshll.u32 %s5202_s18, 4  ;;  %s5046_s17 = int_to_ptr.vmem [resolvable:$false] %s5045_s17 }
 0xbd2   : > { %p5048_p4 = scmp.lt.s32.totalorder %s3496_s16, %s5046_s17 }
 0xbd3   : > { %v2922_v11 = vmul.f32 1.442695, %v2915_v10 }
 0xbd5   : > { %4501 = vpow2.f32 %v2922_v11 }
 0xbd6   : > { %v4496_v12 = vpop.eup %4495 }
 0xbd7   : > { %v2924_v13 = vsel %vm2899_vm4, %v4496_v12, 0.0 }
 0xbd8   : > { %2925 = vadd.xlane.f32.xlu1 %v2924_v13 }
 0xbda   : > { %v4498_v14 = vpop.eup %4497 }
 0xbdb   : > { %v2927_v15 = vsel %vm2899_vm4, %v4498_v14, 0.0 }
 0xbdc   : > { %2928 = vadd.xlane.f32.xlu0 %v2927_v15 }
 0xbde   : > { %v4500_v16 = vpop.eup %4499 }
 0xbdf   : > { %v2930_v17 = vsel %vm2899_vm4, %v4500_v16, 0.0 }
 0xbe0   : > { %2931 = vadd.xlane.f32.xlu1 %v2930_v17 }
 0xbe2   : > { %v4502_v18 = vpop.eup %4501 }
 0xbe3   : > { %v2933_v20 = vsel %vm2899_vm4, %v4502_v18, 0.0 }
 0xbe4   : > { %2934 = vadd.xlane.f32.xlu0 %v2933_v20 }
 0xc13   : > { %2537 = vxpose.xlu1.b32.start [1/2] (short) (narrow) %v2467_v23, 32 }
 0xc17   : > { %2538 = vxpose.xlu1.b32.end [2/2] (short) (narrow) %v2470_v24, 32  ;;  %v4467_v24 = vld [vmem:[%s6030_s11 + $0x8] sm:$0xff]  }
 0xc61   : > { %v2926_v25 = vpop.xlane.xlu1 %2925 }
 0xc62   : > { %4503 = vrcp.f32 %v2926_v25  ;;  %v4468_v25 = vld [vmem:[%s6030_s11] sm:$0xff]  }
 0xc65   : > { %v2929_v26 = vpop.xlane.xlu0 %2928 }
 0xc66   : > { %4505 = vrcp.f32 %v2929_v26  ;;  %v4470_v26 = vld [vmem:[%s5356_s25 + $0x30] sm:$0xff]  }
 0xc69   : > { %v2932_v19 = vpop.xlane.xlu1 %2931 }
 0xc6a   : > { %4507 = vrcp.f32 %v2932_v19 }
 0xc6d   : > { %v2935_v21 = vpop.xlane.xlu0 %2934 }
 0xc6e   : > { %4509 = vrcp.f32 %v2935_v21 }
 0xc6f   : > { %v4504_v27 = vpop.eup %4503 }
 0xc70   : > { %v2940_v28 = vmul.f32 %v4504_v27, %v4496_v12 }
 0xc72   : > { %v2948_v29 = vpack.c.bf16 %v2940_v28, %v2940_v28 }
 0xc73   : > { %v4506_v30 = vpop.eup %4505 }
 0xc74   : > { %v2956_v31 = vsel %vm2899_vm4, %v2948_v29, 0  ;;  %v2941_v33 = vmul.f32 %v4506_v30, %v4498_v14 }
 0xc75   : > { %4125 = vmatpush3.bf16.xpose.msra.mxu1 %v2956_v31  ;;  %v3906_v31 = vld [vmem:[#allocation28] ss:$0 sm:$0xff] }
 0xc76   : > { %v2949_v34 = vpack.c.bf16 %v2941_v33, %v2941_v33  ;;  %4136 = vmatprep.subr.bf16.mxu1 %v5200_v0 }
 0xc77   : > { %v4508_v36 = vpop.eup %4507 }
 0xc78   : > { %v3002_v35 = vsel %vm2899_vm4, %v2949_v34, 0  ;;  %v2942_v37 = vmul.f32 %v4508_v36, %v4500_v16  ;;  %v3907_v34 = vld [vmem:[#allocation29] ss:$0 sm:$0xff]  ;;  %v4471_v36 = vld [vmem:[%s5356_s25 + $0x28] sm:$0xff]  }
 0xc79   : > { %4131 = vmatpush3.bf16.xpose.msra.mxu0 %v3002_v35 }
 0xc7a   : > { %4142 = vmatprep.subr.bf16.mxu0 %v5200_v0  ;;  %v2950_v39 = vpack.c.bf16 %v2942_v37, %v2942_v37  ;;  %v4472_v37 = vld [vmem:[%s5356_s25 + $0x20] sm:$0xff]  }
 0xc7b   : > { %v4510_v38 = vpop.eup %4509 }
 0xc7c   : > { %v2943_v40 = vmul.f32 %v4510_v38, %v4502_v18  ;;  %v3048_v42 = vsel %vm2899_vm4, %v2950_v39, 0  ;;  %v4473_v38 = vld [vmem:[%s5356_s25 + $0x18] sm:$0xff]   ;;  %v4474_v39 = vld [vmem:[%s5356_s25 + $0x10] sm:$0xff]  }
 0xc7e   : > { %v2951_v43 = vpack.c.bf16 %v2943_v40, %v2943_v40  ;;  %v4475_v40 = vld [vmem:[%s5356_s25 + $0x8] sm:$0xff]  }
 0xc80   : > { %v3094_v46 = vsel %vm2899_vm4, %v2951_v43, 0 }
 0xc8f   : > { %v2553_v41 = vpop.trf.xlu1 }
 0xc90   : > { %v2944_v3 = vpack.c.bf16 %v2553_v41, %v2553_v41  ;;  %v4476_v41 = vld [vmem:[%s5356_s25] sm:$0xff]  }
 0xc92   : > { %4127 = vmatmul.mubr.msk.bf16.vlgmr.msra.gmra.mxu1 %vm2899_vm4, %v2944_v3  ;;  %v3908_v3 = vld [vmem:[%s6031_s3] ss:$0 sm:$0xff]  ;;  %s5047_s3 = scalar_lea.vmem %s5046_s17, 256 }
 0xc93   : > { %4137 = vmatpush3.bf16.xpose.msra.mxu1 %v3048_v42  ;;  %v2554_v44 = vpop.trf.xlu1  ;;  %4138 = vmatprep.mubr.msk.bf16.mxu1 %vm5201_vm0, %v5200_v0  ;;  %p5049_p9 = scmp.lt.s32.totalorder %s5047_s3, %s5041_s4 }
 0xc94   : > { %v2945_v45 = vpack.c.bf16 %v2554_v44, %v2554_v44  ;;  %4148 = vmatprep.subr.bf16.mxu1 %v5200_v0 }
 0xc95   : > { %p5050_p5 = por %p5049_p9, %p5048_p4 }
 0xc96   : > { %4133 = vmatmul.mubr.msk.bf16.vlgmr.msra.gmra.mxu0 %vm2899_vm4, %v2945_v45 }
 0xc97   : > { %4143 = vmatpush3.bf16.xpose.msra.mxu0 %v3094_v46  ;;  %v2555_v47 = vpop.trf.xlu1  ;;  %4144 = vmatprep.mubr.msk.bf16.mxu0 %vm5201_vm0, %v5200_v0  ;;  %p5051_p0 = pnand %p5050_p5, %p5044_p8 }
 0xc98   : > { %v2946_v48 = vpack.c.bf16 %v2555_v47, %v2555_v47  ;;  %4156 = vmatprep.subr.bf16.mxu0 %v5200_v0 }
 0xc9a   : > { %4139 = vmatmul.mubr.msk.bf16.vlgmr.msra.gmra.mxu1 %vm2899_vm4, %v2946_v48 }
 0xc9b   : > { %v2556_v49 = vpop.trf.xlu1  ;;  %4152 = vmatprep.mubr.msk.bf16.mxu1 %vm5201_vm0, %v5200_v0  ;;  %4149 = vmatpush3.bf16.msra.mxu1 %v4465_v51 }
 0xc9c   : > { %v2947_v50 = vpack.c.bf16 %v2556_v49, %v2556_v49  ;;  %4150 = vmatprep.subr.bf16.mxu1 %v5200_v0 }
 0xc9e   : > { %4145 = vmatmul.mubr.msk.bf16.vlgmr.msra.gmra.mxu0 %vm2899_vm4, %v2947_v50 }
 0xc9f   : > { %4160 = vmatprep.mubr.msk.bf16.mxu0 %vm5201_vm0, %v5200_v0  ;;  %4151 = vmatpush3.bf16.msra.mxu1 %v4466_v32 }
 0xca0   : > { %4164 = vmatprep.subr.bf16.mxu1 %v5200_v0  ;;  %4157 = vmatpush3.bf16.msra.mxu0 %v4467_v24 }
 0xca1   : > { %4158 = vmatprep.subr.bf16.mxu0 %v5200_v0 }
 0xca4   : > { %4159 = vmatpush3.bf16.msra.mxu0 %v4468_v25 }
 0xd52   : > { %v2992_v52 = vpop.f32.mrf.mxu1 }
 0xd53   : > { %3136 = vxpose.xlu0.b32.start [1/4] (short) (narrow) %v2992_v52, 8  ;;  %v3912_v52 = vld [vmem:[%s6032_s19] ss:$0 sm:$0xff] }
 0xd54   : > { %v4128_v54 = vpop.f32.mrf.mxu1 }
 0xd56   : > { %v2995_v55 = vpop.f32.mrf.mxu1  ;;  %v3038_v56 = vpop.f32.mrf.mxu0 }
 0xd57   : > { %3137 = vxpose.xlu0.b32.cont [2/4] (short) (narrow) %v3038_v56, 8 }
 0xd58   : > { %v4129_v57 = vpop.f32.mrf.mxu1  ;;  %v4134_v58 = vpop.f32.mrf.mxu0 }
 0xd5a   : > { %v3041_v59 = vpop.f32.mrf.mxu0  ;;  %v3084_v60 = vpop.f32.mrf.mxu1 }
 0xd5b   : > { %3138 = vxpose.xlu0.b32.cont [3/4] (short) (narrow) %v3084_v60, 8 }
 0xd5c   : > { %v4135_v61 = vpop.f32.mrf.mxu0  ;;  %v4140_v62 = vpop.f32.mrf.mxu1 }
 0xd5e   : > { %v3087_v63 = vpop.f32.mrf.mxu1  ;;  %v3130_v1 = vpop.f32.mrf.mxu0 }
 0xd5f   : > { %3139 = vxpose.xlu0.b32.end [4/4] (short) (narrow) %v3130_v1, 8 }
 0xd60   : > { %v4141_v2 = vpop.f32.mrf.mxu1  ;;  %v4146_v4 = vpop.f32.mrf.mxu0 }
 0xd62   : > { %v3133_v5 = vpop.f32.mrf.mxu0 }
 0xd64   : > { %v4147_v6 = vpop.f32.mrf.mxu0 }
 0xdcf   : > { %v3152_v7 = vpop.trf.xlu0 }
 0xdd0   : > { %v3168_v8 = vpack.c.bf16 %v3152_v7, %v3152_v7  ;;  %v3921_v7 = vld [vmem:[#allocation31] ss:$0 sm:$0xff] }
 0xdd2   : > { %4153 = vmatmul.mubr.msk.bf16.vlgmr.msra.gmra.mxu1 %vm1303_vm1, %v3168_v8 }
 0xdd3   : > { %4180 = vmatprep.mubr.msk.bf16.mxu1 %vm5201_vm0, %v5200_v0 }
 0xe92   : > { %v3229_v10 = vpop.f32.mrf.mxu1 }
 0xe93   : > { %v3230_v11 = vadd.f32 %v3902_v9, %v3229_v10  ;;  %v3922_v9 = vld [vmem:[#allocation32] ss:$0 sm:$0xff] }
 0xe94   : > { %v4154_v12 = vpop.f32.mrf.mxu1 }
 0xe95   : > { %v3235_v13 = vadd.f32 %v3230_v11, %v5793_v53  ;;  %v4469_v53 = vld [vmem:[%s5356_s25 + $0x38] sm:$0xff]  }
 0xe96   : > { %v3232_v14 = vpop.f32.mrf.mxu1  ;;  %4165 = vmatpush3.bf16.msra.mxu1 %v4469_v53 }
 0xe97   : > { %v3238_v15 = vsel %vm1303_vm1, %v3235_v13, 0.0  ;;  %4166 = vmatprep.subr.bf16.mxu1 %v5200_v0 }
 0xe98   : > { %3239 = vadd.xlane.f32.xlu1 %v3238_v15  ;;  %v4155_v16 = vpop.f32.mrf.mxu1 }
 0xe9a   : > { %4167 = vmatpush3.bf16.msra.mxu1 %v4470_v26 }
 0xe9b   : > { %4168 = vmatprep.subr.bf16.mxu1 %v5200_v0 }
 0xe9e   : > { %4169 = vmatpush3.bf16.msra.mxu1 %v4471_v36 }
 0xe9f   : > { %4170 = vmatprep.subr.bf16.mxu1 %v5200_v0 }
 0xea2   : > { %4171 = vmatpush3.bf16.msra.mxu1 %v4472_v37 }
 0xea3   : > { %4172 = vmatprep.subr.bf16.mxu1 %v5200_v0 }
 0xea6   : > { %4173 = vmatpush3.bf16.msra.mxu1 %v4473_v38 }
 0xea7   : > { %4174 = vmatprep.subr.bf16.mxu1 %v5200_v0 }
 0xeaa   : > { %4175 = vmatpush3.bf16.msra.mxu1 %v4474_v39 }
 0xeab   : > { %4176 = vmatprep.subr.bf16.mxu1 %v5200_v0 }
 0xeae   : > { %4177 = vmatpush3.bf16.msra.mxu1 %v4475_v40 }
 0xeaf   : > { %4178 = vmatprep.subr.bf16.mxu1 %v5200_v0 }
 0xeb2   : > { %4179 = vmatpush3.bf16.msra.mxu1 %v4476_v41 }
 0xf21   : > { %v3240_v17 = vpop.xlane.xlu1 %3239 }
 0xf22   : > { %v3241_v18 = vmul.f32 0.03125, %v3240_v17 }
 0xf24   : > { %v3242_v20 = vsub.f32 %v3235_v13, %v3241_v18 }
 0xf26   : > { %v3243_v22 = vmul.f32 %v3242_v20, %v3242_v20 }
 0xf28   : > { %v3244_v23 = vsel %vm1303_vm1, %v3243_v22, 0.0 }
 0xf29   : > { %3245 = vadd.xlane.f32.xlu0 %v3244_v23 }
 0xfb2   : > { %v3246_v27 = vpop.xlane.xlu0 %3245 }
 0xfb3   : > { %v3247_v28 = vmul.f32 0.03125, %v3246_v27 }
 0xfb5   : > { %v3248_v29 = vadd.f32 1e-05, %v3247_v28 }
 0xfb7   : > { %4511 = vrsqrt.f32 %v3248_v29 }
 0xfc4   : > { %v4512_v30 = vpop.eup %4511 }
 0xfc5   : > { %v3250_v33 = vmul.f32 %v4512_v30, %v3242_v20 }
 0xfc7   : > { %v3257_v19 = vmul.f32 %v3906_v31, %v3250_v33 }
 0xfc9   : > { %v3264_v35 = vadd.f32 %v3907_v34, %v3257_v19 }
 0xfcb   : > { %v3265_v21 = vpack.c.bf16 %v3264_v35, %v3264_v35 }
 0xfcd   : > { %4161 = vmatmul.mubr.msk.bf16.vlgmr.msra.gmra.mxu0 %vm1303_vm1, %v3265_v21 }
0x108d   : > { %v3326_v42 = vpop.f32.mrf.mxu0 }
0x108e   : > { %v3327_v43 = vadd.f32 %v3908_v3, %v3326_v42 }
0x108f   : > { %v4162_v44 = vpop.f32.mrf.mxu0 }
0x1090   : > { %v3334_v45 = vmul.f32 0.70710677, %v3327_v43  ;;  %v3332_v49 = vmul.f32 0.5, %v3327_v43 }
0x1091   : > { %v3329_v46 = vpop.f32.mrf.mxu0 }
0x1092   : > { %4513 = verf.f32 %v3334_v45 }
0x1093   : > { %v4163_v47 = vpop.f32.mrf.mxu0 }
0x109f   : > { %v4514_v48 = vpop.eup %4513 }
0x10a0   : > { %v3336_v50 = vadd.f32 1.0, %v4514_v48 }
0x10a2   : > { %v3337_v51 = vmul.f32 %v3336_v50, %v3332_v49 }
0x10a4   : > { %v3338_v32 = vpack.c.bf16 %v3337_v51, %v3337_v51 }
0x10a6   : > { %4181 = vmatmul.mubr.bf16.vlgmr.msra.gmra.mxu1 %v3338_v32 }
0x1166   : > { %v3444_v54 = vpop.f32.mrf.mxu1 }
0x1167   : > { %v3445_v0 = vadd.f32 %v3912_v52, %v3444_v54 }
0x1168   : > { %v4182_v55 = vpop.f32.mrf.mxu1 }
0x1169   : > { %v3450_v56 = vadd.f32 %v3445_v0, %v3264_v35 }
0x116a   : > { %v3447_v57 = vpop.f32.mrf.mxu1 }
0x116b   : > { %v3453_v58 = vsel %vm1303_vm1, %v3450_v56, 0.0 }
0x116c   : > { %3454 = vadd.xlane.f32.xlu1 %v3453_v58  ;;  %v4183_v59 = vpop.f32.mrf.mxu1 }
0x11f5   : > { %v3455_v60 = vpop.xlane.xlu1 %3454 }
0x11f6   : > { %v3456_v61 = vmul.f32 0.03125, %v3455_v60 }
0x11f8   : > { %v3457_v62 = vsub.f32 %v3450_v56, %v3456_v61 }
0x11fa   : > { %v3458_v63 = vmul.f32 %v3457_v62, %v3457_v62 }
0x11fc   : > { %v3459_v1 = vsel %vm1303_vm1, %v3458_v63, 0.0 }
0x11fd   : > { %3460 = vadd.xlane.f32.xlu0 %v3459_v1 }
0x1286   : > { %v3461_v2 = vpop.xlane.xlu0 %3460 }
0x1287   : > { %v3462_v4 = vmul.f32 0.03125, %v3461_v2 }
0x1289   : > { %v3463_v5 = vadd.f32 1e-05, %v3462_v4 }
0x128b   : > { %4515 = vrsqrt.f32 %v3463_v5 }
0x1298   : > { %v4516_v6 = vpop.eup %4515 }
0x1299   : > { %v3465_v8 = vmul.f32 %v4516_v6, %v3457_v62 }
0x129b   : > { %v3472_v10 = vmul.f32 %v3921_v7, %v3465_v8 }
0x129d   : > { %v3479_v11 = vadd.f32 %v3922_v9, %v3472_v10 }
0x129f   : > { %3480 = vst.msk [vmem:[%s1263_s14] sm:$0xff] %vm1303_vm1, %v3479_v11 }
0x12a0   : > { %5054 = shalt.err (!%p5051_p0)
}
0x12a1   : > { %s5055_s2 = scalar_lea.hbm %s3493_s12, 128  ;;  %s5059_s9 = scalar_lea.hbm %s6033_s30, 256 }
0x12a2   : > { %p5056_p6 = scmp.ne.s32.totalorder %s3493_s12, %s5055_s2  ;;  %p5060_p1 = scmp.lt.s32.totalorder %s3493_s12, %s6033_s30 }
0x12a3   : > { %p5061_p3 = scmp.lt.s32.totalorder %s5059_s9, %s5055_s2 }
0x12a4   : > { %p5057_p7 = pnand %p5056_p6, %p6034_p11 }
0x12a5   : > { %p5062_p10 = por %p5061_p3, %p5060_p1 }
0x12a6   : > { %p5058_p2 = pneg %p5057_p7 }
0x12a8   : > { %p5063_p13 = pnand %p5062_p10, %p5058_p2 }
0x12aa   : > { %5066 = shalt.err (!%p5063_p13)
}
0x12ab   : > { %4260 = dma.vmem_to_hbm [thread:$0]  (%p6034_p11), %s3496_s16, 128, %s3493_s12, %s3482_s5  }
0x12ac PF: > { %s3507_s19 = sand.u32 1, %s5133_s22   ;;  %p6035_p12 = scmp.ne.s32.totalorder %s5988_s28, 0 }
0x12ad   : > { %p6036_p8 = scmp.ge.s32.totalorder %s5145_s26, 2  ;;  %s3508_s29 = scalar_lea.sflag [#allocation4], %s3507_s19 }
0x12af   : > { %p4325_p4 = pnand %p6036_p8, %p6035_p12 }
0x12b1   : > { %p4326_p9 = pneg %p4325_p4 }
0x12b3   : > { %5128 = dma.done.wait (%p4326_p9), %s3508_s29, 128  }
0x12b4   : > { %5130 = vsyncadd (%p4326_p9), %s3508_s29, 4294967168  ;;  %s6037_s27 = sld [smem:[#allocation74_spill]]  ;;  %p86_p5 = scmp.ge.s32.totalorder %s5474_s15, 4  }
0x12b5   : > { %s6038_s22 = smov %s5137_s23  ;;  %s6039_s23 = smov %s5141_s0 }
0x12b6   : > { %s6041_s26 = smov %s5474_s15  ;;  %88 = sbr.rel (!%p86_p5) target bundleno = 79 (0x4f), region = 310 }
0x12ba   : > { %s6040_s0 = smov %s6037_s27 }
0x12bb   :  { %3513 = vsyncpa [#allocation3], 1 }
0x12bc   :  { %3515 = vsyncpa [#allocation3 + $0x1], 1 }
0x12bd   :  { %3516 = vsyncpa [#allocation6], 1 }
0x12be   :  { %3518 = vsyncpa [#allocation6 + $0x1], 1 }
0x12bf   :  { %3519 = vsyncpa [#allocation9], 1 }
0x12c0   :  { %3520 = vsyncpa [#allocation12], 1 }
0x12c1   :  { %3521 = vsyncpa [#allocation15], 1 }
0x12c2   :  { %3522 = vsyncpa [#allocation18], 1 }
0x12c3   :  { %3523 = vsyncpa [#allocation21], 1 }
0x12c4   :  { %3524 = vsyncpa [#allocation24], 1 }
0x12c5   :  { %3525 = vsyncpa [#allocation27], 1 }
0x12c6   :  { %3526 = vsyncpa [#allocation30], 1 }
0x12c7   :  { %3527 = vsyncpa [#allocation33], 1 }
0x12c8   :  { %3528 = vsyncpa [#allocation4], 1 }
0x12c9   :  { %3530 = vsyncpa [#allocation4 + $0x1], 1 }

</bundles_post_ra>
